<compile_context>
chip_gen: v7x
topology: tpu7x:2x2x1
jax: 0.10.0
libtpu: 0.0.40
codegen_flags: <defaults>
</compile_context>

<pallas_src>
import functools
import math

import jax
import jax.numpy as jnp
from jax.experimental import pallas as pl
from jax.experimental.pallas import tpu as pltpu


def _gelu_tanh(x):
    # tanh-form GELU: transcendental on the EUP, only a few VALU ops.
    c = 0.7978845608028654  # sqrt(2/pi)
    return 0.5 * x * (1.0 + jnp.tanh(c * (x + 0.044715 * x * x * x)))


def _layernorm(x, gamma, beta, eps):
    # One-pass statistics: the two reductions are independent (not serialized through x - mu).
    mu = jnp.mean(x, axis=-1, keepdims=True)
    ms = jnp.mean(x * x, axis=-1, keepdims=True)
    var = ms - mu * mu
    inv = jax.lax.rsqrt(var + eps)          # rsqrt + mul instead of sqrt + divide
    return (x - mu) * inv * gamma + beta


def _block_kernel(x_ref, g1_ref, b1_ref, wqkv_ref, wproj_ref, bproj_ref,
                  g2_ref, b2_ref, w1_ref, bf1_ref, w2_ref, bf2_ref,
                  o_ref, *, num_heads, scale, eps):
    x = x_ref[...]                          # (N, C) f32 -- one batch element
    N, C = x.shape
    dh = C // num_heads

    # ---------------- Attention branch ----------------
    xn = _layernorm(x, g1_ref[...], b1_ref[...], eps)
    qkv = jnp.dot(xn.astype(jnp.bfloat16), wqkv_ref[...],
                  preferred_element_type=jnp.float32)        # (N, 3C) f32, bf16 MXU
    q = qkv[:, 0:C] * scale                 # fold softmax scale into q
    k = qkv[:, C:2 * C]
    v = qkv[:, 2 * C:3 * C]

    # Accumulate each head's contribution straight into the projection output:
    # attn_out = sum_h softmax(q_h k_h^T) v_h @ wproj[h*dh:(h+1)*dh, :]
    acc = jnp.zeros((N, C), jnp.float32)
    for h in range(num_heads):              # static unroll; intermediates die each iter
        lo = h * dh
        q_h = q[:, lo:lo + dh].astype(jnp.bfloat16)
        k_h = k[:, lo:lo + dh].astype(jnp.bfloat16)
        v_h = v[:, lo:lo + dh].astype(jnp.bfloat16)
        # q_h @ k_h^T without materializing a transpose (contract last axes of both).
        s = jax.lax.dot_general(q_h, k_h, (((1,), (1,)), ((), ())),
                                preferred_element_type=jnp.float32)     # (N, N)
        s = s - jnp.max(s, axis=-1, keepdims=True)
        p = jnp.exp(s)
        r = pl.reciprocal(jnp.sum(p, axis=-1, keepdims=True), approx=True)   # (N, 1), EUP
        pv = jnp.dot(p.astype(jnp.bfloat16), v_h,
                     preferred_element_type=jnp.float32)                # (N, dh)
        head = pv * r                       # normalize the small (N, dh) tile, not (N, N)
        acc = acc + jnp.dot(head.astype(jnp.bfloat16), wproj_ref[lo:lo + dh, :],
                            preferred_element_type=jnp.float32)         # (N, C)
    x1 = x + acc + bproj_ref[...]           # residual 1 (+ proj bias once)

    # ---------------- MLP branch ----------------
    yn = _layernorm(x1, g2_ref[...], b2_ref[...], eps)
    h1 = jnp.dot(yn.astype(jnp.bfloat16), w1_ref[...],
                 preferred_element_type=jnp.float32) + bf1_ref[...]     # (N, H)
    h1 = _gelu_tanh(h1)
    h2 = jnp.dot(h1.astype(jnp.bfloat16), w2_ref[...],
                 preferred_element_type=jnp.float32) + bf2_ref[...]     # (N, C)

    o_ref[...] = x1 + h2                    # residual 2 (lane-dense, multiple of 128)


def vit_block(x, params, *, num_heads, eps=1e-5):
    """x: (B, N, C) f32; params: dict of weights laid out as (in, out); returns (B, N, C) f32."""
    B, N, C = x.shape
    H = params["w1"].shape[1]
    assert C % num_heads == 0
    scale = float((C // num_heads) ** -0.5)

    # Matmul weights stored / DMA'd / held resident in bf16 (halves weight VMEM, MXU-native).
    # Biases and LayerNorm affine params stay f32 (tiny, keep additive accuracy).
    wqkv = params["wqkv"].astype(jnp.bfloat16)
    wproj = params["wproj"].astype(jnp.bfloat16)
    w1 = params["w1"].astype(jnp.bfloat16)
    w2 = params["w2"].astype(jnp.bfloat16)

    kernel = functools.partial(_block_kernel, num_heads=num_heads,
                               scale=scale, eps=float(eps))

    row_spec = pl.BlockSpec((None, N, C), lambda b: (b, 0, 0))   # one batch element / step

    def const(shape, single_buffer):
        # Constant index_map -> weight stays VMEM-resident across grid steps. With
        # single_buffer, request 1 buffer instead of the default 2 (VMEM headroom on v7x).
        idx = lambda b: (0,) * len(shape)
        if single_buffer:
            return pl.BlockSpec(shape, idx, pipeline_mode=pl.Buffered(1))
        return pl.BlockSpec(shape, idx)

    def run(single_buffer_weights):
        c = functools.partial(const, single_buffer=single_buffer_weights)
        return pl.pallas_call(
            kernel,
            out_shape=jax.ShapeDtypeStruct((B, N, C), jnp.float32),
            grid=(B,),
            in_specs=[
                row_spec,                     # x
                c((1, C)), c((1, C)),         # norm1 gamma / beta (f32)
                c((C, 3 * C)),                # qkv weight (bf16, qkv_bias=False)
                c((C, C)), c((1, C)),         # proj weight (bf16) / bias (f32)
                c((1, C)), c((1, C)),         # norm2 gamma / beta (f32)
                c((C, H)), c((1, H)),         # fc1 weight (bf16) / bias (f32)
                c((H, C)), c((1, C)),         # fc2 weight (bf16) / bias (f32)
            ],
            out_specs=row_spec,
            compiler_params=pltpu.CompilerParams(
                dimension_semantics=("parallel",),
                vmem_limit_bytes=64 * 1024 * 1024),
        )(x, params["g1"], params["b1"], wqkv, wproj, params["bproj"],
          params["g2"], params["b2"], w1, params["bf1"], w2, params["bf2"])

    try:
        return run(True)
    except Exception:
        # pipeline_mode=pl.Buffered(1) not supported by this jax version/backend;
        # fall back to default double-buffered weight specs (correctness unchanged).
        return run(False)


def block_reference(x, p, *, num_heads, eps=1e-5):
    """Pure-JAX f32 reference with the exact PyTorch Block math."""
    def ln(z, g, b):
        mu = z.mean(-1, keepdims=True)
        var = ((z - mu) ** 2).mean(-1, keepdims=True)
        return (z - mu) / jnp.sqrt(var + eps) * g + b

    B, N, C = x.shape
    dh = C // num_heads
    scale = dh ** -0.5

    xn = ln(x, p["g1"], p["b1"])
    qkv = xn @ p["wqkv"]
    qkv = qkv.reshape(B, N, 3, num_heads, dh).transpose(2, 0, 3, 1, 4)
    q, k, v = qkv[0], qkv[1], qkv[2]                      # (B, nh, N, dh)
    attn = jax.nn.softmax((q @ jnp.swapaxes(k, -1, -2)) * scale, axis=-1)
    out = (attn @ v).transpose(0, 2, 1, 3).reshape(B, N, C)
    out = out @ p["wproj"] + p["bproj"]
    x = x + out

    yn = ln(x, p["g2"], p["b2"])
    h = yn @ p["w1"] + p["bf1"]
    h = 0.5 * h * (1.0 + jax.scipy.special.erf(h / math.sqrt(2.0)))   # exact GELU
    h = h @ p["w2"] + p["bf2"]
    return x + h


if __name__ == "__main__":
    B, N, C = 2, 64, 128         # batch, tokens, embed dim (lane-dense last dim)
    NUM_HEADS = 4                # head_dim = 32
    H = 4 * C                    # mlp_ratio = 4.0 -> hidden = 512

    key = jax.random.PRNGKey(0)
    ks = jax.random.split(key, 12)

    def linear_init(k, fan_in, shape):
        bound = 1.0 / math.sqrt(fan_in)
        return jax.random.uniform(k, shape, jnp.float32, -bound, bound)

    x = jax.random.normal(ks[0], (B, N, C), dtype=jnp.float32)
    params = {
        "g1": 1.0 + 0.1 * jax.random.normal(ks[1], (1, C), jnp.float32),
        "b1": 0.1 * jax.random.normal(ks[2], (1, C), jnp.float32),
        "wqkv": linear_init(ks[3], C, (C, 3 * C)),          # no qkv bias
        "wproj": linear_init(ks[4], C, (C, C)),
        "bproj": linear_init(ks[5], C, (1, C)),
        "g2": 1.0 + 0.1 * jax.random.normal(ks[6], (1, C), jnp.float32),
        "b2": 0.1 * jax.random.normal(ks[7], (1, C), jnp.float32),
        "w1": linear_init(ks[8], C, (C, H)),
        "bf1": linear_init(ks[9], C, (1, H)),
        "w2": linear_init(ks[10], H, (H, C)),
        "bf2": linear_init(ks[11], H, (1, C)),
    }

    out = vit_block(x, params, num_heads=NUM_HEADS)
    jax.block_until_ready(out)

    ref = block_reference(x, params, num_heads=NUM_HEADS)
    assert out.shape == ref.shape
    # bf16 matmul operands + approx reciprocal + tanh GELU -> compare at bf16-level tolerance.
    max_err = float(jnp.max(jnp.abs(out - ref)))
    assert jnp.allclose(out, ref, atol=2e-2, rtol=2e-2), f"mismatch vs reference: {max_err}"

    print("KERNEL_OK")
</pallas_src>

<mosaic_0001>
module attributes {stable_mosaic.version = 11 : i64} {
  func.func @_block_kernel(%arg0: i32, %arg1: memref<1x64x128xf32, #tpu.memory_space<vmem>>, %arg2: memref<1x128xf32, #tpu.memory_space<vmem>>, %arg3: memref<1x128xf32, #tpu.memory_space<vmem>>, %arg4: memref<128x384xbf16, #tpu.memory_space<vmem>>, %arg5: memref<128x128xbf16, #tpu.memory_space<vmem>>, %arg6: memref<1x128xf32, #tpu.memory_space<vmem>>, %arg7: memref<1x128xf32, #tpu.memory_space<vmem>>, %arg8: memref<1x128xf32, #tpu.memory_space<vmem>>, %arg9: memref<128x512xbf16, #tpu.memory_space<vmem>>, %arg10: memref<1x512xf32, #tpu.memory_space<vmem>>, %arg11: memref<512x128xbf16, #tpu.memory_space<vmem>>, %arg12: memref<1x128xf32, #tpu.memory_space<vmem>>, %arg13: memref<1x64x128xf32, #tpu.memory_space<vmem>>) attributes {dimension_semantics = [#tpu.dimension_semantics<parallel>], iteration_bounds = array<i64: 2>, scalar_prefetch = 0 : i64, scratch_operands = 0 : i64, tpu.core_type = #tpu.core_type<tc>, window_params = [{transform_indices = @transform_0, window_bounds = array<i64: 1, 64, 128>}, {pipeline_mode = #tpu.pipeline_mode<synchronous>, transform_indices = @transform_1, window_bounds = array<i64: 1, 128>}, {pipeline_mode = #tpu.pipeline_mode<synchronous>, transform_indices = @transform_2, window_bounds = array<i64: 1, 128>}, {pipeline_mode = #tpu.pipeline_mode<synchronous>, transform_indices = @transform_3, window_bounds = array<i64: 128, 384>}, {pipeline_mode = #tpu.pipeline_mode<synchronous>, transform_indices = @transform_4, window_bounds = array<i64: 128, 128>}, {pipeline_mode = #tpu.pipeline_mode<synchronous>, transform_indices = @transform_5, window_bounds = array<i64: 1, 128>}, {pipeline_mode = #tpu.pipeline_mode<synchronous>, transform_indices = @transform_6, window_bounds = array<i64: 1, 128>}, {pipeline_mode = #tpu.pipeline_mode<synchronous>, transform_indices = @transform_7, window_bounds = array<i64: 1, 128>}, {pipeline_mode = #tpu.pipeline_mode<synchronous>, transform_indices = @transform_8, window_bounds = array<i64: 128, 512>}, {pipeline_mode = #tpu.pipeline_mode<synchronous>, transform_indices = @transform_9, window_bounds = array<i64: 1, 512>}, {pipeline_mode = #tpu.pipeline_mode<synchronous>, transform_indices = @transform_10, window_bounds = array<i64: 512, 128>}, {pipeline_mode = #tpu.pipeline_mode<synchronous>, transform_indices = @transform_11, window_bounds = array<i64: 1, 128>}, {transform_indices = @transform_12, window_bounds = array<i64: 1, 64, 128>}]} {
    %c0 = arith.constant 0 : index
    %c0_0 = arith.constant 0 : index
    %c0_1 = arith.constant 0 : index
    %0 = vector.load %arg1[%c0, %c0_0, %c0_1] : memref<1x64x128xf32, #tpu.memory_space<vmem>>, vector<1x64x128xf32>
    %1 = vector.shape_cast %0 : vector<1x64x128xf32> to vector<64x128xf32>
    %c0_2 = arith.constant 0 : index
    %c0_3 = arith.constant 0 : index
    %2 = vector.load %arg2[%c0_2, %c0_3] : memref<1x128xf32, #tpu.memory_space<vmem>>, vector<1x128xf32>
    %c0_4 = arith.constant 0 : index
    %c0_5 = arith.constant 0 : index
    %3 = vector.load %arg3[%c0_4, %c0_5] : memref<1x128xf32, #tpu.memory_space<vmem>>, vector<1x128xf32>
    %cst = arith.constant dense<0.000000e+00> : vector<64xf32>
    %4 = vector.multi_reduction <add>, %1, %cst [1] : vector<64x128xf32> to vector<64xf32>
    %5 = vector.shape_cast %4 : vector<64xf32> to vector<64x1xf32>
    %cst_6 = arith.constant 1.280000e+02 : f32
    %6 = vector.broadcast %cst_6 : f32 to vector<64x1xf32>
    %7 = arith.divf %5, %6 : vector<64x1xf32>
    %8 = arith.mulf %1, %1 : vector<64x128xf32>
    %cst_7 = arith.constant dense<0.000000e+00> : vector<64xf32>
    %9 = vector.multi_reduction <add>, %8, %cst_7 [1] : vector<64x128xf32> to vector<64xf32>
    %10 = vector.shape_cast %9 : vector<64xf32> to vector<64x1xf32>
    %cst_8 = arith.constant 1.280000e+02 : f32
    %11 = vector.broadcast %cst_8 : f32 to vector<64x1xf32>
    %12 = arith.divf %10, %11 : vector<64x1xf32>
    %13 = arith.mulf %7, %7 : vector<64x1xf32>
    %14 = arith.subf %12, %13 : vector<64x1xf32>
    %cst_9 = arith.constant 9.99999974E-6 : f32
    %15 = vector.broadcast %cst_9 : f32 to vector<64x1xf32>
    %16 = arith.addf %14, %15 : vector<64x1xf32>
    %17 = math.rsqrt %16 : vector<64x1xf32>
    %18 = vector.broadcast %7 : vector<64x1xf32> to vector<64x128xf32>
    %19 = arith.subf %1, %18 : vector<64x128xf32>
    %20 = vector.broadcast %17 : vector<64x1xf32> to vector<64x128xf32>
    %21 = arith.mulf %19, %20 : vector<64x128xf32>
    %22 = vector.broadcast %2 : vector<1x128xf32> to vector<64x128xf32>
    %23 = arith.mulf %21, %22 : vector<64x128xf32>
    %24 = vector.broadcast %3 : vector<1x128xf32> to vector<64x128xf32>
    %25 = arith.addf %23, %24 : vector<64x128xf32>
    %26 = arith.truncf %25 : vector<64x128xf32> to vector<64x128xbf16>
    %c0_10 = arith.constant 0 : index
    %c0_11 = arith.constant 0 : index
    %27 = vector.load %arg4[%c0_10, %c0_11] : memref<128x384xbf16, #tpu.memory_space<vmem>>, vector<128x384xbf16>
    %cst_12 = arith.constant dense<0.000000e+00> : vector<64x384xf32>
    %28 = tpu.matmul %26, %27, %cst_12 {dimension_numbers = #tpu.dot_dimension_numbers<[1], [0], [0], [1], [0, 0, 1, 1], [], []>} : vector<64x128xbf16>, vector<128x384xbf16>, vector<64x384xf32> -> vector<64x384xf32>
    %29 = vector.extract_strided_slice %28 {offsets = [0, 0], sizes = [64, 128], strides = [1, 1]} : vector<64x384xf32> to vector<64x128xf32>
    %cst_13 = arith.constant 0.176776692 : f32
    %30 = vector.broadcast %cst_13 : f32 to vector<64x128xf32>
    %31 = arith.mulf %29, %30 : vector<64x128xf32>
    %32 = vector.extract_strided_slice %28 {offsets = [0, 128], sizes = [64, 128], strides = [1, 1]} : vector<64x384xf32> to vector<64x128xf32>
    %33 = vector.extract_strided_slice %28 {offsets = [0, 256], sizes = [64, 128], strides = [1, 1]} : vector<64x384xf32> to vector<64x128xf32>
    %cst_14 = arith.constant 0.000000e+00 : f32
    %34 = vector.broadcast %cst_14 : f32 to vector<64x128xf32>
    %35 = vector.extract_strided_slice %31 {offsets = [0, 0], sizes = [64, 32], strides = [1, 1]} : vector<64x128xf32> to vector<64x32xf32>
    %36 = arith.truncf %35 : vector<64x32xf32> to vector<64x32xbf16>
    %37 = vector.extract_strided_slice %32 {offsets = [0, 0], sizes = [64, 32], strides = [1, 1]} : vector<64x128xf32> to vector<64x32xf32>
    %38 = arith.truncf %37 : vector<64x32xf32> to vector<64x32xbf16>
    %39 = vector.extract_strided_slice %33 {offsets = [0, 0], sizes = [64, 32], strides = [1, 1]} : vector<64x128xf32> to vector<64x32xf32>
    %40 = arith.truncf %39 : vector<64x32xf32> to vector<64x32xbf16>
    %cst_15 = arith.constant dense<0.000000e+00> : vector<64x64xf32>
    %41 = tpu.matmul %36, %38, %cst_15 {dimension_numbers = #tpu.dot_dimension_numbers<[1], [1], [0], [0], [0, 0, 1, 0], [], []>} : vector<64x32xbf16>, vector<64x32xbf16>, vector<64x64xf32> -> vector<64x64xf32>
    %cst_16 = arith.constant dense<0xFF800000> : vector<64xf32>
    %42 = vector.multi_reduction <maximumf>, %41, %cst_16 [1] : vector<64x64xf32> to vector<64xf32>
    %43 = vector.shape_cast %42 : vector<64xf32> to vector<64x1xf32>
    %44 = vector.broadcast %43 : vector<64x1xf32> to vector<64x64xf32>
    %45 = arith.subf %41, %44 : vector<64x64xf32>
    %46 = math.exp %45 : vector<64x64xf32>
    %cst_17 = arith.constant dense<0.000000e+00> : vector<64xf32>
    %47 = vector.multi_reduction <add>, %46, %cst_17 [1] : vector<64x64xf32> to vector<64xf32>
    %48 = vector.shape_cast %47 : vector<64xf32> to vector<64x1xf32>
    %49 = tpu.reciprocal %48 {approx = true} : vector<64x1xf32> -> vector<64x1xf32>
    %50 = arith.truncf %46 : vector<64x64xf32> to vector<64x64xbf16>
    %cst_18 = arith.constant dense<0.000000e+00> : vector<64x32xf32>
    %51 = tpu.matmul %50, %40, %cst_18 {dimension_numbers = #tpu.dot_dimension_numbers<[1], [0], [0], [1], [0, 0, 1, 1], [], []>} : vector<64x64xbf16>, vector<64x32xbf16>, vector<64x32xf32> -> vector<64x32xf32>
    %52 = vector.broadcast %49 : vector<64x1xf32> to vector<64x32xf32>
    %53 = arith.mulf %51, %52 : vector<64x32xf32>
    %54 = arith.truncf %53 : vector<64x32xf32> to vector<64x32xbf16>
    %c0_19 = arith.constant 0 : index
    %c0_20 = arith.constant 0 : index
    %55 = vector.load %arg5[%c0_19, %c0_20] : memref<128x128xbf16, #tpu.memory_space<vmem>>, vector<32x128xbf16>
    %cst_21 = arith.constant dense<0.000000e+00> : vector<64x128xf32>
    %56 = tpu.matmul %54, %55, %cst_21 {dimension_numbers = #tpu.dot_dimension_numbers<[1], [0], [0], [1], [0, 0, 1, 1], [], []>} : vector<64x32xbf16>, vector<32x128xbf16>, vector<64x128xf32> -> vector<64x128xf32>
    %57 = arith.addf %34, %56 : vector<64x128xf32>
    %58 = vector.extract_strided_slice %31 {offsets = [0, 32], sizes = [64, 32], strides = [1, 1]} : vector<64x128xf32> to vector<64x32xf32>
    %59 = arith.truncf %58 : vector<64x32xf32> to vector<64x32xbf16>
    %60 = vector.extract_strided_slice %32 {offsets = [0, 32], sizes = [64, 32], strides = [1, 1]} : vector<64x128xf32> to vector<64x32xf32>
    %61 = arith.truncf %60 : vector<64x32xf32> to vector<64x32xbf16>
    %62 = vector.extract_strided_slice %33 {offsets = [0, 32], sizes = [64, 32], strides = [1, 1]} : vector<64x128xf32> to vector<64x32xf32>
    %63 = arith.truncf %62 : vector<64x32xf32> to vector<64x32xbf16>
    %cst_22 = arith.constant dense<0.000000e+00> : vector<64x64xf32>
    %64 = tpu.matmul %59, %61, %cst_22 {dimension_numbers = #tpu.dot_dimension_numbers<[1], [1], [0], [0], [0, 0, 1, 0], [], []>} : vector<64x32xbf16>, vector<64x32xbf16>, vector<64x64xf32> -> vector<64x64xf32>
    %cst_23 = arith.constant dense<0xFF800000> : vector<64xf32>
    %65 = vector.multi_reduction <maximumf>, %64, %cst_23 [1] : vector<64x64xf32> to vector<64xf32>
    %66 = vector.shape_cast %65 : vector<64xf32> to vector<64x1xf32>
    %67 = vector.broadcast %66 : vector<64x1xf32> to vector<64x64xf32>
    %68 = arith.subf %64, %67 : vector<64x64xf32>
    %69 = math.exp %68 : vector<64x64xf32>
    %cst_24 = arith.constant dense<0.000000e+00> : vector<64xf32>
    %70 = vector.multi_reduction <add>, %69, %cst_24 [1] : vector<64x64xf32> to vector<64xf32>
    %71 = vector.shape_cast %70 : vector<64xf32> to vector<64x1xf32>
    %72 = tpu.reciprocal %71 {approx = true} : vector<64x1xf32> -> vector<64x1xf32>
    %73 = arith.truncf %69 : vector<64x64xf32> to vector<64x64xbf16>
    %cst_25 = arith.constant dense<0.000000e+00> : vector<64x32xf32>
    %74 = tpu.matmul %73, %63, %cst_25 {dimension_numbers = #tpu.dot_dimension_numbers<[1], [0], [0], [1], [0, 0, 1, 1], [], []>} : vector<64x64xbf16>, vector<64x32xbf16>, vector<64x32xf32> -> vector<64x32xf32>
    %75 = vector.broadcast %72 : vector<64x1xf32> to vector<64x32xf32>
    %76 = arith.mulf %74, %75 : vector<64x32xf32>
    %77 = arith.truncf %76 : vector<64x32xf32> to vector<64x32xbf16>
    %c32 = arith.constant 32 : index
    %c0_26 = arith.constant 0 : index
    %78 = vector.load %arg5[%c32, %c0_26] : memref<128x128xbf16, #tpu.memory_space<vmem>>, vector<32x128xbf16>
    %cst_27 = arith.constant dense<0.000000e+00> : vector<64x128xf32>
    %79 = tpu.matmul %77, %78, %cst_27 {dimension_numbers = #tpu.dot_dimension_numbers<[1], [0], [0], [1], [0, 0, 1, 1], [], []>} : vector<64x32xbf16>, vector<32x128xbf16>, vector<64x128xf32> -> vector<64x128xf32>
    %80 = arith.addf %57, %79 : vector<64x128xf32>
    %81 = vector.extract_strided_slice %31 {offsets = [0, 64], sizes = [64, 32], strides = [1, 1]} : vector<64x128xf32> to vector<64x32xf32>
    %82 = arith.truncf %81 : vector<64x32xf32> to vector<64x32xbf16>
    %83 = vector.extract_strided_slice %32 {offsets = [0, 64], sizes = [64, 32], strides = [1, 1]} : vector<64x128xf32> to vector<64x32xf32>
    %84 = arith.truncf %83 : vector<64x32xf32> to vector<64x32xbf16>
    %85 = vector.extract_strided_slice %33 {offsets = [0, 64], sizes = [64, 32], strides = [1, 1]} : vector<64x128xf32> to vector<64x32xf32>
    %86 = arith.truncf %85 : vector<64x32xf32> to vector<64x32xbf16>
    %cst_28 = arith.constant dense<0.000000e+00> : vector<64x64xf32>
    %87 = tpu.matmul %82, %84, %cst_28 {dimension_numbers = #tpu.dot_dimension_numbers<[1], [1], [0], [0], [0, 0, 1, 0], [], []>} : vector<64x32xbf16>, vector<64x32xbf16>, vector<64x64xf32> -> vector<64x64xf32>
    %cst_29 = arith.constant dense<0xFF800000> : vector<64xf32>
    %88 = vector.multi_reduction <maximumf>, %87, %cst_29 [1] : vector<64x64xf32> to vector<64xf32>
    %89 = vector.shape_cast %88 : vector<64xf32> to vector<64x1xf32>
    %90 = vector.broadcast %89 : vector<64x1xf32> to vector<64x64xf32>
    %91 = arith.subf %87, %90 : vector<64x64xf32>
    %92 = math.exp %91 : vector<64x64xf32>
    %cst_30 = arith.constant dense<0.000000e+00> : vector<64xf32>
    %93 = vector.multi_reduction <add>, %92, %cst_30 [1] : vector<64x64xf32> to vector<64xf32>
    %94 = vector.shape_cast %93 : vector<64xf32> to vector<64x1xf32>
    %95 = tpu.reciprocal %94 {approx = true} : vector<64x1xf32> -> vector<64x1xf32>
    %96 = arith.truncf %92 : vector<64x64xf32> to vector<64x64xbf16>
    %cst_31 = arith.constant dense<0.000000e+00> : vector<64x32xf32>
    %97 = tpu.matmul %96, %86, %cst_31 {dimension_numbers = #tpu.dot_dimension_numbers<[1], [0], [0], [1], [0, 0, 1, 1], [], []>} : vector<64x64xbf16>, vector<64x32xbf16>, vector<64x32xf32> -> vector<64x32xf32>
    %98 = vector.broadcast %95 : vector<64x1xf32> to vector<64x32xf32>
    %99 = arith.mulf %97, %98 : vector<64x32xf32>
    %100 = arith.truncf %99 : vector<64x32xf32> to vector<64x32xbf16>
    %c64 = arith.constant 64 : index
    %c0_32 = arith.constant 0 : index
    %101 = vector.load %arg5[%c64, %c0_32] : memref<128x128xbf16, #tpu.memory_space<vmem>>, vector<32x128xbf16>
    %cst_33 = arith.constant dense<0.000000e+00> : vector<64x128xf32>
    %102 = tpu.matmul %100, %101, %cst_33 {dimension_numbers = #tpu.dot_dimension_numbers<[1], [0], [0], [1], [0, 0, 1, 1], [], []>} : vector<64x32xbf16>, vector<32x128xbf16>, vector<64x128xf32> -> vector<64x128xf32>
    %103 = arith.addf %80, %102 : vector<64x128xf32>
    %104 = vector.extract_strided_slice %31 {offsets = [0, 96], sizes = [64, 32], strides = [1, 1]} : vector<64x128xf32> to vector<64x32xf32>
    %105 = arith.truncf %104 : vector<64x32xf32> to vector<64x32xbf16>
    %106 = vector.extract_strided_slice %32 {offsets = [0, 96], sizes = [64, 32], strides = [1, 1]} : vector<64x128xf32> to vector<64x32xf32>
    %107 = arith.truncf %106 : vector<64x32xf32> to vector<64x32xbf16>
    %108 = vector.extract_strided_slice %33 {offsets = [0, 96], sizes = [64, 32], strides = [1, 1]} : vector<64x128xf32> to vector<64x32xf32>
    %109 = arith.truncf %108 : vector<64x32xf32> to vector<64x32xbf16>
    %cst_34 = arith.constant dense<0.000000e+00> : vector<64x64xf32>
    %110 = tpu.matmul %105, %107, %cst_34 {dimension_numbers = #tpu.dot_dimension_numbers<[1], [1], [0], [0], [0, 0, 1, 0], [], []>} : vector<64x32xbf16>, vector<64x32xbf16>, vector<64x64xf32> -> vector<64x64xf32>
    %cst_35 = arith.constant dense<0xFF800000> : vector<64xf32>
    %111 = vector.multi_reduction <maximumf>, %110, %cst_35 [1] : vector<64x64xf32> to vector<64xf32>
    %112 = vector.shape_cast %111 : vector<64xf32> to vector<64x1xf32>
    %113 = vector.broadcast %112 : vector<64x1xf32> to vector<64x64xf32>
    %114 = arith.subf %110, %113 : vector<64x64xf32>
    %115 = math.exp %114 : vector<64x64xf32>
    %cst_36 = arith.constant dense<0.000000e+00> : vector<64xf32>
    %116 = vector.multi_reduction <add>, %115, %cst_36 [1] : vector<64x64xf32> to vector<64xf32>
    %117 = vector.shape_cast %116 : vector<64xf32> to vector<64x1xf32>
    %118 = tpu.reciprocal %117 {approx = true} : vector<64x1xf32> -> vector<64x1xf32>
    %119 = arith.truncf %115 : vector<64x64xf32> to vector<64x64xbf16>
    %cst_37 = arith.constant dense<0.000000e+00> : vector<64x32xf32>
    %120 = tpu.matmul %119, %109, %cst_37 {dimension_numbers = #tpu.dot_dimension_numbers<[1], [0], [0], [1], [0, 0, 1, 1], [], []>} : vector<64x64xbf16>, vector<64x32xbf16>, vector<64x32xf32> -> vector<64x32xf32>
    %121 = vector.broadcast %118 : vector<64x1xf32> to vector<64x32xf32>
    %122 = arith.mulf %120, %121 : vector<64x32xf32>
    %123 = arith.truncf %122 : vector<64x32xf32> to vector<64x32xbf16>
    %c96 = arith.constant 96 : index
    %c0_38 = arith.constant 0 : index
    %124 = vector.load %arg5[%c96, %c0_38] : memref<128x128xbf16, #tpu.memory_space<vmem>>, vector<32x128xbf16>
    %cst_39 = arith.constant dense<0.000000e+00> : vector<64x128xf32>
    %125 = tpu.matmul %123, %124, %cst_39 {dimension_numbers = #tpu.dot_dimension_numbers<[1], [0], [0], [1], [0, 0, 1, 1], [], []>} : vector<64x32xbf16>, vector<32x128xbf16>, vector<64x128xf32> -> vector<64x128xf32>
    %126 = arith.addf %103, %125 : vector<64x128xf32>
    %127 = arith.addf %1, %126 : vector<64x128xf32>
    %c0_40 = arith.constant 0 : index
    %c0_41 = arith.constant 0 : index
    %128 = vector.load %arg6[%c0_40, %c0_41] : memref<1x128xf32, #tpu.memory_space<vmem>>, vector<1x128xf32>
    %129 = vector.broadcast %128 : vector<1x128xf32> to vector<64x128xf32>
    %130 = arith.addf %127, %129 : vector<64x128xf32>
    %c0_42 = arith.constant 0 : index
    %c0_43 = arith.constant 0 : index
    %131 = vector.load %arg7[%c0_42, %c0_43] : memref<1x128xf32, #tpu.memory_space<vmem>>, vector<1x128xf32>
    %c0_44 = arith.constant 0 : index
    %c0_45 = arith.constant 0 : index
    %132 = vector.load %arg8[%c0_44, %c0_45] : memref<1x128xf32, #tpu.memory_space<vmem>>, vector<1x128xf32>
    %cst_46 = arith.constant dense<0.000000e+00> : vector<64xf32>
    %133 = vector.multi_reduction <add>, %130, %cst_46 [1] : vector<64x128xf32> to vector<64xf32>
    %134 = vector.shape_cast %133 : vector<64xf32> to vector<64x1xf32>
    %cst_47 = arith.constant 1.280000e+02 : f32
    %135 = vector.broadcast %cst_47 : f32 to vector<64x1xf32>
    %136 = arith.divf %134, %135 : vector<64x1xf32>
    %137 = arith.mulf %130, %130 : vector<64x128xf32>
    %cst_48 = arith.constant dense<0.000000e+00> : vector<64xf32>
    %138 = vector.multi_reduction <add>, %137, %cst_48 [1] : vector<64x128xf32> to vector<64xf32>
    %139 = vector.shape_cast %138 : vector<64xf32> to vector<64x1xf32>
    %cst_49 = arith.constant 1.280000e+02 : f32
    %140 = vector.broadcast %cst_49 : f32 to vector<64x1xf32>
    %141 = arith.divf %139, %140 : vector<64x1xf32>
    %142 = arith.mulf %136, %136 : vector<64x1xf32>
    %143 = arith.subf %141, %142 : vector<64x1xf32>
    %cst_50 = arith.constant 9.99999974E-6 : f32
    %144 = vector.broadcast %cst_50 : f32 to vector<64x1xf32>
    %145 = arith.addf %143, %144 : vector<64x1xf32>
    %146 = math.rsqrt %145 : vector<64x1xf32>
    %147 = vector.broadcast %136 : vector<64x1xf32> to vector<64x128xf32>
    %148 = arith.subf %130, %147 : vector<64x128xf32>
    %149 = vector.broadcast %146 : vector<64x1xf32> to vector<64x128xf32>
    %150 = arith.mulf %148, %149 : vector<64x128xf32>
    %151 = vector.broadcast %131 : vector<1x128xf32> to vector<64x128xf32>
    %152 = arith.mulf %150, %151 : vector<64x128xf32>
    %153 = vector.broadcast %132 : vector<1x128xf32> to vector<64x128xf32>
    %154 = arith.addf %152, %153 : vector<64x128xf32>
    %155 = arith.truncf %154 : vector<64x128xf32> to vector<64x128xbf16>
    %c0_51 = arith.constant 0 : index
    %c0_52 = arith.constant 0 : index
    %156 = vector.load %arg9[%c0_51, %c0_52] : memref<128x512xbf16, #tpu.memory_space<vmem>>, vector<128x512xbf16>
    %cst_53 = arith.constant dense<0.000000e+00> : vector<64x512xf32>
    %157 = tpu.matmul %155, %156, %cst_53 {dimension_numbers = #tpu.dot_dimension_numbers<[1], [0], [0], [1], [0, 0, 1, 1], [], []>} : vector<64x128xbf16>, vector<128x512xbf16>, vector<64x512xf32> -> vector<64x512xf32>
    %c0_54 = arith.constant 0 : index
    %c0_55 = arith.constant 0 : index
    %158 = vector.load %arg10[%c0_54, %c0_55] : memref<1x512xf32, #tpu.memory_space<vmem>>, vector<1x512xf32>
    %159 = vector.broadcast %158 : vector<1x512xf32> to vector<64x512xf32>
    %160 = arith.addf %157, %159 : vector<64x512xf32>
    %cst_56 = arith.constant 5.000000e-01 : f32
    %161 = vector.broadcast %cst_56 : f32 to vector<64x512xf32>
    %162 = arith.mulf %161, %160 : vector<64x512xf32>
    %cst_57 = arith.constant 4.471500e-02 : f32
    %163 = vector.broadcast %cst_57 : f32 to vector<64x512xf32>
    %164 = arith.mulf %163, %160 : vector<64x512xf32>
    %165 = arith.mulf %164, %160 : vector<64x512xf32>
    %166 = arith.mulf %165, %160 : vector<64x512xf32>
    %167 = arith.addf %160, %166 : vector<64x512xf32>
    %cst_58 = arith.constant 0.797884583 : f32
    %168 = vector.broadcast %cst_58 : f32 to vector<64x512xf32>
    %169 = arith.mulf %168, %167 : vector<64x512xf32>
    %170 = math.tanh %169 : vector<64x512xf32>
    %cst_59 = arith.constant 1.000000e+00 : f32
    %171 = vector.broadcast %cst_59 : f32 to vector<64x512xf32>
    %172 = arith.addf %171, %170 : vector<64x512xf32>
    %173 = arith.mulf %162, %172 : vector<64x512xf32>
    %174 = arith.truncf %173 : vector<64x512xf32> to vector<64x512xbf16>
    %c0_60 = arith.constant 0 : index
    %c0_61 = arith.constant 0 : index
    %175 = vector.load %arg11[%c0_60, %c0_61] : memref<512x128xbf16, #tpu.memory_space<vmem>>, vector<512x128xbf16>
    %cst_62 = arith.constant dense<0.000000e+00> : vector<64x128xf32>
    %176 = tpu.matmul %174, %175, %cst_62 {dimension_numbers = #tpu.dot_dimension_numbers<[1], [0], [0], [1], [0, 0, 1, 1], [], []>} : vector<64x512xbf16>, vector<512x128xbf16>, vector<64x128xf32> -> vector<64x128xf32>
    %c0_63 = arith.constant 0 : index
    %c0_64 = arith.constant 0 : index
    %177 = vector.load %arg12[%c0_63, %c0_64] : memref<1x128xf32, #tpu.memory_space<vmem>>, vector<1x128xf32>
    %178 = vector.broadcast %177 : vector<1x128xf32> to vector<64x128xf32>
    %179 = arith.addf %176, %178 : vector<64x128xf32>
    %180 = arith.addf %130, %179 : vector<64x128xf32>
    %c0_65 = arith.constant 0 : index
    %c0_66 = arith.constant 0 : index
    %c0_67 = arith.constant 0 : index
    %181 = vector.load %arg13[%c0_65, %c0_66, %c0_67] : memref<1x64x128xf32, #tpu.memory_space<vmem>>, vector<1x64x128xf32>
    %182 = vector.shape_cast %181 : vector<1x64x128xf32> to vector<64x128xf32>
    %183 = vector.shape_cast %180 : vector<64x128xf32> to vector<1x64x128xf32>
    tpu.vector_store %arg13[%c0_65, %c0_66, %c0_67], %183 {strides = array<i32>} : memref<1x64x128xf32, #tpu.memory_space<vmem>>, vector<1x64x128xf32>,
    return
  }
  func.func @transform_0(%arg0: i32) -> (i32, i32, i32) {
    %c0_i32 = arith.constant 0 : i32
    %c0_i32_0 = arith.constant 0 : i32
    %c0_i32_1 = arith.constant 0 : i32
    return %arg0, %c0_i32, %c0_i32_0 : i32, i32, i32
  }
  func.func @transform_1(%arg0: i32) -> (i32, i32) {
    %c0_i32 = arith.constant 0 : i32
    %c0_i32_0 = arith.constant 0 : i32
    %c0_i32_1 = arith.constant 0 : i32
    return %c0_i32, %c0_i32_0 : i32, i32
  }
  func.func @transform_2(%arg0: i32) -> (i32, i32) {
    %c0_i32 = arith.constant 0 : i32
    %c0_i32_0 = arith.constant 0 : i32
    %c0_i32_1 = arith.constant 0 : i32
    return %c0_i32, %c0_i32_0 : i32, i32
  }
  func.func @transform_3(%arg0: i32) -> (i32, i32) {
    %c0_i32 = arith.constant 0 : i32
    %c0_i32_0 = arith.constant 0 : i32
    %c0_i32_1 = arith.constant 0 : i32
    return %c0_i32, %c0_i32_0 : i32, i32
  }
  func.func @transform_4(%arg0: i32) -> (i32, i32) {
    %c0_i32 = arith.constant 0 : i32
    %c0_i32_0 = arith.constant 0 : i32
    %c0_i32_1 = arith.constant 0 : i32
    return %c0_i32, %c0_i32_0 : i32, i32
  }
  func.func @transform_5(%arg0: i32) -> (i32, i32) {
    %c0_i32 = arith.constant 0 : i32
    %c0_i32_0 = arith.constant 0 : i32
    %c0_i32_1 = arith.constant 0 : i32
    return %c0_i32, %c0_i32_0 : i32, i32
  }
  func.func @transform_6(%arg0: i32) -> (i32, i32) {
    %c0_i32 = arith.constant 0 : i32
    %c0_i32_0 = arith.constant 0 : i32
    %c0_i32_1 = arith.constant 0 : i32
    return %c0_i32, %c0_i32_0 : i32, i32
  }
  func.func @transform_7(%arg0: i32) -> (i32, i32) {
    %c0_i32 = arith.constant 0 : i32
    %c0_i32_0 = arith.constant 0 : i32
    %c0_i32_1 = arith.constant 0 : i32
    return %c0_i32, %c0_i32_0 : i32, i32
  }
  func.func @transform_8(%arg0: i32) -> (i32, i32) {
    %c0_i32 = arith.constant 0 : i32
    %c0_i32_0 = arith.constant 0 : i32
    %c0_i32_1 = arith.constant 0 : i32
    return %c0_i32, %c0_i32_0 : i32, i32
  }
  func.func @transform_9(%arg0: i32) -> (i32, i32) {
    %c0_i32 = arith.constant 0 : i32
    %c0_i32_0 = arith.constant 0 : i32
    %c0_i32_1 = arith.constant 0 : i32
    return %c0_i32, %c0_i32_0 : i32, i32
  }
  func.func @transform_10(%arg0: i32) -> (i32, i32) {
    %c0_i32 = arith.constant 0 : i32
    %c0_i32_0 = arith.constant 0 : i32
    %c0_i32_1 = arith.constant 0 : i32
    return %c0_i32, %c0_i32_0 : i32, i32
  }
  func.func @transform_11(%arg0: i32) -> (i32, i32) {
    %c0_i32 = arith.constant 0 : i32
    %c0_i32_0 = arith.constant 0 : i32
    %c0_i32_1 = arith.constant 0 : i32
    return %c0_i32, %c0_i32_0 : i32, i32
  }
  func.func @transform_12(%arg0: i32) -> (i32, i32, i32) {
    %c0_i32 = arith.constant 0 : i32
    %c0_i32_0 = arith.constant 0 : i32
    %c0_i32_1 = arith.constant 0 : i32
    return %arg0, %c0_i32, %c0_i32_0 : i32, i32, i32
  }
}

module attributes {stable_mosaic.version = 11 : i64} {
  func.func @_block_kernel(%arg0: i32, %arg1: memref<1x64x128xf32, #tpu.memory_space<vmem>>, %arg2: memref<1x128xf32, #tpu.memory_space<vmem>>, %arg3: memref<1x128xf32, #tpu.memory_space<vmem>>, %arg4: memref<128x384xbf16, #tpu.memory_space<vmem>>, %arg5: memref<128x128xbf16, #tpu.memory_space<vmem>>, %arg6: memref<1x128xf32, #tpu.memory_space<vmem>>, %arg7: memref<1x128xf32, #tpu.memory_space<vmem>>, %arg8: memref<1x128xf32, #tpu.memory_space<vmem>>, %arg9: memref<128x512xbf16, #tpu.memory_space<vmem>>, %arg10: memref<1x512xf32, #tpu.memory_space<vmem>>, %arg11: memref<512x128xbf16, #tpu.memory_space<vmem>>, %arg12: memref<1x128xf32, #tpu.memory_space<vmem>>, %arg13: memref<1x64x128xf32, #tpu.memory_space<vmem>>) attributes {dimension_semantics = [#tpu.dimension_semantics<parallel>], iteration_bounds = array<i64: 2>, scalar_prefetch = 0 : i64, scratch_operands = 0 : i64, tpu.core_type = #tpu.core_type<tc>, window_params = [{transform_indices = @transform_0, window_bounds = array<i64: 1, 64, 128>}, {pipeline_mode = #tpu.pipeline_mode<synchronous>, transform_indices = @transform_1, window_bounds = array<i64: 1, 128>}, {pipeline_mode = #tpu.pipeline_mode<synchronous>, transform_indices = @transform_2, window_bounds = array<i64: 1, 128>}, {pipeline_mode = #tpu.pipeline_mode<synchronous>, transform_indices = @transform_3, window_bounds = array<i64: 128, 384>}, {pipeline_mode = #tpu.pipeline_mode<synchronous>, transform_indices = @transform_4, window_bounds = array<i64: 128, 128>}, {pipeline_mode = #tpu.pipeline_mode<synchronous>, transform_indices = @transform_5, window_bounds = array<i64: 1, 128>}, {pipeline_mode = #tpu.pipeline_mode<synchronous>, transform_indices = @transform_6, window_bounds = array<i64: 1, 128>}, {pipeline_mode = #tpu.pipeline_mode<synchronous>, transform_indices = @transform_7, window_bounds = array<i64: 1, 128>}, {pipeline_mode = #tpu.pipeline_mode<synchronous>, transform_indices = @transform_8, window_bounds = array<i64: 128, 512>}, {pipeline_mode = #tpu.pipeline_mode<synchronous>, transform_indices = @transform_9, window_bounds = array<i64: 1, 512>}, {pipeline_mode = #tpu.pipeline_mode<synchronous>, transform_indices = @transform_10, window_bounds = array<i64: 512, 128>}, {pipeline_mode = #tpu.pipeline_mode<synchronous>, transform_indices = @transform_11, window_bounds = array<i64: 1, 128>}, {transform_indices = @transform_12, window_bounds = array<i64: 1, 64, 128>}]} {
    %c0 = arith.constant 0 : index
    %c0_0 = arith.constant 0 : index
    %c0_1 = arith.constant 0 : index
    %0 = vector.load %arg1[%c0, %c0_0, %c0_1] : memref<1x64x128xf32, #tpu.memory_space<vmem>>, vector<1x64x128xf32>
    %1 = vector.shape_cast %0 : vector<1x64x128xf32> to vector<64x128xf32>
    %c0_2 = arith.constant 0 : index
    %c0_3 = arith.constant 0 : index
    %2 = vector.load %arg2[%c0_2, %c0_3] : memref<1x128xf32, #tpu.memory_space<vmem>>, vector<1x128xf32>
    %c0_4 = arith.constant 0 : index
    %c0_5 = arith.constant 0 : index
    %3 = vector.load %arg3[%c0_4, %c0_5] : memref<1x128xf32, #tpu.memory_space<vmem>>, vector<1x128xf32>
    %cst = arith.constant dense<0.000000e+00> : vector<64xf32>
    %4 = vector.multi_reduction <add>, %1, %cst [1] : vector<64x128xf32> to vector<64xf32>
    %5 = vector.shape_cast %4 : vector<64xf32> to vector<64x1xf32>
    %cst_6 = arith.constant 1.280000e+02 : f32
    %6 = vector.broadcast %cst_6 : f32 to vector<64x1xf32>
    %7 = arith.divf %5, %6 : vector<64x1xf32>
    %8 = arith.mulf %1, %1 : vector<64x128xf32>
    %cst_7 = arith.constant dense<0.000000e+00> : vector<64xf32>
    %9 = vector.multi_reduction <add>, %8, %cst_7 [1] : vector<64x128xf32> to vector<64xf32>
    %10 = vector.shape_cast %9 : vector<64xf32> to vector<64x1xf32>
    %cst_8 = arith.constant 1.280000e+02 : f32
    %11 = vector.broadcast %cst_8 : f32 to vector<64x1xf32>
    %12 = arith.divf %10, %11 : vector<64x1xf32>
    %13 = arith.mulf %7, %7 : vector<64x1xf32>
    %14 = arith.subf %12, %13 : vector<64x1xf32>
    %cst_9 = arith.constant 9.99999974E-6 : f32
    %15 = vector.broadcast %cst_9 : f32 to vector<64x1xf32>
    %16 = arith.addf %14, %15 : vector<64x1xf32>
    %17 = math.rsqrt %16 : vector<64x1xf32>
    %18 = vector.broadcast %7 : vector<64x1xf32> to vector<64x128xf32>
    %19 = arith.subf %1, %18 : vector<64x128xf32>
    %20 = vector.broadcast %17 : vector<64x1xf32> to vector<64x128xf32>
    %21 = arith.mulf %19, %20 : vector<64x128xf32>
    %22 = vector.broadcast %2 : vector<1x128xf32> to vector<64x128xf32>
    %23 = arith.mulf %21, %22 : vector<64x128xf32>
    %24 = vector.broadcast %3 : vector<1x128xf32> to vector<64x128xf32>
    %25 = arith.addf %23, %24 : vector<64x128xf32>
    %26 = arith.truncf %25 : vector<64x128xf32> to vector<64x128xbf16>
    %c0_10 = arith.constant 0 : index
    %c0_11 = arith.constant 0 : index
    %27 = vector.load %arg4[%c0_10, %c0_11] : memref<128x384xbf16, #tpu.memory_space<vmem>>, vector<128x384xbf16>
    %cst_12 = arith.constant dense<0.000000e+00> : vector<64x384xf32>
    %28 = tpu.matmul %26, %27, %cst_12 {dimension_numbers = #tpu.dot_dimension_numbers<[1], [0], [0], [1], [0, 0, 1, 1], [], []>} : vector<64x128xbf16>, vector<128x384xbf16>, vector<64x384xf32> -> vector<64x384xf32>
    %29 = vector.extract_strided_slice %28 {offsets = [0, 0], sizes = [64, 128], strides = [1, 1]} : vector<64x384xf32> to vector<64x128xf32>
    %cst_13 = arith.constant 0.176776692 : f32
    %30 = vector.broadcast %cst_13 : f32 to vector<64x128xf32>
    %31 = arith.mulf %29, %30 : vector<64x128xf32>
    %32 = vector.extract_strided_slice %28 {offsets = [0, 128], sizes = [64, 128], strides = [1, 1]} : vector<64x384xf32> to vector<64x128xf32>
    %33 = vector.extract_strided_slice %28 {offsets = [0, 256], sizes = [64, 128], strides = [1, 1]} : vector<64x384xf32> to vector<64x128xf32>
    %cst_14 = arith.constant 0.000000e+00 : f32
    %34 = vector.broadcast %cst_14 : f32 to vector<64x128xf32>
    %35 = vector.extract_strided_slice %31 {offsets = [0, 0], sizes = [64, 32], strides = [1, 1]} : vector<64x128xf32> to vector<64x32xf32>
    %36 = arith.truncf %35 : vector<64x32xf32> to vector<64x32xbf16>
    %37 = vector.extract_strided_slice %32 {offsets = [0, 0], sizes = [64, 32], strides = [1, 1]} : vector<64x128xf32> to vector<64x32xf32>
    %38 = arith.truncf %37 : vector<64x32xf32> to vector<64x32xbf16>
    %39 = vector.extract_strided_slice %33 {offsets = [0, 0], sizes = [64, 32], strides = [1, 1]} : vector<64x128xf32> to vector<64x32xf32>
    %40 = arith.truncf %39 : vector<64x32xf32> to vector<64x32xbf16>
    %cst_15 = arith.constant dense<0.000000e+00> : vector<64x64xf32>
    %41 = tpu.matmul %36, %38, %cst_15 {dimension_numbers = #tpu.dot_dimension_numbers<[1], [1], [0], [0], [0, 0, 1, 0], [], []>} : vector<64x32xbf16>, vector<64x32xbf16>, vector<64x64xf32> -> vector<64x64xf32>
    %cst_16 = arith.constant dense<0xFF800000> : vector<64xf32>
    %42 = vector.multi_reduction <maximumf>, %41, %cst_16 [1] : vector<64x64xf32> to vector<64xf32>
    %43 = vector.shape_cast %42 : vector<64xf32> to vector<64x1xf32>
    %44 = vector.broadcast %43 : vector<64x1xf32> to vector<64x64xf32>
    %45 = arith.subf %41, %44 : vector<64x64xf32>
    %46 = math.exp %45 : vector<64x64xf32>
    %cst_17 = arith.constant dense<0.000000e+00> : vector<64xf32>
    %47 = vector.multi_reduction <add>, %46, %cst_17 [1] : vector<64x64xf32> to vector<64xf32>
    %48 = vector.shape_cast %47 : vector<64xf32> to vector<64x1xf32>
    %49 = tpu.reciprocal %48 {approx = true} : vector<64x1xf32> -> vector<64x1xf32>
    %50 = arith.truncf %46 : vector<64x64xf32> to vector<64x64xbf16>
    %cst_18 = arith.constant dense<0.000000e+00> : vector<64x32xf32>
    %51 = tpu.matmul %50, %40, %cst_18 {dimension_numbers = #tpu.dot_dimension_numbers<[1], [0], [0], [1], [0, 0, 1, 1], [], []>} : vector<64x64xbf16>, vector<64x32xbf16>, vector<64x32xf32> -> vector<64x32xf32>
    %52 = vector.broadcast %49 : vector<64x1xf32> to vector<64x32xf32>
    %53 = arith.mulf %51, %52 : vector<64x32xf32>
    %54 = arith.truncf %53 : vector<64x32xf32> to vector<64x32xbf16>
    %c0_19 = arith.constant 0 : index
    %c0_20 = arith.constant 0 : index
    %55 = vector.load %arg5[%c0_19, %c0_20] : memref<128x128xbf16, #tpu.memory_space<vmem>>, vector<32x128xbf16>
    %cst_21 = arith.constant dense<0.000000e+00> : vector<64x128xf32>
    %56 = tpu.matmul %54, %55, %cst_21 {dimension_numbers = #tpu.dot_dimension_numbers<[1], [0], [0], [1], [0, 0, 1, 1], [], []>} : vector<64x32xbf16>, vector<32x128xbf16>, vector<64x128xf32> -> vector<64x128xf32>
    %57 = arith.addf %34, %56 : vector<64x128xf32>
    %58 = vector.extract_strided_slice %31 {offsets = [0, 32], sizes = [64, 32], strides = [1, 1]} : vector<64x128xf32> to vector<64x32xf32>
    %59 = arith.truncf %58 : vector<64x32xf32> to vector<64x32xbf16>
    %60 = vector.extract_strided_slice %32 {offsets = [0, 32], sizes = [64, 32], strides = [1, 1]} : vector<64x128xf32> to vector<64x32xf32>
    %61 = arith.truncf %60 : vector<64x32xf32> to vector<64x32xbf16>
    %62 = vector.extract_strided_slice %33 {offsets = [0, 32], sizes = [64, 32], strides = [1, 1]} : vector<64x128xf32> to vector<64x32xf32>
    %63 = arith.truncf %62 : vector<64x32xf32> to vector<64x32xbf16>
    %cst_22 = arith.constant dense<0.000000e+00> : vector<64x64xf32>
    %64 = tpu.matmul %59, %61, %cst_22 {dimension_numbers = #tpu.dot_dimension_numbers<[1], [1], [0], [0], [0, 0, 1, 0], [], []>} : vector<64x32xbf16>, vector<64x32xbf16>, vector<64x64xf32> -> vector<64x64xf32>
    %cst_23 = arith.constant dense<0xFF800000> : vector<64xf32>
    %65 = vector.multi_reduction <maximumf>, %64, %cst_23 [1] : vector<64x64xf32> to vector<64xf32>
    %66 = vector.shape_cast %65 : vector<64xf32> to vector<64x1xf32>
    %67 = vector.broadcast %66 : vector<64x1xf32> to vector<64x64xf32>
    %68 = arith.subf %64, %67 : vector<64x64xf32>
    %69 = math.exp %68 : vector<64x64xf32>
    %cst_24 = arith.constant dense<0.000000e+00> : vector<64xf32>
    %70 = vector.multi_reduction <add>, %69, %cst_24 [1] : vector<64x64xf32> to vector<64xf32>
    %71 = vector.shape_cast %70 : vector<64xf32> to vector<64x1xf32>
    %72 = tpu.reciprocal %71 {approx = true} : vector<64x1xf32> -> vector<64x1xf32>
    %73 = arith.truncf %69 : vector<64x64xf32> to vector<64x64xbf16>
    %cst_25 = arith.constant dense<0.000000e+00> : vector<64x32xf32>
    %74 = tpu.matmul %73, %63, %cst_25 {dimension_numbers = #tpu.dot_dimension_numbers<[1], [0], [0], [1], [0, 0, 1, 1], [], []>} : vector<64x64xbf16>, vector<64x32xbf16>, vector<64x32xf32> -> vector<64x32xf32>
    %75 = vector.broadcast %72 : vector<64x1xf32> to vector<64x32xf32>
    %76 = arith.mulf %74, %75 : vector<64x32xf32>
    %77 = arith.truncf %76 : vector<64x32xf32> to vector<64x32xbf16>
    %c32 = arith.constant 32 : index
    %c0_26 = arith.constant 0 : index
    %78 = vector.load %arg5[%c32, %c0_26] : memref<128x128xbf16, #tpu.memory_space<vmem>>, vector<32x128xbf16>
    %cst_27 = arith.constant dense<0.000000e+00> : vector<64x128xf32>
    %79 = tpu.matmul %77, %78, %cst_27 {dimension_numbers = #tpu.dot_dimension_numbers<[1], [0], [0], [1], [0, 0, 1, 1], [], []>} : vector<64x32xbf16>, vector<32x128xbf16>, vector<64x128xf32> -> vector<64x128xf32>
    %80 = arith.addf %57, %79 : vector<64x128xf32>
    %81 = vector.extract_strided_slice %31 {offsets = [0, 64], sizes = [64, 32], strides = [1, 1]} : vector<64x128xf32> to vector<64x32xf32>
    %82 = arith.truncf %81 : vector<64x32xf32> to vector<64x32xbf16>
    %83 = vector.extract_strided_slice %32 {offsets = [0, 64], sizes = [64, 32], strides = [1, 1]} : vector<64x128xf32> to vector<64x32xf32>
    %84 = arith.truncf %83 : vector<64x32xf32> to vector<64x32xbf16>
    %85 = vector.extract_strided_slice %33 {offsets = [0, 64], sizes = [64, 32], strides = [1, 1]} : vector<64x128xf32> to vector<64x32xf32>
    %86 = arith.truncf %85 : vector<64x32xf32> to vector<64x32xbf16>
    %cst_28 = arith.constant dense<0.000000e+00> : vector<64x64xf32>
    %87 = tpu.matmul %82, %84, %cst_28 {dimension_numbers = #tpu.dot_dimension_numbers<[1], [1], [0], [0], [0, 0, 1, 0], [], []>} : vector<64x32xbf16>, vector<64x32xbf16>, vector<64x64xf32> -> vector<64x64xf32>
    %cst_29 = arith.constant dense<0xFF800000> : vector<64xf32>
    %88 = vector.multi_reduction <maximumf>, %87, %cst_29 [1] : vector<64x64xf32> to vector<64xf32>
    %89 = vector.shape_cast %88 : vector<64xf32> to vector<64x1xf32>
    %90 = vector.broadcast %89 : vector<64x1xf32> to vector<64x64xf32>
    %91 = arith.subf %87, %90 : vector<64x64xf32>
    %92 = math.exp %91 : vector<64x64xf32>
    %cst_30 = arith.constant dense<0.000000e+00> : vector<64xf32>
    %93 = vector.multi_reduction <add>, %92, %cst_30 [1] : vector<64x64xf32> to vector<64xf32>
    %94 = vector.shape_cast %93 : vector<64xf32> to vector<64x1xf32>
    %95 = tpu.reciprocal %94 {approx = true} : vector<64x1xf32> -> vector<64x1xf32>
    %96 = arith.truncf %92 : vector<64x64xf32> to vector<64x64xbf16>
    %cst_31 = arith.constant dense<0.000000e+00> : vector<64x32xf32>
    %97 = tpu.matmul %96, %86, %cst_31 {dimension_numbers = #tpu.dot_dimension_numbers<[1], [0], [0], [1], [0, 0, 1, 1], [], []>} : vector<64x64xbf16>, vector<64x32xbf16>, vector<64x32xf32> -> vector<64x32xf32>
    %98 = vector.broadcast %95 : vector<64x1xf32> to vector<64x32xf32>
    %99 = arith.mulf %97, %98 : vector<64x32xf32>
    %100 = arith.truncf %99 : vector<64x32xf32> to vector<64x32xbf16>
    %c64 = arith.constant 64 : index
    %c0_32 = arith.constant 0 : index
    %101 = vector.load %arg5[%c64, %c0_32] : memref<128x128xbf16, #tpu.memory_space<vmem>>, vector<32x128xbf16>
    %cst_33 = arith.constant dense<0.000000e+00> : vector<64x128xf32>
    %102 = tpu.matmul %100, %101, %cst_33 {dimension_numbers = #tpu.dot_dimension_numbers<[1], [0], [0], [1], [0, 0, 1, 1], [], []>} : vector<64x32xbf16>, vector<32x128xbf16>, vector<64x128xf32> -> vector<64x128xf32>
    %103 = arith.addf %80, %102 : vector<64x128xf32>
    %104 = vector.extract_strided_slice %31 {offsets = [0, 96], sizes = [64, 32], strides = [1, 1]} : vector<64x128xf32> to vector<64x32xf32>
    %105 = arith.truncf %104 : vector<64x32xf32> to vector<64x32xbf16>
    %106 = vector.extract_strided_slice %32 {offsets = [0, 96], sizes = [64, 32], strides = [1, 1]} : vector<64x128xf32> to vector<64x32xf32>
    %107 = arith.truncf %106 : vector<64x32xf32> to vector<64x32xbf16>
    %108 = vector.extract_strided_slice %33 {offsets = [0, 96], sizes = [64, 32], strides = [1, 1]} : vector<64x128xf32> to vector<64x32xf32>
    %109 = arith.truncf %108 : vector<64x32xf32> to vector<64x32xbf16>
    %cst_34 = arith.constant dense<0.000000e+00> : vector<64x64xf32>
    %110 = tpu.matmul %105, %107, %cst_34 {dimension_numbers = #tpu.dot_dimension_numbers<[1], [1], [0], [0], [0, 0, 1, 0], [], []>} : vector<64x32xbf16>, vector<64x32xbf16>, vector<64x64xf32> -> vector<64x64xf32>
    %cst_35 = arith.constant dense<0xFF800000> : vector<64xf32>
    %111 = vector.multi_reduction <maximumf>, %110, %cst_35 [1] : vector<64x64xf32> to vector<64xf32>
    %112 = vector.shape_cast %111 : vector<64xf32> to vector<64x1xf32>
    %113 = vector.broadcast %112 : vector<64x1xf32> to vector<64x64xf32>
    %114 = arith.subf %110, %113 : vector<64x64xf32>
    %115 = math.exp %114 : vector<64x64xf32>
    %cst_36 = arith.constant dense<0.000000e+00> : vector<64xf32>
    %116 = vector.multi_reduction <add>, %115, %cst_36 [1] : vector<64x64xf32> to vector<64xf32>
    %117 = vector.shape_cast %116 : vector<64xf32> to vector<64x1xf32>
    %118 = tpu.reciprocal %117 {approx = true} : vector<64x1xf32> -> vector<64x1xf32>
    %119 = arith.truncf %115 : vector<64x64xf32> to vector<64x64xbf16>
    %cst_37 = arith.constant dense<0.000000e+00> : vector<64x32xf32>
    %120 = tpu.matmul %119, %109, %cst_37 {dimension_numbers = #tpu.dot_dimension_numbers<[1], [0], [0], [1], [0, 0, 1, 1], [], []>} : vector<64x64xbf16>, vector<64x32xbf16>, vector<64x32xf32> -> vector<64x32xf32>
    %121 = vector.broadcast %118 : vector<64x1xf32> to vector<64x32xf32>
    %122 = arith.mulf %120, %121 : vector<64x32xf32>
    %123 = arith.truncf %122 : vector<64x32xf32> to vector<64x32xbf16>
    %c96 = arith.constant 96 : index
    %c0_38 = arith.constant 0 : index
    %124 = vector.load %arg5[%c96, %c0_38] : memref<128x128xbf16, #tpu.memory_space<vmem>>, vector<32x128xbf16>
    %cst_39 = arith.constant dense<0.000000e+00> : vector<64x128xf32>
    %125 = tpu.matmul %123, %124, %cst_39 {dimension_numbers = #tpu.dot_dimension_numbers<[1], [0], [0], [1], [0, 0, 1, 1], [], []>} : vector<64x32xbf16>, vector<32x128xbf16>, vector<64x128xf32> -> vector<64x128xf32>
    %126 = arith.addf %103, %125 : vector<64x128xf32>
    %127 = arith.addf %1, %126 : vector<64x128xf32>
    %c0_40 = arith.constant 0 : index
    %c0_41 = arith.constant 0 : index
    %128 = vector.load %arg6[%c0_40, %c0_41] : memref<1x128xf32, #tpu.memory_space<vmem>>, vector<1x128xf32>
    %129 = vector.broadcast %128 : vector<1x128xf32> to vector<64x128xf32>
    %130 = arith.addf %127, %129 : vector<64x128xf32>
    %c0_42 = arith.constant 0 : index
    %c0_43 = arith.constant 0 : index
    %131 = vector.load %arg7[%c0_42, %c0_43] : memref<1x128xf32, #tpu.memory_space<vmem>>, vector<1x128xf32>
    %c0_44 = arith.constant 0 : index
    %c0_45 = arith.constant 0 : index
    %132 = vector.load %arg8[%c0_44, %c0_45] : memref<1x128xf32, #tpu.memory_space<vmem>>, vector<1x128xf32>
    %cst_46 = arith.constant dense<0.000000e+00> : vector<64xf32>
    %133 = vector.multi_reduction <add>, %130, %cst_46 [1] : vector<64x128xf32> to vector<64xf32>
    %134 = vector.shape_cast %133 : vector<64xf32> to vector<64x1xf32>
    %cst_47 = arith.constant 1.280000e+02 : f32
    %135 = vector.broadcast %cst_47 : f32 to vector<64x1xf32>
    %136 = arith.divf %134, %135 : vector<64x1xf32>
    %137 = arith.mulf %130, %130 : vector<64x128xf32>
    %cst_48 = arith.constant dense<0.000000e+00> : vector<64xf32>
    %138 = vector.multi_reduction <add>, %137, %cst_48 [1] : vector<64x128xf32> to vector<64xf32>
    %139 = vector.shape_cast %138 : vector<64xf32> to vector<64x1xf32>
    %cst_49 = arith.constant 1.280000e+02 : f32
    %140 = vector.broadcast %cst_49 : f32 to vector<64x1xf32>
    %141 = arith.divf %139, %140 : vector<64x1xf32>
    %142 = arith.mulf %136, %136 : vector<64x1xf32>
    %143 = arith.subf %141, %142 : vector<64x1xf32>
    %cst_50 = arith.constant 9.99999974E-6 : f32
    %144 = vector.broadcast %cst_50 : f32 to vector<64x1xf32>
    %145 = arith.addf %143, %144 : vector<64x1xf32>
    %146 = math.rsqrt %145 : vector<64x1xf32>
    %147 = vector.broadcast %136 : vector<64x1xf32> to vector<64x128xf32>
    %148 = arith.subf %130, %147 : vector<64x128xf32>
    %149 = vector.broadcast %146 : vector<64x1xf32> to vector<64x128xf32>
    %150 = arith.mulf %148, %149 : vector<64x128xf32>
    %151 = vector.broadcast %131 : vector<1x128xf32> to vector<64x128xf32>
    %152 = arith.mulf %150, %151 : vector<64x128xf32>
    %153 = vector.broadcast %132 : vector<1x128xf32> to vector<64x128xf32>
    %154 = arith.addf %152, %153 : vector<64x128xf32>
    %155 = arith.truncf %154 : vector<64x128xf32> to vector<64x128xbf16>
    %c0_51 = arith.constant 0 : index
    %c0_52 = arith.constant 0 : index
    %156 = vector.load %arg9[%c0_51, %c0_52] : memref<128x512xbf16, #tpu.memory_space<vmem>>, vector<128x512xbf16>
    %cst_53 = arith.constant dense<0.000000e+00> : vector<64x512xf32>
    %157 = tpu.matmul %155, %156, %cst_53 {dimension_numbers = #tpu.dot_dimension_numbers<[1], [0], [0], [1], [0, 0, 1, 1], [], []>} : vector<64x128xbf16>, vector<128x512xbf16>, vector<64x512xf32> -> vector<64x512xf32>
    %c0_54 = arith.constant 0 : index
    %c0_55 = arith.constant 0 : index
    %158 = vector.load %arg10[%c0_54, %c0_55] : memref<1x512xf32, #tpu.memory_space<vmem>>, vector<1x512xf32>
    %159 = vector.broadcast %158 : vector<1x512xf32> to vector<64x512xf32>
    %160 = arith.addf %157, %159 : vector<64x512xf32>
    %cst_56 = arith.constant 5.000000e-01 : f32
    %161 = vector.broadcast %cst_56 : f32 to vector<64x512xf32>
    %162 = arith.mulf %161, %160 : vector<64x512xf32>
    %cst_57 = arith.constant 4.471500e-02 : f32
    %163 = vector.broadcast %cst_57 : f32 to vector<64x512xf32>
    %164 = arith.mulf %163, %160 : vector<64x512xf32>
    %165 = arith.mulf %164, %160 : vector<64x512xf32>
    %166 = arith.mulf %165, %160 : vector<64x512xf32>
    %167 = arith.addf %160, %166 : vector<64x512xf32>
    %cst_58 = arith.constant 0.797884583 : f32
    %168 = vector.broadcast %cst_58 : f32 to vector<64x512xf32>
    %169 = arith.mulf %168, %167 : vector<64x512xf32>
    %170 = math.tanh %169 : vector<64x512xf32>
    %cst_59 = arith.constant 1.000000e+00 : f32
    %171 = vector.broadcast %cst_59 : f32 to vector<64x512xf32>
    %172 = arith.addf %171, %170 : vector<64x512xf32>
    %173 = arith.mulf %162, %172 : vector<64x512xf32>
    %174 = arith.truncf %173 : vector<64x512xf32> to vector<64x512xbf16>
    %c0_60 = arith.constant 0 : index
    %c0_61 = arith.constant 0 : index
    %175 = vector.load %arg11[%c0_60, %c0_61] : memref<512x128xbf16, #tpu.memory_space<vmem>>, vector<512x128xbf16>
    %cst_62 = arith.constant dense<0.000000e+00> : vector<64x128xf32>
    %176 = tpu.matmul %174, %175, %cst_62 {dimension_numbers = #tpu.dot_dimension_numbers<[1], [0], [0], [1], [0, 0, 1, 1], [], []>} : vector<64x512xbf16>, vector<512x128xbf16>, vector<64x128xf32> -> vector<64x128xf32>
    %c0_63 = arith.constant 0 : index
    %c0_64 = arith.constant 0 : index
    %177 = vector.load %arg12[%c0_63, %c0_64] : memref<1x128xf32, #tpu.memory_space<vmem>>, vector<1x128xf32>
    %178 = vector.broadcast %177 : vector<1x128xf32> to vector<64x128xf32>
    %179 = arith.addf %176, %178 : vector<64x128xf32>
    %180 = arith.addf %130, %179 : vector<64x128xf32>
    %c0_65 = arith.constant 0 : index
    %c0_66 = arith.constant 0 : index
    %c0_67 = arith.constant 0 : index
    %181 = vector.load %arg13[%c0_65, %c0_66, %c0_67] : memref<1x64x128xf32, #tpu.memory_space<vmem>>, vector<1x64x128xf32>
    %182 = vector.shape_cast %181 : vector<1x64x128xf32> to vector<64x128xf32>
    %183 = vector.shape_cast %180 : vector<64x128xf32> to vector<1x64x128xf32>
    tpu.vector_store %arg13[%c0_65, %c0_66, %c0_67], %183 {strides = array<i32>} : memref<1x64x128xf32, #tpu.memory_space<vmem>>, vector<1x64x128xf32>,
    return
  }
  func.func @transform_0(%arg0: i32) -> (i32, i32, i32) {
    %c0_i32 = arith.constant 0 : i32
    %c0_i32_0 = arith.constant 0 : i32
    %c0_i32_1 = arith.constant 0 : i32
    return %arg0, %c0_i32, %c0_i32_0 : i32, i32, i32
  }
  func.func @transform_1(%arg0: i32) -> (i32, i32) {
    %c0_i32 = arith.constant 0 : i32
    %c0_i32_0 = arith.constant 0 : i32
    %c0_i32_1 = arith.constant 0 : i32
    return %c0_i32, %c0_i32_0 : i32, i32
  }
  func.func @transform_2(%arg0: i32) -> (i32, i32) {
    %c0_i32 = arith.constant 0 : i32
    %c0_i32_0 = arith.constant 0 : i32
    %c0_i32_1 = arith.constant 0 : i32
    return %c0_i32, %c0_i32_0 : i32, i32
  }
  func.func @transform_3(%arg0: i32) -> (i32, i32) {
    %c0_i32 = arith.constant 0 : i32
    %c0_i32_0 = arith.constant 0 : i32
    %c0_i32_1 = arith.constant 0 : i32
    return %c0_i32, %c0_i32_0 : i32, i32
  }
  func.func @transform_4(%arg0: i32) -> (i32, i32) {
    %c0_i32 = arith.constant 0 : i32
    %c0_i32_0 = arith.constant 0 : i32
    %c0_i32_1 = arith.constant 0 : i32
    return %c0_i32, %c0_i32_0 : i32, i32
  }
  func.func @transform_5(%arg0: i32) -> (i32, i32) {
    %c0_i32 = arith.constant 0 : i32
    %c0_i32_0 = arith.constant 0 : i32
    %c0_i32_1 = arith.constant 0 : i32
    return %c0_i32, %c0_i32_0 : i32, i32
  }
  func.func @transform_6(%arg0: i32) -> (i32, i32) {
    %c0_i32 = arith.constant 0 : i32
    %c0_i32_0 = arith.constant 0 : i32
    %c0_i32_1 = arith.constant 0 : i32
    return %c0_i32, %c0_i32_0 : i32, i32
  }
  func.func @transform_7(%arg0: i32) -> (i32, i32) {
    %c0_i32 = arith.constant 0 : i32
    %c0_i32_0 = arith.constant 0 : i32
    %c0_i32_1 = arith.constant 0 : i32
    return %c0_i32, %c0_i32_0 : i32, i32
  }
  func.func @transform_8(%arg0: i32) -> (i32, i32) {
    %c0_i32 = arith.constant 0 : i32
    %c0_i32_0 = arith.constant 0 : i32
    %c0_i32_1 = arith.constant 0 : i32
    return %c0_i32, %c0_i32_0 : i32, i32
  }
  func.func @transform_9(%arg0: i32) -> (i32, i32) {
    %c0_i32 = arith.constant 0 : i32
    %c0_i32_0 = arith.constant 0 : i32
    %c0_i32_1 = arith.constant 0 : i32
    return %c0_i32, %c0_i32_0 : i32, i32
  }
  func.func @transform_10(%arg0: i32) -> (i32, i32) {
    %c0_i32 = arith.constant 0 : i32
    %c0_i32_0 = arith.constant 0 : i32
    %c0_i32_1 = arith.constant 0 : i32
    return %c0_i32, %c0_i32_0 : i32, i32
  }
  func.func @transform_11(%arg0: i32) -> (i32, i32) {
    %c0_i32 = arith.constant 0 : i32
    %c0_i32_0 = arith.constant 0 : i32
    %c0_i32_1 = arith.constant 0 : i32
    return %c0_i32, %c0_i32_0 : i32, i32
  }
  func.func @transform_12(%arg0: i32) -> (i32, i32, i32) {
    %c0_i32 = arith.constant 0 : i32
    %c0_i32_0 = arith.constant 0 : i32
    %c0_i32_1 = arith.constant 0 : i32
    return %arg0, %c0_i32, %c0_i32_0 : i32, i32, i32
  }
}

</mosaic_0001>

<bundles_post_ra>
// kernel: tpu_custom_call.1
= control target key start
LH: loop header
LB: loop body
LE: loop exit
PB: predicated region body
PF: predicated region fallthrough
CT: control target
= control target key end

     0   :  { %s7147_s0 = inlined_call_operand.hbm [shape: f32[2,64,128], index: 0, kind: input, shape index: {}]   ;;  %s7148_s1 = inlined_call_operand.hbm [shape: f32[1,128], index: 1, kind: input, shape index: {}]   ;;  %s7149_s2 = inlined_call_operand.hbm [shape: f32[1,128], index: 2, kind: input, shape index: {}]   ;;  %s7150_s3 = inlined_call_operand.hbm [shape: bf16[128,384], index: 3, kind: input, shape index: {}]   ;;  %s7151_s4 = inlined_call_operand.hbm [shape: bf16[128,128], index: 4, kind: input, shape index: {}]   ;;  %s7152_s5 = inlined_call_operand.hbm [shape: f32[1,128], index: 5, kind: input, shape index: {}]   ;;  %s7153_s6 = inlined_call_operand.hbm [shape: f32[1,128], index: 6, kind: input, shape index: {}]   ;;  %s7154_s7 = inlined_call_operand.hbm [shape: f32[1,128], index: 7, kind: input, shape index: {}]   ;;  %s7155_s8 = inlined_call_operand.hbm [shape: bf16[128,512], index: 8, kind: input, shape index: {}]   ;;  %s7156_s9 = inlined_call_operand.hbm [shape: f32[1,512], index: 9, kind: input, shape index: {}]   ;;  %s7157_s10 = inlined_call_operand.hbm [shape: bf16[512,128], index: 10, kind: input, shape index: {}]   ;;  %s7158_s11 = inlined_call_operand.hbm [shape: f32[1,128], index: 11, kind: input, shape index: {}]   ;;  %s7159_s12 = inlined_call_operand.hbm [shape: f32[2,64,128], index: 12, kind: output, shape index: {}]  }
   0x1   :  { %7183 = sst [smem:[#allocation49_spill]] %s7148_s1 }
   0x2   :  { %7184 = sst [smem:[#allocation50_spill]] %s7149_s2 }
   0x3   :  { %7185 = sst [smem:[#allocation51_spill]] %s7150_s3 }
   0x4   :  { %7186 = sst [smem:[#allocation52_spill]] %s7152_s5 }
   0x5   :  { %7187 = sst [smem:[#allocation53_spill]] %s7159_s12 }
   0x6   :  { %17 = vsyncpa [#allocation3], 0 }
   0x7   :  { %19 = vsyncpa [#allocation3 + $0x1], 0 }
   0x8   :  { %20 = vsyncpa [#allocation6], 0 }
   0x9   :  { %21 = vsyncpa [#allocation9], 0 }
   0xa   :  { %22 = vsyncpa [#allocation12], 0 }
   0xb   :  { %23 = vsyncpa [#allocation15], 0 }
   0xc   :  { %24 = vsyncpa [#allocation18], 0 }
   0xd   :  { %25 = vsyncpa [#allocation21], 0 }
   0xe   :  { %26 = vsyncpa [#allocation4], 0 }
   0xf   :  { %28 = vsyncpa [#allocation4 + $0x1], 0  ;;  %s5657_s21 = smov 0   ;;  %s5659_s22 = smov 0  }
  0x10   :  { %s5661_s23 = smov 0   ;;  %s5663_s24 = smov 0  }
  0x11 LB: > { %s5565_s25 = smov [#allocation5]   ;;  %s5678_s27 = sadd.s32 4294967295, %s5563_s24   ;;  %s5563_s24 = sphi %s5663_s24, %s7258_s24   ;;  %s5559_s23 = sphi %s5661_s23, %s7257_s23   ;;  %s5555_s22 = sphi %s5659_s22, %s7256_s22   ;;  %s5551_s21 = sphi %s5657_s21, %s7255_s21  }
  0x12   : > { %s335_s26 = sshll.u32 %s5565_s25, 4  ;;  %p4005_p0 = scmp.ge.s32.totalorder %s5563_s24, 1  ;;  %s5683_s26 = int_to_ptr.vmem [resolvable:$true] %s335_s26 }
  0x13   : > { %p7162_p1 = scmp.eq.s32.totalorder %s5678_s27, 0  ;;  %p322_p2 = scmp.lt.s32.totalorder %s5563_s24, 3 }
  0x14   : > { %s5566_s29 = smov [#allocation8]   ;;  %s5567_s14 = smov [#allocation11]  }
  0x15   : > { %p5685_p3 = pnand %p4005_p0, %p322_p2  ;;  %s356_s30 = sshll.u32 %s5566_s29, 4  ;;  %s5692_s30 = int_to_ptr.vmem [resolvable:$true] %s356_s30 }
  0x16   : > { %s383_s15 = sshll.u32 %s5567_s14, 4  ;;  %s7191_s1 = sld [smem:[#allocation49_spill]]  ;;  %s5700_s15 = int_to_ptr.vmem [resolvable:$true] %s383_s15 }
  0x17   : > { %s7188_s28 = scalar_select %p5685_p3, 1, 0 }
  0x18   : > { %p4660_p5 = pneg %p5685_p3 }
  0x19   : > { %7189 = sst [smem:[#allocation31_spill]] %s7188_s28 }
  0x1a   : > { %p5696_p6 = pnand %p4660_p5, %p7162_p1 }
  0x1c   : > { %s5135_s18 = scalar_lea.hbm %s7191_s1, 16  ;;  %p5710_p8 = pneg %p5696_p6 }
  0x1d   : > { %p5136_p7 = scmp.ne.s32.totalorder %s7191_s1, %s5135_s18  ;;  %p5142_p11 = scmp.lt.u32.totalorder %s5135_s18, %s7191_s1 }
  0x1f   : > { %p5138_p9 = pnand %p5710_p8, %p5136_p7 }
  0x21   : > { %p5139_p10 = pneg %p5138_p9 }
  0x23   : > { %p5144_p12 = pnand %p5142_p11, %p5139_p10 }
  0x25   : > { %5147 = shalt.err (!%p5144_p12)
}
  0x26   : > { %s5148_s16 = scalar_lea.vmem %s5683_s26, 16  ;;  %s5155_s17 = scalar_lea.vmem %s5683_s26, 32 }
  0x27   : > { %p5149_p13 = scmp.ne.s32.totalorder %s5683_s26, %s5148_s16  ;;  %p5156_p5 = scmp.lt.s32.totalorder %s5683_s26, %s5683_s26 }
  0x28   : > { %p5157_p7 = scmp.lt.s32.totalorder %s5155_s17, %s5148_s16 }
  0x29   : > { %p5151_p0 = pnand %p5149_p13, %p5710_p8 }
  0x2a   : > { %p5158_p9 = por %p5157_p7, %p5156_p5 }
  0x2b   : > { %p5152_p2 = pneg %p5151_p0 }
  0x2d   : > { %p5159_p4 = pnand %p5158_p9, %p5152_p2 }
  0x2f   : > { %5162 = shalt.err (!%p5159_p4)
}
  0x30   : > { %4663 = dma.hbm_to_vmem [thread:$0]  (!%p5696_p6), %s7191_s1, 16, %s5683_s26, [#allocation6]  }
  0x31   : > { %s7193_s3 = sld [smem:[#allocation51_spill]] }
  0x37   : > { %s5163_s14 = scalar_lea.hbm %s7193_s3, 3072 }
  0x38   : > { %p5164_p10 = scmp.ne.s32.totalorder %s7193_s3, %s5163_s14  ;;  %p5170_p4 = scmp.lt.u32.totalorder %s5163_s14, %s7193_s3 }
  0x3a   : > { %p5166_p11 = pnand %p5164_p10, %p5710_p8 }
  0x3c   : > { %p5167_p12 = pneg %p5166_p11 }
  0x3e   : > { %p5172_p13 = pnand %p5170_p4, %p5167_p12 }
  0x40   : > { %5175 = shalt.err (!%p5172_p13)
}
  0x41   : > { %s5176_s26 = scalar_lea.vmem %s5692_s30, 3072  ;;  %p5184_p7 = scmp.lt.s32.totalorder %s5692_s30, %s5692_s30 }
  0x42   : > { %p5177_p0 = scmp.ne.s32.totalorder %s5692_s30, %s5176_s26  ;;  %p5185_p9 = scmp.lt.s32.totalorder %s5176_s26, %s5176_s26 }
  0x44   : > { %p5179_p2 = pnand %p5177_p0, %p5710_p8  ;;  %p5186_p10 = por %p5185_p9, %p5184_p7 }
  0x46   : > { %p5180_p5 = pneg %p5179_p2 }
  0x48   : > { %p5187_p11 = pnand %p5186_p10, %p5180_p5 }
  0x4a   : > { %5190 = shalt.err (!%p5187_p11)
}
  0x4b   : > { %s5568_s12 = smov 192   ;;  %s5569_s28 = smov 12  }
  0x4c   : > { %4669 = dma.hbm_to_vmem [thread:$0]  (!%p5696_p6), %s7193_s3, 3072, %s5692_s30, [#allocation9], %s5568_s12, %s5568_s12, %s5569_s28  }
  0x4d   : > { %s7194_s5 = sld [smem:[#allocation52_spill]] }
  0x53   : > { %s5191_s14 = scalar_lea.hbm %s7194_s5, 16 }
  0x54   : > { %p5192_p12 = scmp.ne.s32.totalorder %s7194_s5, %s5191_s14  ;;  %p5198_p0 = scmp.lt.u32.totalorder %s5191_s14, %s7194_s5 }
  0x56   : > { %p5194_p4 = pnand %p5192_p12, %p5710_p8 }
  0x58   : > { %p5195_p13 = pneg %p5194_p4 }
  0x5a   : > { %p5200_p2 = pnand %p5198_p0, %p5195_p13 }
  0x5c   : > { %5203 = shalt.err (!%p5200_p2)
}
  0x5d   : > { %s5204_s30 = scalar_lea.vmem %s5700_s15, 16  ;;  %s5211_s12 = scalar_lea.vmem %s5700_s15, 32 }
  0x5e   : > { %p5205_p5 = scmp.ne.s32.totalorder %s5700_s15, %s5204_s30  ;;  %p5212_p10 = scmp.lt.s32.totalorder %s5700_s15, %s5700_s15 }
  0x5f   : > { %p5213_p11 = scmp.lt.s32.totalorder %s5211_s12, %s5204_s30 }
  0x60   : > { %p5207_p7 = pnand %p5205_p5, %p5710_p8 }
  0x61   : > { %p5214_p12 = por %p5213_p11, %p5212_p10 }
  0x62   : > { %p5208_p9 = pneg %p5207_p7 }
  0x64   : > { %p5215_p4 = pnand %p5214_p12, %p5208_p9 }
  0x66   : > { %5218 = shalt.err (!%p5215_p4)
}
  0x67   : > { %4675 = dma.hbm_to_vmem [thread:$0]  (!%p5696_p6), %s7194_s5, 16, %s5700_s15, [#allocation12]  }
  0x68   : > { %s5570_s18 = smov [#allocation14]   ;;  %s5571_s20 = smov [#allocation17]  }
  0x69   : > { %s405_s19 = sshll.u32 %s5570_s18, 4  ;;  %s429_s29 = sshll.u32 %s5571_s20, 4  ;;  %s406_s19 = int_to_ptr.vmem [resolvable:$true] %s405_s19  ;;  %s430_s29 = int_to_ptr.vmem [resolvable:$true] %s429_s29 }
  0x6a   : > { %s5219_s17 = scalar_lea.hbm %s7154_s7, 16 }
  0x6b   : > { %p5220_p13 = scmp.ne.s32.totalorder %s7154_s7, %s5219_s17  ;;  %p5226_p5 = scmp.lt.u32.totalorder %s5219_s17, %s7154_s7 }
  0x6d   : > { %p5222_p0 = pnand %p5220_p13, %p5710_p8 }
  0x6f   : > { %p5223_p2 = pneg %p5222_p0 }
  0x71   : > { %p5228_p7 = pnand %p5226_p5, %p5223_p2 }
  0x73   : > { %5231 = shalt.err (!%p5228_p7)
}
  0x74   : > { %s5232_s15 = scalar_lea.vmem %s406_s19, 16  ;;  %s5239_s28 = scalar_lea.vmem %s406_s19, 32 }
  0x75   : > { %p5233_p9 = scmp.ne.s32.totalorder %s406_s19, %s5232_s15  ;;  %p5240_p12 = scmp.lt.s32.totalorder %s406_s19, %s406_s19 }
  0x76   : > { %p5241_p4 = scmp.lt.s32.totalorder %s5239_s28, %s5232_s15 }
  0x77   : > { %p5235_p10 = pnand %p5233_p9, %p5710_p8 }
  0x78   : > { %p5242_p1 = por %p5241_p4, %p5240_p12 }
  0x79   : > { %p5236_p11 = pneg %p5235_p10 }
  0x7b   : > { %p5243_p3 = pnand %p5242_p1, %p5236_p11 }
  0x7d   : > { %5246 = shalt.err (!%p5243_p3)
}
  0x7e   : > { %4681 = dma.hbm_to_vmem [thread:$0]  (!%p5696_p6), %s7154_s7, 16, %s406_s19, [#allocation15]  }
  0x7f   : > { %s5247_s17 = scalar_lea.hbm %s7156_s9, 64 }
  0x80   : > { %p5248_p13 = scmp.ne.s32.totalorder %s7156_s9, %s5247_s17  ;;  %p5254_p3 = scmp.lt.u32.totalorder %s5247_s17, %s7156_s9 }
  0x82   : > { %p5250_p0 = pnand %p5248_p13, %p5710_p8 }
  0x84   : > { %p5251_p1 = pneg %p5250_p0 }
  0x86   : > { %p5256_p2 = pnand %p5254_p3, %p5251_p1 }
  0x88   : > { %5259 = shalt.err (!%p5256_p2)
}
  0x89   : > { %s5260_s15 = scalar_lea.vmem %s430_s29, 64  ;;  %p5268_p10 = scmp.lt.s32.totalorder %s430_s29, %s430_s29 }
  0x8a   : > { %p5261_p5 = scmp.ne.s32.totalorder %s430_s29, %s5260_s15  ;;  %p5269_p11 = scmp.lt.s32.totalorder %s5260_s15, %s5260_s15 }
  0x8c   : > { %p5263_p7 = pnand %p5261_p5, %p5710_p8  ;;  %p5270_p12 = por %p5269_p11, %p5268_p10 }
  0x8e   : > { %p5264_p9 = pneg %p5263_p7 }
  0x90   : > { %p5271_p4 = pnand %p5270_p12, %p5264_p9 }
  0x92   : > { %5274 = shalt.err (!%p5271_p4)
}
  0x93   : > { %4687 = dma.hbm_to_vmem [thread:$0]  (!%p5696_p6), %s7156_s9, 64, %s430_s29, [#allocation18]  }
  0x94   : > { %s5572_s18 = smov [#allocation7]   ;;  %s5573_s14 = smov [#allocation10]  }
  0x95   : > { %s346_s20 = sshll.u32 %s5572_s18, 4  ;;  %s369_s16 = sshll.u32 %s5573_s14, 4  ;;  %s347_s20 = int_to_ptr.vmem [resolvable:$true] %s346_s20  ;;  %s370_s16 = int_to_ptr.vmem [resolvable:$true] %s369_s16 }
  0x96   : > { %s7195_s2 = sld [smem:[#allocation50_spill]] }
  0x9c   : > { %s5275_s30 = scalar_lea.hbm %s7195_s2, 16 }
  0x9d   : > { %p5276_p13 = scmp.ne.s32.totalorder %s7195_s2, %s5275_s30  ;;  %p5282_p3 = scmp.lt.u32.totalorder %s5275_s30, %s7195_s2 }
  0x9f   : > { %p5278_p0 = pnand %p5276_p13, %p5710_p8 }
  0xa1   : > { %p5279_p1 = pneg %p5278_p0 }
  0xa3   : > { %p5284_p2 = pnand %p5282_p3, %p5279_p1 }
  0xa5   : > { %5287 = shalt.err (!%p5284_p2)
}
  0xa6   : > { %s5288_s29 = scalar_lea.vmem %s347_s20, 16  ;;  %s5295_s28 = scalar_lea.vmem %s347_s20, 32 }
  0xa7   : > { %p5289_p5 = scmp.ne.s32.totalorder %s347_s20, %s5288_s29  ;;  %p5296_p10 = scmp.lt.s32.totalorder %s347_s20, %s347_s20 }
  0xa8   : > { %p5297_p11 = scmp.lt.s32.totalorder %s5295_s28, %s5288_s29 }
  0xa9   : > { %p5291_p7 = pnand %p5289_p5, %p5710_p8 }
  0xaa   : > { %p5298_p12 = por %p5297_p11, %p5296_p10 }
  0xab   : > { %p5292_p9 = pneg %p5291_p7 }
  0xad   : > { %p5299_p4 = pnand %p5298_p12, %p5292_p9 }
  0xaf   : > { %5302 = shalt.err (!%p5299_p4)
}
  0xb0   : > { %4666 = dma.hbm_to_vmem [thread:$0]  (!%p5696_p6), %s7195_s2, 16, %s347_s20, [#allocation6]  }
  0xb1   : > { %s5303_s30 = scalar_lea.hbm %s7151_s4, 1024 }
  0xb2   : > { %p5304_p13 = scmp.ne.s32.totalorder %s7151_s4, %s5303_s30  ;;  %p5310_p3 = scmp.lt.u32.totalorder %s5303_s30, %s7151_s4 }
  0xb4   : > { %p5306_p0 = pnand %p5304_p13, %p5710_p8 }
  0xb6   : > { %p5307_p1 = pneg %p5306_p0 }
  0xb8   : > { %p5312_p2 = pnand %p5310_p3, %p5307_p1 }
  0xba   : > { %5315 = shalt.err (!%p5312_p2)
}
  0xbb   : > { %s5316_s29 = scalar_lea.vmem %s370_s16, 1024  ;;  %p5324_p10 = scmp.lt.s32.totalorder %s370_s16, %s370_s16 }
  0xbc   : > { %p5317_p5 = scmp.ne.s32.totalorder %s370_s16, %s5316_s29  ;;  %p5325_p11 = scmp.lt.s32.totalorder %s5316_s29, %s5316_s29 }
  0xbe   : > { %p5319_p7 = pnand %p5317_p5, %p5710_p8  ;;  %p5326_p12 = por %p5325_p11, %p5324_p10 }
  0xc0   : > { %p5320_p9 = pneg %p5319_p7 }
  0xc2   : > { %p5327_p4 = pnand %p5326_p12, %p5320_p9 }
  0xc4   : > { %5330 = shalt.err (!%p5327_p4)
}
  0xc5   : > { %s7164_s20 = smov 64   ;;  %s7165_s28 = smov 4  }
  0xc6   : > { %4672 = dma.hbm_to_vmem [thread:$0]  (!%p5696_p6), %s7151_s4, 1024, %s370_s16, [#allocation9], %s7164_s20, %s7164_s20, %s7165_s28  }
  0xc7   : > { %s5576_s17 = smov [#allocation13]   ;;  %s5577_s30 = smov [#allocation16]  }
  0xc8   : > { %s394_s26 = sshll.u32 %s5576_s17, 4  ;;  %s415_s12 = sshll.u32 %s5577_s30, 4  ;;  %s395_s26 = int_to_ptr.vmem [resolvable:$true] %s394_s26  ;;  %s416_s12 = int_to_ptr.vmem [resolvable:$true] %s415_s12 }
  0xc9   : > { %s5331_s19 = scalar_lea.hbm %s7153_s6, 16 }
  0xca   : > { %p5332_p13 = scmp.ne.s32.totalorder %s7153_s6, %s5331_s19  ;;  %p5338_p3 = scmp.lt.u32.totalorder %s5331_s19, %s7153_s6 }
  0xcc   : > { %p5334_p0 = pnand %p5332_p13, %p5710_p8 }
  0xce   : > { %p5335_p1 = pneg %p5334_p0 }
  0xd0   : > { %p5340_p2 = pnand %p5338_p3, %p5335_p1 }
  0xd2   : > { %5343 = shalt.err (!%p5340_p2)
}
  0xd3   : > { %s5344_s16 = scalar_lea.vmem %s395_s26, 16  ;;  %s5351_s18 = scalar_lea.vmem %s395_s26, 32 }
  0xd4   : > { %p5345_p5 = scmp.ne.s32.totalorder %s395_s26, %s5344_s16  ;;  %p5352_p10 = scmp.lt.s32.totalorder %s395_s26, %s395_s26 }
  0xd5   : > { %p5353_p11 = scmp.lt.s32.totalorder %s5351_s18, %s5344_s16 }
  0xd6   : > { %p5347_p7 = pnand %p5345_p5, %p5710_p8 }
  0xd7   : > { %p5354_p12 = por %p5353_p11, %p5352_p10 }
  0xd8   : > { %p5348_p9 = pneg %p5347_p7 }
  0xda   : > { %p5355_p4 = pnand %p5354_p12, %p5348_p9 }
  0xdc   : > { %5358 = shalt.err (!%p5355_p4)
}
  0xdd   : > { %4678 = dma.hbm_to_vmem [thread:$0]  (!%p5696_p6), %s7153_s6, 16, %s395_s26, [#allocation12]  }
  0xde   : > { %s5359_s17 = scalar_lea.hbm %s7155_s8, 4096 }
  0xdf   : > { %p5360_p13 = scmp.ne.s32.totalorder %s7155_s8, %s5359_s17  ;;  %p5366_p3 = scmp.lt.u32.totalorder %s5359_s17, %s7155_s8 }
  0xe1   : > { %p5362_p0 = pnand %p5360_p13, %p5710_p8 }
  0xe3   : > { %p5363_p1 = pneg %p5362_p0 }
  0xe5   : > { %p5368_p2 = pnand %p5366_p3, %p5363_p1 }
  0xe7   : > { %5371 = shalt.err (!%p5368_p2)
}
  0xe8   : > { %s5372_s29 = scalar_lea.vmem %s416_s12, 4096  ;;  %p5380_p10 = scmp.lt.s32.totalorder %s416_s12, %s416_s12 }
  0xe9   : > { %p5373_p5 = scmp.ne.s32.totalorder %s416_s12, %s5372_s29  ;;  %p5381_p11 = scmp.lt.s32.totalorder %s5372_s29, %s5372_s29 }
  0xeb   : > { %p5375_p7 = pnand %p5373_p5, %p5710_p8  ;;  %p5382_p12 = por %p5381_p11, %p5380_p10 }
  0xed   : > { %p5376_p9 = pneg %p5375_p7 }
  0xef   : > { %p5383_p4 = pnand %p5382_p12, %p5376_p9 }
  0xf1   : > { %5386 = shalt.err (!%p5383_p4)
}
  0xf2   : > { %s5578_s26 = smov 256   ;;  %s5579_s16 = smov 16  }
  0xf3   : > { %4684 = dma.hbm_to_vmem [thread:$0]  (!%p5696_p6), %s7155_s8, 4096, %s416_s12, [#allocation15], %s5578_s26, %s5578_s26, %s5579_s16  }
  0xf4   : > { %s5580_s14 = smov [#allocation19]   ;;  %s5581_s5 = smov [#allocation20]  }
  0xf5   : > { %s439_s3 = sshll.u32 %s5580_s14, 4  ;;  %s453_s17 = sshll.u32 %s5581_s5, 4  ;;  %s440_s3 = int_to_ptr.vmem [resolvable:$true] %s439_s3  ;;  %s454_s17 = int_to_ptr.vmem [resolvable:$true] %s453_s17 }
  0xf6   : > { %s5387_s15 = scalar_lea.hbm %s7157_s10, 4096 }
  0xf7   : > { %p5388_p13 = scmp.ne.s32.totalorder %s7157_s10, %s5387_s15  ;;  %p5394_p3 = scmp.lt.u32.totalorder %s5387_s15, %s7157_s10 }
  0xf9   : > { %p5390_p0 = pnand %p5388_p13, %p5710_p8 }
  0xfb   : > { %p5391_p1 = pneg %p5390_p0 }
  0xfd   : > { %p5396_p2 = pnand %p5394_p3, %p5391_p1 }
  0xff   : > { %5399 = shalt.err (!%p5396_p2)
}
 0x100   : > { %s5400_s12 = scalar_lea.vmem %s440_s3, 4096  ;;  %p5408_p10 = scmp.lt.s32.totalorder %s440_s3, %s440_s3 }
 0x101   : > { %p5401_p5 = scmp.ne.s32.totalorder %s440_s3, %s5400_s12  ;;  %p5409_p11 = scmp.lt.s32.totalorder %s5400_s12, %s5400_s12 }
 0x103   : > { %p5403_p7 = pnand %p5401_p5, %p5710_p8  ;;  %p5410_p12 = por %p5409_p11, %p5408_p10 }
 0x105   : > { %p5404_p9 = pneg %p5403_p7 }
 0x107   : > { %p5411_p4 = pnand %p5410_p12, %p5404_p9 }
 0x109   : > { %5414 = shalt.err (!%p5411_p4)
}
 0x10a   : > { %s7196_s26 = smov 4   ;;  %s7197_s16 = smov 64  }
 0x10b   : > { %4690 = dma.hbm_to_vmem [thread:$0]  (!%p5696_p6), %s7157_s10, 4096, %s440_s3, [#allocation18], %s7197_s16, %s7197_s16, %s7196_s26  }
 0x10c   : > { %s5415_s14 = scalar_lea.hbm %s7158_s11, 16 }
 0x10d   : > { %p5416_p13 = scmp.ne.s32.totalorder %s7158_s11, %s5415_s14  ;;  %p5422_p3 = scmp.lt.u32.totalorder %s5415_s14, %s7158_s11 }
 0x10f   : > { %p5418_p0 = pnand %p5416_p13, %p5710_p8 }
 0x111   : > { %p5419_p1 = pneg %p5418_p0 }
 0x113   : > { %p5424_p2 = pnand %p5422_p3, %p5419_p1 }
 0x115   : > { %5427 = shalt.err (!%p5424_p2)
}
 0x116   : > { %s5428_s19 = scalar_lea.vmem %s454_s17, 16  ;;  %s5435_s3 = scalar_lea.vmem %s454_s17, 32 }
 0x117   : > { %p5429_p5 = scmp.ne.s32.totalorder %s454_s17, %s5428_s19  ;;  %p5436_p10 = scmp.lt.s32.totalorder %s454_s17, %s454_s17 }
 0x118   : > { %p5437_p11 = scmp.lt.s32.totalorder %s5435_s3, %s5428_s19 }
 0x119   : > { %p5431_p7 = pnand %p5429_p5, %p5710_p8 }
 0x11a   : > { %p5438_p12 = por %p5437_p11, %p5436_p10 }
 0x11b   : > { %p5432_p9 = pneg %p5431_p7 }
 0x11d   : > { %p5439_p4 = pnand %p5438_p12, %p5432_p9 }
 0x11f   : > { %5442 = shalt.err (!%p5439_p4)
}
 0x120   : > { %4693 = dma.hbm_to_vmem [thread:$0]  (!%p5696_p6), %s7158_s11, 16, %s454_s17, [#allocation21]  }
 0x121   : > { %s4004_s25 = sadd.s32 4294967294, %s5563_s24   ;;  %s5931_s13 = sadd.s32 1, %s5563_s24  }
 0x122   : > { %s41_s26 = sadd.s32 1, %s5559_s23  ;;  %s38_s16 = ssub.s32 %s5563_s24, %s5931_s13 }
 0x123   : > { %p48_p8 = scmp.ne.s32.totalorder %s5559_s23, %s5555_s22  ;;  %p39_p13 = scmp.eq.s32.totalorder %s38_s16, 0 }
 0x124   : > { %p49_p0 = scmp.eq.s32.totalorder %s5563_s24, 0  ;;  %p54_p1 = scmp.ne.s32.totalorder %s5555_s22, %s5551_s21 }
 0x125   : > { %p309_p3 = scmp.eq.s32.totalorder %s5678_s27, 1  ;;  %p7198_p5 = scmp.eq.s32.totalorder %s5678_s27, 0 }
 0x126   : > { %s5943_s20 = scalar_select %p39_p13, %s5559_s23, %s41_s26  }
 0x127   : > { %p50_p2 = por %p49_p0, %p48_p8  ;;  %p5947_p7 = por %p7198_p5, %p54_p1 }
 0x128   : > { %p5951_p6 = por %p309_p3, %p48_p8  ;;  %p315_p9 = scmp.eq.s32.totalorder %s4004_s25, 1 }
 0x129   : > { %p4713_p10 = scmp.lt.s32.totalorder %s5563_s24, 2  ;;  %s464_s18 = sand.u32 1, %s5559_s23  }
 0x12a   : > { %s7200_s17 = scalar_select %p5951_p6, 1, 0 }
 0x12b   : > { %p5957_p11 = por %p315_p9, %p54_p1  ;;  %s4018_s14 = sshll.u32 %s464_s18, 6 }
 0x12c   : > { %s4190_s5 = sshll.u32 %s5563_s24, 10  ;;  %s468_s19 = scalar_lea.vmem [#allocation2], %s4018_s14 }
 0x12d   : > { %s7201_s2 = scalar_select %p5957_p11, 1, 0 }
 0x12e   : > { %s5965_s15 = scalar_lea.hbm %s7147_s0, %s4190_s5  ;;  %s475_s3 = sshll.u32 %s468_s19, 4  ;;  %s5971_s3 = int_to_ptr.vmem [resolvable:$true] %s475_s3 }
 0x12f   : > { %p5967_p12 = pnand %p4713_p10, %p50_p2  ;;  %s5973_s12 = scalar_lea.sflag [#allocation3], %s464_s18 }
 0x130   : > { %s5443_s25 = scalar_lea.hbm %s5965_s15, 1024  ;;  %s5448_s14 = scalar_lea.hbm %s7147_s0, 2048 }
 0x131   : > { %p5444_p4 = scmp.ne.s32.totalorder %s5965_s15, %s5443_s25  ;;  %p5445_p8 = pneg %p5967_p12 }
 0x132   : > { %p5449_p1 = scmp.lt.u32.totalorder %s5965_s15, %s7147_s0  ;;  %p5450_p3 = scmp.lt.u32.totalorder %s5448_s14, %s5443_s25 }
 0x133   : > { %p5446_p13 = pnand %p5445_p8, %p5444_p4  ;;  %p5452_p5 = scmp.lt.u32.totalorder %s5443_s25, %s5965_s15 }
 0x134   : > { %p5451_p2 = por %p5450_p3, %p5449_p1 }
 0x135   : > { %p5447_p0 = pneg %p5446_p13 }
 0x136   : > { %p5453_p9 = por %p5452_p5, %p5451_p2 }
 0x138   : > { %p5454_p10 = pnand %p5453_p9, %p5447_p0 }
 0x13a   : > { %5457 = shalt.err (!%p5454_p10)
}
 0x13b   : > { %s5458_s18 = scalar_lea.vmem %s5971_s3, 1024  ;;  %s5582_s1 = smov [#allocation2]  }
 0x13c   : > { %p5459_p4 = scmp.ne.s32.totalorder %s5971_s3, %s5458_s18  ;;  %s5463_s19 = sshll.u32 %s5582_s1, 4  ;;  %s5464_s19 = int_to_ptr.vmem [resolvable:$false] %s5463_s19 }
 0x13d   : > { %s5465_s26 = scalar_lea.vmem %s5464_s19, 2048  ;;  %p5466_p6 = scmp.lt.s32.totalorder %s5971_s3, %s5464_s19 }
 0x13e   : > { %p5461_p13 = pnand %p5459_p4, %p5445_p8  ;;  %p5467_p1 = scmp.lt.s32.totalorder %s5465_s26, %s5458_s18 }
 0x140   : > { %p5462_p11 = pneg %p5461_p13  ;;  %p5468_p3 = por %p5467_p1, %p5466_p6 }
 0x142   : > { %p5469_p2 = pnand %p5468_p3, %p5462_p11 }
 0x144   : > { %5472 = shalt.err (!%p5469_p2)
}
 0x145   : > { %s5583_s25 = smov 128   ;;  %s5584_s16 = smov 8  }
 0x146   : > { %4697 = dma.hbm_to_vmem [thread:$0]  (!%p5967_p12), %s5965_s15, 1024, %s5971_s3, %s5973_s12, %s5583_s25, %s5583_s25, %s5584_s16  }
 0x147   : > { %s7203_s14 = sld [smem:[#allocation31_spill]] }
 0x14d   : > { %p7204_p8 = scmp.ne.s32.totalorder %s7203_s14, 0 }
 0x14f   : > { %487 = sbr.rel (%p7204_p8) target bundleno = 3499 (0xdab), region = 68 }
 0x156   : > { %s6004_s5 = sand.u32 1, %s5555_s22  }
 0x157   : > { %s4022_s30 = sshll.u32 %s6004_s5, 6  ;;  %s490_s18 = scalar_lea.sflag [#allocation3], %s6004_s5 }
 0x158   : > { %s6010_s1 = scalar_lea.vmem [#allocation2], %s4022_s30 }
 0x159   : > { %5518 = dma.done.wait (%p5947_p7), %s490_s18, 1024  }
 0x15a   : > { %5520 = vsyncadd (%p5947_p7), %s490_s18, 4294966272  ;;  %p7205_p6 = scmp.eq.s32.totalorder %s5678_s27, 0 }
 0x15c   : > { %5522 = dma.done.wait (%p7205_p6), [#allocation6], 32   ;;  %p7206_p11 = pmov %p7205_p6 }
 0x15d   : > { %p7207_p12 = pmov %p7205_p6 }
 0x15e   : > { %5524 = vsyncadd (%p7206_p11), [#allocation6], 4294967264 }
 0x15f   : > { %5526 = dma.done.wait (%p7207_p12), [#allocation9], 4096   ;;  %p7208_p0 = pmov %p7205_p6 }
 0x161   : > { %5528 = vsyncadd (%p7208_p0), [#allocation9], 4294963200  ;;  %p7209_p5 = pmov %p7208_p0 }
 0x162   : > { %p7210_p9 = pmov %p7208_p0 }
 0x163   : > { %5530 = dma.done.wait (%p7209_p5), [#allocation12], 32  }
 0x164   : > { %5532 = vsyncadd (%p7210_p9), [#allocation12], 4294967264  ;;  %p7211_p7 = pmov %p7208_p0 }
 0x165   : > { %p7212_p10 = pmov %p7208_p0 }
 0x166   : > { %5534 = dma.done.wait (%p7211_p7), [#allocation15], 4112  }
 0x167   : > { %5536 = vsyncadd (%p7212_p10), [#allocation15], 4294963184  ;;  %p7213_p4 = pmov %p7208_p0 }
 0x168   : > { %p7214_p13 = pmov %p7208_p0 }
 0x169   : > { %5538 = dma.done.wait (%p7213_p4), [#allocation18], 4160  }
 0x16a   : > { %5540 = vsyncadd (%p7214_p13), [#allocation18], 4294963136  ;;  %p7215_p1 = pmov %p7208_p0 }
 0x16b   : > { %p7216_p3 = pmov %p7208_p0 }
 0x16c   : > { %5542 = dma.done.wait (%p7215_p1), [#allocation21], 16  }
 0x16d   : > { %5544 = vsyncadd (%p7216_p3), [#allocation21], 4294967280  ;;  %v6041_v0 = vld [vmem:[%s6010_s1] sm:$0xff]  ;;  %v6044_v1 = vld [vmem:[%s6010_s1 + $0x8] sm:$0xff]  ;;  %v5585_v39 = vmov 0   ;;  %vm1044_vm0 = vcmask 261120  }
 0x16e   : > { %589 = vadd.xlane.f32.xlu0 %v6041_v0  ;;  %v614_v2 = vmul.f32 %v6041_v0, %v6041_v0  ;;  %v615_v3 = vmul.f32 %v6044_v1, %v6044_v1  ;;  %v4783_v4 = vld [vmem:[#allocation8 + $0x4] ss:$12 sps:$4 sm:$0xff]   ;;  %v6056_v6 = vld [vmem:[%s6010_s1 + $0x18] sm:$0xff]  ;;  %v6065_v9 = vld [vmem:[%s6010_s1 + $0x20] sm:$0xff]  ;;  %918 = vmatprep.mubr.bf16.mxu0 %v5585_v39  ;;  %vm1134_vm1 = vcmask 523264   ;;  %s5586_s28 = smov 96  }
 0x16f   : > { %v6052_v5 = vld [vmem:[%s6010_s1 + $0x10] sm:$0xff]  ;;  %886 = vmatprep.subr.bf16.mxu0 %v4783_v4  ;;  %v617_v8 = vmul.f32 %v6056_v6, %v6056_v6  ;;  %v6068_v11 = vld [vmem:[%s6010_s1 + $0x28] sm:$0xff]  ;;  %v618_v13 = vmul.f32 %v6065_v9, %v6065_v9  ;;  %v4789_v17 = vld [vmem:[#allocation8 + $0x34] ss:$12 sps:$4 sm:$0xff]   ;;  %s5587_s15 = smov 64   ;;  %s5588_s3 = smov 32  }
 0x170   : > { %622 = vadd.xlane.f32.xlu1 %v614_v2  ;;  %v616_v7 = vmul.f32 %v6052_v5, %v6052_v5  ;;  %v4785_v10 = vld [vmem:[#allocation8] ss:$12 sps:$4 sm:$0xff]   ;;  %v4786_v12 = vld [vmem:[#allocation8 + $0x1c] ss:$12 sps:$4 sm:$0xff]   ;;  %v4788_v14 = vld [vmem:[#allocation8 + $0x18] ss:$12 sps:$4 sm:$0xff]   ;;  %v619_v15 = vmul.f32 %v6068_v11, %v6068_v11 }
 0x171   : > { %887 = vmatpush1.bf16.msra.mxu0 %v4785_v10  ;;  %v6077_v16 = vld [vmem:[%s6010_s1 + $0x30] sm:$0xff]  ;;  %v4791_v18 = vld [vmem:[#allocation8 + $0x8] ss:$12 sps:$4 sm:$0xff]   ;;  %v4799_v27 = vld [vmem:[#allocation8 + $0x38] ss:$12 sps:$4 sm:$0xff]   ;;  %s7073_s29 = scalar_lea.vmem [#allocation22], %s4022_s30 }
 0x172   : > { %591 = vadd.xlane.f32.xlu0 %v6044_v1  ;;  %888 = vmatprep.subr.bf16.mxu0 %v4786_v12  ;;  %v4792_v19 = vld [vmem:[#allocation8 + $0x30] ss:$12 sps:$4 sm:$0xff]   ;;  %v6080_v20 = vld [vmem:[%s6010_s1 + $0x38] sm:$0xff]  ;;  %v4795_v22 = vld [vmem:[#allocation8 + $0x20] ss:$12 sps:$4 sm:$0xff]   ;;  %v620_v23 = vmul.f32 %v6077_v16, %v6077_v16  ;;  %s4191_s12 = sshll.u32 %s5678_s27, 10 }
 0x173   : > { %4372 = vmatprep.subr.bf16.mxu1 %v4791_v18  ;;  %v4793_v21 = vld [vmem:[#allocation8 + $0x4c] ss:$12 sps:$4 sm:$0xff]   ;;  %v4796_v24 = vld [vmem:[#allocation8 + $0x48] ss:$12 sps:$4 sm:$0xff]   ;;  %v621_v25 = vmul.f32 %v6080_v20, %v6080_v20  ;;  %v4797_v26 = vld [vmem:[#allocation8 + $0x64] ss:$12 sps:$4 sm:$0xff]  }
 0x174   : > { %624 = vadd.xlane.f32.xlu1 %v615_v3  ;;  %4373 = vmatpush3.bf16.msra.mxu1 %v4791_v18  ;;  %v4800_v28 = vld [vmem:[#allocation8 + $0x60] ss:$12 sps:$4 sm:$0xff]   ;;  %v4801_v29 = vld [vmem:[#allocation8 + $0x7c] ss:$12 sps:$4 sm:$0xff]   ;;  %v4804_v31 = vld [vmem:[#allocation8 + $0x78] ss:$12 sps:$4 sm:$0xff]  }
 0x175   : > { %889 = vmatpush1.bf16.msra.mxu0 %v4788_v14  ;;  %4374 = vmatprep.subr.bf16.mxu1 %v4795_v22  ;;  %v4803_v30 = vld [vmem:[#allocation8 + $0x50] ss:$12 sps:$4 sm:$0xff]   ;;  %v4805_v32 = vld [vmem:[#allocation8 + $0x94] ss:$12 sps:$4 sm:$0xff]   ;;  %v4809_v35 = vld [vmem:[#allocation8 + $0xac] ss:$12 sps:$4 sm:$0xff]  }
 0x176   : > { %593 = vadd.xlane.f32.xlu0 %v6052_v5  ;;  %890 = vmatprep.subr.bf16.mxu0 %v4789_v17  ;;  %v4807_v33 = vld [vmem:[#allocation8 + $0x68] ss:$12 sps:$4 sm:$0xff]   ;;  %v4808_v34 = vld [vmem:[#allocation8 + $0x90] ss:$12 sps:$4 sm:$0xff]   ;;  %v4811_v36 = vld [vmem:[#allocation8 + $0x80] ss:$12 sps:$4 sm:$0xff]  }
 0x177   : > { %v4812_v37 = vld [vmem:[#allocation8 + $0xa8] ss:$12 sps:$4 sm:$0xff]   ;;  %v4813_v38 = vld [vmem:[#allocation8 + $0x98] ss:$12 sps:$4 sm:$0xff]   ;;  %v4814_v40 = vld [vmem:[#allocation8 + $0xb0] ss:$12 sps:$4 sm:$0xff]  }
 0x178   : > { %595 = vadd.xlane.f32.xlu1 %v6056_v6  ;;  %4375 = vmatpush3.bf16.msra.mxu1 %v4795_v22  ;;  %s3826_s19 = sshll.u32 %s7073_s29, 4  ;;  %s7250_s16 = sld [smem:[#allocation53_spill]]  ;;  %s7100_s19 = int_to_ptr.vmem [resolvable:$true] %s3826_s19 }
 0x179   : > { %891 = vmatpush1.bf16.msra.mxu0 %v4792_v19  ;;  %4376 = vmatprep.subr.bf16.mxu1 %v4799_v27  ;;  %s3813_s30 = scalar_lea.sflag [#allocation4], %s6004_s5  ;;  %s5473_s27 = scalar_lea.vmem %s7100_s19, 1024 }
 0x17a   : > { %626 = vadd.xlane.f32.xlu0 %v616_v7  ;;  %892 = vmatprep.subr.bf16.mxu0 %v4793_v21  ;;  %p5474_p2 = scmp.ne.s32.totalorder %s7100_s19, %s5473_s27  ;;  %p7252_p8 = scmp.ne.s32.totalorder %s7200_s17, 0 }
 0x17b   : > { %s5589_s18 = smov [#allocation22]  }
 0x17c   : > { %628 = vadd.xlane.f32.xlu1 %v617_v8  ;;  %4377 = vmatpush3.bf16.msra.mxu1 %v4799_v27  ;;  %p5475_p6 = pnand %p5474_p2, %p7252_p8 }
 0x17d   : > { %893 = vmatpush1.bf16.msra.mxu0 %v4796_v24  ;;  %4378 = vmatprep.subr.bf16.mxu1 %v4803_v30 }
 0x17e   : > { %597 = vadd.xlane.f32.xlu0 %v6065_v9  ;;  %894 = vmatprep.subr.bf16.mxu0 %v4797_v26  ;;  %s7098_s14 = scalar_lea.hbm %s7250_s16, %s4191_s12  ;;  %p5476_p11 = pneg %p5475_p6 }
 0x180   : > { %599 = vadd.xlane.f32.xlu1 %v6068_v11  ;;  %4379 = vmatpush3.bf16.msra.mxu1 %v4803_v30 }
 0x181   : > { %895 = vmatpush1.bf16.msra.mxu0 %v4800_v28  ;;  %4380 = vmatprep.subr.bf16.mxu1 %v4807_v33 }
 0x182   : > { %630 = vadd.xlane.f32.xlu0 %v618_v13  ;;  %896 = vmatprep.subr.bf16.mxu0 %v4801_v29 }
 0x184   : > { %632 = vadd.xlane.f32.xlu1 %v619_v15  ;;  %4381 = vmatpush3.bf16.msra.mxu1 %v4807_v33 }
 0x185   : > { %897 = vmatpush1.bf16.msra.mxu0 %v4804_v31  ;;  %4382 = vmatprep.subr.bf16.mxu1 %v4811_v36 }
 0x186   : > { %601 = vadd.xlane.f32.xlu0 %v6077_v16  ;;  %898 = vmatprep.subr.bf16.mxu0 %v4805_v32 }
 0x188   : > { %603 = vadd.xlane.f32.xlu1 %v6080_v20  ;;  %4383 = vmatpush3.bf16.msra.mxu1 %v4811_v36 }
 0x189   : > { %899 = vmatpush1.bf16.msra.mxu0 %v4808_v34  ;;  %4384 = vmatprep.subr.bf16.mxu1 %v4813_v38 }
 0x18a   : > { %634 = vadd.xlane.f32.xlu0 %v620_v23  ;;  %900 = vmatprep.subr.bf16.mxu0 %v4809_v35  ;;  %v6094_v23 = vld [vmem:[#allocation5] ss:$0 sm:$0xff]  ;;  %v4036_v35 = vld [vmem:[#allocation7] ss:$0 sm:$0xff] }
 0x18c   : > { %636 = vadd.xlane.f32.xlu1 %v621_v25  ;;  %4385 = vmatpush3.bf16.msra.mxu1 %v4813_v38 }
 0x18d   : > { %901 = vmatpush1.bf16.msra.mxu0 %v4812_v37  ;;  %4386 = vmatprep.subr.bf16.mxu1 %v4814_v40 }
 0x190   : > { %4387 = vmatpush3.bf16.msra.mxu1 %v4814_v40 }
 0x1fb   : > { %v590_v41 = vpop.xlane.xlu0 %589 }
 0x1fc   : > { %v606_v42 = vmul.f32 0.0078125, %v590_v41 }
 0x1fd   : > { %v623_v43 = vpop.xlane.xlu1 %622 }
 0x1fe   : > { %v646_v44 = vmul.f32 %v606_v42, %v606_v42  ;;  %v638_v45 = vmul.f32 0.0078125, %v623_v43  ;;  %v678_v12 = vsub.f32 %v6041_v0, %v606_v42 }
 0x1ff   : > { %v592_v46 = vpop.xlane.xlu0 %591 }
 0x200   : > { %v654_v47 = vsub.f32 %v638_v45, %v646_v44  ;;  %v607_v48 = vmul.f32 0.0078125, %v592_v46 }
 0x201   : > { %v625_v49 = vpop.xlane.xlu1 %624 }
 0x202   : > { %v662_v50 = vadd.f32 1e-05, %v654_v47  ;;  %v647_v51 = vmul.f32 %v607_v48, %v607_v48  ;;  %v639_v52 = vmul.f32 0.0078125, %v625_v49  ;;  %v679_v24 = vsub.f32 %v6044_v1, %v607_v48 }
 0x203   : > { %v594_v53 = vpop.xlane.xlu0 %593 }
 0x204   : > { %4903 = vrsqrt.f32 %v662_v50  ;;  %v655_v54 = vsub.f32 %v639_v52, %v647_v51  ;;  %v608_v55 = vmul.f32 0.0078125, %v594_v53 }
 0x205   : > { %v596_v56 = vpop.xlane.xlu1 %595 }
 0x206   : > { %v663_v57 = vadd.f32 1e-05, %v655_v54  ;;  %v648_v58 = vmul.f32 %v608_v55, %v608_v55  ;;  %v609_v59 = vmul.f32 0.0078125, %v596_v56  ;;  %v680_v1 = vsub.f32 %v6052_v5, %v608_v55 }
 0x207   : > { %v627_v60 = vpop.xlane.xlu0 %626 }
 0x208   : > { %4905 = vrsqrt.f32 %v663_v57  ;;  %v640_v61 = vmul.f32 0.0078125, %v627_v60  ;;  %v649_v63 = vmul.f32 %v609_v59, %v609_v59  ;;  %v681_v47 = vsub.f32 %v6056_v6, %v609_v59 }
 0x209   : > { %v629_v62 = vpop.xlane.xlu1 %628 }
 0x20a   : > { %v656_v2 = vsub.f32 %v640_v61, %v648_v58  ;;  %v641_v3 = vmul.f32 0.0078125, %v629_v62 }
 0x20b   : > { %v598_v4 = vpop.xlane.xlu0 %597 }
 0x20c   : > { %v664_v7 = vadd.f32 1e-05, %v656_v2  ;;  %v657_v8 = vsub.f32 %v641_v3, %v649_v63  ;;  %v6089_v10 = vmul.f32 0.0078125, %v598_v4 }
 0x20d   : > { %v600_v13 = vpop.xlane.xlu1 %599 }
 0x20e   : > { %v4904_v14 = vpop.eup %4903  ;;  %4907 = vrsqrt.f32 %v664_v7  ;;  %v665_v15 = vadd.f32 1e-05, %v657_v8  ;;  %v650_v17 = vmul.f32 %v6089_v10, %v6089_v10  ;;  %v611_v18 = vmul.f32 0.0078125, %v600_v13 }
 0x20f   : > { %v631_v19 = vpop.xlane.xlu0 %630  ;;  %v686_v21 = vmul.f32 %v4904_v14, %v678_v12  ;;  %v682_v59 = vsub.f32 %v6065_v9, %v6089_v10 }
 0x210   : > { %4909 = vrsqrt.f32 %v665_v15  ;;  %v642_v22 = vmul.f32 0.0078125, %v631_v19  ;;  %v651_v27 = vmul.f32 %v611_v18, %v611_v18  ;;  %v683_v63 = vsub.f32 %v6068_v11, %v611_v18 }
 0x211   : > { %v633_v25 = vpop.xlane.xlu1 %632  ;;  %v700_v31 = vmul.f32 %v6094_v23, %v686_v21 }
 0x212   : > { %v4906_v26 = vpop.eup %4905  ;;  %v658_v0 = vsub.f32 %v642_v22, %v650_v17  ;;  %v643_v28 = vmul.f32 0.0078125, %v633_v25 }
 0x213   : > { %v602_v29 = vpop.xlane.xlu0 %601  ;;  %v687_v30 = vmul.f32 %v4906_v26, %v679_v24  ;;  %v714_v43 = vadd.f32 %v4036_v35, %v700_v31 }
 0x214   : > { %v666_v32 = vadd.f32 1e-05, %v658_v0  ;;  %v659_v33 = vsub.f32 %v643_v28, %v651_v27  ;;  %v612_v34 = vmul.f32 0.0078125, %v602_v29 }
 0x215   : > { %v604_v36 = vpop.xlane.xlu1 %603  ;;  %v701_v37 = vmul.f32 %v6094_v23, %v687_v30 }
 0x216   : > { %4911 = vrsqrt.f32 %v666_v32  ;;  %v667_v38 = vadd.f32 1e-05, %v659_v33  ;;  %v652_v40 = vmul.f32 %v612_v34, %v612_v34  ;;  %v613_v41 = vmul.f32 0.0078125, %v604_v36 }
 0x217   : > { %v635_v42 = vpop.xlane.xlu0 %634  ;;  %v715_v44 = vadd.f32 %v4036_v35, %v701_v37  ;;  %v684_v9 = vsub.f32 %v6077_v16, %v612_v34 }
 0x218   : > { %v4908_v45 = vpop.eup %4907  ;;  %4913 = vrsqrt.f32 %v667_v38  ;;  %v644_v46 = vmul.f32 0.0078125, %v635_v42  ;;  %v653_v52 = vmul.f32 %v613_v41, %v613_v41  ;;  %v685_v15 = vsub.f32 %v6080_v20, %v613_v41 }
 0x219   : > { %v637_v48 = vpop.xlane.xlu1 %636  ;;  %v722_v49 = vpack.c.bf16 %v715_v44, %v714_v43  ;;  %v688_v50 = vmul.f32 %v4908_v45, %v680_v1 }
 0x21a   : > { %v4910_v51 = vpop.eup %4909  ;;  %v660_v53 = vsub.f32 %v644_v46, %v652_v40  ;;  %v645_v54 = vmul.f32 0.0078125, %v637_v48 }
 0x21b   : > { %919 = vmatmul.mubr.bf16.vlgmr.msra.gmra.mrb[0].mxu0 %v722_v49  ;;  %4388 = vmatprep.mubr.bf16.mxu1 %v722_v49  ;;  %v689_v56 = vmul.f32 %v4910_v51, %v681_v47  ;;  %v702_v5 = vmul.f32 %v6094_v23, %v688_v50 }
 0x21c   : > { %v668_v55 = vadd.f32 1e-05, %v660_v53  ;;  %v661_v57 = vsub.f32 %v645_v54, %v653_v52  ;;  %928 = vmatprep.mubr.bf16.mxu0 %v5585_v39 }
 0x21d   : > { %v703_v58 = vmul.f32 %v6094_v23, %v689_v56  ;;  %v716_v60 = vadd.f32 %v4036_v35, %v702_v5 }
 0x21e   : > { %4915 = vrsqrt.f32 %v668_v55  ;;  %v669_v6 = vadd.f32 1e-05, %v661_v57 }
 0x21f   : > { %v717_v61 = vadd.f32 %v4036_v35, %v703_v58 }
 0x220   : > { %v4912_v62 = vpop.eup %4911  ;;  %4917 = vrsqrt.f32 %v669_v6 }
 0x221   : > { %v723_v2 = vpack.c.bf16 %v717_v61, %v716_v60  ;;  %v690_v3 = vmul.f32 %v4912_v62, %v682_v59 }
 0x222   : > { %v4914_v4 = vpop.eup %4913 }
 0x223   : > { %929 = vmatmul.mubr.bf16.gmra.mrb[4].mxu0 %v723_v2  ;;  %4389 = vmatmul.mubr.bf16.vlgmr.msra.gmra.mrb[0].mxu1 %v723_v2  ;;  %v691_v7 = vmul.f32 %v4914_v4, %v683_v63  ;;  %v704_v8 = vmul.f32 %v6094_v23, %v690_v3 }
 0x224   : > { %938 = vmatprep.mubr.bf16.mxu0 %v5585_v39 }
 0x225   : > { %v705_v12 = vmul.f32 %v6094_v23, %v691_v7  ;;  %v718_v10 = vadd.f32 %v4036_v35, %v704_v8 }
 0x227   : > { %v719_v13 = vadd.f32 %v4036_v35, %v705_v12 }
 0x228   : > { %v4916_v14 = vpop.eup %4915 }
 0x229   : > { %v724_v11 = vpack.c.bf16 %v719_v13, %v718_v10  ;;  %v692_v17 = vmul.f32 %v4916_v14, %v684_v9 }
 0x22a   : > { %v4918_v18 = vpop.eup %4917 }
 0x22b   : > { %939 = vmatmul.mubr.bf16.gmra.mrb[8].mxu0 %v724_v11  ;;  %4392 = vmatprep.mubr.bf16.mxu1 %v724_v11  ;;  %v693_v19 = vmul.f32 %v4918_v18, %v685_v15  ;;  %v706_v21 = vmul.f32 %v6094_v23, %v692_v17 }
 0x22c   : > { %948 = vmatprep.mubr.bf16.mxu0 %v5585_v39 }
 0x22d   : > { %v707_v22 = vmul.f32 %v6094_v23, %v693_v19  ;;  %v720_v24 = vadd.f32 %v4036_v35, %v706_v21 }
 0x22f   : > { %v721_v25 = vadd.f32 %v4036_v35, %v707_v22 }
 0x231   : > { %v725_v16 = vpack.c.bf16 %v721_v25, %v720_v24 }
 0x233   : > { %949 = vmatmul.mubr.bf16.gmra.mrb[12].mxu0 %v725_v16  ;;  %4393 = vmatmul.mubr.bf16.gmra.mrb[4].mxu1 %v725_v16 }
 0x2ee   : > { %v920_v26 = vpop.f32.mrb[0].mxu0 }
 0x2ef   : > { %v922_v27 = vpop.f32.mrb[1].mxu0  ;;  %v1024_v0 = vmul.f32 0.17677669, %v920_v26 }
 0x2f0   : > { %v924_v20 = vpop.f32.mrb[2].mxu0 }
 0x2f1   : > { %v1025_v28 = vmul.f32 0.17677669, %v924_v20  ;;  %v926_v29 = vpop.f32.mrb[3].mxu0 }
 0x2f2   : > { %v6115_v30 = vpack.c.bf16 %v926_v29, %v922_v27 }
 0x2f3   : > { %v6117_v31 = vpack.c.bf16 %v1025_v28, %v1024_v0 }
 0x2f4   : > { %4596 = vmatprep.subr.msk.bf16.mxu0 %vm1044_vm0, %v6115_v30  ;;  %v1058_v23 = vsel %vm1044_vm0, %v6115_v30, 0 }
 0x2f5   : > { %4397 = vmatpush3.bf16.xpose.msra.mxu0 %v1058_v23  ;;  %4404 = vmatprep.mubr.msk.bf16.mxu0 %vm1044_vm0, %v6117_v31 }
 0x2f6   : > { %v930_v32 = vpop.f32.mrb[4].mxu0  ;;  %v4390_v33 = vpop.f32.mrb[0].mxu1 }
 0x2f7   : > { %v932_v34 = vpop.f32.mrb[5].mxu0  ;;  %v993_v35 = vpop.f32.mrb[1].mxu1  ;;  %v1026_v38 = vmul.f32 0.17677669, %v930_v32 }
 0x2f8   : > { %v934_v36 = vpop.f32.mrb[6].mxu0  ;;  %v4391_v37 = vpop.f32.mrb[2].mxu1 }
 0x2f9   : > { %v1027_v40 = vmul.f32 0.17677669, %v934_v36  ;;  %v6125_v1 = vpack.c.bf16 %v4391_v37, %v4390_v33  ;;  %v936_v41 = vpop.f32.mrb[7].mxu0  ;;  %v996_v42 = vpop.f32.mrb[3].mxu1 }
 0x2fa   : > { %v6127_v43 = vpack.c.bf16 %v936_v41, %v932_v34  ;;  %v6129_v44 = vpack.c.bf16 %v996_v42, %v993_v35 }
 0x2fb   : > { %v6131_v45 = vpack.c.bf16 %v1027_v40, %v1026_v38 }
 0x2fc   : > { %4597 = vmatprep.subr.msk.bf16.mxu0 %vm1044_vm0, %v6127_v43  ;;  %4412 = vmatprep.subr.bf16.mxu1 %v6129_v44  ;;  %v1061_v46 = vsel %vm1044_vm0, %v6127_v43, 0 }
 0x2fd   : > { %4399 = vmatpush3.bf16.xpose.msra.mxu0 %v1061_v46  ;;  %4413 = vmatpush3.bf16.msra.mxu1 %v6129_v44 }
 0x2fe   : > { %v940_v47 = vpop.f32.mrb[8].mxu0  ;;  %4414 = vmatprep.subr.bf16.mxu1 %v6125_v1 }
 0x2ff   : > { %v942_v48 = vpop.f32.mrb[9].mxu0  ;;  %v1028_v50 = vmul.f32 0.17677669, %v940_v47 }
 0x300   : > { %v944_v49 = vpop.f32.mrb[10].mxu0 }
 0x301   : > { %v1029_v51 = vmul.f32 0.17677669, %v944_v49  ;;  %v946_v52 = vpop.f32.mrb[11].mxu0  ;;  %4415 = vmatpush3.bf16.msra.mxu1 %v6125_v1 }
 0x302   : > { %v6141_v53 = vpack.c.bf16 %v946_v52, %v942_v48 }
 0x303   : > { %v6143_v54 = vpack.c.bf16 %v1029_v51, %v1028_v50 }
 0x304   : > { %4598 = vmatprep.subr.msk.bf16.mxu0 %vm1044_vm0, %v6141_v53  ;;  %v1064_v56 = vsel %vm1044_vm0, %v6141_v53, 0 }
 0x305   : > { %4401 = vmatpush3.bf16.xpose.msra.mxu0 %v1064_v56 }
 0x306   : > { %v950_v5 = vpop.f32.mrb[12].mxu0  ;;  %v4394_v55 = vpop.f32.mrb[4].mxu1 }
 0x307   : > { %v952_v57 = vpop.f32.mrb[13].mxu0  ;;  %v1009_v58 = vpop.f32.mrb[5].mxu1  ;;  %v1030_v60 = vmul.f32 0.17677669, %v950_v5 }
 0x308   : > { %v954_v6 = vpop.f32.mrb[14].mxu0  ;;  %v4395_v59 = vpop.f32.mrb[6].mxu1 }
 0x309   : > { %v1031_v61 = vmul.f32 0.17677669, %v954_v6  ;;  %v6149_v62 = vpack.c.bf16 %v4395_v59, %v4394_v55  ;;  %v956_v63 = vpop.f32.mrb[15].mxu0  ;;  %v1012_v2 = vpop.f32.mrb[7].mxu1 }
 0x30a   : > { %v6151_v3 = vpack.c.bf16 %v956_v63, %v952_v57  ;;  %v6153_v4 = vpack.c.bf16 %v1012_v2, %v1009_v58 }
 0x30b   : > { %v6155_v7 = vpack.c.bf16 %v1031_v61, %v1030_v60 }
 0x30c   : > { %4599 = vmatprep.subr.msk.bf16.mxu0 %vm1044_vm0, %v6151_v3  ;;  %4416 = vmatprep.subr.bf16.mxu1 %v6153_v4  ;;  %v1067_v8 = vsel %vm1044_vm0, %v6151_v3, 0 }
 0x30d   : > { %4403 = vmatpush3.bf16.xpose.msra.mxu0 %v1067_v8  ;;  %4417 = vmatpush3.bf16.msra.mxu1 %v6153_v4 }
 0x30e   : > { %4418 = vmatprep.subr.bf16.mxu1 %v6149_v62 }
 0x311   : > { %4419 = vmatpush3.bf16.msra.mxu1 %v6149_v62 }
 0x314   : > { %4405 = vmatmul.mubr.msk.bf16.vlgmr.msra.gmra.mrb[16].mxu0 %vm1044_vm0, %v6131_v45 }
 0x315   : > { %4408 = vmatprep.mubr.msk.bf16.mxu0 %vm1044_vm0, %v6143_v54 }
 0x31c   : > { %4409 = vmatmul.mubr.msk.bf16.gmra.mrb[20].mxu0 %vm1044_vm0, %v6155_v7 }
 0x3e7   : > { %v4406_v12 = vpop.f32.mrb[16].mxu0 }
 0x3e8   : > { %v1103_v9 = vpop.f32.mrb[17].mxu0  ;;  %v1141_v10 = vsel %vm1134_vm1, %v4406_v12, -inf }
 0x3e9   : > { %1142 = vmax.xlane.f32.xlu0 %v1141_v10  ;;  %v4407_v13 = vpop.f32.mrb[18].mxu0  ;;  %v1135_v11 = vsel %vm1134_vm1, %v1103_v9, -inf }
 0x3ea   : > { %v1106_v14 = vpop.f32.mrb[19].mxu0  ;;  %v1144_v15 = vsel %vm1134_vm1, %v4407_v13, -inf }
 0x3eb   : > { %1145 = vmax.xlane.f32.xlu1 %v1144_v15  ;;  %v1138_v17 = vsel %vm1134_vm1, %v1106_v14, -inf }
 0x3ed   : > { %1136 = vmax.xlane.f32.xlu0 %v1135_v11 }
 0x3ef   : > { %1139 = vmax.xlane.f32.xlu1 %v1138_v17  ;;  %v6175_v18 = vpop.f32.mrb[20].mxu0 }
 0x3f0   : > { %v6177_v19 = vpop.f32.mrb[21].mxu0  ;;  %v1153_v21 = vsel %vm1134_vm1, %v6175_v18, -inf }
 0x3f1   : > { %1154 = vmax.xlane.f32.xlu0 %v1153_v21  ;;  %v6181_v22 = vpop.f32.mrb[22].mxu0  ;;  %v1147_v25 = vsel %vm1134_vm1, %v6177_v19, -inf }
 0x3f2   : > { %v6183_v24 = vpop.f32.mrb[23].mxu0  ;;  %v1156_v16 = vsel %vm1134_vm1, %v6181_v22, -inf }
 0x3f3   : > { %v1150_v26 = vsel %vm1134_vm1, %v6183_v24, -inf }
 0x3f5   : > { %1148 = vmax.xlane.f32.xlu0 %v1147_v25 }
 0x400   : > { %1330 = vrot.lane.b32.xlu1 %v6127_v43, %s5586_s28 }
 0x404   : > { %1332 = vrot.lane.b32.xlu1 %v6141_v53, %s5586_s28 }
 0x40b   : > { %1328 = vrot.lane.b32.xlu0 %v6115_v30, %s5586_s28 }
 0x40f   : > { %1316 = vrot.lane.b32.xlu0 %v6117_v31, %s5586_s28 }
 0x413   : > { %1320 = vrot.lane.b32.xlu0 %v6143_v54, %s5586_s28 }
 0x417   : > { %1513 = vrot.lane.b32.xlu0 %v6129_v44, %s5586_s28 }
 0x428   : > { %1157 = vmax.xlane.f32.xlu1 %v1156_v16 }
 0x42c   : > { %1151 = vmax.xlane.f32.xlu1 %v1150_v26 }
 0x43d   : > { %1334 = vrot.lane.b32.xlu1 %v6151_v3, %s5586_s28 }
 0x441   : > { %1318 = vrot.lane.b32.xlu1 %v6131_v45, %s5586_s28 }
 0x445   : > { %1322 = vrot.lane.b32.xlu1 %v6155_v7, %s5586_s28 }
 0x449   : > { %1515 = vrot.lane.b32.xlu1 %v6125_v1, %s5586_s28 }
 0x44d   : > { %1517 = vrot.lane.b32.xlu1 %v6153_v4, %s5586_s28 }
 0x451   : > { %1519 = vrot.lane.b32.xlu1 %v6149_v62, %s5586_s28 }
 0x476   : > { %v1143_v27 = vpop.xlane.xlu0 %1142 }
 0x477   : > { %v1161_v20 = vsub.f32 %v4406_v12, %v1143_v27 }
 0x478   : > { %v1146_v0 = vpop.xlane.xlu1 %1145 }
 0x479   : > { %v1171_v28 = vmul.f32 1.442695, %v1161_v20  ;;  %v1162_v29 = vsub.f32 %v4407_v13, %v1146_v0 }
 0x47a   : > { %v1137_v23 = vpop.xlane.xlu0 %1136 }
 0x47b   : > { %v1173_v32 = vmul.f32 1.442695, %v1162_v29  ;;  %v1159_v33 = vsub.f32 %v1103_v9, %v1137_v23  ;;  %4919 = vpow2.f32 %v1171_v28 }
 0x47c   : > { %v1140_v34 = vpop.xlane.xlu1 %1139 }
 0x47d   : > { %4921 = vpow2.f32 %v1173_v32  ;;  %v1167_v35 = vmul.f32 1.442695, %v1159_v33  ;;  %v1160_v36 = vsub.f32 %v1106_v14, %v1140_v34 }
 0x47e   : > { %v1155_v37 = vpop.xlane.xlu0 %1154 }
 0x47f   : > { %v1169_v38 = vmul.f32 1.442695, %v1160_v36  ;;  %4923 = vpow2.f32 %v1167_v35  ;;  %v1165_v57 = vsub.f32 %v6175_v18, %v1155_v37 }
 0x480   : > { %v1331_v52 = vpop.permute.xlu1 %1330 }
 0x481   : > { %4925 = vpow2.f32 %v1169_v38  ;;  %v1352_v56 = vsel %vm1044_vm0, %v1331_v52, 0  ;;  %v1179_v6 = vmul.f32 1.442695, %v1165_v57 }
 0x482   : > { %v1149_v40 = vpop.xlane.xlu0 %1148 }
 0x483   : > { %v1163_v59 = vsub.f32 %v6177_v19, %v1149_v40  ;;  %4927 = vpow2.f32 %v1179_v6 }
 0x484   : > { %v1333_v5 = vpop.permute.xlu1 %1332 }
 0x485   : > { %v6203_v41 = vpop.eup %4919  ;;  %v1355_v55 = vsel %vm1044_vm0, %v1333_v5, 0  ;;  %v1175_v2 = vmul.f32 1.442695, %v1163_v59 }
 0x486   : > { %v1329_v42 = vpop.permute.xlu0 %1328 }
 0x487   : > { %v6205_v46 = vpop.eup %4921  ;;  %4600 = vmatprep.subr.msk.bf16.mxu1 %vm1044_vm0, %v1329_v42  ;;  %v1349_v51 = vsel %vm1044_vm0, %v1329_v42, 0 }
 0x488   : > { %v1216_v47 = vpack.c.bf16 %v6205_v46, %v6203_v41 }
 0x489   : > { %v6210_v48 = vpop.eup %4923 }
 0x48a   : > { %v1317_v58 = vpop.permute.xlu0 %1316 }
 0x48b   : > { %v6212_v49 = vpop.eup %4925 }
 0x48c   : > { %v1215_v50 = vpack.c.bf16 %v6212_v49, %v6210_v48 }
 0x48d   : > { %v6229_v11 = vpop.eup %4927 }
 0x48e   : > { %4420 = vmatprep.mubr.msk.bf16.mxu1 %vm1134_vm1, %v1215_v50  ;;  %v1321_v8 = vpop.permute.xlu0 %1320 }
 0x48f   : > { %4421 = vmatmul.mubr.msk.bf16.vlgmr.msra.gmra.mrb[8].mxu1 %vm1134_vm1, %v1216_v47 }
 0x490   : > { %4429 = vmatpush3.bf16.xpose.msra.mxu1 %v1349_v51 }
 0x491   : > { %4601 = vmatprep.subr.msk.bf16.mxu1 %vm1044_vm0, %v1331_v52 }
 0x492   : > { %v1514_v15 = vpop.permute.xlu0 %1513 }
 0x498   : > { %4431 = vmatpush3.bf16.xpose.msra.mxu1 %v1352_v56 }
 0x499   : > { %4602 = vmatprep.subr.msk.bf16.mxu1 %vm1044_vm0, %v1333_v5 }
 0x4a0   : > { %4433 = vmatpush3.bf16.xpose.msra.mxu1 %v1355_v55 }
 0x4b5   : > { %v1158_v60 = vpop.xlane.xlu1 %1157 }
 0x4b6   : > { %v1166_v61 = vsub.f32 %v6181_v22, %v1158_v60 }
 0x4b8   : > { %v1181_v63 = vmul.f32 1.442695, %v1166_v61 }
 0x4b9   : > { %v1152_v12 = vpop.xlane.xlu1 %1151 }
 0x4ba   : > { %4929 = vpow2.f32 %v1181_v63  ;;  %v1164_v9 = vsub.f32 %v6183_v24, %v1152_v12 }
 0x4bb   : > { %4931 = vpow2.f32 %v1175_v2 }
 0x4bc   : > { %v1177_v10 = vmul.f32 1.442695, %v1164_v9 }
 0x4bd   : > { %v1335_v13 = vpop.permute.xlu1 %1334 }
 0x4be   : > { %4933 = vpow2.f32 %v1177_v10  ;;  %4603 = vmatprep.subr.msk.bf16.mxu1 %vm1044_vm0, %v1335_v13  ;;  %v1358_v14 = vsel %vm1044_vm0, %v1335_v13, 0 }
 0x4bf   : > { %4435 = vmatpush3.bf16.xpose.msra.mxu1 %v1358_v14 }
 0x4c0   : > { %4444 = vmatprep.subr.bf16.mxu1 %v1514_v15 }
 0x4c1   : > { %v1319_v18 = vpop.permute.xlu1 %1318 }
 0x4c4   : > { %v6231_v17 = vpop.eup %4929 }
 0x4c5   : > { %v1218_v19 = vpack.c.bf16 %v6231_v17, %v6229_v11  ;;  %v6235_v21 = vpop.eup %4931  ;;  %v1323_v25 = vpop.permute.xlu1 %1322  ;;  %v1204_v59 = vsel %vm1134_vm1, %v6231_v17, 0.0 }
 0x4c8   : > { %v6237_v22 = vpop.eup %4933 }
 0x4c9   : > { %v1217_v24 = vpack.c.bf16 %v6237_v22, %v6235_v21  ;;  %v1516_v16 = vpop.permute.xlu1 %1515 }
 0x4cb   : > { %4424 = vmatprep.mubr.msk.bf16.mxu1 %vm1134_vm1, %v1217_v24 }
 0x4cc   : > { %4425 = vmatmul.mubr.msk.bf16.gmra.mrb[12].mxu1 %vm1134_vm1, %v1218_v19 }
 0x4cd   : > { %4436 = vmatprep.mubr.msk.bf16.mxu1 %vm1044_vm0, %v1317_v58  ;;  %v1518_v26 = vpop.permute.xlu1 %1517 }
 0x4d1   : > { %v1520_v27 = vpop.permute.xlu1 %1519 }
 0x4d4   : > { %4437 = vmatmul.mubr.msk.bf16.vlgmr.msra.gmra.mrb[16].mxu1 %vm1044_vm0, %v1319_v18 }
 0x4d5   : > { %4445 = vmatpush3.bf16.msra.mxu1 %v1514_v15  ;;  %4440 = vmatprep.mubr.msk.bf16.mxu1 %vm1044_vm0, %v1321_v8 }
 0x4d6   : > { %4446 = vmatprep.subr.bf16.mxu1 %v1516_v16 }
 0x4d9   : > { %4447 = vmatpush3.bf16.msra.mxu1 %v1516_v16 }
 0x4da   : > { %4448 = vmatprep.subr.bf16.mxu1 %v1518_v26 }
 0x4dc   : > { %4441 = vmatmul.mubr.msk.bf16.gmra.mrb[20].mxu1 %vm1044_vm0, %v1323_v25 }
 0x4dd   : > { %4449 = vmatpush3.bf16.msra.mxu1 %v1518_v26 }
 0x4de   : > { %4450 = vmatprep.subr.bf16.mxu1 %v1520_v27 }
 0x4e1   : > { %4451 = vmatpush3.bf16.msra.mxu1 %v1520_v27 }
 0x562   : > { %v6247_v20 = vpop.f32.mrb[8].mxu1 }
 0x563   : > { %v6249_v0 = vpop.f32.mrb[9].mxu1 }
 0x564   : > { %v6251_v28 = vpop.f32.mrb[10].mxu1 }
 0x565   : > { %v6253_v29 = vpop.f32.mrb[11].mxu1 }
 0x59f   : > { %v6255_v23 = vpop.f32.mrb[12].mxu1 }
 0x5a0   : > { %v6257_v32 = vpop.f32.mrb[13].mxu1 }
 0x5a1   : > { %v6259_v33 = vpop.f32.mrb[14].mxu1 }
 0x5a2   : > { %v6261_v34 = vpop.f32.mrb[15].mxu1 }
 0x5a7   : > { %v4438_v35 = vpop.f32.mrb[16].mxu1 }
 0x5a8   : > { %v6263_v36 = vpop.f32.mrb[17].mxu1  ;;  %v1431_v37 = vsel %vm1134_vm1, %v4438_v35, -inf }
 0x5a9   : > { %1432 = vmax.xlane.f32.xlu0 %v1431_v37  ;;  %v6266_v38 = vpop.f32.mrb[18].mxu1  ;;  %v1425_v47 = vsel %vm1134_vm1, %v6263_v36, -inf }
 0x5aa   : > { %v1397_v40 = vpop.f32.mrb[19].mxu1  ;;  %v1434_v52 = vsel %vm1134_vm1, %v6266_v38, -inf }
 0x5ab   : > { %v1428_v42 = vsel %vm1134_vm1, %v1397_v40, -inf }
 0x5ac   : > { %1429 = vmax.xlane.f32.xlu1 %v1428_v42 }
 0x5ad   : > { %1426 = vmax.xlane.f32.xlu0 %v1425_v47 }
 0x5af   : > { %v6271_v50 = vpop.f32.mrb[20].mxu1 }
 0x5b0   : > { %v6273_v51 = vpop.f32.mrb[21].mxu1  ;;  %v1443_v55 = vsel %vm1134_vm1, %v6271_v50, -inf }
 0x5b1   : > { %1435 = vmax.xlane.f32.xlu0 %v1434_v52  ;;  %v6277_v56 = vpop.f32.mrb[22].mxu1  ;;  %v1437_v57 = vsel %vm1134_vm1, %v6273_v51, -inf }
 0x5b2   : > { %v6279_v5 = vpop.f32.mrb[23].mxu1  ;;  %v1446_v58 = vsel %vm1134_vm1, %v6277_v56, -inf }
 0x5b3   : > { %v1440_v6 = vsel %vm1134_vm1, %v6279_v5, -inf }
 0x5b5   : > { %1444 = vmax.xlane.f32.xlu0 %v1443_v55 }
 0x5b9   : > { %1438 = vmax.xlane.f32.xlu0 %v1437_v57 }
 0x5bd   : > { %1806 = vrot.lane.b32.xlu1 %v6127_v43, %s5587_s15  ;;  %1447 = vmax.xlane.f32.xlu0 %v1446_v58 }
 0x5c1   : > { %1808 = vrot.lane.b32.xlu1 %v6141_v53, %s5587_s15 }
 0x5d3   : > { %1804 = vrot.lane.b32.xlu0 %v6115_v30, %s5587_s15 }
 0x5d7   : > { %1796 = vrot.lane.b32.xlu0 %v6117_v31, %s5587_s15 }
 0x5db   : > { %1800 = vrot.lane.b32.xlu0 %v6143_v54, %s5587_s15 }
 0x5df   : > { %2195 = vrot.lane.b32.xlu0 %v6115_v30, %s5588_s3  ;;  %v1183_v30 = vsel %vm1134_vm1, %v6210_v48, 0.0 }
 0x5e3   : > { %2199 = vrot.lane.b32.xlu0 %v6141_v53, %s5588_s3  ;;  %v1195_v53 = vsel %vm1134_vm1, %v6235_v21, 0.0 }
 0x5e5   : > { %1441 = vmax.xlane.f32.xlu1 %v1440_v6 }
 0x5e7   : > { %2187 = vrot.lane.b32.xlu0 %v6117_v31, %s5588_s3  ;;  %v1186_v31 = vsel %vm1134_vm1, %v6212_v49, 0.0 }
 0x5eb   : > { %2191 = vrot.lane.b32.xlu0 %v6143_v54, %s5588_s3  ;;  %v1201_v54 = vsel %vm1134_vm1, %v6229_v11, 0.0 }
 0x5f6   : > { %1810 = vrot.lane.b32.xlu1 %v6151_v3, %s5587_s15 }
 0x5fa   : > { %1798 = vrot.lane.b32.xlu1 %v6131_v45, %s5587_s15 }
 0x5fe   : > { %1802 = vrot.lane.b32.xlu1 %v6155_v7, %s5587_s15 }
 0x602   : > { %2197 = vrot.lane.b32.xlu1 %v6127_v43, %s5588_s3  ;;  %v1189_v43 = vsel %vm1134_vm1, %v6203_v41, 0.0 }
 0x606   : > { %2201 = vrot.lane.b32.xlu1 %v6151_v3, %s5588_s3  ;;  %v1198_v3 = vsel %vm1134_vm1, %v6237_v22, 0.0 }
 0x60a   : > { %1184 = vadd.xlane.f32.xlu0 %v1183_v30  ;;  %2189 = vrot.lane.b32.xlu1 %v6131_v45, %s5588_s3  ;;  %v1192_v45 = vsel %vm1134_vm1, %v6205_v46, 0.0 }
 0x60e   : > { %1187 = vadd.xlane.f32.xlu0 %v1186_v31  ;;  %2193 = vrot.lane.b32.xlu1 %v6155_v7, %s5588_s3 }
 0x612   : > { %1190 = vadd.xlane.f32.xlu0 %v1189_v43 }
 0x616   : > { %1196 = vadd.xlane.f32.xlu0 %v1195_v53 }
 0x61a   : > { %1202 = vadd.xlane.f32.xlu0 %v1201_v54 }
 0x632   : > { %1193 = vadd.xlane.f32.xlu1 %v1192_v45 }
 0x636   : > { %v1433_v7 = vpop.xlane.xlu0 %1432  ;;  %1199 = vadd.xlane.f32.xlu1 %v1198_v3 }
 0x637   : > { %v1451_v48 = vsub.f32 %v4438_v35, %v1433_v7 }
 0x639   : > { %v1461_v41 = vmul.f32 1.442695, %v1451_v48  ;;  %v1430_v49 = vpop.xlane.xlu1 %1429 }
 0x63a   : > { %v1450_v60 = vsub.f32 %v1397_v40, %v1430_v49  ;;  %v1427_v61 = vpop.xlane.xlu0 %1426  ;;  %1205 = vadd.xlane.f32.xlu1 %v1204_v59 }
 0x63b   : > { %4935 = vpow2.f32 %v1461_v41  ;;  %v1449_v63 = vsub.f32 %v6263_v36, %v1427_v61 }
 0x63c   : > { %v1459_v2 = vmul.f32 1.442695, %v1450_v60 }
 0x63d   : > { %v1457_v46 = vmul.f32 1.442695, %v1449_v63 }
 0x63e   : > { %4937 = vpow2.f32 %v1459_v2  ;;  %v1436_v8 = vpop.xlane.xlu0 %1435 }
 0x63f   : > { %4939 = vpow2.f32 %v1457_v46  ;;  %v1452_v12 = vsub.f32 %v6266_v38, %v1436_v8 }
 0x641   : > { %v1463_v9 = vmul.f32 1.442695, %v1452_v12 }
 0x642   : > { %v1445_v10 = vpop.xlane.xlu0 %1444 }
 0x643   : > { %4941 = vpow2.f32 %v1463_v9  ;;  %v1455_v13 = vsub.f32 %v6271_v50, %v1445_v10  ;;  %v1807_v50 = vpop.permute.xlu1 %1806 }
 0x644   : > { %v1828_v55 = vsel %vm1044_vm0, %v1807_v50, 0 }
 0x645   : > { %v4936_v14 = vpop.eup %4935  ;;  %v1469_v15 = vmul.f32 1.442695, %v1455_v13 }
 0x646   : > { %v1439_v11 = vpop.xlane.xlu0 %1438  ;;  %v1479_v17 = vsel %vm1134_vm1, %v4936_v14, 0.0 }
 0x647   : > { %4943 = vpow2.f32 %v1469_v15  ;;  %v1453_v18 = vsub.f32 %v6273_v51, %v1439_v11  ;;  %1480 = vadd.xlane.f32.xlu0 %v1479_v17  ;;  %v1809_v58 = vpop.permute.xlu1 %1808 }
 0x648   : > { %v4938_v19 = vpop.eup %4937  ;;  %v1831_v31 = vsel %vm1044_vm0, %v1809_v58, 0 }
 0x649   : > { %v4940_v21 = vpop.eup %4939  ;;  %v1465_v22 = vmul.f32 1.442695, %v1453_v18  ;;  %v1476_v24 = vsel %vm1134_vm1, %v4938_v19, 0.0 }
 0x64a   : > { %v1448_v25 = vpop.xlane.xlu0 %1447  ;;  %1477 = vadd.xlane.f32.xlu1 %v1476_v24  ;;  %v1473_v16 = vsel %vm1134_vm1, %v4940_v21, 0.0  ;;  %v1505_v26 = vpack.c.bf16 %v4938_v19, %v4940_v21  ;;  %v4815_v19 = vld [vmem:[#allocation10 + $0x10] sm:$0xff]  }
 0x64b   : > { %4945 = vpow2.f32 %v1465_v22  ;;  %v1456_v27 = vsub.f32 %v6277_v56, %v1448_v25  ;;  %1474 = vadd.xlane.f32.xlu0 %v1473_v16  ;;  %4460 = vmatprep.subr.bf16.mxu0 %v4815_v19  ;;  %v4816_v16 = vld [vmem:[#allocation10 + $0x18] sm:$0xff]  }
 0x64c   : > { %4452 = vmatprep.mubr.msk.bf16.mxu1 %vm1134_vm1, %v1505_v26  ;;  %4461 = vmatpush3.bf16.msra.mxu0 %v4815_v19 }
 0x64d   : > { %v4942_v35 = vpop.eup %4941  ;;  %v1471_v36 = vmul.f32 1.442695, %v1456_v27  ;;  %4462 = vmatprep.subr.bf16.mxu0 %v4816_v16 }
 0x64e   : > { %v1506_v37 = vpack.c.bf16 %v4942_v35, %v4936_v14  ;;  %v1805_v38 = vpop.permute.xlu0 %1804  ;;  %v1482_v40 = vsel %vm1134_vm1, %v4942_v35, 0.0 }
 0x64f   : > { %4947 = vpow2.f32 %v1471_v36  ;;  %v1825_v42 = vsel %vm1044_vm0, %v1805_v38, 0  ;;  %1483 = vadd.xlane.f32.xlu0 %v1482_v40  ;;  %4604 = vmatprep.subr.msk.bf16.mxu1 %vm1044_vm0, %v1805_v38 }
 0x650   : > { %4453 = vmatmul.mubr.msk.bf16.vlgmr.msra.gmra.mrb[24].mxu1 %vm1134_vm1, %v1506_v37  ;;  %4463 = vmatpush3.bf16.msra.mxu0 %v4816_v16 }
 0x651   : > { %v4944_v47 = vpop.eup %4943  ;;  %4485 = vmatpush3.bf16.xpose.msra.mxu1 %v1825_v42 }
 0x652   : > { %4605 = vmatprep.subr.msk.bf16.mxu1 %vm1044_vm0, %v1807_v50  ;;  %v1491_v51 = vsel %vm1134_vm1, %v4944_v47, 0.0  ;;  %v1797_v43 = vpop.permute.xlu0 %1796 }
 0x653   : > { %1492 = vadd.xlane.f32.xlu0 %v1491_v51 }
 0x655   : > { %v4946_v52 = vpop.eup %4945 }
 0x656   : > { %v1485_v56 = vsel %vm1134_vm1, %v4946_v52, 0.0  ;;  %v1801_v53 = vpop.permute.xlu0 %1800 }
 0x657   : > { %1486 = vadd.xlane.f32.xlu1 %v1485_v56 }
 0x659   : > { %v4948_v57 = vpop.eup %4947  ;;  %4487 = vmatpush3.bf16.xpose.msra.mxu1 %v1828_v55 }
 0x65a   : > { %4606 = vmatprep.subr.msk.bf16.mxu1 %vm1044_vm0, %v1809_v58  ;;  %v1494_v6 = vsel %vm1134_vm1, %v4948_v57, 0.0  ;;  %v1508_v30 = vpack.c.bf16 %v4948_v57, %v4944_v47  ;;  %v2196_v41 = vpop.permute.xlu0 %2195 }
 0x65b   : > { %1495 = vadd.xlane.f32.xlu1 %v1494_v6  ;;  %v2216_v2 = vsel %vm1044_vm0, %v2196_v41, 0 }
 0x661   : > { %4489 = vmatpush3.bf16.xpose.msra.mxu1 %v1831_v31 }
 0x672   : > { %v1442_v54 = vpop.xlane.xlu1 %1441 }
 0x673   : > { %v1454_v45 = vsub.f32 %v6279_v5, %v1442_v54  ;;  %v2200_v5 = vpop.permute.xlu0 %2199 }
 0x674   : > { %v2222_v14 = vsel %vm1044_vm0, %v2200_v5, 0 }
 0x675   : > { %v1467_v3 = vmul.f32 1.442695, %v1454_v45 }
 0x676   : > { %v1811_v7 = vpop.permute.xlu1 %1810 }
 0x677   : > { %4949 = vpow2.f32 %v1467_v3  ;;  %v1834_v48 = vsel %vm1044_vm0, %v1811_v7, 0  ;;  %4607 = vmatprep.subr.msk.bf16.mxu1 %vm1044_vm0, %v1811_v7  ;;  %v2188_v46 = vpop.permute.xlu0 %2187 }
 0x678   : > { %4491 = vmatpush3.bf16.xpose.msra.mxu1 %v1834_v48 }
 0x679   : > { %4608 = vmatprep.subr.msk.bf16.mxu1 %vm1044_vm0, %v2196_v41 }
 0x67a   : > { %v1799_v59 = vpop.permute.xlu1 %1798 }
 0x67b   : > { %v2192_v12 = vpop.permute.xlu0 %2191 }
 0x67e   : > { %v1803_v63 = vpop.permute.xlu1 %1802 }
 0x681   : > { %v4950_v49 = vpop.eup %4949 }
 0x682   : > { %v1488_v60 = vsel %vm1134_vm1, %v4950_v49, 0.0  ;;  %v1507_v61 = vpack.c.bf16 %v4950_v49, %v4946_v52  ;;  %v2198_v8 = vpop.permute.xlu1 %2197 }
 0x683   : > { %1489 = vadd.xlane.f32.xlu1 %v1488_v60  ;;  %v2219_v9 = vsel %vm1044_vm0, %v2198_v8, 0 }
 0x684   : > { %4456 = vmatprep.mubr.msk.bf16.mxu1 %vm1134_vm1, %v1507_v61 }
 0x685   : > { %4457 = vmatmul.mubr.msk.bf16.gmra.mrb[28].mxu1 %vm1134_vm1, %v1508_v30  ;;  %v4817_v30 = vld [vmem:[#allocation10] sm:$0xff]  }
 0x686   : > { %4492 = vmatprep.mubr.msk.bf16.mxu1 %vm1044_vm0, %v1797_v43  ;;  %v2202_v15 = vpop.permute.xlu1 %2201  ;;  %4472 = vmatprep.subr.bf16.mxu0 %v4817_v30 }
 0x687   : > { %v2225_v22 = vsel %vm1044_vm0, %v2202_v15, 0 }
 0x68a   : > { %v2190_v36 = vpop.permute.xlu1 %2189 }
 0x68d   : > { %4493 = vmatmul.mubr.msk.bf16.vlgmr.msra.gmra.mrb[32].mxu1 %vm1044_vm0, %v1799_v59 }
 0x68e   : > { %4529 = vmatpush3.bf16.xpose.msra.mxu1 %v2216_v2  ;;  %4496 = vmatprep.mubr.msk.bf16.mxu1 %vm1044_vm0, %v1801_v53  ;;  %v2194_v42 = vpop.permute.xlu1 %2193  ;;  %v4818_v2 = vld [vmem:[#allocation10 + $0x8] sm:$0xff]  }
 0x68f   : > { %4609 = vmatprep.subr.msk.bf16.mxu1 %vm1044_vm0, %v2198_v8 }
 0x695   : > { %4497 = vmatmul.mubr.msk.bf16.gmra.mrb[36].mxu1 %vm1044_vm0, %v1803_v63 }
 0x696   : > { %4531 = vmatpush3.bf16.xpose.msra.mxu1 %v2219_v9  ;;  %4536 = vmatprep.mubr.msk.bf16.mxu1 %vm1044_vm0, %v2188_v46 }
 0x697   : > { %4610 = vmatprep.subr.msk.bf16.mxu1 %vm1044_vm0, %v2200_v5  ;;  %v1185_v10 = vpop.xlane.xlu0 %1184 }
 0x698   : > { %4951 = vrcp.f32 %v1185_v10 }
 0x69b   : > { %v1188_v13 = vpop.xlane.xlu0 %1187 }
 0x69c   : > { %4953 = vrcp.f32 %v1188_v13 }
 0x69e   : > { %4533 = vmatpush3.bf16.xpose.msra.mxu1 %v2222_v14 }
 0x69f   : > { %4611 = vmatprep.subr.msk.bf16.mxu1 %vm1044_vm0, %v2202_v15  ;;  %v1191_v11 = vpop.xlane.xlu0 %1190 }
 0x6a0   : > { %4955 = vrcp.f32 %v1191_v11 }
 0x6a2   : > { %v4952_v17 = vpop.eup %4951 }
 0x6a3   : > { %v1197_v18 = vpop.xlane.xlu0 %1196  ;;  %v6376_v21 = vmul.f32 %v4952_v17, %v6249_v0 }
 0x6a4   : > { %4957 = vrcp.f32 %v1197_v18 }
 0x6a6   : > { %v4954_v24 = vpop.eup %4953  ;;  %4535 = vmatpush3.bf16.xpose.msra.mxu1 %v2225_v22 }
 0x6a7   : > { %v1203_v25 = vpop.xlane.xlu0 %1202  ;;  %v6380_v26 = vmul.f32 %v4954_v24, %v6253_v29 }
 0x6a8   : > { %4959 = vrcp.f32 %v1203_v25 }
 0x6a9   : > { %v1304_v27 = vpack.c.bf16 %v6380_v26, %v6376_v21 }
 0x6aa   : > { %v4956_v35 = vpop.eup %4955 }
 0x6ab   : > { %v6385_v0 = vmul.f32 %v4956_v35, %v6247_v20 }
 0x6ad   : > { %4537 = vmatmul.mubr.msk.bf16.vlgmr.msra.gmra.mrb[40].mxu1 %vm1044_vm0, %v2190_v36 }
 0x6ae   : > { %v4958_v37 = vpop.eup %4957  ;;  %4540 = vmatprep.mubr.msk.bf16.mxu1 %vm1044_vm0, %v2192_v12 }
 0x6af   : > { %v6390_v38 = vmul.f32 %v4958_v37, %v6257_v32 }
 0x6b2   : > { %v4960_v29 = vpop.eup %4959 }
 0x6b3   : > { %v6393_v40 = vmul.f32 %v4960_v29, %v6255_v23 }
 0x6b5   : > { %4541 = vmatmul.mubr.msk.bf16.gmra.mrb[44].mxu1 %vm1044_vm0, %v2194_v42 }
 0x6b6   : > { %2985 = vmatprep.mubr.bf16.mxu1 %v5585_v39 }
 0x6bf   : > { %v1194_v20 = vpop.xlane.xlu1 %1193 }
 0x6c0   : > { %4961 = vrcp.f32 %v1194_v20 }
 0x6c3   : > { %v1200_v47 = vpop.xlane.xlu1 %1199 }
 0x6c4   : > { %4963 = vrcp.f32 %v1200_v47 }
 0x6c7   : > { %v1206_v50 = vpop.xlane.xlu1 %1205 }
 0x6c8   : > { %4965 = vrcp.f32 %v1206_v50 }
 0x6ca   : > { %v4962_v51 = vpop.eup %4961 }
 0x6cb   : > { %v6398_v52 = vmul.f32 %v4962_v51, %v6251_v28 }
 0x6cd   : > { %v1305_v32 = vpack.c.bf16 %v6398_v52, %v6385_v0 }
 0x6ce   : > { %v4964_v23 = vpop.eup %4963 }
 0x6cf   : > { %v6403_v56 = vmul.f32 %v4964_v23, %v6261_v34 }
 0x6d1   : > { %v1306_v55 = vpack.c.bf16 %v6403_v56, %v6390_v38 }
 0x6d2   : > { %v4966_v57 = vpop.eup %4965 }
 0x6d3   : > { %v6408_v58 = vmul.f32 %v4966_v57, %v6259_v33 }
 0x6d4   : > { %v1481_v28 = vpop.xlane.xlu0 %1480 }
 0x6d5   : > { %v1307_v6 = vpack.c.bf16 %v6408_v58, %v6393_v40  ;;  %4967 = vrcp.f32 %v1481_v28 }
 0x6d7   : > { %v1478_v43 = vpop.xlane.xlu1 %1477 }
 0x6d8   : > { %v1475_v31 = vpop.xlane.xlu0 %1474  ;;  %4969 = vrcp.f32 %v1478_v43 }
 0x6dc   : > { %v1484_v53 = vpop.xlane.xlu0 %1483 }
 0x6dd   : > { %4971 = vrcp.f32 %v1484_v53 }
 0x6de   : > { %4973 = vrcp.f32 %v1475_v31 }
 0x6df   : > { %v4968_v34 = vpop.eup %4967 }
 0x6e0   : > { %v1493_v12 = vpop.xlane.xlu0 %1492 }
 0x6e1   : > { %4975 = vrcp.f32 %v1493_v12 }
 0x6e2   : > { %v4970_v45 = vpop.eup %4969 }
 0x6e4   : > { %v1487_v46 = vpop.xlane.xlu1 %1486 }
 0x6e5   : > { %4977 = vrcp.f32 %v1487_v46 }
 0x6e7   : > { %v4972_v7 = vpop.eup %4971 }
 0x6e8   : > { %v4974_v48 = vpop.eup %4973  ;;  %v1496_v8 = vpop.xlane.xlu1 %1495 }
 0x6e9   : > { %4979 = vrcp.f32 %v1496_v8 }
 0x6eb   : > { %v4976_v10 = vpop.eup %4975 }
 0x6ef   : > { %v4978_v14 = vpop.eup %4977 }
 0x6f3   : > { %v4980_v11 = vpop.eup %4979 }
 0x710   : > { %v1490_v9 = vpop.xlane.xlu1 %1489 }
 0x711   : > { %4981 = vrcp.f32 %v1490_v9 }
 0x71b   : > { %v4982_v18 = vpop.eup %4981 }
 0x723   : > { %v4454_v54 = vpop.f32.mrb[24].mxu1 }
 0x724   : > { %v1571_v3 = vpop.f32.mrb[25].mxu1  ;;  %v1604_v41 = vmul.f32 %v4968_v34, %v4454_v54 }
 0x725   : > { %v4455_v33 = vpop.f32.mrb[26].mxu1  ;;  %v1602_v60 = vmul.f32 %v4974_v48, %v1571_v3 }
 0x726   : > { %v1605_v49 = vmul.f32 %v4972_v7, %v4455_v33  ;;  %v1574_v59 = vpop.f32.mrb[27].mxu1 }
 0x727   : > { %v1603_v61 = vmul.f32 %v4970_v45, %v1574_v59 }
 0x728   : > { %v1611_v5 = vpack.c.bf16 %v1605_v49, %v1604_v41 }
 0x729   : > { %v1610_v63 = vpack.c.bf16 %v1603_v61, %v1602_v60 }
 0x72b   : > { %4464 = vmatprep.mubr.msk.bf16.mxu0 %vm1044_vm0, %v1610_v63 }
 0x72c   : > { %4465 = vmatmul.mubr.msk.bf16.vlgmr.msra.gmra.mrb[24].mxu0 %vm1044_vm0, %v1611_v5 }
 0x72d   : > { %4473 = vmatpush3.bf16.msra.mxu0 %v4817_v30 }
 0x72e   : > { %4474 = vmatprep.subr.bf16.mxu0 %v4818_v2 }
 0x731   : > { %4475 = vmatpush3.bf16.msra.mxu0 %v4818_v2 }
 0x758   : > { %v4458_v13 = vpop.f32.mrb[28].mxu1 }
 0x759   : > { %v1587_v15 = vpop.f32.mrb[29].mxu1  ;;  %v1608_v19 = vmul.f32 %v4976_v10, %v4458_v13 }
 0x75a   : > { %v4459_v17 = vpop.f32.mrb[30].mxu1  ;;  %v1606_v25 = vmul.f32 %v4978_v14, %v1587_v15 }
 0x75b   : > { %v1609_v22 = vmul.f32 %v4980_v11, %v4459_v17  ;;  %v1590_v24 = vpop.f32.mrb[31].mxu1 }
 0x75c   : > { %v1607_v16 = vmul.f32 %v4982_v18, %v1590_v24 }
 0x75d   : > { %v1613_v35 = vpack.c.bf16 %v1609_v22, %v1608_v19 }
 0x75e   : > { %v1612_v36 = vpack.c.bf16 %v1607_v16, %v1606_v25 }
 0x760   : > { %4468 = vmatprep.mubr.msk.bf16.mxu0 %vm1044_vm0, %v1612_v36  ;;  %v4494_v37 = vpop.f32.mrb[32].mxu1 }
 0x761   : > { %4469 = vmatmul.mubr.msk.bf16.gmra.mrb[28].mxu0 %vm1044_vm0, %v1613_v35  ;;  %v6416_v29 = vpop.f32.mrb[33].mxu1  ;;  %v1907_v42 = vsel %vm1134_vm1, %v4494_v37, -inf }
 0x762   : > { %1908 = vmax.xlane.f32.xlu0 %v1907_v42  ;;  %4476 = vmatprep.mubr.msk.bf16.mxu0 %vm1044_vm0, %v1304_v27  ;;  %v4495_v20 = vpop.f32.mrb[34].mxu1  ;;  %v1901_v51 = vsel %vm1134_vm1, %v6416_v29, -inf }
 0x763   : > { %v6423_v47 = vpop.f32.mrb[35].mxu1  ;;  %v1910_v50 = vsel %vm1134_vm1, %v4495_v20, -inf }
 0x764   : > { %1911 = vmax.xlane.f32.xlu1 %v1910_v50  ;;  %v1904_v23 = vsel %vm1134_vm1, %v6423_v47, -inf }
 0x766   : > { %1902 = vmax.xlane.f32.xlu0 %v1901_v51 }
 0x768   : > { %1905 = vmax.xlane.f32.xlu1 %v1904_v23  ;;  %v6430_v57 = vpop.f32.mrb[36].mxu1 }
 0x769   : > { %4477 = vmatmul.mubr.msk.bf16.vlgmr.msra.gmra.mrb[24].mxu0 %vm1044_vm0, %v1305_v32  ;;  %v6436_v21 = vpop.f32.mrb[37].mxu1  ;;  %v1919_v26 = vsel %vm1134_vm1, %v6430_v57, -inf }
 0x76a   : > { %1920 = vmax.xlane.f32.xlu0 %v1919_v26  ;;  %4480 = vmatprep.mubr.msk.bf16.mxu0 %vm1044_vm0, %v1306_v55  ;;  %v6444_v27 = vpop.f32.mrb[38].mxu1  ;;  %v1913_v0 = vsel %vm1134_vm1, %v6436_v21, -inf }
 0x76b   : > { %v6446_v30 = vpop.f32.mrb[39].mxu1  ;;  %v1922_v28 = vsel %vm1134_vm1, %v6444_v27, -inf }
 0x76c   : > { %v1916_v31 = vsel %vm1134_vm1, %v6446_v30, -inf }
 0x76e   : > { %1914 = vmax.xlane.f32.xlu0 %v1913_v0 }
 0x771   : > { %4481 = vmatmul.mubr.msk.bf16.gmra.mrb[28].mxu0 %vm1044_vm0, %v1307_v6 }
 0x779   : > { %1987 = vrot.lane.b32.xlu1 %v6125_v1, %s5587_s15 }
 0x77d   : > { %1989 = vrot.lane.b32.xlu1 %v6153_v4, %s5587_s15 }
 0x780   : > { %v6458_v38 = vpop.f32.mrb[40].mxu1 }
 0x781   : > { %v6460_v52 = vpop.f32.mrb[41].mxu1  ;;  %v2298_v43 = vsel %vm1134_vm1, %v6458_v38, -inf }
 0x782   : > { %v6462_v32 = vpop.f32.mrb[42].mxu1 }
 0x783   : > { %v6464_v56 = vpop.f32.mrb[43].mxu1  ;;  %v2301_v34 = vsel %vm1134_vm1, %v6462_v32, -inf }
 0x784   : > { %1985 = vrot.lane.b32.xlu0 %v6129_v44, %s5587_s15  ;;  %v2295_v54 = vsel %vm1134_vm1, %v6464_v56, -inf }
 0x788   : > { %v6468_v40 = vpop.f32.mrb[44].mxu1  ;;  %2376 = vrot.lane.b32.xlu0 %v6129_v44, %s5588_s3  ;;  %v2292_v44 = vsel %vm1134_vm1, %v6460_v52, -inf }
 0x789   : > { %v6472_v55 = vpop.f32.mrb[45].mxu1  ;;  %v2310_v45 = vsel %vm1134_vm1, %v6468_v40, -inf }
 0x78a   : > { %v6474_v58 = vpop.f32.mrb[46].mxu1  ;;  %v2304_v53 = vsel %vm1134_vm1, %v6472_v55, -inf }
 0x78b   : > { %v6476_v6 = vpop.f32.mrb[47].mxu1  ;;  %v2313_v3 = vsel %vm1134_vm1, %v6474_v58, -inf }
 0x78c   : > { %v2307_v7 = vsel %vm1134_vm1, %v6476_v6, -inf }
 0x7a1   : > { %1923 = vmax.xlane.f32.xlu1 %v1922_v28 }
 0x7a5   : > { %1917 = vmax.xlane.f32.xlu1 %v1916_v31 }
 0x7a7   : > { %2299 = vmax.xlane.f32.xlu0 %v2298_v43  ;;  %v4819_v43 = vld [vmem:[#allocation10 + $0x20] sm:$0xff]  }
 0x7ab   : > { %2293 = vmax.xlane.f32.xlu0 %v2292_v44 }
 0x7af   : > { %2305 = vmax.xlane.f32.xlu0 %v2304_v53 }
 0x7b6   : > { %1991 = vrot.lane.b32.xlu1 %v6149_v62, %s5587_s15 }
 0x7ba   : > { %2378 = vrot.lane.b32.xlu1 %v6125_v1, %s5588_s3 }
 0x7de   : > { %2302 = vmax.xlane.f32.xlu1 %v2301_v34 }
 0x7e2   : > { %2296 = vmax.xlane.f32.xlu1 %v2295_v54 }
 0x7e6   : > { %2311 = vmax.xlane.f32.xlu1 %v2310_v45 }
 0x7ea   : > { %2314 = vmax.xlane.f32.xlu1 %v2313_v3 }
 0x7ee   : > { %2308 = vmax.xlane.f32.xlu1 %v2307_v7 }
 0x7ef   : > { %v1909_v1 = vpop.xlane.xlu0 %1908 }
 0x7f0   : > { %v1927_v33 = vsub.f32 %v4494_v37, %v1909_v1 }
 0x7f1   : > { %v1912_v48 = vpop.xlane.xlu1 %1911 }
 0x7f2   : > { %v1937_v41 = vmul.f32 1.442695, %v1927_v33  ;;  %v1928_v49 = vsub.f32 %v4495_v20, %v1912_v48 }
 0x7f3   : > { %v1903_v59 = vpop.xlane.xlu0 %1902 }
 0x7f4   : > { %4983 = vpow2.f32 %v1937_v41  ;;  %v1939_v60 = vmul.f32 1.442695, %v1928_v49  ;;  %v1925_v61 = vsub.f32 %v6416_v29, %v1903_v59 }
 0x7f5   : > { %v1906_v5 = vpop.xlane.xlu1 %1905 }
 0x7f6   : > { %4985 = vpow2.f32 %v1939_v60  ;;  %v1933_v63 = vmul.f32 1.442695, %v1925_v61  ;;  %v1926_v2 = vsub.f32 %v6423_v47, %v1906_v5 }
 0x7f7   : > { %v1921_v46 = vpop.xlane.xlu0 %1920 }
 0x7f8   : > { %4987 = vpow2.f32 %v1933_v63  ;;  %v1935_v8 = vmul.f32 1.442695, %v1926_v2  ;;  %v1931_v12 = vsub.f32 %v6430_v57, %v1921_v46 }
 0x7f9   : > { %v1988_v11 = vpop.permute.xlu1 %1987 }
 0x7fa   : > { %4989 = vpow2.f32 %v1935_v8  ;;  %v1945_v9 = vmul.f32 1.442695, %v1931_v12 }
 0x7fb   : > { %v1915_v10 = vpop.xlane.xlu0 %1914 }
 0x7fc   : > { %v1929_v13 = vsub.f32 %v6436_v21, %v1915_v10  ;;  %4991 = vpow2.f32 %v1945_v9 }
 0x7fd   : > { %v1990_v35 = vpop.permute.xlu1 %1989 }
 0x7fe   : > { %v4984_v14 = vpop.eup %4983  ;;  %v1941_v15 = vmul.f32 1.442695, %v1929_v13 }
 0x7ff   : > { %v1986_v17 = vpop.permute.xlu0 %1985  ;;  %v1955_v18 = vsel %vm1134_vm1, %v4984_v14, 0.0 }
 0x800   : > { %v4986_v19 = vpop.eup %4985  ;;  %1956 = vadd.xlane.f32.xlu0 %v1955_v18  ;;  %4500 = vmatprep.subr.bf16.mxu0 %v1986_v17  ;;  %4993 = vpow2.f32 %v1941_v15 }
 0x801   : > { %v1982_v22 = vpack.c.bf16 %v4986_v19, %v4984_v14  ;;  %4501 = vmatpush3.bf16.msra.mxu0 %v1986_v17  ;;  %v1958_v29 = vsel %vm1134_vm1, %v4986_v19, 0.0 }
 0x802   : > { %v4988_v24 = vpop.eup %4987  ;;  %4502 = vmatprep.subr.bf16.mxu0 %v1988_v11 }
 0x803   : > { %v1949_v25 = vsel %vm1134_vm1, %v4988_v24, 0.0  ;;  %v6516_v57 = vpop.permute.xlu0 %2376 }
 0x804   : > { %v4990_v16 = vpop.eup %4989  ;;  %1950 = vadd.xlane.f32.xlu0 %v1949_v25 }
 0x805   : > { %4503 = vmatpush3.bf16.msra.mxu0 %v1988_v11  ;;  %v1952_v36 = vsel %vm1134_vm1, %v4990_v16, 0.0  ;;  %v1981_v37 = vpack.c.bf16 %v4990_v16, %v4988_v24 }
 0x806   : > { %1953 = vadd.xlane.f32.xlu1 %v1952_v36  ;;  %4504 = vmatprep.subr.bf16.mxu0 %v1990_v35  ;;  %v4992_v42 = vpop.eup %4991 }
 0x807   : > { %4508 = vmatprep.mubr.msk.bf16.mxu0 %vm1134_vm1, %v1981_v37  ;;  %v1967_v20 = vsel %vm1134_vm1, %v4992_v42, 0.0 }
 0x808   : > { %1959 = vadd.xlane.f32.xlu0 %v1958_v29 }
 0x809   : > { %4505 = vmatpush3.bf16.msra.mxu0 %v1990_v35 }
 0x80a   : > { %v4994_v47 = vpop.eup %4993 }
 0x80b   : > { %v1961_v50 = vsel %vm1134_vm1, %v4994_v47, 0.0 }
 0x80c   : > { %1968 = vadd.xlane.f32.xlu0 %v1967_v20 }
 0x810   : > { %1962 = vadd.xlane.f32.xlu0 %v1961_v50 }
 0x826   : > { %2380 = vrot.lane.b32.xlu0 %v6153_v4, %s5588_s3 }
 0x82e   : > { %v1924_v51 = vpop.xlane.xlu1 %1923 }
 0x82f   : > { %v1932_v23 = vsub.f32 %v6444_v27, %v1924_v51  ;;  %v4820_v27 = vld [vmem:[#allocation10 + $0x28] sm:$0xff]  }
 0x831   : > { %v1947_v21 = vmul.f32 1.442695, %v1932_v23 }
 0x832   : > { %v1918_v26 = vpop.xlane.xlu1 %1917 }
 0x833   : > { %4995 = vpow2.f32 %v1947_v21  ;;  %v1930_v0 = vsub.f32 %v6446_v30, %v1918_v26 }
 0x834   : > { %v2300_v28 = vpop.xlane.xlu0 %2299 }
 0x835   : > { %v1943_v31 = vmul.f32 1.442695, %v1930_v0  ;;  %v2318_v53 = vsub.f32 %v6458_v38, %v2300_v28 }
 0x836   : > { %v1992_v44 = vpop.permute.xlu1 %1991 }
 0x837   : > { %4997 = vpow2.f32 %v1943_v31  ;;  %4506 = vmatprep.subr.bf16.mxu0 %v1992_v44  ;;  %v2328_v54 = vmul.f32 1.442695, %v2318_v53 }
 0x838   : > { %v2294_v34 = vpop.xlane.xlu0 %2293  ;;  %4507 = vmatpush3.bf16.msra.mxu0 %v1992_v44 }
 0x839   : > { %v2316_v4 = vsub.f32 %v6460_v52, %v2294_v34  ;;  %4516 = vmatprep.subr.bf16.mxu0 %v4819_v43 }
 0x83a   : > { %v6537_v59 = vpop.permute.xlu1 %2378 }
 0x83b   : > { %v2324_v45 = vmul.f32 1.442695, %v2316_v4  ;;  %4509 = vmatmul.mubr.msk.bf16.vlgmr.msra.gmra.mrb[32].mxu0 %vm1134_vm1, %v1982_v22 }
 0x83c   : > { %4517 = vmatpush3.bf16.msra.mxu0 %v4819_v43  ;;  %v2306_v60 = vpop.xlane.xlu0 %2305 }
 0x83d   : > { %v4996_v30 = vpop.eup %4995  ;;  %4999 = vpow2.f32 %v2324_v45  ;;  %4518 = vmatprep.subr.bf16.mxu0 %v4820_v27  ;;  %v2320_v61 = vsub.f32 %v6472_v55, %v2306_v60 }
 0x83e   : > { %v1970_v3 = vsel %vm1134_vm1, %v4996_v30, 0.0  ;;  %v1984_v7 = vpack.c.bf16 %v4996_v30, %v4992_v42  ;;  %5001 = vpow2.f32 %v2328_v54 }
 0x83f   : > { %1971 = vadd.xlane.f32.xlu1 %v1970_v3  ;;  %v2332_v2 = vmul.f32 1.442695, %v2320_v61 }
 0x840   : > { %4519 = vmatpush3.bf16.msra.mxu0 %v4820_v27 }
 0x841   : > { %v4998_v38 = vpop.eup %4997  ;;  %4544 = vmatprep.subr.bf16.mxu0 %v6516_v57 }
 0x842   : > { %v1964_v52 = vsel %vm1134_vm1, %v4998_v38, 0.0  ;;  %v1983_v1 = vpack.c.bf16 %v4998_v38, %v4994_v47 }
 0x843   : > { %1965 = vadd.xlane.f32.xlu1 %v1964_v52 }
 0x844   : > { %4512 = vmatprep.mubr.msk.bf16.mxu0 %vm1134_vm1, %v1983_v1 }
 0x845   : > { %4513 = vmatmul.mubr.msk.bf16.gmra.mrb[36].mxu0 %vm1134_vm1, %v1984_v7 }
 0x847   : > { %v6527_v33 = vpop.eup %4999 }
 0x848   : > { %v2340_v48 = vsel %vm1134_vm1, %v6527_v33, 0.0  ;;  %v6531_v41 = vpop.eup %5001 }
 0x849   : > { %2341 = vadd.xlane.f32.xlu0 %v2340_v48  ;;  %v2346_v49 = vsel %vm1134_vm1, %v6531_v41, 0.0 }
 0x84d   : > { %2347 = vadd.xlane.f32.xlu0 %v2346_v49 }
 0x854   : > { %2382 = vrot.lane.b32.xlu1 %v6149_v62, %s5588_s3 }
 0x86b   : > { %v2303_v5 = vpop.xlane.xlu1 %2302 }
 0x86c   : > { %v2319_v63 = vsub.f32 %v6462_v32, %v2303_v5 }
 0x86e   : > { %v2330_v46 = vmul.f32 1.442695, %v2319_v63 }
 0x86f   : > { %v2297_v8 = vpop.xlane.xlu1 %2296 }
 0x870   : > { %5003 = vpow2.f32 %v2330_v46  ;;  %v2317_v12 = vsub.f32 %v6464_v56, %v2297_v8 }
 0x871   : > { %5005 = vpow2.f32 %v2332_v2 }
 0x872   : > { %v2326_v9 = vmul.f32 1.442695, %v2317_v12 }
 0x873   : > { %v2312_v10 = vpop.xlane.xlu1 %2311 }
 0x874   : > { %5007 = vpow2.f32 %v2326_v9  ;;  %v2322_v62 = vsub.f32 %v6468_v40, %v2312_v10 }
 0x876   : > { %v2336_v13 = vmul.f32 1.442695, %v2322_v62 }
 0x877   : > { %v2315_v14 = vpop.xlane.xlu1 %2314 }
 0x878   : > { %5009 = vpow2.f32 %v2336_v13  ;;  %v2323_v55 = vsub.f32 %v6474_v58, %v2315_v14  ;;  %v4821_v14 = vld [vmem:[#allocation10 + $0x30] sm:$0xff]  }
 0x87a   : > { %v6544_v15 = vpop.eup %5003  ;;  %v2338_v32 = vmul.f32 1.442695, %v2323_v55 }
 0x87b   : > { %v2373_v11 = vpack.c.bf16 %v6544_v15, %v6531_v41  ;;  %v2309_v17 = vpop.xlane.xlu1 %2308  ;;  %v2349_v56 = vsel %vm1134_vm1, %v6544_v15, 0.0  ;;  %v6550_v18 = vpop.eup %5005 }
 0x87c   : > { %5011 = vpow2.f32 %v2338_v32  ;;  %v2321_v40 = vsub.f32 %v6476_v6, %v2309_v17  ;;  %2350 = vadd.xlane.f32.xlu0 %v2349_v56  ;;  %v2352_v58 = vsel %vm1134_vm1, %v6550_v18, 0.0 }
 0x87e   : > { %v6553_v19 = vpop.eup %5007  ;;  %v2334_v22 = vmul.f32 1.442695, %v2321_v40 }
 0x87f   : > { %v2343_v24 = vsel %vm1134_vm1, %v6553_v19, 0.0  ;;  %v2372_v25 = vpack.c.bf16 %v6553_v19, %v6527_v33  ;;  %v4822_v33 = vld [vmem:[#allocation10 + $0x38] sm:$0xff]  }
 0x880   : > { %5013 = vpow2.f32 %v2334_v22  ;;  %2353 = vadd.xlane.f32.xlu0 %v2352_v58  ;;  %2344 = vadd.xlane.f32.xlu1 %v2343_v24 }
 0x882   : > { %v6561_v16 = vpop.eup %5009 }
 0x883   : > { %v2358_v6 = vsel %vm1134_vm1, %v6561_v16, 0.0 }
 0x884   : > { %2359 = vadd.xlane.f32.xlu0 %v2358_v6 }
 0x886   : > { %v6565_v35 = vpop.eup %5011 }
 0x887   : > { %v2375_v36 = vpack.c.bf16 %v6565_v35, %v6561_v16  ;;  %v2361_v20 = vsel %vm1134_vm1, %v6565_v35, 0.0 }
 0x88a   : > { %v6569_v37 = vpop.eup %5013 }
 0x88b   : > { %v2355_v29 = vsel %vm1134_vm1, %v6569_v37, 0.0  ;;  %v2374_v42 = vpack.c.bf16 %v6569_v37, %v6550_v18 }
 0x88c   : > { %2356 = vadd.xlane.f32.xlu1 %v2355_v29 }
 0x88d   : > { %v1957_v47 = vpop.xlane.xlu0 %1956 }
 0x88e   : > { %5015 = vrcp.f32 %v1957_v47 }
 0x890   : > { %2362 = vadd.xlane.f32.xlu1 %v2361_v20 }
 0x891   : > { %v1951_v50 = vpop.xlane.xlu0 %1950 }
 0x892   : > { %5017 = vrcp.f32 %v1951_v50 }
 0x893   : > { %v1954_v23 = vpop.xlane.xlu1 %1953 }
 0x895   : > { %v1960_v51 = vpop.xlane.xlu0 %1959 }
 0x896   : > { %5019 = vrcp.f32 %v1960_v51 }
 0x897   : > { %5021 = vrcp.f32 %v1954_v23 }
 0x898   : > { %v5016_v28 = vpop.eup %5015 }
 0x899   : > { %v1969_v21 = vpop.xlane.xlu0 %1968 }
 0x89a   : > { %5023 = vrcp.f32 %v1969_v21 }
 0x89c   : > { %v5018_v44 = vpop.eup %5017 }
 0x89d   : > { %v1963_v0 = vpop.xlane.xlu0 %1962 }
 0x89e   : > { %5025 = vrcp.f32 %v1963_v0 }
 0x8a0   : > { %v5020_v34 = vpop.eup %5019 }
 0x8a1   : > { %v5022_v27 = vpop.eup %5021  ;;  %v2381_v12 = vpop.permute.xlu0 %2380 }
 0x8a4   : > { %v5024_v1 = vpop.eup %5023 }
 0x8a8   : > { %v5026_v49 = vpop.eup %5025 }
 0x8cc   : > { %v1972_v26 = vpop.xlane.xlu1 %1971 }
 0x8cd   : > { %5027 = vrcp.f32 %v1972_v26 }
 0x8d0   : > { %v1966_v31 = vpop.xlane.xlu1 %1965 }
 0x8d1   : > { %5029 = vrcp.f32 %v1966_v31 }
 0x8d7   : > { %v5028_v61 = vpop.eup %5027 }
 0x8db   : > { %v5030_v63 = vpop.eup %5029 }
 0x90e   : > { %v4510_v43 = vpop.f32.mrb[32].mxu0 }
 0x90f   : > { %v2043_v53 = vpop.f32.mrb[33].mxu0  ;;  %v2076_v54 = vmul.f32 %v5016_v28, %v4510_v43 }
 0x910   : > { %v4511_v4 = vpop.f32.mrb[34].mxu0  ;;  %v2074_v3 = vmul.f32 %v5018_v44, %v2043_v53 }
 0x911   : > { %v2077_v45 = vmul.f32 %v5020_v34, %v4511_v4  ;;  %v2046_v30 = vpop.f32.mrb[35].mxu0  ;;  %v4823_v4 = vld [vmem:[#allocation16] ss:$16 sps:$4 sm:$0xff]  }
 0x912   : > { %v2075_v7 = vmul.f32 %v5022_v27, %v2046_v30  ;;  %v4825_v27 = vld [vmem:[#allocation16 + $0x4] ss:$16 sps:$4 sm:$0xff]  }
 0x913   : > { %v2083_v38 = vpack.c.bf16 %v2077_v45, %v2076_v54  ;;  %v4826_v54 = vld [vmem:[#allocation16 + $0x8] ss:$16 sps:$4 sm:$0xff]   ;;  %v4828_v45 = vld [vmem:[#allocation16 + $0xc] ss:$16 sps:$4 sm:$0xff]   ;;  %2953 = vmatprep.subr.bf16.mxu1 %v4825_v27 }
 0x914   : > { %v2082_v52 = vpack.c.bf16 %v2075_v7, %v2074_v3  ;;  %2954 = vmatpush1.bf16.msra.mxu1 %v4823_v4  ;;  %v6605_v3 = vld [vmem:[#allocation11] ss:$0 sm:$0xff]  ;;  %v4853_v4 = vld [vmem:[#allocation16 + $0xa0] ss:$16 sps:$4 sm:$0xff]  }
 0x915   : > { %v4856_v27 = vld [vmem:[#allocation16 + $0xa8] ss:$16 sps:$4 sm:$0xff]  }
 0x916   : > { %4520 = vmatprep.mubr.msk.bf16.mxu0 %vm1044_vm0, %v2082_v52 }
 0x917   : > { %4521 = vmatmul.mubr.msk.bf16.vlgmr.msra.gmra.mrb[24].mxu0 %vm1044_vm0, %v2083_v38  ;;  %v5127_v38 = vld [vmem:[%s6010_s1] sm:$0xff] }
 0x918   : > { %4545 = vmatpush3.bf16.msra.mxu0 %v6516_v57  ;;  %v4514_v48 = vpop.f32.mrb[36].mxu0  ;;  %v2383_v57 = vpop.permute.xlu1 %2382 }
 0x919   : > { %4546 = vmatprep.subr.bf16.mxu0 %v6537_v59  ;;  %v2059_v60 = vpop.f32.mrb[37].mxu0  ;;  %v2080_v2 = vmul.f32 %v5024_v1, %v4514_v48 }
 0x91a   : > { %v4515_v5 = vpop.f32.mrb[38].mxu0  ;;  %v2078_v9 = vmul.f32 %v5026_v49, %v2059_v60  ;;  %v5128_v60 = vld [vmem:[%s6010_s1 + $0x8] sm:$0xff] }
 0x91b   : > { %v2081_v46 = vmul.f32 %v5028_v61, %v4515_v5  ;;  %v2062_v8 = vpop.f32.mrb[39].mxu0 }
 0x91c   : > { %v2079_v10 = vmul.f32 %v5030_v63, %v2062_v8  ;;  %4547 = vmatpush3.bf16.msra.mxu0 %v6537_v59  ;;  %v2342_v59 = vpop.xlane.xlu0 %2341  ;;  %v2345_v41 = vpop.xlane.xlu1 %2344  ;;  %v5129_v63 = vld [vmem:[%s6010_s1 + $0x10] sm:$0xff] }
 0x91d   : > { %v2085_v62 = vpack.c.bf16 %v2081_v46, %v2080_v2  ;;  %4548 = vmatprep.subr.bf16.mxu0 %v2381_v12  ;;  %5031 = vrcp.f32 %v2342_v59  ;;  %v5131_v59 = vld [vmem:[%s6010_s1 + $0x20] sm:$0xff] }
 0x91e   : > { %v2084_v13 = vpack.c.bf16 %v2079_v10, %v2078_v9  ;;  %v5130_v9 = vld [vmem:[%s6010_s1 + $0x18] sm:$0xff] }
 0x920   : > { %4549 = vmatpush3.bf16.msra.mxu0 %v2381_v12  ;;  %4524 = vmatprep.mubr.msk.bf16.mxu0 %vm1044_vm0, %v2084_v13  ;;  %v2348_v55 = vpop.xlane.xlu0 %2347 }
 0x921   : > { %4550 = vmatprep.subr.bf16.mxu0 %v2383_v57  ;;  %4525 = vmatmul.mubr.msk.bf16.gmra.mrb[28].mxu0 %vm1044_vm0, %v2085_v62  ;;  %5033 = vrcp.f32 %v2348_v55 }
 0x922   : > { %4552 = vmatprep.mubr.msk.bf16.mxu0 %vm1134_vm1, %v2372_v25 }
 0x924   : > { %4551 = vmatpush3.bf16.msra.mxu0 %v2383_v57  ;;  %v2351_v32 = vpop.xlane.xlu0 %2350 }
 0x925   : > { %4560 = vmatprep.subr.bf16.mxu0 %v4821_v14  ;;  %5035 = vrcp.f32 %v2351_v32 }
 0x926   : > { %5037 = vrcp.f32 %v2345_v41  ;;  %v5132_v41 = vld [vmem:[%s6010_s1 + $0x28] sm:$0xff] }
 0x927   : > { %v5032_v18 = vpop.eup %5031 }
 0x928   : > { %v2354_v15 = vpop.xlane.xlu0 %2353 }
 0x929   : > { %4553 = vmatmul.mubr.msk.bf16.vlgmr.msra.gmra.mrb[40].mxu0 %vm1134_vm1, %v2373_v11  ;;  %v2357_v11 = vpop.xlane.xlu1 %2356  ;;  %5039 = vrcp.f32 %v2354_v15 }
 0x92a   : > { %4556 = vmatprep.mubr.msk.bf16.mxu0 %vm1134_vm1, %v2374_v42  ;;  %4561 = vmatpush3.bf16.msra.mxu0 %v4821_v14 }
 0x92b   : > { %4562 = vmatprep.subr.bf16.mxu0 %v4822_v33  ;;  %v5034_v19 = vpop.eup %5033 }
 0x92c   : > { %v2360_v17 = vpop.xlane.xlu0 %2359 }
 0x92d   : > { %v2363_v56 = vpop.xlane.xlu1 %2362  ;;  %5041 = vrcp.f32 %v2360_v17 }
 0x92e   : > { %4563 = vmatpush3.bf16.msra.mxu0 %v4822_v33  ;;  %5043 = vrcp.f32 %v2363_v56 }
 0x92f   : > { %5045 = vrcp.f32 %v2357_v11  ;;  %v5036_v58 = vpop.eup %5035  ;;  %3026 = vmatprep.subr.bf16.mxu0 %v4828_v45  ;;  %v4864_v45 = vld [vmem:[#allocation16 + $0xcc] ss:$16 sps:$4 sm:$0xff]  }
 0x930   : > { %v5038_v25 = vpop.eup %5037 }
 0x931   : > { %4557 = vmatmul.mubr.msk.bf16.gmra.mrb[44].mxu0 %vm1134_vm1, %v2375_v36 }
 0x933   : > { %v5040_v20 = vpop.eup %5039 }
 0x937   : > { %v5042_v50 = vpop.eup %5041 }
 0x938   : > { %v5044_v23 = vpop.eup %5043 }
 0x939   : > { %v5046_v26 = vpop.eup %5045 }
 0x9fc   : > { %v4554_v40 = vpop.f32.mrb[40].mxu0 }
 0x9fd   : > { %v2434_v22 = vpop.f32.mrb[41].mxu0  ;;  %v2467_v16 = vmul.f32 %v5034_v19, %v4554_v40  ;;  %v4834_v40 = vld [vmem:[#allocation16 + $0x2c] ss:$16 sps:$4 sm:$0xff]   ;;  %v4829_v19 = vld [vmem:[#allocation16 + $0x20] ss:$16 sps:$4 sm:$0xff]  }
 0x9fe   : > { %v4555_v24 = vpop.f32.mrb[42].mxu0  ;;  %v2465_v36 = vmul.f32 %v5032_v18, %v2434_v22  ;;  %v4831_v18 = vld [vmem:[#allocation16 + $0x24] ss:$16 sps:$4 sm:$0xff]   ;;  %v4832_v22 = vld [vmem:[#allocation16 + $0x28] ss:$16 sps:$4 sm:$0xff]  }
 0x9ff   : > { %v2468_v6 = vmul.f32 %v5036_v58, %v4555_v24  ;;  %v2437_v35 = vpop.f32.mrb[43].mxu0  ;;  %v5133_v58 = vld [vmem:[%s6010_s1 + $0x30] sm:$0xff]  ;;  %2955 = vmatprep.subr.bf16.mxu1 %v4831_v18 }
 0xa00   : > { %v2466_v37 = vmul.f32 %v5038_v25, %v2437_v35  ;;  %2956 = vmatpush1.bf16.msra.mxu1 %v4829_v19 }
 0xa01   : > { %v2474_v29 = vpack.c.bf16 %v2468_v6, %v2467_v16  ;;  %v5134_v16 = vld [vmem:[%s6010_s1 + $0x38] sm:$0xff]  ;;  %s5477_s1 = sshll.u32 %s5589_s18, 4  ;;  %s5478_s1 = int_to_ptr.vmem [resolvable:$false] %s5477_s1 }
 0xa02   : > { %v2473_v42 = vpack.c.bf16 %v2466_v37, %v2465_v36  ;;  %v4837_v36 = vld [vmem:[#allocation16 + $0x44] ss:$16 sps:$4 sm:$0xff]   ;;  %v4840_v37 = vld [vmem:[#allocation16 + $0x4c] ss:$16 sps:$4 sm:$0xff]   ;;  %s5479_s28 = scalar_lea.vmem %s5478_s1, 2048  ;;  %p5480_p12 = scmp.lt.s32.totalorder %s7100_s19, %s5478_s1 }
 0xa03   : > { %2957 = vmatprep.subr.bf16.mxu1 %v4837_v36  ;;  %p5481_p0 = scmp.lt.s32.totalorder %s5479_s28, %s5473_s27 }
 0xa04   : > { %v4558_v47 = vpop.f32.mrb[44].mxu0  ;;  %4564 = vmatprep.mubr.msk.bf16.mxu0 %vm1044_vm0, %v2473_v42  ;;  %v4838_v42 = vld [vmem:[#allocation16 + $0x48] ss:$16 sps:$4 sm:$0xff]  }
 0xa05   : > { %v2450_v51 = vpop.f32.mrb[45].mxu0  ;;  %4565 = vmatmul.mubr.msk.bf16.vlgmr.msra.gmra.mrb[24].mxu0 %vm1044_vm0, %v2474_v29  ;;  %v2471_v0 = vmul.f32 %v5042_v50, %v4558_v47  ;;  %v4835_v29 = vld [vmem:[#allocation16 + $0x40] ss:$16 sps:$4 sm:$0xff]   ;;  %v4843_v50 = vld [vmem:[#allocation16 + $0x64] ss:$16 sps:$4 sm:$0xff]   ;;  %p5482_p5 = por %p5481_p0, %p5480_p12 }
 0xa06   : > { %v4559_v21 = vpop.f32.mrb[46].mxu0  ;;  %v2469_v43 = vmul.f32 %v5040_v20, %v2450_v51  ;;  %3027 = vmatpush1.bf16.msra.mxu0 %v4826_v54  ;;  %2958 = vmatpush1.bf16.msra.mxu1 %v4835_v29  ;;  %v4846_v51 = vld [vmem:[#allocation16 + $0x6c] ss:$16 sps:$4 sm:$0xff]   ;;  %v4861_v54 = vld [vmem:[#allocation16 + $0xc4] ss:$16 sps:$4 sm:$0xff]  }
 0xa07   : > { %v2472_v28 = vmul.f32 %v5044_v23, %v4559_v21  ;;  %v2453_v31 = vpop.f32.mrb[47].mxu0  ;;  %3028 = vmatprep.subr.bf16.mxu0 %v4834_v40  ;;  %v4841_v23 = vld [vmem:[#allocation16 + $0x60] ss:$16 sps:$4 sm:$0xff]   ;;  %v4844_v21 = vld [vmem:[#allocation16 + $0x68] ss:$16 sps:$4 sm:$0xff]   ;;  %2959 = vmatprep.subr.bf16.mxu1 %v4843_v50  ;;  %p5483_p9 = pnand %p5482_p5, %p5476_p11 }
 0xa08   : > { %v2470_v44 = vmul.f32 %v5046_v26, %v2453_v31  ;;  %v4852_v31 = vld [vmem:[#allocation16 + $0x8c] ss:$16 sps:$4 sm:$0xff]  }
 0xa09   : > { %v2476_v53 = vpack.c.bf16 %v2472_v28, %v2471_v0  ;;  %v4849_v28 = vld [vmem:[#allocation16 + $0x84] ss:$16 sps:$4 sm:$0xff]  }
 0xa0a   : > { %v2475_v34 = vpack.c.bf16 %v2470_v44, %v2469_v43  ;;  %3029 = vmatpush1.bf16.msra.mxu0 %v4832_v22  ;;  %2960 = vmatpush1.bf16.msra.mxu1 %v4841_v23  ;;  %v4847_v43 = vld [vmem:[#allocation16 + $0x80] ss:$16 sps:$4 sm:$0xff]   ;;  %v4850_v44 = vld [vmem:[#allocation16 + $0x88] ss:$16 sps:$4 sm:$0xff]  }
 0xa0b   : > { %3030 = vmatprep.subr.bf16.mxu0 %v4840_v37  ;;  %2961 = vmatprep.subr.bf16.mxu1 %v4849_v28 }
 0xa0c   : > { %4568 = vmatprep.mubr.msk.bf16.mxu0 %vm1044_vm0, %v2475_v34  ;;  %v4858_v34 = vld [vmem:[#allocation16 + $0xac] ss:$16 sps:$4 sm:$0xff]  }
 0xa0d   : > { %4569 = vmatmul.mubr.msk.bf16.gmra.mrb[28].mxu0 %vm1044_vm0, %v2476_v53  ;;  %v4855_v53 = vld [vmem:[#allocation16 + $0xa4] ss:$16 sps:$4 sm:$0xff]  }
 0xa0e   : > { %3058 = vmatprep.mubr.bf16.mxu0 %v5585_v39  ;;  %3031 = vmatpush1.bf16.msra.mxu0 %v4838_v42 }
 0xa0f   : > { %3032 = vmatprep.subr.bf16.mxu0 %v4846_v51  ;;  %2962 = vmatpush1.bf16.msra.mxu1 %v4847_v43 }
 0xa10   : > { %2963 = vmatprep.subr.bf16.mxu1 %v4855_v53 }
 0xa12   : > { %3033 = vmatpush1.bf16.msra.mxu0 %v4844_v21 }
 0xa13   : > { %3034 = vmatprep.subr.bf16.mxu0 %v4852_v31  ;;  %2964 = vmatpush1.bf16.msra.mxu1 %v4853_v4 }
 0xa14   : > { %2965 = vmatprep.subr.bf16.mxu1 %v4861_v54 }
 0xa16   : > { %3035 = vmatpush1.bf16.msra.mxu0 %v4850_v44 }
 0xa17   : > { %3036 = vmatprep.subr.bf16.mxu0 %v4858_v34 }
 0xa1a   : > { %3037 = vmatpush1.bf16.msra.mxu0 %v4856_v27 }
 0xa1b   : > { %3038 = vmatprep.subr.bf16.mxu0 %v4864_v45 }
 0xad8   : > { %v4566_v30 = vpop.f32.mrb[24].mxu0 }
 0xad9   : > { %v2539_v7 = vpop.f32.mrb[25].mxu0  ;;  %v2580_v2 = vadd.f32 %v5129_v63, %v4566_v30  ;;  %v4859_v30 = vld [vmem:[#allocation16 + $0xc0] ss:$16 sps:$4 sm:$0xff]  }
 0xada   : > { %v2578_v52 = vadd.f32 %v5127_v38, %v2539_v7  ;;  %v4567_v1 = vpop.f32.mrb[26].mxu0  ;;  %2966 = vmatpush1.bf16.msra.mxu1 %v4859_v30  ;;  %v4867_v7 = vld [vmem:[#allocation16 + $0xe4] ss:$16 sps:$4 sm:$0xff]   ;;  %v4870_v38 = vld [vmem:[#allocation16 + $0xec] ss:$16 sps:$4 sm:$0xff]  }
 0xadb   : > { %v2542_v48 = vpop.f32.mrb[27].mxu0  ;;  %v2581_v10 = vadd.f32 %v5130_v9, %v4567_v1  ;;  %v6624_v14 = vadd.f32 %v6605_v3, %v2580_v2  ;;  %v4868_v1 = vld [vmem:[#allocation16 + $0xe8] ss:$16 sps:$4 sm:$0xff]   ;;  %2967 = vmatprep.subr.bf16.mxu1 %v4867_v7  ;;  %v6676_v7 = vld [vmem:[#allocation14] ss:$0 sm:$0xff] }
 0xadc   : > { %v6609_v49 = vadd.f32 %v6605_v3, %v2578_v52  ;;  %v2579_v61 = vadd.f32 %v5128_v60, %v2542_v48  ;;  %v4865_v52 = vld [vmem:[#allocation16 + $0xe0] ss:$16 sps:$4 sm:$0xff]  }
 0xadd   : > { %7219 = vst [vmem:[#allocation34_spill] sm:$0xff] %v6624_v14  ;;  %v6627_v33 = vadd.f32 %v6605_v3, %v2581_v10  ;;  %v2629_v32 = vmul.f32 %v6624_v14, %v6624_v14 }
 0xade   : > { %7217 = vst [vmem:[#allocation32_spill] sm:$0xff] %v6609_v49  ;;  %v6613_v5 = vadd.f32 %v6605_v3, %v2579_v61  ;;  %2603 = vadd.xlane.f32.xlu0 %v6609_v49  ;;  %v2627_v8 = vmul.f32 %v6609_v49, %v6609_v49  ;;  %2968 = vmatpush1.bf16.msra.mxu1 %v4865_v52 }
 0xadf   : > { %7220 = vst [vmem:[#allocation35_spill] sm:$0xff] %v6627_v33  ;;  %v2630_v11 = vmul.f32 %v6627_v33, %v6627_v33 }
 0xae0   : > { %7218 = vst [vmem:[#allocation33_spill] sm:$0xff] %v6613_v5  ;;  %2605 = vadd.xlane.f32.xlu1 %v6613_v5  ;;  %v4570_v46 = vpop.f32.mrb[28].mxu0  ;;  %v2628_v13 = vmul.f32 %v6613_v5, %v6613_v5 }
 0xae1   : > { %v2555_v12 = vpop.f32.mrb[29].mxu0  ;;  %v2584_v24 = vadd.f32 %v5133_v58, %v4570_v46 }
 0xae2   : > { %2635 = vadd.xlane.f32.xlu0 %v2627_v8  ;;  %v4571_v62 = vpop.f32.mrb[30].mxu0  ;;  %v2582_v55 = vadd.f32 %v5131_v59, %v2555_v12 }
 0xae3   : > { %v2558_v57 = vpop.f32.mrb[31].mxu0  ;;  %v2585_v6 = vadd.f32 %v5134_v16, %v4571_v62  ;;  %v6652_v20 = vadd.f32 %v6605_v3, %v2584_v24 }
 0xae4   : > { %2637 = vadd.xlane.f32.xlu1 %v2628_v13  ;;  %v2583_v15 = vadd.f32 %v5132_v41, %v2558_v57  ;;  %v6638_v17 = vadd.f32 %v6605_v3, %v2582_v55 }
 0xae5   : > { %7223 = vst [vmem:[#allocation38_spill] sm:$0xff] %v6652_v20  ;;  %v6655_v47 = vadd.f32 %v6605_v3, %v2585_v6  ;;  %v2633_v26 = vmul.f32 %v6652_v20, %v6652_v20 }
 0xae6   : > { %2607 = vadd.xlane.f32.xlu0 %v6624_v14  ;;  %7221 = vst [vmem:[#allocation36_spill] sm:$0xff] %v6638_v17  ;;  %v6641_v56 = vadd.f32 %v6605_v3, %v2583_v15  ;;  %v2631_v25 = vmul.f32 %v6638_v17, %v6638_v17  ;;  %v4862_v3 = vld [vmem:[#allocation16 + $0xc8] ss:$16 sps:$4 sm:$0xff]  }
 0xae7   : > { %7224 = vst [vmem:[#allocation39_spill] sm:$0xff] %v6655_v47  ;;  %v2634_v0 = vmul.f32 %v6655_v47, %v6655_v47  ;;  %3039 = vmatpush1.bf16.msra.mxu0 %v4862_v3 }
 0xae8   : > { %2609 = vadd.xlane.f32.xlu1 %v6627_v33  ;;  %7222 = vst [vmem:[#allocation37_spill] sm:$0xff] %v6641_v56  ;;  %v2632_v35 = vmul.f32 %v6641_v56, %v6641_v56  ;;  %3040 = vmatprep.subr.bf16.mxu0 %v4870_v38 }
 0xaea   : > { %2639 = vadd.xlane.f32.xlu0 %v2629_v32 }
 0xaeb   : > { %3041 = vmatpush1.bf16.msra.mxu0 %v4868_v1 }
 0xaec   : > { %2641 = vadd.xlane.f32.xlu1 %v2630_v11 }
 0xaee   : > { %2611 = vadd.xlane.f32.xlu0 %v6638_v17 }
 0xaf0   : > { %2613 = vadd.xlane.f32.xlu1 %v6641_v56 }
 0xaf2   : > { %2643 = vadd.xlane.f32.xlu0 %v2631_v25 }
 0xaf4   : > { %2645 = vadd.xlane.f32.xlu1 %v2632_v35 }
 0xaf6   : > { %2615 = vadd.xlane.f32.xlu0 %v6652_v20 }
 0xaf8   : > { %2617 = vadd.xlane.f32.xlu1 %v6655_v47 }
 0xafa   : > { %2647 = vadd.xlane.f32.xlu0 %v2633_v26  ;;  %v6670_v26 = vld [vmem:[#allocation13] ss:$0 sm:$0xff] }
 0xafc   : > { %2649 = vadd.xlane.f32.xlu1 %v2634_v0 }
 0xb6b   : > { %v2604_v48 = vpop.xlane.xlu0 %2603 }
 0xb6c   : > { %v2619_v60 = vmul.f32 0.0078125, %v2604_v48 }
 0xb6d   : > { %v2606_v61 = vpop.xlane.xlu1 %2605 }
 0xb6e   : > { %v2620_v63 = vmul.f32 0.0078125, %v2606_v61  ;;  %v2659_v46 = vmul.f32 %v2619_v60, %v2619_v60  ;;  %v2691_v29 = vsub.f32 %v6609_v49, %v2619_v60 }
 0xb6f   : > { %v2636_v2 = vpop.xlane.xlu0 %2635 }
 0xb70   : > { %v2651_v8 = vmul.f32 0.0078125, %v2636_v2  ;;  %v2660_v9 = vmul.f32 %v2620_v63, %v2620_v63  ;;  %v2692_v0 = vsub.f32 %v6613_v5, %v2620_v63 }
 0xb71   : > { %v2638_v12 = vpop.xlane.xlu1 %2637 }
 0xb72   : > { %v2667_v10 = vsub.f32 %v2651_v8, %v2659_v46  ;;  %v2652_v62 = vmul.f32 0.0078125, %v2638_v12 }
 0xb73   : > { %v2608_v13 = vpop.xlane.xlu0 %2607 }
 0xb74   : > { %v2675_v57 = vadd.f32 1e-05, %v2667_v10  ;;  %v2668_v59 = vsub.f32 %v2652_v62, %v2660_v9  ;;  %v2621_v55 = vmul.f32 0.0078125, %v2608_v13 }
 0xb75   : > { %v2610_v32 = vpop.xlane.xlu1 %2609 }
 0xb76   : > { %5047 = vrsqrt.f32 %v2675_v57  ;;  %v2676_v41 = vadd.f32 1e-05, %v2668_v59  ;;  %v2622_v15 = vmul.f32 0.0078125, %v2610_v32  ;;  %v2661_v18 = vmul.f32 %v2621_v55, %v2621_v55 }
 0xb77   : > { %v2640_v11 = vpop.xlane.xlu0 %2639  ;;  %v2693_v48 = vsub.f32 %v6624_v14, %v2621_v55 }
 0xb78   : > { %5049 = vrsqrt.f32 %v2676_v41  ;;  %v2653_v40 = vmul.f32 0.0078125, %v2640_v11  ;;  %v2662_v22 = vmul.f32 %v2622_v15, %v2622_v15  ;;  %v2694_v9 = vsub.f32 %v6627_v33, %v2622_v15 }
 0xb79   : > { %v2642_v19 = vpop.xlane.xlu1 %2641 }
 0xb7a   : > { %v2669_v58 = vsub.f32 %v2653_v40, %v2661_v18  ;;  %v2654_v24 = vmul.f32 0.0078125, %v2642_v19 }
 0xb7b   : > { %v2612_v25 = vpop.xlane.xlu0 %2611 }
 0xb7c   : > { %v2677_v16 = vadd.f32 1e-05, %v2669_v58  ;;  %v2670_v6 = vsub.f32 %v2654_v24, %v2662_v22  ;;  %v6663_v35 = vmul.f32 0.0078125, %v2612_v25 }
 0xb7d   : > { %v2614_v36 = vpop.xlane.xlu1 %2613 }
 0xb7e   : > { %5051 = vrsqrt.f32 %v2677_v16  ;;  %v2678_v37 = vadd.f32 1e-05, %v2670_v6  ;;  %v6666_v42 = vmul.f32 0.0078125, %v2614_v36  ;;  %v2663_v23 = vmul.f32 %v6663_v35, %v6663_v35 }
 0xb7f   : > { %v2644_v50 = vpop.xlane.xlu0 %2643  ;;  %v2695_v22 = vsub.f32 %v6638_v17, %v6663_v35 }
 0xb80   : > { %v5048_v51 = vpop.eup %5047  ;;  %5053 = vrsqrt.f32 %v2678_v37  ;;  %v2655_v21 = vmul.f32 0.0078125, %v2644_v50  ;;  %v2664_v44 = vmul.f32 %v6666_v42, %v6666_v42  ;;  %v2696_v16 = vsub.f32 %v6641_v56, %v6666_v42 }
 0xb81   : > { %v2699_v28 = vmul.f32 %v5048_v51, %v2691_v29  ;;  %v2646_v31 = vpop.xlane.xlu1 %2645 }
 0xb82   : > { %v5050_v43 = vpop.eup %5049  ;;  %v2671_v53 = vsub.f32 %v2655_v21, %v2663_v23  ;;  %v2656_v34 = vmul.f32 0.0078125, %v2646_v31 }
 0xb83   : > { %v2700_v4 = vmul.f32 %v5050_v43, %v2692_v0  ;;  %v2616_v27 = vpop.xlane.xlu0 %2615  ;;  %v2713_v54 = vmul.f32 %v6670_v26, %v2699_v28 }
 0xb84   : > { %v2679_v45 = vadd.f32 1e-05, %v2671_v53  ;;  %v2672_v30 = vsub.f32 %v2656_v34, %v2664_v44  ;;  %v2625_v3 = vmul.f32 0.0078125, %v2616_v27 }
 0xb85   : > { %v2618_v38 = vpop.xlane.xlu1 %2617  ;;  %v2714_v52 = vmul.f32 %v6670_v26, %v2700_v4  ;;  %v2727_v63 = vadd.f32 %v6676_v7, %v2713_v54 }
 0xb86   : > { %5055 = vrsqrt.f32 %v2679_v45  ;;  %v2680_v1 = vadd.f32 1e-05, %v2672_v30  ;;  %v2626_v60 = vmul.f32 0.0078125, %v2618_v38  ;;  %v2665_v8 = vmul.f32 %v2625_v3, %v2625_v3  ;;  %v4871_v45 = vld [vmem:[#allocation19 + $0x40] sm:$0xff]  }
 0xb87   : > { %v2648_v61 = vpop.xlane.xlu0 %2647  ;;  %v2728_v2 = vadd.f32 %v6676_v7, %v2714_v52  ;;  %v2697_v51 = vsub.f32 %v6652_v20, %v2625_v3  ;;  %v4872_v30 = vld [vmem:[#allocation19 + $0xc0] sm:$0xff]   ;;  %4292 = vmatprep.subr.bf16.mxu1 %v4871_v45  ;;  %v4875_v52 = vld [vmem:[#allocation19 + $0x48] sm:$0xff]  }
 0xb88   : > { %v5052_v46 = vpop.eup %5051  ;;  %5057 = vrsqrt.f32 %v2680_v1  ;;  %v2657_v12 = vmul.f32 0.0078125, %v2648_v61  ;;  %v2666_v59 = vmul.f32 %v2626_v60, %v2626_v60  ;;  %v2698_v0 = vsub.f32 %v6655_v47, %v2626_v60  ;;  %4332 = vmatprep.subr.bf16.mxu0 %v4872_v30  ;;  %v4873_v3 = vld [vmem:[#allocation19] sm:$0xff]   ;;  %v4876_v1 = vld [vmem:[#allocation19 + $0xc8] sm:$0xff]   ;;  %v4881_v60 = vld [vmem:[#allocation19 + $0x10] sm:$0xff]  }
 0xb89   : > { %v2650_v10 = vpop.xlane.xlu1 %2649  ;;  %v2735_v62 = vpack.c.bf16 %v2728_v2, %v2727_v63  ;;  %v2701_v13 = vmul.f32 %v5052_v46, %v2693_v48  ;;  %v4874_v38 = vld [vmem:[#allocation19 + $0x80] sm:$0xff]   ;;  %v4878_v48 = vld [vmem:[#allocation19 + $0x88] sm:$0xff]   ;;  %v4882_v61 = vld [vmem:[#allocation19 + $0x90] sm:$0xff]  }
 0xb8a   : > { %v5054_v57 = vpop.eup %5053  ;;  %v2673_v32 = vsub.f32 %v2657_v12, %v2665_v8  ;;  %v2658_v41 = vmul.f32 0.0078125, %v2650_v10  ;;  %v4883_v63 = vld [vmem:[#allocation19 + $0x58] sm:$0xff]   ;;  %v4887_v12 = vld [vmem:[#allocation19 + $0x60] sm:$0xff]  }
 0xb8b   : > { %2986 = vmatmul.mubr.bf16.vlgmr.msra.gmra.mrb[48].mxu1 %v2735_v62  ;;  %3059 = vmatmul.mubr.bf16.vlgmr.msra.gmra.mrb[48].mxu0 %v2735_v62  ;;  %v2702_v55 = vmul.f32 %v5054_v57, %v2694_v9  ;;  %v2715_v11 = vmul.f32 %v6670_v26, %v2701_v13  ;;  %v4884_v2 = vld [vmem:[#allocation19 + $0xd8] sm:$0xff]   ;;  %v4888_v9 = vld [vmem:[#allocation19 + $0xe0] sm:$0xff]   ;;  %v4891_v13 = vld [vmem:[#allocation19 + $0x68] sm:$0xff]  }
 0xb8c   : > { %v2681_v18 = vadd.f32 1e-05, %v2673_v32  ;;  %v2674_v40 = vsub.f32 %v2658_v41, %v2666_v59  ;;  %2995 = vmatprep.mubr.bf16.mxu1 %v5585_v39  ;;  %3068 = vmatprep.mubr.bf16.mxu0 %v5585_v39  ;;  %v4885_v46 = vld [vmem:[#allocation19 + $0x18] sm:$0xff]   ;;  %v4889_v10 = vld [vmem:[#allocation19 + $0x20] sm:$0xff]   ;;  %v4892_v57 = vld [vmem:[#allocation19 + $0xe8] sm:$0xff]  }
 0xb8d   : > { %v2716_v15 = vmul.f32 %v6670_v26, %v2702_v55  ;;  %v2729_v58 = vadd.f32 %v6676_v7, %v2715_v11  ;;  %4293 = vmatpush3.bf16.msra.mxu1 %v4873_v3  ;;  %4333 = vmatpush3.bf16.msra.mxu0 %v4874_v38  ;;  %v4886_v8 = vld [vmem:[#allocation19 + $0x98] sm:$0xff]   ;;  %v4890_v62 = vld [vmem:[#allocation19 + $0xa0] sm:$0xff]   ;;  %v4893_v59 = vld [vmem:[#allocation19 + $0x28] sm:$0xff]  }
 0xb8e   : > { %5059 = vrsqrt.f32 %v2681_v18  ;;  %v2682_v19 = vadd.f32 1e-05, %v2674_v40  ;;  %4294 = vmatprep.subr.bf16.mxu1 %v4875_v52  ;;  %4334 = vmatprep.subr.bf16.mxu0 %v4876_v1  ;;  %v4894_v32 = vld [vmem:[#allocation19 + $0xa8] sm:$0xff]   ;;  %v4895_v41 = vld [vmem:[#allocation19 + $0x70] sm:$0xff]   ;;  %v4899_v40 = vld [vmem:[#allocation19 + $0x78] sm:$0xff]  }
 0xb8f   : > { %v2730_v24 = vadd.f32 %v6676_v7, %v2716_v15  ;;  %v4896_v55 = vld [vmem:[#allocation19 + $0xf0] sm:$0xff]   ;;  %v4900_v15 = vld [vmem:[#allocation19 + $0xf8] sm:$0xff]  }
 0xb90   : > { %v5056_v25 = vpop.eup %5055  ;;  %5061 = vrsqrt.f32 %v2682_v19  ;;  %v4897_v11 = vld [vmem:[#allocation19 + $0x30] sm:$0xff]   ;;  %v4901_v19 = vld [vmem:[#allocation19 + $0x38] sm:$0xff]  }
 0xb91   : > { %v2736_v6 = vpack.c.bf16 %v2730_v24, %v2729_v58  ;;  %v2703_v36 = vmul.f32 %v5056_v25, %v2695_v22  ;;  %4335 = vmatpush3.bf16.msra.mxu0 %v4878_v48  ;;  %v4898_v18 = vld [vmem:[#allocation19 + $0xb0] sm:$0xff]   ;;  %v4902_v22 = vld [vmem:[#allocation19 + $0xb8] sm:$0xff]   ;;  %v2773_v58 = vlaneseq }
 0xb92   : > { %v5058_v37 = vpop.eup %5057 }
 0xb93   : > { %2996 = vmatmul.mubr.bf16.gmra.mrb[52].mxu1 %v2736_v6  ;;  %3069 = vmatmul.mubr.bf16.gmra.mrb[52].mxu0 %v2736_v6  ;;  %v2704_v29 = vmul.f32 %v5058_v37, %v2696_v16  ;;  %v2717_v50 = vmul.f32 %v6670_v26, %v2703_v36  ;;  %v2774_v24 = vshrl.u32 %v2773_v58, 7  ;;  %v2771_v6 = vld [vmem:[#allocation17] sm:$0xf] }
 0xb94   : > { %3005 = vmatprep.mubr.bf16.mxu1 %v5585_v39  ;;  %3078 = vmatprep.mubr.bf16.mxu0 %v5585_v39 }
 0xb95   : > { %v2718_v35 = vmul.f32 %v6670_v26, %v2704_v29  ;;  %v2731_v23 = vadd.f32 %v6676_v7, %v2717_v50  ;;  %v2775_v25 = vsub.s32 0, %v2774_v24  ;;  %v2783_v16 = vsub.s32 2, %v2774_v24 }
 0xb96   : > { %v2779_v36 = vsub.s32 1, %v2774_v24  ;;  %v2787_v37 = vsub.s32 3, %v2774_v24 }
 0xb97   : > { %v2732_v42 = vadd.f32 %v6676_v7, %v2718_v35  ;;  %v6707_v29 = vrot.slane %v2771_v6, %v2775_v25  ;;  %v6709_v50 = vrot.slane %v2771_v6, %v2783_v16 }
 0xb98   : > { %v5060_v21 = vpop.eup %5059  ;;  %v6711_v35 = vrot.slane %v2771_v6, %v2779_v36 }
 0xb99   : > { %v2737_v28 = vpack.c.bf16 %v2732_v42, %v2731_v23  ;;  %v2705_v31 = vmul.f32 %v5060_v21, %v2697_v51  ;;  %v6713_v51 = vrot.slane %v2771_v6, %v2787_v37 }
 0xb9a   : > { %v5062_v43 = vpop.eup %5061 }
 0xb9b   : > { %3006 = vmatmul.mubr.bf16.gmra.mrb[56].mxu1 %v2737_v28  ;;  %3079 = vmatmul.mubr.bf16.gmra.mrb[56].mxu0 %v2737_v28  ;;  %v2706_v44 = vmul.f32 %v5062_v43, %v2698_v0  ;;  %v2719_v53 = vmul.f32 %v6670_v26, %v2705_v31 }
 0xb9c   : > { %3015 = vmatprep.mubr.bf16.mxu1 %v5585_v39  ;;  %3088 = vmatprep.mubr.bf16.mxu0 %v5585_v39  ;;  %v4877_v39 = vld [vmem:[#allocation19 + $0x8] sm:$0xff]  }
 0xb9d   : > { %v2720_v34 = vmul.f32 %v6670_v26, %v2706_v44  ;;  %v2733_v4 = vadd.f32 %v6676_v7, %v2719_v53  ;;  %4295 = vmatpush3.bf16.msra.mxu1 %v4877_v39  ;;  %v4879_v26 = vld [vmem:[#allocation19 + $0x50] sm:$0xff]  }
 0xb9e   : > { %4296 = vmatprep.subr.bf16.mxu1 %v4879_v26 }
 0xb9f   : > { %v2734_v27 = vadd.f32 %v6676_v7, %v2720_v34  ;;  %v4880_v7 = vld [vmem:[#allocation19 + $0xd0] sm:$0xff]  }
 0xba0   : > { %4336 = vmatprep.subr.bf16.mxu0 %v4880_v7 }
 0xba1   : > { %v2738_v54 = vpack.c.bf16 %v2734_v27, %v2733_v4  ;;  %4297 = vmatpush3.bf16.msra.mxu1 %v4881_v60  ;;  %4337 = vmatpush3.bf16.msra.mxu0 %v4882_v61 }
 0xba2   : > { %4298 = vmatprep.subr.bf16.mxu1 %v4883_v63  ;;  %4338 = vmatprep.subr.bf16.mxu0 %v4884_v2 }
 0xba3   : > { %3016 = vmatmul.mubr.bf16.gmra.mrb[60].mxu1 %v2738_v54  ;;  %3089 = vmatmul.mubr.bf16.gmra.mrb[60].mxu0 %v2738_v54 }
 0xba5   : > { %4299 = vmatpush3.bf16.msra.mxu1 %v4885_v46  ;;  %4339 = vmatpush3.bf16.msra.mxu0 %v4886_v8 }
 0xba6   : > { %4300 = vmatprep.subr.bf16.mxu1 %v4887_v12  ;;  %4340 = vmatprep.subr.bf16.mxu0 %v4888_v9 }
 0xba9   : > { %4301 = vmatpush3.bf16.msra.mxu1 %v4889_v10  ;;  %4341 = vmatpush3.bf16.msra.mxu0 %v4890_v62 }
 0xbaa   : > { %4302 = vmatprep.subr.bf16.mxu1 %v4891_v13  ;;  %4342 = vmatprep.subr.bf16.mxu0 %v4892_v57 }
 0xbad   : > { %4303 = vmatpush3.bf16.msra.mxu1 %v4893_v59  ;;  %4343 = vmatpush3.bf16.msra.mxu0 %v4894_v32 }
 0xbae   : > { %4304 = vmatprep.subr.bf16.mxu1 %v4895_v41  ;;  %4344 = vmatprep.subr.bf16.mxu0 %v4896_v55 }
 0xbb1   : > { %4305 = vmatpush3.bf16.msra.mxu1 %v4897_v11  ;;  %4345 = vmatpush3.bf16.msra.mxu0 %v4898_v18 }
 0xbb2   : > { %4306 = vmatprep.subr.bf16.mxu1 %v4899_v40  ;;  %4346 = vmatprep.subr.bf16.mxu0 %v4900_v15 }
 0xbb5   : > { %4307 = vmatpush3.bf16.msra.mxu1 %v4901_v19  ;;  %4347 = vmatpush3.bf16.msra.mxu0 %v4902_v22 }
 0xc5e   : > { %v2987_v23 = vpop.f32.mrb[48].mxu1  ;;  %v3060_v42 = vpop.f32.mrb[48].mxu0 }
 0xc5f   : > { %v2988_v21 = vadd.f32 %v2987_v23, %v6707_v29  ;;  %v3061_v0 = vadd.f32 %v3060_v42, %v6709_v50  ;;  %v2989_v28 = vpop.f32.mrb[49].mxu1  ;;  %v3062_v31 = vpop.f32.mrb[49].mxu0 }
 0xc60   : > { %v6718_v43 = vadd.f32 %v2989_v28, %v6711_v35  ;;  %v6721_v44 = vadd.f32 %v3062_v31, %v6713_v51  ;;  %v2991_v53 = vpop.f32.mrb[50].mxu1  ;;  %v3064_v34 = vpop.f32.mrb[50].mxu0 }
 0xc61   : > { %v3131_v4 = vmul.f32 0.044715, %v2988_v21  ;;  %v3133_v27 = vmul.f32 0.044715, %v3061_v0  ;;  %v2992_v45 = vadd.f32 %v2991_v53, %v6707_v29  ;;  %v3065_v30 = vadd.f32 %v3064_v34, %v6709_v50  ;;  %v2993_v3 = vpop.f32.mrb[51].mxu1  ;;  %v3066_v38 = vpop.f32.mrb[51].mxu0 }
 0xc62   : > { %v3132_v54 = vmul.f32 0.044715, %v6718_v43  ;;  %v3134_v39 = vmul.f32 0.044715, %v6721_v44  ;;  %v6728_v48 = vadd.f32 %v2993_v3, %v6711_v35  ;;  %v6731_v63 = vadd.f32 %v3066_v38, %v6713_v51 }
 0xc63   : > { %v3163_v52 = vmul.f32 %v3131_v4, %v2988_v21  ;;  %v3165_v1 = vmul.f32 %v3133_v27, %v3061_v0  ;;  %v3135_v26 = vmul.f32 0.044715, %v2992_v45  ;;  %v3137_v61 = vmul.f32 0.044715, %v3065_v30 }
 0xc64   : > { %v3164_v2 = vmul.f32 %v3132_v54, %v6718_v43  ;;  %v3166_v10 = vmul.f32 %v3134_v39, %v6721_v44  ;;  %v3136_v13 = vmul.f32 0.044715, %v6728_v48  ;;  %v6742_v15 = vmul.f32 0.5, %v2988_v21 }
 0xc65   : > { %v3195_v7 = vmul.f32 %v3163_v52, %v2988_v21  ;;  %v3197_v60 = vmul.f32 %v3165_v1, %v3061_v0  ;;  %v3167_v46 = vmul.f32 %v3135_v26, %v2992_v45  ;;  %v3169_v62 = vmul.f32 %v3137_v61, %v3065_v30 }
 0xc66   : > { %v2997_v8 = vpop.f32.mrb[52].mxu1  ;;  %v3070_v12 = vpop.f32.mrb[52].mxu0  ;;  %v6744_v19 = vmul.f32 0.5, %v3061_v0  ;;  %v3138_v58 = vmul.f32 0.044715, %v6731_v63  ;;  %v6747_v6 = vmul.f32 0.5, %v2992_v45  ;;  %v6757_v31 = vmul.f32 %v3164_v2, %v6718_v43 }
 0xc67   : > { %v3227_v9 = vadd.f32 %v3195_v7, %v2988_v21  ;;  %v2999_v57 = vpop.f32.mrb[53].mxu1  ;;  %v3072_v59 = vpop.f32.mrb[53].mxu0  ;;  %v3229_v32 = vadd.f32 %v3197_v60, %v3061_v0  ;;  %v3199_v41 = vmul.f32 %v3167_v46, %v2992_v45  ;;  %v6737_v55 = vadd.f32 %v2997_v8, %v6707_v29 }
 0xc68   : > { %v6740_v11 = vadd.f32 %v3070_v12, %v6709_v50  ;;  %v3001_v18 = vpop.f32.mrb[54].mxu1  ;;  %v3074_v40 = vpop.f32.mrb[54].mxu0  ;;  %v3201_v22 = vmul.f32 %v3169_v62, %v3065_v30  ;;  %v6749_v37 = vmul.f32 0.5, %v3065_v30  ;;  %v6754_v21 = vadd.f32 %v2999_v57, %v6711_v35 }
 0xc69   : > { %v3003_v24 = vpop.f32.mrb[55].mxu1  ;;  %v3076_v25 = vpop.f32.mrb[55].mxu0  ;;  %v3259_v16 = vmul.f32 0.7978846, %v3227_v9  ;;  %v3231_v36 = vadd.f32 %v3199_v41, %v2992_v45  ;;  %v3139_v42 = vmul.f32 0.044715, %v6737_v55  ;;  %v6760_v53 = vmul.f32 %v3166_v10, %v6721_v44 }
 0xc6a   : > { %7225 = vst [vmem:[#allocation40_spill] sm:$0xff] %v6740_v11  ;;  %v3233_v23 = vadd.f32 %v3201_v22, %v3065_v30  ;;  %v3141_v28 = vmul.f32 0.044715, %v6740_v11  ;;  %v3261_v0 = vmul.f32 0.7978846, %v3229_v32  ;;  %v3168_v34 = vmul.f32 %v3136_v13, %v6728_v48 }
 0xc6b   : > { %v3170_v4 = vmul.f32 %v3138_v58, %v6731_v63  ;;  %v3140_v27 = vmul.f32 0.044715, %v6754_v21  ;;  %v6766_v54 = vadd.f32 %v3072_v59, %v6713_v51  ;;  %v6769_v45 = vadd.f32 %v3001_v18, %v6707_v29 }
 0xc6c   : > { %5063 = vtanh.f32 %v3259_v16  ;;  %v3263_v30 = vmul.f32 0.7978846, %v3231_v36  ;;  %v3265_v3 = vmul.f32 0.7978846, %v3233_v23  ;;  %v6772_v38 = vadd.f32 %v3074_v40, %v6709_v50 }
 0xc6d   : > { %7226 = vst [vmem:[#allocation41_spill] sm:$0xff] %v6769_v45  ;;  %v3171_v39 = vmul.f32 %v3139_v42, %v6737_v55  ;;  %v3173_v26 = vmul.f32 %v3141_v28, %v6740_v11  ;;  %v3142_v7 = vmul.f32 0.044715, %v6766_v54  ;;  %v3143_v60 = vmul.f32 0.044715, %v6769_v45 }
 0xc6e   : > { %7227 = vst [vmem:[#allocation42_spill] sm:$0xff] %v6772_v38  ;;  %v3007_v52 = vpop.f32.mrb[56].mxu1  ;;  %v3080_v1 = vpop.f32.mrb[56].mxu0  ;;  %v3172_v46 = vmul.f32 %v3140_v27, %v6754_v21  ;;  %v3145_v8 = vmul.f32 0.044715, %v6772_v38  ;;  %v6781_v12 = vadd.f32 %v3003_v24, %v6711_v35  ;;  %v6784_v9 = vadd.f32 %v3076_v25, %v6713_v51 }
 0xc6f   : > { %v3009_v61 = vpop.f32.mrb[57].mxu1  ;;  %v3082_v2 = vpop.f32.mrb[57].mxu0  ;;  %5065 = vtanh.f32 %v3261_v0  ;;  %v6787_v13 = vmul.f32 %v3168_v34, %v6728_v48  ;;  %v6790_v57 = vadd.f32 %v3007_v52, %v6707_v29  ;;  %v6793_v59 = vadd.f32 %v3080_v1, %v6709_v50 }
 0xc70   : > { %v3011_v10 = vpop.f32.mrb[58].mxu1  ;;  %v3084_v62 = vpop.f32.mrb[58].mxu0  ;;  %5067 = vtanh.f32 %v3263_v30  ;;  %v6796_v18 = vmul.f32 %v3170_v4, %v6731_v63  ;;  %v3174_v40 = vmul.f32 %v3142_v7, %v6766_v54  ;;  %v3144_v22 = vmul.f32 0.044715, %v6781_v12 }
 0xc71   : > { %v3013_v32 = vpop.f32.mrb[59].mxu1  ;;  %v3086_v41 = vpop.f32.mrb[59].mxu0  ;;  %v6801_v58 = vmul.f32 %v3171_v39, %v6737_v55  ;;  %v3175_v24 = vmul.f32 %v3143_v60, %v6769_v45  ;;  %v3146_v25 = vmul.f32 0.044715, %v6784_v9  ;;  %v6806_v16 = vadd.f32 %v3009_v61, %v6711_v35 }
 0xc72   : > { %5069 = vtanh.f32 %v3265_v3  ;;  %v6809_v36 = vmul.f32 %v3173_v26, %v6740_v11  ;;  %v6812_v23 = vmul.f32 %v3172_v46, %v6754_v21  ;;  %v3177_v42 = vmul.f32 %v3145_v8, %v6772_v38 }
 0xc73   : > { %7228 = vst [vmem:[#allocation43_spill] sm:$0xff] %v6801_v58  ;;  %v3147_v28 = vmul.f32 0.044715, %v6790_v57  ;;  %v3149_v0 = vmul.f32 0.044715, %v6793_v59  ;;  %v6818_v34 = vadd.f32 %v3082_v2, %v6713_v51  ;;  %v6821_v4 = vadd.f32 %v3011_v10, %v6707_v29 }
 0xc74   : > { %7229 = vst [vmem:[#allocation44_spill] sm:$0xff] %v6809_v36  ;;  %v6824_v27 = vmul.f32 %v3174_v40, %v6766_v54  ;;  %v3176_v30 = vmul.f32 %v3144_v22, %v6781_v12  ;;  %v3148_v3 = vmul.f32 0.044715, %v6806_v16  ;;  %v6829_v52 = vadd.f32 %v3084_v62, %v6709_v50 }
 0xc75   : > { %v6832_v26 = vmul.f32 %v3175_v24, %v6769_v45  ;;  %v3178_v7 = vmul.f32 %v3146_v25, %v6784_v9  ;;  %v3150_v60 = vmul.f32 0.044715, %v6818_v34  ;;  %v3151_v61 = vmul.f32 0.044715, %v6821_v4 }
 0xc76   : > { %v3017_v1 = vpop.f32.mrb[60].mxu1  ;;  %v3090_v39 = vpop.f32.mrb[60].mxu0  ;;  %v3153_v10 = vmul.f32 0.044715, %v6829_v52  ;;  %v6841_v62 = vadd.f32 %v3013_v32, %v6711_v35  ;;  %v6844_v40 = vadd.f32 %v3086_v41, %v6713_v51  ;;  %v6850_v47 = vmul.f32 %v3177_v42, %v6772_v38 }
 0xc77   : > { %7230 = vst [vmem:[#allocation45_spill] sm:$0xff] %v6832_v26  ;;  %v3019_v2 = vpop.f32.mrb[61].mxu1  ;;  %v3092_v46 = vpop.f32.mrb[61].mxu0  ;;  %v6847_v22 = vadd.f32 %v3017_v1, %v6707_v29  ;;  %v3179_v20 = vmul.f32 %v3147_v28, %v6790_v57  ;;  %v3181_v56 = vmul.f32 %v3149_v0, %v6793_v59  ;;  %v6855_v17 = vadd.f32 %v3090_v39, %v6709_v50 }
 0xc78   : > { %v6837_v8 = vpop.eup %5063  ;;  %v3021_v24 = vpop.f32.mrb[62].mxu1  ;;  %7231 = vst [vmem:[#allocation46_spill] sm:$0xff] %v6850_v47  ;;  %v6858_v41 = vmul.f32 %v3176_v30, %v6781_v12  ;;  %v3152_v1 = vmul.f32 0.044715, %v6841_v62  ;;  %v3154_v14 = vmul.f32 0.044715, %v6844_v40  ;;  %v6864_v49 = vmul.f32 %v3178_v7, %v6784_v9 }
 0xc79   : > { %v3094_v25 = vpop.f32.mrb[62].mxu0  ;;  %7232 = vst [vmem:[#allocation47_spill] sm:$0xff] %v6855_v17  ;;  %v3023_v32 = vpop.f32.mrb[63].mxu1  ;;  %v3155_v5 = vmul.f32 0.044715, %v6847_v22  ;;  %v3180_v28 = vmul.f32 %v3148_v3, %v6806_v16  ;;  %v6869_v39 = vadd.f32 %v3019_v2, %v6711_v35  ;;  %v3182_v30 = vmul.f32 %v3150_v60, %v6818_v34 }
 0xc7a   : > { %v3096_v33 = vpop.f32.mrb[63].mxu0  ;;  %v5066_v42 = vpop.eup %5065  ;;  %v3157_v0 = vmul.f32 0.044715, %v6855_v17  ;;  %v3183_v38 = vmul.f32 %v3151_v61, %v6821_v4  ;;  %v3185_v36 = vmul.f32 %v3153_v10, %v6829_v52  ;;  %v3184_v11 = vmul.f32 %v3152_v1, %v6841_v62 }
 0xc7b   : > { %v5068_v47 = vpop.eup %5067  ;;  %v3186_v26 = vmul.f32 %v3154_v14, %v6844_v40  ;;  %v3156_v7 = vmul.f32 0.044715, %v6869_v39  ;;  %v6878_v3 = vadd.f32 %v3092_v46, %v6713_v51  ;;  %v6881_v45 = vadd.f32 %v3021_v24, %v6707_v29 }
 0xc7c   : > { %v5070_v2 = vpop.eup %5069  ;;  %v6884_v58 = vmul.f32 %v3179_v20, %v6790_v57  ;;  %v6887_v60 = vmul.f32 %v3181_v56, %v6793_v59  ;;  %v3187_v61 = vmul.f32 %v3155_v5, %v6847_v22  ;;  %v6891_v10 = vadd.f32 %v3094_v25, %v6709_v50 }
 0xc7d   : > { %v6894_v14 = vmul.f32 %v3180_v28, %v6806_v16  ;;  %v3189_v46 = vmul.f32 %v3157_v0, %v6855_v17  ;;  %v3188_v29 = vmul.f32 %v3156_v7, %v6869_v39  ;;  %v3158_v24 = vmul.f32 0.044715, %v6878_v3 }
 0xc7e   : > { %v6900_v20 = vmul.f32 %v3182_v30, %v6818_v34  ;;  %v6903_v56 = vmul.f32 %v3183_v38, %v6821_v4  ;;  %v3159_v5 = vmul.f32 0.044715, %v6881_v45  ;;  %v3161_v50 = vmul.f32 0.044715, %v6891_v10 }
 0xc7f   : > { %v6908_v25 = vmul.f32 %v3185_v36, %v6829_v52  ;;  %v6911_v1 = vmul.f32 %v3184_v11, %v6841_v62  ;;  %v6914_v28 = vmul.f32 %v3186_v26, %v6844_v40  ;;  %v6917_v0 = vadd.f32 %v3023_v32, %v6711_v35 }
 0xc80   : > { %v6920_v30 = vmul.f32 %v3187_v61, %v6847_v22  ;;  %v3190_v38 = vmul.f32 %v3158_v24, %v6878_v3  ;;  %v6924_v7 = vadd.f32 %v3096_v33, %v6713_v51  ;;  %v3228_v36 = vadd.f32 %v6757_v31, %v6718_v43 }
 0xc81   : > { %v6929_v11 = vmul.f32 %v3189_v46, %v6855_v17  ;;  %v6932_v26 = vmul.f32 %v3188_v29, %v6869_v39  ;;  %v6935_v35 = vmul.f32 0.5, %v6718_v43  ;;  %v3232_v32 = vadd.f32 %v6787_v13, %v6728_v48 }
 0xc82   : > { %v3191_v61 = vmul.f32 %v3159_v5, %v6881_v45  ;;  %v3193_v33 = vmul.f32 %v3161_v50, %v6891_v10  ;;  %v6942_v51 = vmul.f32 0.5, %v6728_v48  ;;  %v3260_v31 = vmul.f32 0.7978846, %v3228_v36 }
 0xc83   : > { %7233 = vst [vmem:[#allocation48_spill] sm:$0xff] %v6929_v11  ;;  %v3160_v46 = vmul.f32 0.044715, %v6917_v0  ;;  %v3264_v24 = vmul.f32 0.7978846, %v3232_v32  ;;  %v3230_v29 = vadd.f32 %v6760_v53, %v6721_v44  ;;  %v3234_v43 = vadd.f32 %v6796_v18, %v6731_v63 }
 0xc84   : > { %v6950_v11 = vmul.f32 %v3190_v38, %v6878_v3  ;;  %v3162_v13 = vmul.f32 0.044715, %v6924_v7  ;;  %5071 = vtanh.f32 %v3260_v31  ;;  %v3323_v5 = vadd.f32 1.0, %v6837_v8 }
 0xc85   : > { %5073 = vtanh.f32 %v3264_v24  ;;  %v3262_v48 = vmul.f32 0.7978846, %v3230_v29  ;;  %v3266_v50 = vmul.f32 0.7978846, %v3234_v43  ;;  %v3327_v36 = vadd.f32 1.0, %v5068_v47 }
 0xc86   : > { %v6955_v32 = vmul.f32 %v3191_v61, %v6881_v45  ;;  %v6958_v53 = vmul.f32 0.5, %v6721_v44  ;;  %v3325_v17 = vadd.f32 1.0, %v5066_v42  ;;  %v3329_v18 = vadd.f32 1.0, %v5070_v2 }
 0xc87   : > { %5075 = vtanh.f32 %v3262_v48  ;;  %v6961_v38 = vmul.f32 %v3323_v5, %v6742_v15  ;;  %v6964_v31 = vmul.f32 %v3327_v36, %v6747_v6  ;;  %v3236_v8 = vadd.f32 %v6812_v23, %v6754_v21  ;;  %v7235_v5 = vld [vmem:[#allocation41_spill] sm:$0xff]  ;;  %v7237_v36 = vld [vmem:[#allocation40_spill] sm:$0xff] }
 0xc88   : > { %5077 = vtanh.f32 %v3266_v50  ;;  %v6969_v47 = vmul.f32 %v3325_v17, %v6744_v19  ;;  %v6972_v61 = vmul.f32 %v3329_v18, %v6749_v37  ;;  %v3240_v44 = vadd.f32 %v6858_v41, %v6781_v12  ;;  %v7236_v48 = vld [vmem:[#allocation45_spill] sm:$0xff]  ;;  %v7238_v18 = vld [vmem:[#allocation44_spill] sm:$0xff] }
 0xc89   : > { %v3192_v42 = vmul.f32 %v3160_v46, %v6917_v0  ;;  %v3194_v15 = vmul.f32 %v3162_v13, %v6924_v7  ;;  %v3387_v6 = vpack.c.bf16 %v6964_v31, %v6961_v38  ;;  %v3268_v2 = vmul.f32 0.7978846, %v3236_v8  ;;  %v7234_v46 = vld [vmem:[#allocation43_spill] sm:$0xff] }
 0xc8a   : > { %v3389_v23 = vpack.c.bf16 %v6972_v61, %v6969_v47  ;;  %v3272_v24 = vmul.f32 0.7978846, %v3240_v44  ;;  %v3238_v17 = vadd.f32 %v6824_v27, %v6766_v54  ;;  %v3242_v19 = vadd.f32 %v6864_v49, %v6784_v9  ;;  %v7239_v44 = vld [vmem:[#allocation42_spill] sm:$0xff] }
 0xc8b   : > { %v6987_v37 = vmul.f32 %v3193_v33, %v6891_v10  ;;  %v3106_v41 = vmul.f32 0.5, %v6731_v63  ;;  %5079 = vtanh.f32 %v3268_v2  ;;  %v3235_v29 = vadd.f32 %v7234_v46, %v6737_v55  ;;  %v7240_v2 = vld [vmem:[#allocation46_spill] sm:$0xff] }
 0xc8c   : > { %5081 = vtanh.f32 %v3272_v24  ;;  %v3270_v43 = vmul.f32 0.7978846, %v3238_v17  ;;  %v3274_v13 = vmul.f32 0.7978846, %v3242_v19  ;;  %v3239_v50 = vadd.f32 %v7236_v48, %v7235_v5 }
 0xc8d   : > { %v6995_v27 = vmul.f32 %v3192_v42, %v6917_v0  ;;  %v6998_v49 = vmul.f32 %v3194_v15, %v6924_v7  ;;  %v3267_v33 = vmul.f32 0.7978846, %v3235_v29  ;;  %v3237_v63 = vadd.f32 %v7238_v18, %v7237_v36 }
 0xc8e   : > { %v5072_v38 = vpop.eup %5071  ;;  %v3108_v31 = vmul.f32 0.5, %v6754_v21  ;;  %5083 = vtanh.f32 %v3270_v43  ;;  %v3271_v8 = vmul.f32 0.7978846, %v3239_v50  ;;  %v3241_v24 = vadd.f32 %v7240_v2, %v7239_v44 }
 0xc8f   : > { %v5074_v17 = vpop.eup %5073  ;;  %v3324_v19 = vadd.f32 1.0, %v5072_v38  ;;  %v3112_v42 = vmul.f32 0.5, %v6781_v12  ;;  %5085 = vtanh.f32 %v3274_v13  ;;  %v3269_v46 = vmul.f32 0.7978846, %v3237_v63 }
 0xc90   : > { %v3328_v15 = vadd.f32 1.0, %v5074_v17  ;;  %5087 = vtanh.f32 %v3267_v33  ;;  %v3273_v29 = vmul.f32 0.7978846, %v3241_v24  ;;  %v3244_v48 = vadd.f32 %v6894_v14, %v6806_v16 }
 0xc91   : > { %v5076_v18 = vpop.eup %5075  ;;  %v3356_v21 = vmul.f32 %v3324_v19, %v6935_v35  ;;  %v3110_v43 = vmul.f32 0.5, %v6766_v54  ;;  %5089 = vtanh.f32 %v3271_v8  ;;  %v3248_v50 = vadd.f32 %v6911_v1, %v6841_v62 }
 0xc92   : > { %v5078_v38 = vpop.eup %5077  ;;  %v3360_v12 = vmul.f32 %v3328_v15, %v6942_v51  ;;  %v3326_v13 = vadd.f32 1.0, %v5076_v18  ;;  %5091 = vtanh.f32 %v3269_v46  ;;  %v3276_v63 = vmul.f32 0.7978846, %v3244_v48 }
 0xc93   : > { %v3330_v33 = vadd.f32 1.0, %v5078_v38  ;;  %v3114_v2 = vmul.f32 0.5, %v6784_v9  ;;  %5093 = vtanh.f32 %v3273_v29  ;;  %v3280_v14 = vmul.f32 0.7978846, %v3248_v50 }
 0xc94   : > { %v3388_v24 = vpack.c.bf16 %v3360_v12, %v3356_v21  ;;  %v3107_v35 = vmul.f32 0.5, %v6737_v55  ;;  %5095 = vtanh.f32 %v3276_v63  ;;  %v3246_v54 = vadd.f32 %v6900_v20, %v6818_v34 }
 0xc95   : > { %v5080_v8 = vpop.eup %5079  ;;  %v3358_v1 = vmul.f32 %v3326_v13, %v6958_v53  ;;  %v3362_v17 = vmul.f32 %v3330_v33, %v3106_v41  ;;  %5097 = vtanh.f32 %v3280_v14  ;;  %v3250_v51 = vadd.f32 %v6914_v28, %v6844_v40 }
 0xc96   : > { %v5082_v19 = vpop.eup %5081  ;;  %3698 = vmatprep.mubr.bf16.mxu1 %v3388_v24  ;;  %v3332_v9 = vadd.f32 1.0, %v5080_v8  ;;  %v3111_v46 = vmul.f32 0.5, %v7235_v5  ;;  %v3278_v15 = vmul.f32 0.7978846, %v3246_v54  ;;  %v3243_v55 = vadd.f32 %v6884_v58, %v6790_v57 }
 0xc97   : > { %v3390_v29 = vpack.c.bf16 %v3362_v17, %v3358_v1  ;;  %3699 = vmatmul.mubr.bf16.vlgmr.msra.gmra.mrb[64].mxu1 %v3387_v6  ;;  %v3336_v20 = vadd.f32 1.0, %v5082_v19  ;;  %v3282_v48 = vmul.f32 0.7978846, %v3250_v51  ;;  %v3247_v53 = vadd.f32 %v6903_v56, %v6821_v4 }
 0xc98   : > { %v5084_v41 = vpop.eup %5083  ;;  %v3364_v18 = vmul.f32 %v3332_v9, %v3108_v31  ;;  %v3109_v28 = vmul.f32 0.5, %v7237_v36  ;;  %5099 = vtanh.f32 %v3278_v15  ;;  %v3275_v21 = vmul.f32 0.7978846, %v3243_v55 }
 0xc99   : > { %v5086_v50 = vpop.eup %5085  ;;  %3763 = vmatprep.mubr.bf16.mxu0 %v3390_v29  ;;  %v3368_v5 = vmul.f32 %v3336_v20, %v3112_v42  ;;  %v3334_v38 = vadd.f32 1.0, %v5084_v41  ;;  %5101 = vtanh.f32 %v3282_v48  ;;  %v3279_v12 = vmul.f32 0.7978846, %v3247_v53 }
 0xc9a   : > { %v5088_v58 = vpop.eup %5087  ;;  %3764 = vmatmul.mubr.bf16.vlgmr.msra.gmra.mrb[64].mxu0 %v3389_v23  ;;  %v3338_v6 = vadd.f32 1.0, %v5086_v50  ;;  %v3113_v56 = vmul.f32 0.5, %v7239_v44  ;;  %5103 = vtanh.f32 %v3275_v21  ;;  %v3245_v36 = vadd.f32 %v6887_v60, %v6793_v59 }
 0xc9b   : > { %v5090_v31 = vpop.eup %5089  ;;  %v3392_v13 = vpack.c.bf16 %v3368_v5, %v3364_v18  ;;  %v3366_v63 = vmul.f32 %v3334_v38, %v3110_v43  ;;  %v3331_v33 = vadd.f32 1.0, %v5088_v58  ;;  %5105 = vtanh.f32 %v3279_v12 }
 0xc9c   : > { %v5092_v42 = vpop.eup %5091  ;;  %v3370_v14 = vmul.f32 %v3338_v6, %v3114_v2  ;;  %v3335_v24 = vadd.f32 1.0, %v5090_v31  ;;  %v3249_v54 = vadd.f32 %v6908_v25, %v6829_v52  ;;  %v3277_v47 = vmul.f32 0.7978846, %v3245_v36 }
 0xc9d   : > { %v5094_v61 = vpop.eup %5093  ;;  %3706 = vmatprep.mubr.bf16.mxu1 %v3392_v13  ;;  %v3363_v23 = vmul.f32 %v3331_v33, %v3107_v35  ;;  %v3333_v44 = vadd.f32 1.0, %v5092_v42  ;;  %v3116_v8 = vmul.f32 0.5, %v6806_v16  ;;  %v3120_v60 = vmul.f32 0.5, %v6841_v62 }
 0xc9e   : > { %v5096_v1 = vpop.eup %5095  ;;  %v3394_v17 = vpack.c.bf16 %v3370_v14, %v3366_v63  ;;  %v3367_v43 = vmul.f32 %v3335_v24, %v3111_v46  ;;  %v3337_v51 = vadd.f32 1.0, %v5094_v61  ;;  %v3281_v19 = vmul.f32 0.7978846, %v3249_v54  ;;  %v7241_v54 = vld [vmem:[#allocation47_spill] sm:$0xff] }
 0xc9f   : > { %v5098_v9 = vpop.eup %5097  ;;  %v3365_v2 = vmul.f32 %v3333_v44, %v3109_v28  ;;  %v3340_v15 = vadd.f32 1.0, %v5096_v1  ;;  %5107 = vtanh.f32 %v3277_v47  ;;  %v3252_v25 = vadd.f32 %v6932_v26, %v6869_v39  ;;  %v7242_v47 = vld [vmem:[#allocation48_spill] sm:$0xff] }
 0xca0   : > { %3771 = vmatprep.mubr.bf16.mxu0 %v3394_v17  ;;  %v3391_v55 = vpack.c.bf16 %v3367_v43, %v3363_v23  ;;  %v3369_v35 = vmul.f32 %v3337_v51, %v3113_v56  ;;  %v3344_v29 = vadd.f32 1.0, %v5098_v9  ;;  %5109 = vtanh.f32 %v3281_v19 }
 0xca1   : > { %v3118_v16 = vmul.f32 0.5, %v6818_v34  ;;  %v3122_v62 = vmul.f32 0.5, %v6844_v40  ;;  %v3256_v46 = vadd.f32 %v6995_v27, %v6917_v0  ;;  %v3284_v20 = vmul.f32 0.7978846, %v3252_v25 }
 0xca2   : > { %v5100_v48 = vpop.eup %5099  ;;  %3707 = vmatmul.mubr.bf16.gmra.mrb[68].mxu1 %v3391_v55  ;;  %v3393_v53 = vpack.c.bf16 %v3369_v35, %v3365_v2  ;;  %v3372_v41 = vmul.f32 %v3340_v15, %v3116_v8  ;;  %v3376_v18 = vmul.f32 %v3344_v29, %v3120_v60  ;;  %v3254_v26 = vadd.f32 %v6950_v11, %v6878_v3 }
 0xca3   : > { %v5102_v28 = vpop.eup %5101  ;;  %v3342_v21 = vadd.f32 1.0, %v5100_v48  ;;  %v3288_v50 = vmul.f32 0.7978846, %v3256_v46  ;;  %5111 = vtanh.f32 %v3284_v20  ;;  %v3258_v34 = vadd.f32 %v6998_v49, %v6924_v7 }
 0xca4   : > { %v5104_v40 = vpop.eup %5103  ;;  %3772 = vmatmul.mubr.bf16.gmra.mrb[68].mxu0 %v3393_v53  ;;  %v3396_v5 = vpack.c.bf16 %v3376_v18, %v3372_v41  ;;  %v3346_v27 = vadd.f32 1.0, %v5102_v28  ;;  %v3115_v38 = vmul.f32 0.5, %v6790_v57  ;;  %v3286_v12 = vmul.f32 0.7978846, %v3254_v26 }
 0xca5   : > { %v5106_v58 = vpop.eup %5105  ;;  %v3119_v6 = vmul.f32 0.5, %v6821_v4  ;;  %v3339_v56 = vadd.f32 1.0, %v5104_v40  ;;  %5113 = vtanh.f32 %v3288_v50  ;;  %v3290_v11 = vmul.f32 0.7978846, %v3258_v34 }
 0xca6   : > { %3714 = vmatprep.mubr.bf16.mxu1 %v3396_v5  ;;  %v3374_v36 = vmul.f32 %v3342_v21, %v3118_v16  ;;  %v3378_v31 = vmul.f32 %v3346_v27, %v3122_v62  ;;  %v3343_v13 = vadd.f32 1.0, %v5106_v58  ;;  %5115 = vtanh.f32 %v3286_v12 }
 0xca7   : > { %5117 = vtanh.f32 %v3290_v11  ;;  %v3251_v49 = vadd.f32 %v6920_v30, %v6847_v22  ;;  %v3255_v63 = vadd.f32 %v6955_v32, %v6881_v45  ;;  %v3371_v33 = vmul.f32 %v3339_v56, %v3115_v38 }
 0xca8   : > { %v3398_v57 = vpack.c.bf16 %v3378_v31, %v3374_v36  ;;  %v3375_v42 = vmul.f32 %v3343_v13, %v3119_v6  ;;  %v3253_v61 = vadd.f32 %v7242_v47, %v7241_v54  ;;  %v3257_v23 = vadd.f32 %v6987_v37, %v6891_v10  ;;  %v7066_v31 = vld [vmem:[#allocation20] ss:$0 sm:$0xff] }
 0xca9   : > { %v5108_v14 = vpop.eup %5107  ;;  %v3283_v4 = vmul.f32 0.7978846, %v3251_v49  ;;  %v3287_v24 = vmul.f32 0.7978846, %v3255_v63  ;;  %v3117_v30 = vmul.f32 0.5, %v6793_v59  ;;  %v3121_v60 = vmul.f32 0.5, %v6829_v52 }
 0xcaa   : > { %v5110_v44 = vpop.eup %5109  ;;  %3779 = vmatprep.mubr.bf16.mxu0 %v3398_v57  ;;  %v3395_v8 = vpack.c.bf16 %v3375_v42, %v3371_v33  ;;  %v3341_v32 = vadd.f32 1.0, %v5108_v14  ;;  %v3285_v17 = vmul.f32 0.7978846, %v3253_v61  ;;  %v3289_v43 = vmul.f32 0.7978846, %v3257_v23  ;;  %v7243_v23 = vld [vmem:[#allocation32_spill] sm:$0xff] }
 0xcab   : > { %v3345_v1 = vadd.f32 1.0, %v5110_v44  ;;  %5119 = vtanh.f32 %v3283_v4  ;;  %v3124_v59 = vmul.f32 0.5, %v6869_v39  ;;  %v3128_v52 = vmul.f32 0.5, %v6917_v0 }
 0xcac   : > { %3715 = vmatmul.mubr.bf16.gmra.mrb[72].mxu1 %v3395_v8  ;;  %5121 = vtanh.f32 %v3287_v24  ;;  %v3373_v19 = vmul.f32 %v3341_v32, %v3117_v30  ;;  %v3126_v29 = vmul.f32 0.5, %v6878_v3  ;;  %v3130_v20 = vmul.f32 0.5, %v6924_v7  ;;  %v7244_v30 = vld [vmem:[#allocation33_spill] sm:$0xff] }
 0xcad   : > { %v5112_v51 = vpop.eup %5111  ;;  %v3377_v9 = vmul.f32 %v3345_v1, %v3121_v60  ;;  %5123 = vtanh.f32 %v3285_v17  ;;  %v3123_v50 = vmul.f32 0.5, %v6847_v22  ;;  %v3127_v34 = vmul.f32 0.5, %v6881_v45 }
 0xcae   : > { %v3348_v2 = vadd.f32 1.0, %v5112_v51  ;;  %5125 = vtanh.f32 %v3289_v43  ;;  %v3125_v5 = vmul.f32 0.5, %v7241_v54  ;;  %v3129_v12 = vmul.f32 0.5, %v6891_v10 }
 0xcaf   : > { %v5114_v37 = vpop.eup %5113  ;;  %v3397_v15 = vpack.c.bf16 %v3377_v9, %v3373_v19 }
 0xcb0   : > { %v5116_v25 = vpop.eup %5115  ;;  %v3352_v55 = vadd.f32 1.0, %v5114_v37  ;;  %v3380_v62 = vmul.f32 %v3348_v2, %v3124_v59 }
 0xcb1   : > { %v5118_v35 = vpop.eup %5117  ;;  %3780 = vmatmul.mubr.bf16.gmra.mrb[72].mxu0 %v3397_v15  ;;  %v3350_v16 = vadd.f32 1.0, %v5116_v25 }
 0xcb2   : > { %v3384_v46 = vmul.f32 %v3352_v55, %v3128_v52  ;;  %v3354_v48 = vadd.f32 1.0, %v5118_v35 }
 0xcb3   : > { %v3382_v41 = vmul.f32 %v3350_v16, %v3126_v29  ;;  %v7245_v29 = vld [vmem:[#allocation34_spill] sm:$0xff] }
 0xcb4   : > { %v3400_v53 = vpack.c.bf16 %v3384_v46, %v3380_v62  ;;  %v3386_v18 = vmul.f32 %v3354_v48, %v3130_v20  ;;  %v7246_v46 = vld [vmem:[#allocation35_spill] sm:$0xff] }
 0xcb5   : > { %v5120_v26 = vpop.eup %5119 }
 0xcb6   : > { %v5122_v28 = vpop.eup %5121  ;;  %3722 = vmatprep.mubr.bf16.mxu1 %v3400_v53  ;;  %v3402_v39 = vpack.c.bf16 %v3386_v18, %v3382_v41  ;;  %v3347_v21 = vadd.f32 1.0, %v5120_v26 }
 0xcb7   : > { %v5124_v0 = vpop.eup %5123  ;;  %v3351_v3 = vadd.f32 1.0, %v5122_v28 }
 0xcb8   : > { %v5126_v40 = vpop.eup %5125  ;;  %3787 = vmatprep.mubr.bf16.mxu0 %v3402_v39  ;;  %v3349_v7 = vadd.f32 1.0, %v5124_v0  ;;  %v3379_v27 = vmul.f32 %v3347_v21, %v3123_v50 }
 0xcb9   : > { %v3383_v38 = vmul.f32 %v3351_v3, %v3127_v34  ;;  %v3353_v58 = vadd.f32 1.0, %v5126_v40 }
 0xcba   : > { %v3381_v56 = vmul.f32 %v3349_v7, %v3125_v5 }
 0xcbb   : > { %v3399_v6 = vpack.c.bf16 %v3383_v38, %v3379_v27  ;;  %v3385_v11 = vmul.f32 %v3353_v58, %v3129_v12  ;;  %v7247_v27 = vld [vmem:[#allocation36_spill] sm:$0xff]  ;;  %v7248_v58 = vld [vmem:[#allocation37_spill] sm:$0xff] }
 0xcbd   : > { %3723 = vmatmul.mubr.bf16.gmra.mrb[76].mxu1 %v3399_v6  ;;  %v3401_v36 = vpack.c.bf16 %v3385_v11, %v3381_v56 }
 0xcbf   : > { %3788 = vmatmul.mubr.bf16.gmra.mrb[76].mxu0 %v3401_v36 }
 0xd6a   : > { %v4308_v22 = vpop.f32.mrb[64].mxu1 }
 0xd6b   : > { %v4309_v45 = vpop.f32.mrb[65].mxu1 }
 0xd6c   : > { %v4310_v13 = vadd.f32 %v4309_v45, %v4308_v22  ;;  %v4311_v49 = vpop.f32.mrb[66].mxu1 }
 0xd6d   : > { %v4348_v63 = vpop.f32.mrb[64].mxu0  ;;  %v4312_v57 = vpop.f32.mrb[67].mxu1 }
 0xd6e   : > { %v3701_v33 = vadd.f32 %v4310_v13, %v7066_v31  ;;  %v4349_v42 = vpop.f32.mrb[65].mxu0  ;;  %v4313_v10 = vadd.f32 %v4312_v57, %v4311_v49 }
 0xd6f   : > { %v4350_v14 = vadd.f32 %v4349_v42, %v4348_v63  ;;  %v4351_v4 = vpop.f32.mrb[66].mxu0 }
 0xd70   : > { %v3704_v24 = vadd.f32 %v4313_v10, %v7066_v31  ;;  %v4352_v54 = vpop.f32.mrb[67].mxu0 }
 0xd71   : > { %v3766_v47 = vadd.f32 %v4350_v14, %v3701_v33  ;;  %v4353_v61 = vadd.f32 %v4352_v54, %v4351_v4  ;;  %v7249_v54 = vld [vmem:[#allocation38_spill] sm:$0xff] }
 0xd73   : > { %v3796_v44 = vadd.f32 %v3766_v47, %v7243_v23  ;;  %v3769_v8 = vadd.f32 %v4353_v61, %v3704_v24  ;;  %v7251_v23 = vld [vmem:[#allocation39_spill] sm:$0xff] }
 0xd75   : > { %3804 = vst [vmem:[%s7073_s29] sm:$0xff] %v3796_v44  ;;  %v3797_v60 = vadd.f32 %v3769_v8, %v7244_v30  ;;  %v4314_v32 = vpop.f32.mrb[68].mxu1 }
 0xd76   : > { %v4315_v1 = vpop.f32.mrb[69].mxu1 }
 0xd77   : > { %3805 = vst [vmem:[%s7073_s29 + $0x8] sm:$0xff] %v3797_v60  ;;  %v4354_v17 = vpop.f32.mrb[68].mxu0  ;;  %v4316_v43 = vadd.f32 %v4315_v1, %v4314_v32  ;;  %v4317_v51 = vpop.f32.mrb[70].mxu1 }
 0xd78   : > { %v4355_v19 = vpop.f32.mrb[69].mxu0  ;;  %v4318_v9 = vpop.f32.mrb[71].mxu1 }
 0xd79   : > { %v3709_v2 = vadd.f32 %v4316_v43, %v7066_v31  ;;  %v4356_v37 = vadd.f32 %v4355_v19, %v4354_v17  ;;  %v4357_v15 = vpop.f32.mrb[70].mxu0  ;;  %v4319_v25 = vadd.f32 %v4318_v9, %v4317_v51 }
 0xd7a   : > { %v4358_v59 = vpop.f32.mrb[71].mxu0 }
 0xd7b   : > { %v3774_v52 = vadd.f32 %v4356_v37, %v3709_v2  ;;  %v3712_v55 = vadd.f32 %v4319_v25, %v7066_v31  ;;  %v4359_v35 = vadd.f32 %v4358_v59, %v4357_v15 }
 0xd7d   : > { %v3798_v16 = vadd.f32 %v3774_v52, %v7245_v29  ;;  %v3777_v62 = vadd.f32 %v4359_v35, %v3712_v55 }
 0xd7f   : > { %3806 = vst [vmem:[%s7073_s29 + $0x10] sm:$0xff] %v3798_v16  ;;  %v3799_v20 = vadd.f32 %v3777_v62, %v7246_v46  ;;  %v4320_v48 = vpop.f32.mrb[72].mxu1 }
 0xd80   : > { %v4321_v53 = vpop.f32.mrb[73].mxu1 }
 0xd81   : > { %3807 = vst [vmem:[%s7073_s29 + $0x18] sm:$0xff] %v3799_v20  ;;  %v4322_v41 = vadd.f32 %v4321_v53, %v4320_v48  ;;  %v4323_v18 = vpop.f32.mrb[74].mxu1 }
 0xd82   : > { %v4324_v26 = vpop.f32.mrb[75].mxu1 }
 0xd83   : > { %v4325_v28 = vadd.f32 %v4324_v26, %v4323_v18  ;;  %v3717_v21 = vadd.f32 %v4322_v41, %v7066_v31 }
 0xd84   : > { %v4360_v39 = vpop.f32.mrb[72].mxu0 }
 0xd85   : > { %v4361_v0 = vpop.f32.mrb[73].mxu0  ;;  %v3720_v3 = vadd.f32 %v4325_v28, %v7066_v31 }
 0xd86   : > { %v4362_v50 = vadd.f32 %v4361_v0, %v4360_v39  ;;  %v4363_v34 = vpop.f32.mrb[74].mxu0 }
 0xd87   : > { %v4364_v40 = vpop.f32.mrb[75].mxu0 }
 0xd88   : > { %v3782_v5 = vadd.f32 %v4362_v50, %v3717_v21  ;;  %v4365_v7 = vadd.f32 %v4364_v40, %v4363_v34 }
 0xd8a   : > { %v3800_v38 = vadd.f32 %v3782_v5, %v7247_v27  ;;  %v3785_v12 = vadd.f32 %v4365_v7, %v3720_v3 }
 0xd8c   : > { %3808 = vst [vmem:[%s7073_s29 + $0x20] sm:$0xff] %v3800_v38  ;;  %v3801_v6 = vadd.f32 %v3785_v12, %v7248_v58 }
 0xd8e   : > { %3809 = vst [vmem:[%s7073_s29 + $0x28] sm:$0xff] %v3801_v6 }
 0xd90   : > { %v4326_v56 = vpop.f32.mrb[76].mxu1 }
 0xd91   : > { %v4327_v11 = vpop.f32.mrb[77].mxu1 }
 0xd92   : > { %v4366_v36 = vpop.f32.mrb[76].mxu0  ;;  %v4328_v22 = vadd.f32 %v4327_v11, %v4326_v56  ;;  %v4329_v45 = vpop.f32.mrb[78].mxu1 }
 0xd93   : > { %v4367_v13 = vpop.f32.mrb[77].mxu0  ;;  %v4330_v49 = vpop.f32.mrb[79].mxu1 }
 0xd94   : > { %v3725_v63 = vadd.f32 %v4328_v22, %v7066_v31  ;;  %v4368_v57 = vadd.f32 %v4367_v13, %v4366_v36  ;;  %v4369_v33 = vpop.f32.mrb[78].mxu0  ;;  %v4331_v42 = vadd.f32 %v4330_v49, %v4329_v45 }
 0xd95   : > { %v4370_v10 = vpop.f32.mrb[79].mxu0 }
 0xd96   : > { %v3790_v14 = vadd.f32 %v4368_v57, %v3725_v63  ;;  %v3728_v4 = vadd.f32 %v4331_v42, %v7066_v31  ;;  %v4371_v24 = vadd.f32 %v4370_v10, %v4369_v33 }
 0xd98   : > { %v3802_v47 = vadd.f32 %v3790_v14, %v7249_v54  ;;  %v3793_v61 = vadd.f32 %v4371_v24, %v3728_v4 }
 0xd9a   : > { %3810 = vst [vmem:[%s7073_s29 + $0x30] sm:$0xff] %v3802_v47  ;;  %v3803_v44 = vadd.f32 %v3793_v61, %v7251_v23 }
 0xd9c   : > { %3811 = vst [vmem:[%s7073_s29 + $0x38] sm:$0xff] %v3803_v44 }
 0xd9d   : > { %5486 = shalt.err (!%p5483_p9)
}
 0xd9e   : > { %s5487_s15 = scalar_lea.hbm %s7098_s14, 1024  ;;  %s5491_s12 = scalar_lea.hbm %s7250_s16, 2048 }
 0xd9f   : > { %p5488_p7 = scmp.ne.s32.totalorder %s7098_s14, %s5487_s15  ;;  %p5492_p13 = scmp.lt.u32.totalorder %s7098_s14, %s7250_s16 }
 0xda0   : > { %p5493_p1 = scmp.lt.u32.totalorder %s5491_s12, %s5487_s15  ;;  %p5495_p2 = scmp.lt.u32.totalorder %s5487_s15, %s7098_s14 }
 0xda1   : > { %p5489_p10 = pnand %p5488_p7, %p7252_p8 }
 0xda2   : > { %p5494_p3 = por %p5493_p1, %p5492_p13 }
 0xda3   : > { %p5490_p4 = pneg %p5489_p10 }
 0xda4   : > { %p5496_p6 = por %p5495_p2, %p5494_p3 }
 0xda6   : > { %p5497_p11 = pnand %p5496_p6, %p5490_p4 }
 0xda8   : > { %5500 = shalt.err (!%p5497_p11)
}
 0xda9   : > { %s5590_s27 = smov 128   ;;  %s5591_s18 = smov 8  }
 0xdaa   : > { %4658 = dma.vmem_to_hbm [thread:$0]  (%p7252_p8), %s7100_s19, 1024, %s7098_s14, %s3813_s30, %s5590_s27, %s5590_s27, %s5591_s18  }
 0xdab PF: > { %s3841_s1 = sand.u32 1, %s5551_s21   ;;  %p7253_p12 = scmp.ne.s32.totalorder %s7201_s2, 0 }
 0xdac   : > { %p7254_p0 = scmp.ge.s32.totalorder %s5563_s24, 2  ;;  %s3842_s28 = scalar_lea.sflag [#allocation4], %s3841_s1 }
 0xdae   : > { %p4699_p5 = pnand %p7254_p0, %p7253_p12 }
 0xdb0   : > { %5546 = dma.done.wait (!%p4699_p5), %s3842_s28, 1024  }
 0xdb1   : > { %5548 = vsyncadd (!%p4699_p5), %s3842_s28, 4294966272  ;;  %p31_p9 = scmp.ge.s32.totalorder %s5931_s13, 4   ;;  %s7255_s21 = smov %s5555_s22 }
 0xdb2   : > { %s7256_s22 = smov %s5559_s23  ;;  %s7257_s23 = smov %s5943_s20 }
 0xdb3   : > { %s7258_s24 = smov %s5931_s13  ;;  %33 = sbr.rel (!%p31_p9) target bundleno = 17 (0x11), region = 157 }
 0xdba   :  { %3847 = vsyncpa [#allocation3], 1 }
 0xdbb   :  { %3849 = vsyncpa [#allocation3 + $0x1], 1 }
 0xdbc   :  { %3850 = vsyncpa [#allocation6], 1 }
 0xdbd   :  { %3851 = vsyncpa [#allocation9], 1 }
 0xdbe   :  { %3852 = vsyncpa [#allocation12], 1 }
 0xdbf   :  { %3853 = vsyncpa [#allocation15], 1 }
 0xdc0   :  { %3854 = vsyncpa [#allocation18], 1 }
 0xdc1   :  { %3855 = vsyncpa [#allocation21], 1 }
 0xdc2   :  { %3856 = vsyncpa [#allocation4], 1 }
 0xdc3   :  { %3858 = vsyncpa [#allocation4 + $0x1], 1 }

// kernel: tpu_custom_call.1
= control target key start
LH: loop header
LB: loop body
LE: loop exit
PB: predicated region body
PF: predicated region fallthrough
CT: control target
= control target key end

     0   :  { %s7147_s0 = inlined_call_operand.hbm [shape: f32[2,64,128], index: 0, kind: input, shape index: {}]   ;;  %s7148_s1 = inlined_call_operand.hbm [shape: f32[1,128], index: 1, kind: input, shape index: {}]   ;;  %s7149_s2 = inlined_call_operand.hbm [shape: f32[1,128], index: 2, kind: input, shape index: {}]   ;;  %s7150_s3 = inlined_call_operand.hbm [shape: bf16[128,384], index: 3, kind: input, shape index: {}]   ;;  %s7151_s4 = inlined_call_operand.hbm [shape: bf16[128,128], index: 4, kind: input, shape index: {}]   ;;  %s7152_s5 = inlined_call_operand.hbm [shape: f32[1,128], index: 5, kind: input, shape index: {}]   ;;  %s7153_s6 = inlined_call_operand.hbm [shape: f32[1,128], index: 6, kind: input, shape index: {}]   ;;  %s7154_s7 = inlined_call_operand.hbm [shape: f32[1,128], index: 7, kind: input, shape index: {}]   ;;  %s7155_s8 = inlined_call_operand.hbm [shape: bf16[128,512], index: 8, kind: input, shape index: {}]   ;;  %s7156_s9 = inlined_call_operand.hbm [shape: f32[1,512], index: 9, kind: input, shape index: {}]   ;;  %s7157_s10 = inlined_call_operand.hbm [shape: bf16[512,128], index: 10, kind: input, shape index: {}]   ;;  %s7158_s11 = inlined_call_operand.hbm [shape: f32[1,128], index: 11, kind: input, shape index: {}]   ;;  %s7159_s12 = inlined_call_operand.hbm [shape: f32[2,64,128], index: 12, kind: output, shape index: {}]  }
   0x1   :  { %7183 = sst [smem:[#allocation49_spill]] %s7148_s1 }
   0x2   :  { %7184 = sst [smem:[#allocation50_spill]] %s7149_s2 }
   0x3   :  { %7185 = sst [smem:[#allocation51_spill]] %s7150_s3 }
   0x4   :  { %7186 = sst [smem:[#allocation52_spill]] %s7152_s5 }
   0x5   :  { %7187 = sst [smem:[#allocation53_spill]] %s7159_s12 }
   0x6   :  { %17 = vsyncpa [#allocation3], 0 }
   0x7   :  { %19 = vsyncpa [#allocation3 + $0x1], 0 }
   0x8   :  { %20 = vsyncpa [#allocation6], 0 }
   0x9   :  { %21 = vsyncpa [#allocation9], 0 }
   0xa   :  { %22 = vsyncpa [#allocation12], 0 }
   0xb   :  { %23 = vsyncpa [#allocation15], 0 }
   0xc   :  { %24 = vsyncpa [#allocation18], 0 }
   0xd   :  { %25 = vsyncpa [#allocation21], 0 }
   0xe   :  { %26 = vsyncpa [#allocation4], 0 }
   0xf   :  { %28 = vsyncpa [#allocation4 + $0x1], 0  ;;  %s5657_s21 = smov 0   ;;  %s5659_s22 = smov 0  }
  0x10   :  { %s5661_s23 = smov 0   ;;  %s5663_s24 = smov 0  }
  0x11 LB: > { %s5565_s25 = smov [#allocation5]   ;;  %s5678_s27 = sadd.s32 4294967295, %s5563_s24   ;;  %s5563_s24 = sphi %s5663_s24, %s7258_s24   ;;  %s5559_s23 = sphi %s5661_s23, %s7257_s23   ;;  %s5555_s22 = sphi %s5659_s22, %s7256_s22   ;;  %s5551_s21 = sphi %s5657_s21, %s7255_s21  }
  0x12   : > { %s335_s26 = sshll.u32 %s5565_s25, 4  ;;  %p4005_p0 = scmp.ge.s32.totalorder %s5563_s24, 1  ;;  %s5683_s26 = int_to_ptr.vmem [resolvable:$true] %s335_s26 }
  0x13   : > { %p7162_p1 = scmp.eq.s32.totalorder %s5678_s27, 0  ;;  %p322_p2 = scmp.lt.s32.totalorder %s5563_s24, 3 }
  0x14   : > { %s5566_s29 = smov [#allocation8]   ;;  %s5567_s14 = smov [#allocation11]  }
  0x15   : > { %p5685_p3 = pnand %p4005_p0, %p322_p2  ;;  %s356_s30 = sshll.u32 %s5566_s29, 4  ;;  %s5692_s30 = int_to_ptr.vmem [resolvable:$true] %s356_s30 }
  0x16   : > { %s383_s15 = sshll.u32 %s5567_s14, 4  ;;  %s7191_s1 = sld [smem:[#allocation49_spill]]  ;;  %s5700_s15 = int_to_ptr.vmem [resolvable:$true] %s383_s15 }
  0x17   : > { %s7188_s28 = scalar_select %p5685_p3, 1, 0 }
  0x18   : > { %p4660_p5 = pneg %p5685_p3 }
  0x19   : > { %7189 = sst [smem:[#allocation31_spill]] %s7188_s28 }
  0x1a   : > { %p5696_p6 = pnand %p4660_p5, %p7162_p1 }
  0x1c   : > { %s5135_s18 = scalar_lea.hbm %s7191_s1, 16  ;;  %p5710_p8 = pneg %p5696_p6 }
  0x1d   : > { %p5136_p7 = scmp.ne.s32.totalorder %s7191_s1, %s5135_s18  ;;  %p5142_p11 = scmp.lt.u32.totalorder %s5135_s18, %s7191_s1 }
  0x1f   : > { %p5138_p9 = pnand %p5710_p8, %p5136_p7 }
  0x21   : > { %p5139_p10 = pneg %p5138_p9 }
  0x23   : > { %p5144_p12 = pnand %p5142_p11, %p5139_p10 }
  0x25   : > { %5147 = shalt.err (!%p5144_p12)
}
  0x26   : > { %s5148_s16 = scalar_lea.vmem %s5683_s26, 16  ;;  %s5155_s17 = scalar_lea.vmem %s5683_s26, 32 }
  0x27   : > { %p5149_p13 = scmp.ne.s32.totalorder %s5683_s26, %s5148_s16  ;;  %p5156_p5 = scmp.lt.s32.totalorder %s5683_s26, %s5683_s26 }
  0x28   : > { %p5157_p7 = scmp.lt.s32.totalorder %s5155_s17, %s5148_s16 }
  0x29   : > { %p5151_p0 = pnand %p5149_p13, %p5710_p8 }
  0x2a   : > { %p5158_p9 = por %p5157_p7, %p5156_p5 }
  0x2b   : > { %p5152_p2 = pneg %p5151_p0 }
  0x2d   : > { %p5159_p4 = pnand %p5158_p9, %p5152_p2 }
  0x2f   : > { %5162 = shalt.err (!%p5159_p4)
}
  0x30   : > { %4663 = dma.hbm_to_vmem [thread:$0]  (!%p5696_p6), %s7191_s1, 16, %s5683_s26, [#allocation6]  }
  0x31   : > { %s7193_s3 = sld [smem:[#allocation51_spill]] }
  0x37   : > { %s5163_s14 = scalar_lea.hbm %s7193_s3, 3072 }
  0x38   : > { %p5164_p10 = scmp.ne.s32.totalorder %s7193_s3, %s5163_s14  ;;  %p5170_p4 = scmp.lt.u32.totalorder %s5163_s14, %s7193_s3 }
  0x3a   : > { %p5166_p11 = pnand %p5164_p10, %p5710_p8 }
  0x3c   : > { %p5167_p12 = pneg %p5166_p11 }
  0x3e   : > { %p5172_p13 = pnand %p5170_p4, %p5167_p12 }
  0x40   : > { %5175 = shalt.err (!%p5172_p13)
}
  0x41   : > { %s5176_s26 = scalar_lea.vmem %s5692_s30, 3072  ;;  %p5184_p7 = scmp.lt.s32.totalorder %s5692_s30, %s5692_s30 }
  0x42   : > { %p5177_p0 = scmp.ne.s32.totalorder %s5692_s30, %s5176_s26  ;;  %p5185_p9 = scmp.lt.s32.totalorder %s5176_s26, %s5176_s26 }
  0x44   : > { %p5179_p2 = pnand %p5177_p0, %p5710_p8  ;;  %p5186_p10 = por %p5185_p9, %p5184_p7 }
  0x46   : > { %p5180_p5 = pneg %p5179_p2 }
  0x48   : > { %p5187_p11 = pnand %p5186_p10, %p5180_p5 }
  0x4a   : > { %5190 = shalt.err (!%p5187_p11)
}
  0x4b   : > { %s5568_s12 = smov 192   ;;  %s5569_s28 = smov 12  }
  0x4c   : > { %4669 = dma.hbm_to_vmem [thread:$0]  (!%p5696_p6), %s7193_s3, 3072, %s5692_s30, [#allocation9], %s5568_s12, %s5568_s12, %s5569_s28  }
  0x4d   : > { %s7194_s5 = sld [smem:[#allocation52_spill]] }
  0x53   : > { %s5191_s14 = scalar_lea.hbm %s7194_s5, 16 }
  0x54   : > { %p5192_p12 = scmp.ne.s32.totalorder %s7194_s5, %s5191_s14  ;;  %p5198_p0 = scmp.lt.u32.totalorder %s5191_s14, %s7194_s5 }
  0x56   : > { %p5194_p4 = pnand %p5192_p12, %p5710_p8 }
  0x58   : > { %p5195_p13 = pneg %p5194_p4 }
  0x5a   : > { %p5200_p2 = pnand %p5198_p0, %p5195_p13 }
  0x5c   : > { %5203 = shalt.err (!%p5200_p2)
}
  0x5d   : > { %s5204_s30 = scalar_lea.vmem %s5700_s15, 16  ;;  %s5211_s12 = scalar_lea.vmem %s5700_s15, 32 }
  0x5e   : > { %p5205_p5 = scmp.ne.s32.totalorder %s5700_s15, %s5204_s30  ;;  %p5212_p10 = scmp.lt.s32.totalorder %s5700_s15, %s5700_s15 }
  0x5f   : > { %p5213_p11 = scmp.lt.s32.totalorder %s5211_s12, %s5204_s30 }
  0x60   : > { %p5207_p7 = pnand %p5205_p5, %p5710_p8 }
  0x61   : > { %p5214_p12 = por %p5213_p11, %p5212_p10 }
  0x62   : > { %p5208_p9 = pneg %p5207_p7 }
  0x64   : > { %p5215_p4 = pnand %p5214_p12, %p5208_p9 }
  0x66   : > { %5218 = shalt.err (!%p5215_p4)
}
  0x67   : > { %4675 = dma.hbm_to_vmem [thread:$0]  (!%p5696_p6), %s7194_s5, 16, %s5700_s15, [#allocation12]  }
  0x68   : > { %s5570_s18 = smov [#allocation14]   ;;  %s5571_s20 = smov [#allocation17]  }
  0x69   : > { %s405_s19 = sshll.u32 %s5570_s18, 4  ;;  %s429_s29 = sshll.u32 %s5571_s20, 4  ;;  %s406_s19 = int_to_ptr.vmem [resolvable:$true] %s405_s19  ;;  %s430_s29 = int_to_ptr.vmem [resolvable:$true] %s429_s29 }
  0x6a   : > { %s5219_s17 = scalar_lea.hbm %s7154_s7, 16 }
  0x6b   : > { %p5220_p13 = scmp.ne.s32.totalorder %s7154_s7, %s5219_s17  ;;  %p5226_p5 = scmp.lt.u32.totalorder %s5219_s17, %s7154_s7 }
  0x6d   : > { %p5222_p0 = pnand %p5220_p13, %p5710_p8 }
  0x6f   : > { %p5223_p2 = pneg %p5222_p0 }
  0x71   : > { %p5228_p7 = pnand %p5226_p5, %p5223_p2 }
  0x73   : > { %5231 = shalt.err (!%p5228_p7)
}
  0x74   : > { %s5232_s15 = scalar_lea.vmem %s406_s19, 16  ;;  %s5239_s28 = scalar_lea.vmem %s406_s19, 32 }
  0x75   : > { %p5233_p9 = scmp.ne.s32.totalorder %s406_s19, %s5232_s15  ;;  %p5240_p12 = scmp.lt.s32.totalorder %s406_s19, %s406_s19 }
  0x76   : > { %p5241_p4 = scmp.lt.s32.totalorder %s5239_s28, %s5232_s15 }
  0x77   : > { %p5235_p10 = pnand %p5233_p9, %p5710_p8 }
  0x78   : > { %p5242_p1 = por %p5241_p4, %p5240_p12 }
  0x79   : > { %p5236_p11 = pneg %p5235_p10 }
  0x7b   : > { %p5243_p3 = pnand %p5242_p1, %p5236_p11 }
  0x7d   : > { %5246 = shalt.err (!%p5243_p3)
}
  0x7e   : > { %4681 = dma.hbm_to_vmem [thread:$0]  (!%p5696_p6), %s7154_s7, 16, %s406_s19, [#allocation15]  }
  0x7f   : > { %s5247_s17 = scalar_lea.hbm %s7156_s9, 64 }
  0x80   : > { %p5248_p13 = scmp.ne.s32.totalorder %s7156_s9, %s5247_s17  ;;  %p5254_p3 = scmp.lt.u32.totalorder %s5247_s17, %s7156_s9 }
  0x82   : > { %p5250_p0 = pnand %p5248_p13, %p5710_p8 }
  0x84   : > { %p5251_p1 = pneg %p5250_p0 }
  0x86   : > { %p5256_p2 = pnand %p5254_p3, %p5251_p1 }
  0x88   : > { %5259 = shalt.err (!%p5256_p2)
}
  0x89   : > { %s5260_s15 = scalar_lea.vmem %s430_s29, 64  ;;  %p5268_p10 = scmp.lt.s32.totalorder %s430_s29, %s430_s29 }
  0x8a   : > { %p5261_p5 = scmp.ne.s32.totalorder %s430_s29, %s5260_s15  ;;  %p5269_p11 = scmp.lt.s32.totalorder %s5260_s15, %s5260_s15 }
  0x8c   : > { %p5263_p7 = pnand %p5261_p5, %p5710_p8  ;;  %p5270_p12 = por %p5269_p11, %p5268_p10 }
  0x8e   : > { %p5264_p9 = pneg %p5263_p7 }
  0x90   : > { %p5271_p4 = pnand %p5270_p12, %p5264_p9 }
  0x92   : > { %5274 = shalt.err (!%p5271_p4)
}
  0x93   : > { %4687 = dma.hbm_to_vmem [thread:$0]  (!%p5696_p6), %s7156_s9, 64, %s430_s29, [#allocation18]  }
  0x94   : > { %s5572_s18 = smov [#allocation7]   ;;  %s5573_s14 = smov [#allocation10]  }
  0x95   : > { %s346_s20 = sshll.u32 %s5572_s18, 4  ;;  %s369_s16 = sshll.u32 %s5573_s14, 4  ;;  %s347_s20 = int_to_ptr.vmem [resolvable:$true] %s346_s20  ;;  %s370_s16 = int_to_ptr.vmem [resolvable:$true] %s369_s16 }
  0x96   : > { %s7195_s2 = sld [smem:[#allocation50_spill]] }
  0x9c   : > { %s5275_s30 = scalar_lea.hbm %s7195_s2, 16 }
  0x9d   : > { %p5276_p13 = scmp.ne.s32.totalorder %s7195_s2, %s5275_s30  ;;  %p5282_p3 = scmp.lt.u32.totalorder %s5275_s30, %s7195_s2 }
  0x9f   : > { %p5278_p0 = pnand %p5276_p13, %p5710_p8 }
  0xa1   : > { %p5279_p1 = pneg %p5278_p0 }
  0xa3   : > { %p5284_p2 = pnand %p5282_p3, %p5279_p1 }
  0xa5   : > { %5287 = shalt.err (!%p5284_p2)
}
  0xa6   : > { %s5288_s29 = scalar_lea.vmem %s347_s20, 16  ;;  %s5295_s28 = scalar_lea.vmem %s347_s20, 32 }
  0xa7   : > { %p5289_p5 = scmp.ne.s32.totalorder %s347_s20, %s5288_s29  ;;  %p5296_p10 = scmp.lt.s32.totalorder %s347_s20, %s347_s20 }
  0xa8   : > { %p5297_p11 = scmp.lt.s32.totalorder %s5295_s28, %s5288_s29 }
  0xa9   : > { %p5291_p7 = pnand %p5289_p5, %p5710_p8 }
  0xaa   : > { %p5298_p12 = por %p5297_p11, %p5296_p10 }
  0xab   : > { %p5292_p9 = pneg %p5291_p7 }
  0xad   : > { %p5299_p4 = pnand %p5298_p12, %p5292_p9 }
  0xaf   : > { %5302 = shalt.err (!%p5299_p4)
}
  0xb0   : > { %4666 = dma.hbm_to_vmem [thread:$0]  (!%p5696_p6), %s7195_s2, 16, %s347_s20, [#allocation6]  }
  0xb1   : > { %s5303_s30 = scalar_lea.hbm %s7151_s4, 1024 }
  0xb2   : > { %p5304_p13 = scmp.ne.s32.totalorder %s7151_s4, %s5303_s30  ;;  %p5310_p3 = scmp.lt.u32.totalorder %s5303_s30, %s7151_s4 }
  0xb4   : > { %p5306_p0 = pnand %p5304_p13, %p5710_p8 }
  0xb6   : > { %p5307_p1 = pneg %p5306_p0 }
  0xb8   : > { %p5312_p2 = pnand %p5310_p3, %p5307_p1 }
  0xba   : > { %5315 = shalt.err (!%p5312_p2)
}
  0xbb   : > { %s5316_s29 = scalar_lea.vmem %s370_s16, 1024  ;;  %p5324_p10 = scmp.lt.s32.totalorder %s370_s16, %s370_s16 }
  0xbc   : > { %p5317_p5 = scmp.ne.s32.totalorder %s370_s16, %s5316_s29  ;;  %p5325_p11 = scmp.lt.s32.totalorder %s5316_s29, %s5316_s29 }
  0xbe   : > { %p5319_p7 = pnand %p5317_p5, %p5710_p8  ;;  %p5326_p12 = por %p5325_p11, %p5324_p10 }
  0xc0   : > { %p5320_p9 = pneg %p5319_p7 }
  0xc2   : > { %p5327_p4 = pnand %p5326_p12, %p5320_p9 }
  0xc4   : > { %5330 = shalt.err (!%p5327_p4)
}
  0xc5   : > { %s7164_s20 = smov 64   ;;  %s7165_s28 = smov 4  }
  0xc6   : > { %4672 = dma.hbm_to_vmem [thread:$0]  (!%p5696_p6), %s7151_s4, 1024, %s370_s16, [#allocation9], %s7164_s20, %s7164_s20, %s7165_s28  }
  0xc7   : > { %s5576_s17 = smov [#allocation13]   ;;  %s5577_s30 = smov [#allocation16]  }
  0xc8   : > { %s394_s26 = sshll.u32 %s5576_s17, 4  ;;  %s415_s12 = sshll.u32 %s5577_s30, 4  ;;  %s395_s26 = int_to_ptr.vmem [resolvable:$true] %s394_s26  ;;  %s416_s12 = int_to_ptr.vmem [resolvable:$true] %s415_s12 }
  0xc9   : > { %s5331_s19 = scalar_lea.hbm %s7153_s6, 16 }
  0xca   : > { %p5332_p13 = scmp.ne.s32.totalorder %s7153_s6, %s5331_s19  ;;  %p5338_p3 = scmp.lt.u32.totalorder %s5331_s19, %s7153_s6 }
  0xcc   : > { %p5334_p0 = pnand %p5332_p13, %p5710_p8 }
  0xce   : > { %p5335_p1 = pneg %p5334_p0 }
  0xd0   : > { %p5340_p2 = pnand %p5338_p3, %p5335_p1 }
  0xd2   : > { %5343 = shalt.err (!%p5340_p2)
}
  0xd3   : > { %s5344_s16 = scalar_lea.vmem %s395_s26, 16  ;;  %s5351_s18 = scalar_lea.vmem %s395_s26, 32 }
  0xd4   : > { %p5345_p5 = scmp.ne.s32.totalorder %s395_s26, %s5344_s16  ;;  %p5352_p10 = scmp.lt.s32.totalorder %s395_s26, %s395_s26 }
  0xd5   : > { %p5353_p11 = scmp.lt.s32.totalorder %s5351_s18, %s5344_s16 }
  0xd6   : > { %p5347_p7 = pnand %p5345_p5, %p5710_p8 }
  0xd7   : > { %p5354_p12 = por %p5353_p11, %p5352_p10 }
  0xd8   : > { %p5348_p9 = pneg %p5347_p7 }
  0xda   : > { %p5355_p4 = pnand %p5354_p12, %p5348_p9 }
  0xdc   : > { %5358 = shalt.err (!%p5355_p4)
}
  0xdd   : > { %4678 = dma.hbm_to_vmem [thread:$0]  (!%p5696_p6), %s7153_s6, 16, %s395_s26, [#allocation12]  }
  0xde   : > { %s5359_s17 = scalar_lea.hbm %s7155_s8, 4096 }
  0xdf   : > { %p5360_p13 = scmp.ne.s32.totalorder %s7155_s8, %s5359_s17  ;;  %p5366_p3 = scmp.lt.u32.totalorder %s5359_s17, %s7155_s8 }
  0xe1   : > { %p5362_p0 = pnand %p5360_p13, %p5710_p8 }
  0xe3   : > { %p5363_p1 = pneg %p5362_p0 }
  0xe5   : > { %p5368_p2 = pnand %p5366_p3, %p5363_p1 }
  0xe7   : > { %5371 = shalt.err (!%p5368_p2)
}
  0xe8   : > { %s5372_s29 = scalar_lea.vmem %s416_s12, 4096  ;;  %p5380_p10 = scmp.lt.s32.totalorder %s416_s12, %s416_s12 }
  0xe9   : > { %p5373_p5 = scmp.ne.s32.totalorder %s416_s12, %s5372_s29  ;;  %p5381_p11 = scmp.lt.s32.totalorder %s5372_s29, %s5372_s29 }
  0xeb   : > { %p5375_p7 = pnand %p5373_p5, %p5710_p8  ;;  %p5382_p12 = por %p5381_p11, %p5380_p10 }
  0xed   : > { %p5376_p9 = pneg %p5375_p7 }
  0xef   : > { %p5383_p4 = pnand %p5382_p12, %p5376_p9 }
  0xf1   : > { %5386 = shalt.err (!%p5383_p4)
}
  0xf2   : > { %s5578_s26 = smov 256   ;;  %s5579_s16 = smov 16  }
  0xf3   : > { %4684 = dma.hbm_to_vmem [thread:$0]  (!%p5696_p6), %s7155_s8, 4096, %s416_s12, [#allocation15], %s5578_s26, %s5578_s26, %s5579_s16  }
  0xf4   : > { %s5580_s14 = smov [#allocation19]   ;;  %s5581_s5 = smov [#allocation20]  }
  0xf5   : > { %s439_s3 = sshll.u32 %s5580_s14, 4  ;;  %s453_s17 = sshll.u32 %s5581_s5, 4  ;;  %s440_s3 = int_to_ptr.vmem [resolvable:$true] %s439_s3  ;;  %s454_s17 = int_to_ptr.vmem [resolvable:$true] %s453_s17 }
  0xf6   : > { %s5387_s15 = scalar_lea.hbm %s7157_s10, 4096 }
  0xf7   : > { %p5388_p13 = scmp.ne.s32.totalorder %s7157_s10, %s5387_s15  ;;  %p5394_p3 = scmp.lt.u32.totalorder %s5387_s15, %s7157_s10 }
  0xf9   : > { %p5390_p0 = pnand %p5388_p13, %p5710_p8 }
  0xfb   : > { %p5391_p1 = pneg %p5390_p0 }
  0xfd   : > { %p5396_p2 = pnand %p5394_p3, %p5391_p1 }
  0xff   : > { %5399 = shalt.err (!%p5396_p2)
}
 0x100   : > { %s5400_s12 = scalar_lea.vmem %s440_s3, 4096  ;;  %p5408_p10 = scmp.lt.s32.totalorder %s440_s3, %s440_s3 }
 0x101   : > { %p5401_p5 = scmp.ne.s32.totalorder %s440_s3, %s5400_s12  ;;  %p5409_p11 = scmp.lt.s32.totalorder %s5400_s12, %s5400_s12 }
 0x103   : > { %p5403_p7 = pnand %p5401_p5, %p5710_p8  ;;  %p5410_p12 = por %p5409_p11, %p5408_p10 }
 0x105   : > { %p5404_p9 = pneg %p5403_p7 }
 0x107   : > { %p5411_p4 = pnand %p5410_p12, %p5404_p9 }
 0x109   : > { %5414 = shalt.err (!%p5411_p4)
}
 0x10a   : > { %s7196_s26 = smov 4   ;;  %s7197_s16 = smov 64  }
 0x10b   : > { %4690 = dma.hbm_to_vmem [thread:$0]  (!%p5696_p6), %s7157_s10, 4096, %s440_s3, [#allocation18], %s7197_s16, %s7197_s16, %s7196_s26  }
 0x10c   : > { %s5415_s14 = scalar_lea.hbm %s7158_s11, 16 }
 0x10d   : > { %p5416_p13 = scmp.ne.s32.totalorder %s7158_s11, %s5415_s14  ;;  %p5422_p3 = scmp.lt.u32.totalorder %s5415_s14, %s7158_s11 }
 0x10f   : > { %p5418_p0 = pnand %p5416_p13, %p5710_p8 }
 0x111   : > { %p5419_p1 = pneg %p5418_p0 }
 0x113   : > { %p5424_p2 = pnand %p5422_p3, %p5419_p1 }
 0x115   : > { %5427 = shalt.err (!%p5424_p2)
}
 0x116   : > { %s5428_s19 = scalar_lea.vmem %s454_s17, 16  ;;  %s5435_s3 = scalar_lea.vmem %s454_s17, 32 }
 0x117   : > { %p5429_p5 = scmp.ne.s32.totalorder %s454_s17, %s5428_s19  ;;  %p5436_p10 = scmp.lt.s32.totalorder %s454_s17, %s454_s17 }
 0x118   : > { %p5437_p11 = scmp.lt.s32.totalorder %s5435_s3, %s5428_s19 }
 0x119   : > { %p5431_p7 = pnand %p5429_p5, %p5710_p8 }
 0x11a   : > { %p5438_p12 = por %p5437_p11, %p5436_p10 }
 0x11b   : > { %p5432_p9 = pneg %p5431_p7 }
 0x11d   : > { %p5439_p4 = pnand %p5438_p12, %p5432_p9 }
 0x11f   : > { %5442 = shalt.err (!%p5439_p4)
}
 0x120   : > { %4693 = dma.hbm_to_vmem [thread:$0]  (!%p5696_p6), %s7158_s11, 16, %s454_s17, [#allocation21]  }
 0x121   : > { %s4004_s25 = sadd.s32 4294967294, %s5563_s24   ;;  %s5931_s13 = sadd.s32 1, %s5563_s24  }
 0x122   : > { %s41_s26 = sadd.s32 1, %s5559_s23  ;;  %s38_s16 = ssub.s32 %s5563_s24, %s5931_s13 }
 0x123   : > { %p48_p8 = scmp.ne.s32.totalorder %s5559_s23, %s5555_s22  ;;  %p39_p13 = scmp.eq.s32.totalorder %s38_s16, 0 }
 0x124   : > { %p49_p0 = scmp.eq.s32.totalorder %s5563_s24, 0  ;;  %p54_p1 = scmp.ne.s32.totalorder %s5555_s22, %s5551_s21 }
 0x125   : > { %p309_p3 = scmp.eq.s32.totalorder %s5678_s27, 1  ;;  %p7198_p5 = scmp.eq.s32.totalorder %s5678_s27, 0 }
 0x126   : > { %s5943_s20 = scalar_select %p39_p13, %s5559_s23, %s41_s26  }
 0x127   : > { %p50_p2 = por %p49_p0, %p48_p8  ;;  %p5947_p7 = por %p7198_p5, %p54_p1 }
 0x128   : > { %p5951_p6 = por %p309_p3, %p48_p8  ;;  %p315_p9 = scmp.eq.s32.totalorder %s4004_s25, 1 }
 0x129   : > { %p4713_p10 = scmp.lt.s32.totalorder %s5563_s24, 2  ;;  %s464_s18 = sand.u32 1, %s5559_s23  }
 0x12a   : > { %s7200_s17 = scalar_select %p5951_p6, 1, 0 }
 0x12b   : > { %p5957_p11 = por %p315_p9, %p54_p1  ;;  %s4018_s14 = sshll.u32 %s464_s18, 6 }
 0x12c   : > { %s4190_s5 = sshll.u32 %s5563_s24, 10  ;;  %s468_s19 = scalar_lea.vmem [#allocation2], %s4018_s14 }
 0x12d   : > { %s7201_s2 = scalar_select %p5957_p11, 1, 0 }
 0x12e   : > { %s5965_s15 = scalar_lea.hbm %s7147_s0, %s4190_s5  ;;  %s475_s3 = sshll.u32 %s468_s19, 4  ;;  %s5971_s3 = int_to_ptr.vmem [resolvable:$true] %s475_s3 }
 0x12f   : > { %p5967_p12 = pnand %p4713_p10, %p50_p2  ;;  %s5973_s12 = scalar_lea.sflag [#allocation3], %s464_s18 }
 0x130   : > { %s5443_s25 = scalar_lea.hbm %s5965_s15, 1024  ;;  %s5448_s14 = scalar_lea.hbm %s7147_s0, 2048 }
 0x131   : > { %p5444_p4 = scmp.ne.s32.totalorder %s5965_s15, %s5443_s25  ;;  %p5445_p8 = pneg %p5967_p12 }
 0x132   : > { %p5449_p1 = scmp.lt.u32.totalorder %s5965_s15, %s7147_s0  ;;  %p5450_p3 = scmp.lt.u32.totalorder %s5448_s14, %s5443_s25 }
 0x133   : > { %p5446_p13 = pnand %p5445_p8, %p5444_p4  ;;  %p5452_p5 = scmp.lt.u32.totalorder %s5443_s25, %s5965_s15 }
 0x134   : > { %p5451_p2 = por %p5450_p3, %p5449_p1 }
 0x135   : > { %p5447_p0 = pneg %p5446_p13 }
 0x136   : > { %p5453_p9 = por %p5452_p5, %p5451_p2 }
 0x138   : > { %p5454_p10 = pnand %p5453_p9, %p5447_p0 }
 0x13a   : > { %5457 = shalt.err (!%p5454_p10)
}
 0x13b   : > { %s5458_s18 = scalar_lea.vmem %s5971_s3, 1024  ;;  %s5582_s1 = smov [#allocation2]  }
 0x13c   : > { %p5459_p4 = scmp.ne.s32.totalorder %s5971_s3, %s5458_s18  ;;  %s5463_s19 = sshll.u32 %s5582_s1, 4  ;;  %s5464_s19 = int_to_ptr.vmem [resolvable:$false] %s5463_s19 }
 0x13d   : > { %s5465_s26 = scalar_lea.vmem %s5464_s19, 2048  ;;  %p5466_p6 = scmp.lt.s32.totalorder %s5971_s3, %s5464_s19 }
 0x13e   : > { %p5461_p13 = pnand %p5459_p4, %p5445_p8  ;;  %p5467_p1 = scmp.lt.s32.totalorder %s5465_s26, %s5458_s18 }
 0x140   : > { %p5462_p11 = pneg %p5461_p13  ;;  %p5468_p3 = por %p5467_p1, %p5466_p6 }
 0x142   : > { %p5469_p2 = pnand %p5468_p3, %p5462_p11 }
 0x144   : > { %5472 = shalt.err (!%p5469_p2)
}
 0x145   : > { %s5583_s25 = smov 128   ;;  %s5584_s16 = smov 8  }
 0x146   : > { %4697 = dma.hbm_to_vmem [thread:$0]  (!%p5967_p12), %s5965_s15, 1024, %s5971_s3, %s5973_s12, %s5583_s25, %s5583_s25, %s5584_s16  }
 0x147   : > { %s7203_s14 = sld [smem:[#allocation31_spill]] }
 0x14d   : > { %p7204_p8 = scmp.ne.s32.totalorder %s7203_s14, 0 }
 0x14f   : > { %487 = sbr.rel (%p7204_p8) target bundleno = 3499 (0xdab), region = 68 }
 0x156   : > { %s6004_s5 = sand.u32 1, %s5555_s22  }
 0x157   : > { %s4022_s30 = sshll.u32 %s6004_s5, 6  ;;  %s490_s18 = scalar_lea.sflag [#allocation3], %s6004_s5 }
 0x158   : > { %s6010_s1 = scalar_lea.vmem [#allocation2], %s4022_s30 }
 0x159   : > { %5518 = dma.done.wait (%p5947_p7), %s490_s18, 1024  }
 0x15a   : > { %5520 = vsyncadd (%p5947_p7), %s490_s18, 4294966272  ;;  %p7205_p6 = scmp.eq.s32.totalorder %s5678_s27, 0 }
 0x15c   : > { %5522 = dma.done.wait (%p7205_p6), [#allocation6], 32   ;;  %p7206_p11 = pmov %p7205_p6 }
 0x15d   : > { %p7207_p12 = pmov %p7205_p6 }
 0x15e   : > { %5524 = vsyncadd (%p7206_p11), [#allocation6], 4294967264 }
 0x15f   : > { %5526 = dma.done.wait (%p7207_p12), [#allocation9], 4096   ;;  %p7208_p0 = pmov %p7205_p6 }
 0x161   : > { %5528 = vsyncadd (%p7208_p0), [#allocation9], 4294963200  ;;  %p7209_p5 = pmov %p7208_p0 }
 0x162   : > { %p7210_p9 = pmov %p7208_p0 }
 0x163   : > { %5530 = dma.done.wait (%p7209_p5), [#allocation12], 32  }
 0x164   : > { %5532 = vsyncadd (%p7210_p9), [#allocation12], 4294967264  ;;  %p7211_p7 = pmov %p7208_p0 }
 0x165   : > { %p7212_p10 = pmov %p7208_p0 }
 0x166   : > { %5534 = dma.done.wait (%p7211_p7), [#allocation15], 4112  }
 0x167   : > { %5536 = vsyncadd (%p7212_p10), [#allocation15], 4294963184  ;;  %p7213_p4 = pmov %p7208_p0 }
 0x168   : > { %p7214_p13 = pmov %p7208_p0 }
 0x169   : > { %5538 = dma.done.wait (%p7213_p4), [#allocation18], 4160  }
 0x16a   : > { %5540 = vsyncadd (%p7214_p13), [#allocation18], 4294963136  ;;  %p7215_p1 = pmov %p7208_p0 }
 0x16b   : > { %p7216_p3 = pmov %p7208_p0 }
 0x16c   : > { %5542 = dma.done.wait (%p7215_p1), [#allocation21], 16  }
 0x16d   : > { %5544 = vsyncadd (%p7216_p3), [#allocation21], 4294967280  ;;  %v6041_v0 = vld [vmem:[%s6010_s1] sm:$0xff]  ;;  %v6044_v1 = vld [vmem:[%s6010_s1 + $0x8] sm:$0xff]  ;;  %v5585_v39 = vmov 0   ;;  %vm1044_vm0 = vcmask 261120  }
 0x16e   : > { %589 = vadd.xlane.f32.xlu0 %v6041_v0  ;;  %v614_v2 = vmul.f32 %v6041_v0, %v6041_v0  ;;  %v615_v3 = vmul.f32 %v6044_v1, %v6044_v1  ;;  %v4783_v4 = vld [vmem:[#allocation8 + $0x4] ss:$12 sps:$4 sm:$0xff]   ;;  %v6056_v6 = vld [vmem:[%s6010_s1 + $0x18] sm:$0xff]  ;;  %v6065_v9 = vld [vmem:[%s6010_s1 + $0x20] sm:$0xff]  ;;  %918 = vmatprep.mubr.bf16.mxu0 %v5585_v39  ;;  %vm1134_vm1 = vcmask 523264   ;;  %s5586_s28 = smov 96  }
 0x16f   : > { %v6052_v5 = vld [vmem:[%s6010_s1 + $0x10] sm:$0xff]  ;;  %886 = vmatprep.subr.bf16.mxu0 %v4783_v4  ;;  %v617_v8 = vmul.f32 %v6056_v6, %v6056_v6  ;;  %v6068_v11 = vld [vmem:[%s6010_s1 + $0x28] sm:$0xff]  ;;  %v618_v13 = vmul.f32 %v6065_v9, %v6065_v9  ;;  %v4789_v17 = vld [vmem:[#allocation8 + $0x34] ss:$12 sps:$4 sm:$0xff]   ;;  %s5587_s15 = smov 64   ;;  %s5588_s3 = smov 32  }
 0x170   : > { %622 = vadd.xlane.f32.xlu1 %v614_v2  ;;  %v616_v7 = vmul.f32 %v6052_v5, %v6052_v5  ;;  %v4785_v10 = vld [vmem:[#allocation8] ss:$12 sps:$4 sm:$0xff]   ;;  %v4786_v12 = vld [vmem:[#allocation8 + $0x1c] ss:$12 sps:$4 sm:$0xff]   ;;  %v4788_v14 = vld [vmem:[#allocation8 + $0x18] ss:$12 sps:$4 sm:$0xff]   ;;  %v619_v15 = vmul.f32 %v6068_v11, %v6068_v11 }
 0x171   : > { %887 = vmatpush1.bf16.msra.mxu0 %v4785_v10  ;;  %v6077_v16 = vld [vmem:[%s6010_s1 + $0x30] sm:$0xff]  ;;  %v4791_v18 = vld [vmem:[#allocation8 + $0x8] ss:$12 sps:$4 sm:$0xff]   ;;  %v4799_v27 = vld [vmem:[#allocation8 + $0x38] ss:$12 sps:$4 sm:$0xff]   ;;  %s7073_s29 = scalar_lea.vmem [#allocation22], %s4022_s30 }
 0x172   : > { %591 = vadd.xlane.f32.xlu0 %v6044_v1  ;;  %888 = vmatprep.subr.bf16.mxu0 %v4786_v12  ;;  %v4792_v19 = vld [vmem:[#allocation8 + $0x30] ss:$12 sps:$4 sm:$0xff]   ;;  %v6080_v20 = vld [vmem:[%s6010_s1 + $0x38] sm:$0xff]  ;;  %v4795_v22 = vld [vmem:[#allocation8 + $0x20] ss:$12 sps:$4 sm:$0xff]   ;;  %v620_v23 = vmul.f32 %v6077_v16, %v6077_v16  ;;  %s4191_s12 = sshll.u32 %s5678_s27, 10 }
 0x173   : > { %4372 = vmatprep.subr.bf16.mxu1 %v4791_v18  ;;  %v4793_v21 = vld [vmem:[#allocation8 + $0x4c] ss:$12 sps:$4 sm:$0xff]   ;;  %v4796_v24 = vld [vmem:[#allocation8 + $0x48] ss:$12 sps:$4 sm:$0xff]   ;;  %v621_v25 = vmul.f32 %v6080_v20, %v6080_v20  ;;  %v4797_v26 = vld [vmem:[#allocation8 + $0x64] ss:$12 sps:$4 sm:$0xff]  }
 0x174   : > { %624 = vadd.xlane.f32.xlu1 %v615_v3  ;;  %4373 = vmatpush3.bf16.msra.mxu1 %v4791_v18  ;;  %v4800_v28 = vld [vmem:[#allocation8 + $0x60] ss:$12 sps:$4 sm:$0xff]   ;;  %v4801_v29 = vld [vmem:[#allocation8 + $0x7c] ss:$12 sps:$4 sm:$0xff]   ;;  %v4804_v31 = vld [vmem:[#allocation8 + $0x78] ss:$12 sps:$4 sm:$0xff]  }
 0x175   : > { %889 = vmatpush1.bf16.msra.mxu0 %v4788_v14  ;;  %4374 = vmatprep.subr.bf16.mxu1 %v4795_v22  ;;  %v4803_v30 = vld [vmem:[#allocation8 + $0x50] ss:$12 sps:$4 sm:$0xff]   ;;  %v4805_v32 = vld [vmem:[#allocation8 + $0x94] ss:$12 sps:$4 sm:$0xff]   ;;  %v4809_v35 = vld [vmem:[#allocation8 + $0xac] ss:$12 sps:$4 sm:$0xff]  }
 0x176   : > { %593 = vadd.xlane.f32.xlu0 %v6052_v5  ;;  %890 = vmatprep.subr.bf16.mxu0 %v4789_v17  ;;  %v4807_v33 = vld [vmem:[#allocation8 + $0x68] ss:$12 sps:$4 sm:$0xff]   ;;  %v4808_v34 = vld [vmem:[#allocation8 + $0x90] ss:$12 sps:$4 sm:$0xff]   ;;  %v4811_v36 = vld [vmem:[#allocation8 + $0x80] ss:$12 sps:$4 sm:$0xff]  }
 0x177   : > { %v4812_v37 = vld [vmem:[#allocation8 + $0xa8] ss:$12 sps:$4 sm:$0xff]   ;;  %v4813_v38 = vld [vmem:[#allocation8 + $0x98] ss:$12 sps:$4 sm:$0xff]   ;;  %v4814_v40 = vld [vmem:[#allocation8 + $0xb0] ss:$12 sps:$4 sm:$0xff]  }
 0x178   : > { %595 = vadd.xlane.f32.xlu1 %v6056_v6  ;;  %4375 = vmatpush3.bf16.msra.mxu1 %v4795_v22  ;;  %s3826_s19 = sshll.u32 %s7073_s29, 4  ;;  %s7250_s16 = sld [smem:[#allocation53_spill]]  ;;  %s7100_s19 = int_to_ptr.vmem [resolvable:$true] %s3826_s19 }
 0x179   : > { %891 = vmatpush1.bf16.msra.mxu0 %v4792_v19  ;;  %4376 = vmatprep.subr.bf16.mxu1 %v4799_v27  ;;  %s3813_s30 = scalar_lea.sflag [#allocation4], %s6004_s5  ;;  %s5473_s27 = scalar_lea.vmem %s7100_s19, 1024 }
 0x17a   : > { %626 = vadd.xlane.f32.xlu0 %v616_v7  ;;  %892 = vmatprep.subr.bf16.mxu0 %v4793_v21  ;;  %p5474_p2 = scmp.ne.s32.totalorder %s7100_s19, %s5473_s27  ;;  %p7252_p8 = scmp.ne.s32.totalorder %s7200_s17, 0 }
 0x17b   : > { %s5589_s18 = smov [#allocation22]  }
 0x17c   : > { %628 = vadd.xlane.f32.xlu1 %v617_v8  ;;  %4377 = vmatpush3.bf16.msra.mxu1 %v4799_v27  ;;  %p5475_p6 = pnand %p5474_p2, %p7252_p8 }
 0x17d   : > { %893 = vmatpush1.bf16.msra.mxu0 %v4796_v24  ;;  %4378 = vmatprep.subr.bf16.mxu1 %v4803_v30 }
 0x17e   : > { %597 = vadd.xlane.f32.xlu0 %v6065_v9  ;;  %894 = vmatprep.subr.bf16.mxu0 %v4797_v26  ;;  %s7098_s14 = scalar_lea.hbm %s7250_s16, %s4191_s12  ;;  %p5476_p11 = pneg %p5475_p6 }
 0x180   : > { %599 = vadd.xlane.f32.xlu1 %v6068_v11  ;;  %4379 = vmatpush3.bf16.msra.mxu1 %v4803_v30 }
 0x181   : > { %895 = vmatpush1.bf16.msra.mxu0 %v4800_v28  ;;  %4380 = vmatprep.subr.bf16.mxu1 %v4807_v33 }
 0x182   : > { %630 = vadd.xlane.f32.xlu0 %v618_v13  ;;  %896 = vmatprep.subr.bf16.mxu0 %v4801_v29 }
 0x184   : > { %632 = vadd.xlane.f32.xlu1 %v619_v15  ;;  %4381 = vmatpush3.bf16.msra.mxu1 %v4807_v33 }
 0x185   : > { %897 = vmatpush1.bf16.msra.mxu0 %v4804_v31  ;;  %4382 = vmatprep.subr.bf16.mxu1 %v4811_v36 }
 0x186   : > { %601 = vadd.xlane.f32.xlu0 %v6077_v16  ;;  %898 = vmatprep.subr.bf16.mxu0 %v4805_v32 }
 0x188   : > { %603 = vadd.xlane.f32.xlu1 %v6080_v20  ;;  %4383 = vmatpush3.bf16.msra.mxu1 %v4811_v36 }
 0x189   : > { %899 = vmatpush1.bf16.msra.mxu0 %v4808_v34  ;;  %4384 = vmatprep.subr.bf16.mxu1 %v4813_v38 }
 0x18a   : > { %634 = vadd.xlane.f32.xlu0 %v620_v23  ;;  %900 = vmatprep.subr.bf16.mxu0 %v4809_v35  ;;  %v6094_v23 = vld [vmem:[#allocation5] ss:$0 sm:$0xff]  ;;  %v4036_v35 = vld [vmem:[#allocation7] ss:$0 sm:$0xff] }
 0x18c   : > { %636 = vadd.xlane.f32.xlu1 %v621_v25  ;;  %4385 = vmatpush3.bf16.msra.mxu1 %v4813_v38 }
 0x18d   : > { %901 = vmatpush1.bf16.msra.mxu0 %v4812_v37  ;;  %4386 = vmatprep.subr.bf16.mxu1 %v4814_v40 }
 0x190   : > { %4387 = vmatpush3.bf16.msra.mxu1 %v4814_v40 }
 0x1fb   : > { %v590_v41 = vpop.xlane.xlu0 %589 }
 0x1fc   : > { %v606_v42 = vmul.f32 0.0078125, %v590_v41 }
 0x1fd   : > { %v623_v43 = vpop.xlane.xlu1 %622 }
 0x1fe   : > { %v646_v44 = vmul.f32 %v606_v42, %v606_v42  ;;  %v638_v45 = vmul.f32 0.0078125, %v623_v43  ;;  %v678_v12 = vsub.f32 %v6041_v0, %v606_v42 }
 0x1ff   : > { %v592_v46 = vpop.xlane.xlu0 %591 }
 0x200   : > { %v654_v47 = vsub.f32 %v638_v45, %v646_v44  ;;  %v607_v48 = vmul.f32 0.0078125, %v592_v46 }
 0x201   : > { %v625_v49 = vpop.xlane.xlu1 %624 }
 0x202   : > { %v662_v50 = vadd.f32 1e-05, %v654_v47  ;;  %v647_v51 = vmul.f32 %v607_v48, %v607_v48  ;;  %v639_v52 = vmul.f32 0.0078125, %v625_v49  ;;  %v679_v24 = vsub.f32 %v6044_v1, %v607_v48 }
 0x203   : > { %v594_v53 = vpop.xlane.xlu0 %593 }
 0x204   : > { %4903 = vrsqrt.f32 %v662_v50  ;;  %v655_v54 = vsub.f32 %v639_v52, %v647_v51  ;;  %v608_v55 = vmul.f32 0.0078125, %v594_v53 }
 0x205   : > { %v596_v56 = vpop.xlane.xlu1 %595 }
 0x206   : > { %v663_v57 = vadd.f32 1e-05, %v655_v54  ;;  %v648_v58 = vmul.f32 %v608_v55, %v608_v55  ;;  %v609_v59 = vmul.f32 0.0078125, %v596_v56  ;;  %v680_v1 = vsub.f32 %v6052_v5, %v608_v55 }
 0x207   : > { %v627_v60 = vpop.xlane.xlu0 %626 }
 0x208   : > { %4905 = vrsqrt.f32 %v663_v57  ;;  %v640_v61 = vmul.f32 0.0078125, %v627_v60  ;;  %v649_v63 = vmul.f32 %v609_v59, %v609_v59  ;;  %v681_v47 = vsub.f32 %v6056_v6, %v609_v59 }
 0x209   : > { %v629_v62 = vpop.xlane.xlu1 %628 }
 0x20a   : > { %v656_v2 = vsub.f32 %v640_v61, %v648_v58  ;;  %v641_v3 = vmul.f32 0.0078125, %v629_v62 }
 0x20b   : > { %v598_v4 = vpop.xlane.xlu0 %597 }
 0x20c   : > { %v664_v7 = vadd.f32 1e-05, %v656_v2  ;;  %v657_v8 = vsub.f32 %v641_v3, %v649_v63  ;;  %v6089_v10 = vmul.f32 0.0078125, %v598_v4 }
 0x20d   : > { %v600_v13 = vpop.xlane.xlu1 %599 }
 0x20e   : > { %v4904_v14 = vpop.eup %4903  ;;  %4907 = vrsqrt.f32 %v664_v7  ;;  %v665_v15 = vadd.f32 1e-05, %v657_v8  ;;  %v650_v17 = vmul.f32 %v6089_v10, %v6089_v10  ;;  %v611_v18 = vmul.f32 0.0078125, %v600_v13 }
 0x20f   : > { %v631_v19 = vpop.xlane.xlu0 %630  ;;  %v686_v21 = vmul.f32 %v4904_v14, %v678_v12  ;;  %v682_v59 = vsub.f32 %v6065_v9, %v6089_v10 }
 0x210   : > { %4909 = vrsqrt.f32 %v665_v15  ;;  %v642_v22 = vmul.f32 0.0078125, %v631_v19  ;;  %v651_v27 = vmul.f32 %v611_v18, %v611_v18  ;;  %v683_v63 = vsub.f32 %v6068_v11, %v611_v18 }
 0x211   : > { %v633_v25 = vpop.xlane.xlu1 %632  ;;  %v700_v31 = vmul.f32 %v6094_v23, %v686_v21 }
 0x212   : > { %v4906_v26 = vpop.eup %4905  ;;  %v658_v0 = vsub.f32 %v642_v22, %v650_v17  ;;  %v643_v28 = vmul.f32 0.0078125, %v633_v25 }
 0x213   : > { %v602_v29 = vpop.xlane.xlu0 %601  ;;  %v687_v30 = vmul.f32 %v4906_v26, %v679_v24  ;;  %v714_v43 = vadd.f32 %v4036_v35, %v700_v31 }
 0x214   : > { %v666_v32 = vadd.f32 1e-05, %v658_v0  ;;  %v659_v33 = vsub.f32 %v643_v28, %v651_v27  ;;  %v612_v34 = vmul.f32 0.0078125, %v602_v29 }
 0x215   : > { %v604_v36 = vpop.xlane.xlu1 %603  ;;  %v701_v37 = vmul.f32 %v6094_v23, %v687_v30 }
 0x216   : > { %4911 = vrsqrt.f32 %v666_v32  ;;  %v667_v38 = vadd.f32 1e-05, %v659_v33  ;;  %v652_v40 = vmul.f32 %v612_v34, %v612_v34  ;;  %v613_v41 = vmul.f32 0.0078125, %v604_v36 }
 0x217   : > { %v635_v42 = vpop.xlane.xlu0 %634  ;;  %v715_v44 = vadd.f32 %v4036_v35, %v701_v37  ;;  %v684_v9 = vsub.f32 %v6077_v16, %v612_v34 }
 0x218   : > { %v4908_v45 = vpop.eup %4907  ;;  %4913 = vrsqrt.f32 %v667_v38  ;;  %v644_v46 = vmul.f32 0.0078125, %v635_v42  ;;  %v653_v52 = vmul.f32 %v613_v41, %v613_v41  ;;  %v685_v15 = vsub.f32 %v6080_v20, %v613_v41 }
 0x219   : > { %v637_v48 = vpop.xlane.xlu1 %636  ;;  %v722_v49 = vpack.c.bf16 %v715_v44, %v714_v43  ;;  %v688_v50 = vmul.f32 %v4908_v45, %v680_v1 }
 0x21a   : > { %v4910_v51 = vpop.eup %4909  ;;  %v660_v53 = vsub.f32 %v644_v46, %v652_v40  ;;  %v645_v54 = vmul.f32 0.0078125, %v637_v48 }
 0x21b   : > { %919 = vmatmul.mubr.bf16.vlgmr.msra.gmra.mrb[0].mxu0 %v722_v49  ;;  %4388 = vmatprep.mubr.bf16.mxu1 %v722_v49  ;;  %v689_v56 = vmul.f32 %v4910_v51, %v681_v47  ;;  %v702_v5 = vmul.f32 %v6094_v23, %v688_v50 }
 0x21c   : > { %v668_v55 = vadd.f32 1e-05, %v660_v53  ;;  %v661_v57 = vsub.f32 %v645_v54, %v653_v52  ;;  %928 = vmatprep.mubr.bf16.mxu0 %v5585_v39 }
 0x21d   : > { %v703_v58 = vmul.f32 %v6094_v23, %v689_v56  ;;  %v716_v60 = vadd.f32 %v4036_v35, %v702_v5 }
 0x21e   : > { %4915 = vrsqrt.f32 %v668_v55  ;;  %v669_v6 = vadd.f32 1e-05, %v661_v57 }
 0x21f   : > { %v717_v61 = vadd.f32 %v4036_v35, %v703_v58 }
 0x220   : > { %v4912_v62 = vpop.eup %4911  ;;  %4917 = vrsqrt.f32 %v669_v6 }
 0x221   : > { %v723_v2 = vpack.c.bf16 %v717_v61, %v716_v60  ;;  %v690_v3 = vmul.f32 %v4912_v62, %v682_v59 }
 0x222   : > { %v4914_v4 = vpop.eup %4913 }
 0x223   : > { %929 = vmatmul.mubr.bf16.gmra.mrb[4].mxu0 %v723_v2  ;;  %4389 = vmatmul.mubr.bf16.vlgmr.msra.gmra.mrb[0].mxu1 %v723_v2  ;;  %v691_v7 = vmul.f32 %v4914_v4, %v683_v63  ;;  %v704_v8 = vmul.f32 %v6094_v23, %v690_v3 }
 0x224   : > { %938 = vmatprep.mubr.bf16.mxu0 %v5585_v39 }
 0x225   : > { %v705_v12 = vmul.f32 %v6094_v23, %v691_v7  ;;  %v718_v10 = vadd.f32 %v4036_v35, %v704_v8 }
 0x227   : > { %v719_v13 = vadd.f32 %v4036_v35, %v705_v12 }
 0x228   : > { %v4916_v14 = vpop.eup %4915 }
 0x229   : > { %v724_v11 = vpack.c.bf16 %v719_v13, %v718_v10  ;;  %v692_v17 = vmul.f32 %v4916_v14, %v684_v9 }
 0x22a   : > { %v4918_v18 = vpop.eup %4917 }
 0x22b   : > { %939 = vmatmul.mubr.bf16.gmra.mrb[8].mxu0 %v724_v11  ;;  %4392 = vmatprep.mubr.bf16.mxu1 %v724_v11  ;;  %v693_v19 = vmul.f32 %v4918_v18, %v685_v15  ;;  %v706_v21 = vmul.f32 %v6094_v23, %v692_v17 }
 0x22c   : > { %948 = vmatprep.mubr.bf16.mxu0 %v5585_v39 }
 0x22d   : > { %v707_v22 = vmul.f32 %v6094_v23, %v693_v19  ;;  %v720_v24 = vadd.f32 %v4036_v35, %v706_v21 }
 0x22f   : > { %v721_v25 = vadd.f32 %v4036_v35, %v707_v22 }
 0x231   : > { %v725_v16 = vpack.c.bf16 %v721_v25, %v720_v24 }
 0x233   : > { %949 = vmatmul.mubr.bf16.gmra.mrb[12].mxu0 %v725_v16  ;;  %4393 = vmatmul.mubr.bf16.gmra.mrb[4].mxu1 %v725_v16 }
 0x2ee   : > { %v920_v26 = vpop.f32.mrb[0].mxu0 }
 0x2ef   : > { %v922_v27 = vpop.f32.mrb[1].mxu0  ;;  %v1024_v0 = vmul.f32 0.17677669, %v920_v26 }
 0x2f0   : > { %v924_v20 = vpop.f32.mrb[2].mxu0 }
 0x2f1   : > { %v1025_v28 = vmul.f32 0.17677669, %v924_v20  ;;  %v926_v29 = vpop.f32.mrb[3].mxu0 }
 0x2f2   : > { %v6115_v30 = vpack.c.bf16 %v926_v29, %v922_v27 }
 0x2f3   : > { %v6117_v31 = vpack.c.bf16 %v1025_v28, %v1024_v0 }
 0x2f4   : > { %4596 = vmatprep.subr.msk.bf16.mxu0 %vm1044_vm0, %v6115_v30  ;;  %v1058_v23 = vsel %vm1044_vm0, %v6115_v30, 0 }
 0x2f5   : > { %4397 = vmatpush3.bf16.xpose.msra.mxu0 %v1058_v23  ;;  %4404 = vmatprep.mubr.msk.bf16.mxu0 %vm1044_vm0, %v6117_v31 }
 0x2f6   : > { %v930_v32 = vpop.f32.mrb[4].mxu0  ;;  %v4390_v33 = vpop.f32.mrb[0].mxu1 }
 0x2f7   : > { %v932_v34 = vpop.f32.mrb[5].mxu0  ;;  %v993_v35 = vpop.f32.mrb[1].mxu1  ;;  %v1026_v38 = vmul.f32 0.17677669, %v930_v32 }
 0x2f8   : > { %v934_v36 = vpop.f32.mrb[6].mxu0  ;;  %v4391_v37 = vpop.f32.mrb[2].mxu1 }
 0x2f9   : > { %v1027_v40 = vmul.f32 0.17677669, %v934_v36  ;;  %v6125_v1 = vpack.c.bf16 %v4391_v37, %v4390_v33  ;;  %v936_v41 = vpop.f32.mrb[7].mxu0  ;;  %v996_v42 = vpop.f32.mrb[3].mxu1 }
 0x2fa   : > { %v6127_v43 = vpack.c.bf16 %v936_v41, %v932_v34  ;;  %v6129_v44 = vpack.c.bf16 %v996_v42, %v993_v35 }
 0x2fb   : > { %v6131_v45 = vpack.c.bf16 %v1027_v40, %v1026_v38 }
 0x2fc   : > { %4597 = vmatprep.subr.msk.bf16.mxu0 %vm1044_vm0, %v6127_v43  ;;  %4412 = vmatprep.subr.bf16.mxu1 %v6129_v44  ;;  %v1061_v46 = vsel %vm1044_vm0, %v6127_v43, 0 }
 0x2fd   : > { %4399 = vmatpush3.bf16.xpose.msra.mxu0 %v1061_v46  ;;  %4413 = vmatpush3.bf16.msra.mxu1 %v6129_v44 }
 0x2fe   : > { %v940_v47 = vpop.f32.mrb[8].mxu0  ;;  %4414 = vmatprep.subr.bf16.mxu1 %v6125_v1 }
 0x2ff   : > { %v942_v48 = vpop.f32.mrb[9].mxu0  ;;  %v1028_v50 = vmul.f32 0.17677669, %v940_v47 }
 0x300   : > { %v944_v49 = vpop.f32.mrb[10].mxu0 }
 0x301   : > { %v1029_v51 = vmul.f32 0.17677669, %v944_v49  ;;  %v946_v52 = vpop.f32.mrb[11].mxu0  ;;  %4415 = vmatpush3.bf16.msra.mxu1 %v6125_v1 }
 0x302   : > { %v6141_v53 = vpack.c.bf16 %v946_v52, %v942_v48 }
 0x303   : > { %v6143_v54 = vpack.c.bf16 %v1029_v51, %v1028_v50 }
 0x304   : > { %4598 = vmatprep.subr.msk.bf16.mxu0 %vm1044_vm0, %v6141_v53  ;;  %v1064_v56 = vsel %vm1044_vm0, %v6141_v53, 0 }
 0x305   : > { %4401 = vmatpush3.bf16.xpose.msra.mxu0 %v1064_v56 }
 0x306   : > { %v950_v5 = vpop.f32.mrb[12].mxu0  ;;  %v4394_v55 = vpop.f32.mrb[4].mxu1 }
 0x307   : > { %v952_v57 = vpop.f32.mrb[13].mxu0  ;;  %v1009_v58 = vpop.f32.mrb[5].mxu1  ;;  %v1030_v60 = vmul.f32 0.17677669, %v950_v5 }
 0x308   : > { %v954_v6 = vpop.f32.mrb[14].mxu0  ;;  %v4395_v59 = vpop.f32.mrb[6].mxu1 }
 0x309   : > { %v1031_v61 = vmul.f32 0.17677669, %v954_v6  ;;  %v6149_v62 = vpack.c.bf16 %v4395_v59, %v4394_v55  ;;  %v956_v63 = vpop.f32.mrb[15].mxu0  ;;  %v1012_v2 = vpop.f32.mrb[7].mxu1 }
 0x30a   : > { %v6151_v3 = vpack.c.bf16 %v956_v63, %v952_v57  ;;  %v6153_v4 = vpack.c.bf16 %v1012_v2, %v1009_v58 }
 0x30b   : > { %v6155_v7 = vpack.c.bf16 %v1031_v61, %v1030_v60 }
 0x30c   : > { %4599 = vmatprep.subr.msk.bf16.mxu0 %vm1044_vm0, %v6151_v3  ;;  %4416 = vmatprep.subr.bf16.mxu1 %v6153_v4  ;;  %v1067_v8 = vsel %vm1044_vm0, %v6151_v3, 0 }
 0x30d   : > { %4403 = vmatpush3.bf16.xpose.msra.mxu0 %v1067_v8  ;;  %4417 = vmatpush3.bf16.msra.mxu1 %v6153_v4 }
 0x30e   : > { %4418 = vmatprep.subr.bf16.mxu1 %v6149_v62 }
 0x311   : > { %4419 = vmatpush3.bf16.msra.mxu1 %v6149_v62 }
 0x314   : > { %4405 = vmatmul.mubr.msk.bf16.vlgmr.msra.gmra.mrb[16].mxu0 %vm1044_vm0, %v6131_v45 }
 0x315   : > { %4408 = vmatprep.mubr.msk.bf16.mxu0 %vm1044_vm0, %v6143_v54 }
 0x31c   : > { %4409 = vmatmul.mubr.msk.bf16.gmra.mrb[20].mxu0 %vm1044_vm0, %v6155_v7 }
 0x3e7   : > { %v4406_v12 = vpop.f32.mrb[16].mxu0 }
 0x3e8   : > { %v1103_v9 = vpop.f32.mrb[17].mxu0  ;;  %v1141_v10 = vsel %vm1134_vm1, %v4406_v12, -inf }
 0x3e9   : > { %1142 = vmax.xlane.f32.xlu0 %v1141_v10  ;;  %v4407_v13 = vpop.f32.mrb[18].mxu0  ;;  %v1135_v11 = vsel %vm1134_vm1, %v1103_v9, -inf }
 0x3ea   : > { %v1106_v14 = vpop.f32.mrb[19].mxu0  ;;  %v1144_v15 = vsel %vm1134_vm1, %v4407_v13, -inf }
 0x3eb   : > { %1145 = vmax.xlane.f32.xlu1 %v1144_v15  ;;  %v1138_v17 = vsel %vm1134_vm1, %v1106_v14, -inf }
 0x3ed   : > { %1136 = vmax.xlane.f32.xlu0 %v1135_v11 }
 0x3ef   : > { %1139 = vmax.xlane.f32.xlu1 %v1138_v17  ;;  %v6175_v18 = vpop.f32.mrb[20].mxu0 }
 0x3f0   : > { %v6177_v19 = vpop.f32.mrb[21].mxu0  ;;  %v1153_v21 = vsel %vm1134_vm1, %v6175_v18, -inf }
 0x3f1   : > { %1154 = vmax.xlane.f32.xlu0 %v1153_v21  ;;  %v6181_v22 = vpop.f32.mrb[22].mxu0  ;;  %v1147_v25 = vsel %vm1134_vm1, %v6177_v19, -inf }
 0x3f2   : > { %v6183_v24 = vpop.f32.mrb[23].mxu0  ;;  %v1156_v16 = vsel %vm1134_vm1, %v6181_v22, -inf }
 0x3f3   : > { %v1150_v26 = vsel %vm1134_vm1, %v6183_v24, -inf }
 0x3f5   : > { %1148 = vmax.xlane.f32.xlu0 %v1147_v25 }
 0x400   : > { %1330 = vrot.lane.b32.xlu1 %v6127_v43, %s5586_s28 }
 0x404   : > { %1332 = vrot.lane.b32.xlu1 %v6141_v53, %s5586_s28 }
 0x40b   : > { %1328 = vrot.lane.b32.xlu0 %v6115_v30, %s5586_s28 }
 0x40f   : > { %1316 = vrot.lane.b32.xlu0 %v6117_v31, %s5586_s28 }
 0x413   : > { %1320 = vrot.lane.b32.xlu0 %v6143_v54, %s5586_s28 }
 0x417   : > { %1513 = vrot.lane.b32.xlu0 %v6129_v44, %s5586_s28 }
 0x428   : > { %1157 = vmax.xlane.f32.xlu1 %v1156_v16 }
 0x42c   : > { %1151 = vmax.xlane.f32.xlu1 %v1150_v26 }
 0x43d   : > { %1334 = vrot.lane.b32.xlu1 %v6151_v3, %s5586_s28 }
 0x441   : > { %1318 = vrot.lane.b32.xlu1 %v6131_v45, %s5586_s28 }
 0x445   : > { %1322 = vrot.lane.b32.xlu1 %v6155_v7, %s5586_s28 }
 0x449   : > { %1515 = vrot.lane.b32.xlu1 %v6125_v1, %s5586_s28 }
 0x44d   : > { %1517 = vrot.lane.b32.xlu1 %v6153_v4, %s5586_s28 }
 0x451   : > { %1519 = vrot.lane.b32.xlu1 %v6149_v62, %s5586_s28 }
 0x476   : > { %v1143_v27 = vpop.xlane.xlu0 %1142 }
 0x477   : > { %v1161_v20 = vsub.f32 %v4406_v12, %v1143_v27 }
 0x478   : > { %v1146_v0 = vpop.xlane.xlu1 %1145 }
 0x479   : > { %v1171_v28 = vmul.f32 1.442695, %v1161_v20  ;;  %v1162_v29 = vsub.f32 %v4407_v13, %v1146_v0 }
 0x47a   : > { %v1137_v23 = vpop.xlane.xlu0 %1136 }
 0x47b   : > { %v1173_v32 = vmul.f32 1.442695, %v1162_v29  ;;  %v1159_v33 = vsub.f32 %v1103_v9, %v1137_v23  ;;  %4919 = vpow2.f32 %v1171_v28 }
 0x47c   : > { %v1140_v34 = vpop.xlane.xlu1 %1139 }
 0x47d   : > { %4921 = vpow2.f32 %v1173_v32  ;;  %v1167_v35 = vmul.f32 1.442695, %v1159_v33  ;;  %v1160_v36 = vsub.f32 %v1106_v14, %v1140_v34 }
 0x47e   : > { %v1155_v37 = vpop.xlane.xlu0 %1154 }
 0x47f   : > { %v1169_v38 = vmul.f32 1.442695, %v1160_v36  ;;  %4923 = vpow2.f32 %v1167_v35  ;;  %v1165_v57 = vsub.f32 %v6175_v18, %v1155_v37 }
 0x480   : > { %v1331_v52 = vpop.permute.xlu1 %1330 }
 0x481   : > { %4925 = vpow2.f32 %v1169_v38  ;;  %v1352_v56 = vsel %vm1044_vm0, %v1331_v52, 0  ;;  %v1179_v6 = vmul.f32 1.442695, %v1165_v57 }
 0x482   : > { %v1149_v40 = vpop.xlane.xlu0 %1148 }
 0x483   : > { %v1163_v59 = vsub.f32 %v6177_v19, %v1149_v40  ;;  %4927 = vpow2.f32 %v1179_v6 }
 0x484   : > { %v1333_v5 = vpop.permute.xlu1 %1332 }
 0x485   : > { %v6203_v41 = vpop.eup %4919  ;;  %v1355_v55 = vsel %vm1044_vm0, %v1333_v5, 0  ;;  %v1175_v2 = vmul.f32 1.442695, %v1163_v59 }
 0x486   : > { %v1329_v42 = vpop.permute.xlu0 %1328 }
 0x487   : > { %v6205_v46 = vpop.eup %4921  ;;  %4600 = vmatprep.subr.msk.bf16.mxu1 %vm1044_vm0, %v1329_v42  ;;  %v1349_v51 = vsel %vm1044_vm0, %v1329_v42, 0 }
 0x488   : > { %v1216_v47 = vpack.c.bf16 %v6205_v46, %v6203_v41 }
 0x489   : > { %v6210_v48 = vpop.eup %4923 }
 0x48a   : > { %v1317_v58 = vpop.permute.xlu0 %1316 }
 0x48b   : > { %v6212_v49 = vpop.eup %4925 }
 0x48c   : > { %v1215_v50 = vpack.c.bf16 %v6212_v49, %v6210_v48 }
 0x48d   : > { %v6229_v11 = vpop.eup %4927 }
 0x48e   : > { %4420 = vmatprep.mubr.msk.bf16.mxu1 %vm1134_vm1, %v1215_v50  ;;  %v1321_v8 = vpop.permute.xlu0 %1320 }
 0x48f   : > { %4421 = vmatmul.mubr.msk.bf16.vlgmr.msra.gmra.mrb[8].mxu1 %vm1134_vm1, %v1216_v47 }
 0x490   : > { %4429 = vmatpush3.bf16.xpose.msra.mxu1 %v1349_v51 }
 0x491   : > { %4601 = vmatprep.subr.msk.bf16.mxu1 %vm1044_vm0, %v1331_v52 }
 0x492   : > { %v1514_v15 = vpop.permute.xlu0 %1513 }
 0x498   : > { %4431 = vmatpush3.bf16.xpose.msra.mxu1 %v1352_v56 }
 0x499   : > { %4602 = vmatprep.subr.msk.bf16.mxu1 %vm1044_vm0, %v1333_v5 }
 0x4a0   : > { %4433 = vmatpush3.bf16.xpose.msra.mxu1 %v1355_v55 }
 0x4b5   : > { %v1158_v60 = vpop.xlane.xlu1 %1157 }
 0x4b6   : > { %v1166_v61 = vsub.f32 %v6181_v22, %v1158_v60 }
 0x4b8   : > { %v1181_v63 = vmul.f32 1.442695, %v1166_v61 }
 0x4b9   : > { %v1152_v12 = vpop.xlane.xlu1 %1151 }
 0x4ba   : > { %4929 = vpow2.f32 %v1181_v63  ;;  %v1164_v9 = vsub.f32 %v6183_v24, %v1152_v12 }
 0x4bb   : > { %4931 = vpow2.f32 %v1175_v2 }
 0x4bc   : > { %v1177_v10 = vmul.f32 1.442695, %v1164_v9 }
 0x4bd   : > { %v1335_v13 = vpop.permute.xlu1 %1334 }
 0x4be   : > { %4933 = vpow2.f32 %v1177_v10  ;;  %4603 = vmatprep.subr.msk.bf16.mxu1 %vm1044_vm0, %v1335_v13  ;;  %v1358_v14 = vsel %vm1044_vm0, %v1335_v13, 0 }
 0x4bf   : > { %4435 = vmatpush3.bf16.xpose.msra.mxu1 %v1358_v14 }
 0x4c0   : > { %4444 = vmatprep.subr.bf16.mxu1 %v1514_v15 }
 0x4c1   : > { %v1319_v18 = vpop.permute.xlu1 %1318 }
 0x4c4   : > { %v6231_v17 = vpop.eup %4929 }
 0x4c5   : > { %v1218_v19 = vpack.c.bf16 %v6231_v17, %v6229_v11  ;;  %v6235_v21 = vpop.eup %4931  ;;  %v1323_v25 = vpop.permute.xlu1 %1322  ;;  %v1204_v59 = vsel %vm1134_vm1, %v6231_v17, 0.0 }
 0x4c8   : > { %v6237_v22 = vpop.eup %4933 }
 0x4c9   : > { %v1217_v24 = vpack.c.bf16 %v6237_v22, %v6235_v21  ;;  %v1516_v16 = vpop.permute.xlu1 %1515 }
 0x4cb   : > { %4424 = vmatprep.mubr.msk.bf16.mxu1 %vm1134_vm1, %v1217_v24 }
 0x4cc   : > { %4425 = vmatmul.mubr.msk.bf16.gmra.mrb[12].mxu1 %vm1134_vm1, %v1218_v19 }
 0x4cd   : > { %4436 = vmatprep.mubr.msk.bf16.mxu1 %vm1044_vm0, %v1317_v58  ;;  %v1518_v26 = vpop.permute.xlu1 %1517 }
 0x4d1   : > { %v1520_v27 = vpop.permute.xlu1 %1519 }
 0x4d4   : > { %4437 = vmatmul.mubr.msk.bf16.vlgmr.msra.gmra.mrb[16].mxu1 %vm1044_vm0, %v1319_v18 }
 0x4d5   : > { %4445 = vmatpush3.bf16.msra.mxu1 %v1514_v15  ;;  %4440 = vmatprep.mubr.msk.bf16.mxu1 %vm1044_vm0, %v1321_v8 }
 0x4d6   : > { %4446 = vmatprep.subr.bf16.mxu1 %v1516_v16 }
 0x4d9   : > { %4447 = vmatpush3.bf16.msra.mxu1 %v1516_v16 }
 0x4da   : > { %4448 = vmatprep.subr.bf16.mxu1 %v1518_v26 }
 0x4dc   : > { %4441 = vmatmul.mubr.msk.bf16.gmra.mrb[20].mxu1 %vm1044_vm0, %v1323_v25 }
 0x4dd   : > { %4449 = vmatpush3.bf16.msra.mxu1 %v1518_v26 }
 0x4de   : > { %4450 = vmatprep.subr.bf16.mxu1 %v1520_v27 }
 0x4e1   : > { %4451 = vmatpush3.bf16.msra.mxu1 %v1520_v27 }
 0x562   : > { %v6247_v20 = vpop.f32.mrb[8].mxu1 }
 0x563   : > { %v6249_v0 = vpop.f32.mrb[9].mxu1 }
 0x564   : > { %v6251_v28 = vpop.f32.mrb[10].mxu1 }
 0x565   : > { %v6253_v29 = vpop.f32.mrb[11].mxu1 }
 0x59f   : > { %v6255_v23 = vpop.f32.mrb[12].mxu1 }
 0x5a0   : > { %v6257_v32 = vpop.f32.mrb[13].mxu1 }
 0x5a1   : > { %v6259_v33 = vpop.f32.mrb[14].mxu1 }
 0x5a2   : > { %v6261_v34 = vpop.f32.mrb[15].mxu1 }
 0x5a7   : > { %v4438_v35 = vpop.f32.mrb[16].mxu1 }
 0x5a8   : > { %v6263_v36 = vpop.f32.mrb[17].mxu1  ;;  %v1431_v37 = vsel %vm1134_vm1, %v4438_v35, -inf }
 0x5a9   : > { %1432 = vmax.xlane.f32.xlu0 %v1431_v37  ;;  %v6266_v38 = vpop.f32.mrb[18].mxu1  ;;  %v1425_v47 = vsel %vm1134_vm1, %v6263_v36, -inf }
 0x5aa   : > { %v1397_v40 = vpop.f32.mrb[19].mxu1  ;;  %v1434_v52 = vsel %vm1134_vm1, %v6266_v38, -inf }
 0x5ab   : > { %v1428_v42 = vsel %vm1134_vm1, %v1397_v40, -inf }
 0x5ac   : > { %1429 = vmax.xlane.f32.xlu1 %v1428_v42 }
 0x5ad   : > { %1426 = vmax.xlane.f32.xlu0 %v1425_v47 }
 0x5af   : > { %v6271_v50 = vpop.f32.mrb[20].mxu1 }
 0x5b0   : > { %v6273_v51 = vpop.f32.mrb[21].mxu1  ;;  %v1443_v55 = vsel %vm1134_vm1, %v6271_v50, -inf }
 0x5b1   : > { %1435 = vmax.xlane.f32.xlu0 %v1434_v52  ;;  %v6277_v56 = vpop.f32.mrb[22].mxu1  ;;  %v1437_v57 = vsel %vm1134_vm1, %v6273_v51, -inf }
 0x5b2   : > { %v6279_v5 = vpop.f32.mrb[23].mxu1  ;;  %v1446_v58 = vsel %vm1134_vm1, %v6277_v56, -inf }
 0x5b3   : > { %v1440_v6 = vsel %vm1134_vm1, %v6279_v5, -inf }
 0x5b5   : > { %1444 = vmax.xlane.f32.xlu0 %v1443_v55 }
 0x5b9   : > { %1438 = vmax.xlane.f32.xlu0 %v1437_v57 }
 0x5bd   : > { %1806 = vrot.lane.b32.xlu1 %v6127_v43, %s5587_s15  ;;  %1447 = vmax.xlane.f32.xlu0 %v1446_v58 }
 0x5c1   : > { %1808 = vrot.lane.b32.xlu1 %v6141_v53, %s5587_s15 }
 0x5d3   : > { %1804 = vrot.lane.b32.xlu0 %v6115_v30, %s5587_s15 }
 0x5d7   : > { %1796 = vrot.lane.b32.xlu0 %v6117_v31, %s5587_s15 }
 0x5db   : > { %1800 = vrot.lane.b32.xlu0 %v6143_v54, %s5587_s15 }
 0x5df   : > { %2195 = vrot.lane.b32.xlu0 %v6115_v30, %s5588_s3  ;;  %v1183_v30 = vsel %vm1134_vm1, %v6210_v48, 0.0 }
 0x5e3   : > { %2199 = vrot.lane.b32.xlu0 %v6141_v53, %s5588_s3  ;;  %v1195_v53 = vsel %vm1134_vm1, %v6235_v21, 0.0 }
 0x5e5   : > { %1441 = vmax.xlane.f32.xlu1 %v1440_v6 }
 0x5e7   : > { %2187 = vrot.lane.b32.xlu0 %v6117_v31, %s5588_s3  ;;  %v1186_v31 = vsel %vm1134_vm1, %v6212_v49, 0.0 }
 0x5eb   : > { %2191 = vrot.lane.b32.xlu0 %v6143_v54, %s5588_s3  ;;  %v1201_v54 = vsel %vm1134_vm1, %v6229_v11, 0.0 }
 0x5f6   : > { %1810 = vrot.lane.b32.xlu1 %v6151_v3, %s5587_s15 }
 0x5fa   : > { %1798 = vrot.lane.b32.xlu1 %v6131_v45, %s5587_s15 }
 0x5fe   : > { %1802 = vrot.lane.b32.xlu1 %v6155_v7, %s5587_s15 }
 0x602   : > { %2197 = vrot.lane.b32.xlu1 %v6127_v43, %s5588_s3  ;;  %v1189_v43 = vsel %vm1134_vm1, %v6203_v41, 0.0 }
 0x606   : > { %2201 = vrot.lane.b32.xlu1 %v6151_v3, %s5588_s3  ;;  %v1198_v3 = vsel %vm1134_vm1, %v6237_v22, 0.0 }
 0x60a   : > { %1184 = vadd.xlane.f32.xlu0 %v1183_v30  ;;  %2189 = vrot.lane.b32.xlu1 %v6131_v45, %s5588_s3  ;;  %v1192_v45 = vsel %vm1134_vm1, %v6205_v46, 0.0 }
 0x60e   : > { %1187 = vadd.xlane.f32.xlu0 %v1186_v31  ;;  %2193 = vrot.lane.b32.xlu1 %v6155_v7, %s5588_s3 }
 0x612   : > { %1190 = vadd.xlane.f32.xlu0 %v1189_v43 }
 0x616   : > { %1196 = vadd.xlane.f32.xlu0 %v1195_v53 }
 0x61a   : > { %1202 = vadd.xlane.f32.xlu0 %v1201_v54 }
 0x632   : > { %1193 = vadd.xlane.f32.xlu1 %v1192_v45 }
 0x636   : > { %v1433_v7 = vpop.xlane.xlu0 %1432  ;;  %1199 = vadd.xlane.f32.xlu1 %v1198_v3 }
 0x637   : > { %v1451_v48 = vsub.f32 %v4438_v35, %v1433_v7 }
 0x639   : > { %v1461_v41 = vmul.f32 1.442695, %v1451_v48  ;;  %v1430_v49 = vpop.xlane.xlu1 %1429 }
 0x63a   : > { %v1450_v60 = vsub.f32 %v1397_v40, %v1430_v49  ;;  %v1427_v61 = vpop.xlane.xlu0 %1426  ;;  %1205 = vadd.xlane.f32.xlu1 %v1204_v59 }
 0x63b   : > { %4935 = vpow2.f32 %v1461_v41  ;;  %v1449_v63 = vsub.f32 %v6263_v36, %v1427_v61 }
 0x63c   : > { %v1459_v2 = vmul.f32 1.442695, %v1450_v60 }
 0x63d   : > { %v1457_v46 = vmul.f32 1.442695, %v1449_v63 }
 0x63e   : > { %4937 = vpow2.f32 %v1459_v2  ;;  %v1436_v8 = vpop.xlane.xlu0 %1435 }
 0x63f   : > { %4939 = vpow2.f32 %v1457_v46  ;;  %v1452_v12 = vsub.f32 %v6266_v38, %v1436_v8 }
 0x641   : > { %v1463_v9 = vmul.f32 1.442695, %v1452_v12 }
 0x642   : > { %v1445_v10 = vpop.xlane.xlu0 %1444 }
 0x643   : > { %4941 = vpow2.f32 %v1463_v9  ;;  %v1455_v13 = vsub.f32 %v6271_v50, %v1445_v10  ;;  %v1807_v50 = vpop.permute.xlu1 %1806 }
 0x644   : > { %v1828_v55 = vsel %vm1044_vm0, %v1807_v50, 0 }
 0x645   : > { %v4936_v14 = vpop.eup %4935  ;;  %v1469_v15 = vmul.f32 1.442695, %v1455_v13 }
 0x646   : > { %v1439_v11 = vpop.xlane.xlu0 %1438  ;;  %v1479_v17 = vsel %vm1134_vm1, %v4936_v14, 0.0 }
 0x647   : > { %4943 = vpow2.f32 %v1469_v15  ;;  %v1453_v18 = vsub.f32 %v6273_v51, %v1439_v11  ;;  %1480 = vadd.xlane.f32.xlu0 %v1479_v17  ;;  %v1809_v58 = vpop.permute.xlu1 %1808 }
 0x648   : > { %v4938_v19 = vpop.eup %4937  ;;  %v1831_v31 = vsel %vm1044_vm0, %v1809_v58, 0 }
 0x649   : > { %v4940_v21 = vpop.eup %4939  ;;  %v1465_v22 = vmul.f32 1.442695, %v1453_v18  ;;  %v1476_v24 = vsel %vm1134_vm1, %v4938_v19, 0.0 }
 0x64a   : > { %v1448_v25 = vpop.xlane.xlu0 %1447  ;;  %1477 = vadd.xlane.f32.xlu1 %v1476_v24  ;;  %v1473_v16 = vsel %vm1134_vm1, %v4940_v21, 0.0  ;;  %v1505_v26 = vpack.c.bf16 %v4938_v19, %v4940_v21  ;;  %v4815_v19 = vld [vmem:[#allocation10 + $0x10] sm:$0xff]  }
 0x64b   : > { %4945 = vpow2.f32 %v1465_v22  ;;  %v1456_v27 = vsub.f32 %v6277_v56, %v1448_v25  ;;  %1474 = vadd.xlane.f32.xlu0 %v1473_v16  ;;  %4460 = vmatprep.subr.bf16.mxu0 %v4815_v19  ;;  %v4816_v16 = vld [vmem:[#allocation10 + $0x18] sm:$0xff]  }
 0x64c   : > { %4452 = vmatprep.mubr.msk.bf16.mxu1 %vm1134_vm1, %v1505_v26  ;;  %4461 = vmatpush3.bf16.msra.mxu0 %v4815_v19 }
 0x64d   : > { %v4942_v35 = vpop.eup %4941  ;;  %v1471_v36 = vmul.f32 1.442695, %v1456_v27  ;;  %4462 = vmatprep.subr.bf16.mxu0 %v4816_v16 }
 0x64e   : > { %v1506_v37 = vpack.c.bf16 %v4942_v35, %v4936_v14  ;;  %v1805_v38 = vpop.permute.xlu0 %1804  ;;  %v1482_v40 = vsel %vm1134_vm1, %v4942_v35, 0.0 }
 0x64f   : > { %4947 = vpow2.f32 %v1471_v36  ;;  %v1825_v42 = vsel %vm1044_vm0, %v1805_v38, 0  ;;  %1483 = vadd.xlane.f32.xlu0 %v1482_v40  ;;  %4604 = vmatprep.subr.msk.bf16.mxu1 %vm1044_vm0, %v1805_v38 }
 0x650   : > { %4453 = vmatmul.mubr.msk.bf16.vlgmr.msra.gmra.mrb[24].mxu1 %vm1134_vm1, %v1506_v37  ;;  %4463 = vmatpush3.bf16.msra.mxu0 %v4816_v16 }
 0x651   : > { %v4944_v47 = vpop.eup %4943  ;;  %4485 = vmatpush3.bf16.xpose.msra.mxu1 %v1825_v42 }
 0x652   : > { %4605 = vmatprep.subr.msk.bf16.mxu1 %vm1044_vm0, %v1807_v50  ;;  %v1491_v51 = vsel %vm1134_vm1, %v4944_v47, 0.0  ;;  %v1797_v43 = vpop.permute.xlu0 %1796 }
 0x653   : > { %1492 = vadd.xlane.f32.xlu0 %v1491_v51 }
 0x655   : > { %v4946_v52 = vpop.eup %4945 }
 0x656   : > { %v1485_v56 = vsel %vm1134_vm1, %v4946_v52, 0.0  ;;  %v1801_v53 = vpop.permute.xlu0 %1800 }
 0x657   : > { %1486 = vadd.xlane.f32.xlu1 %v1485_v56 }
 0x659   : > { %v4948_v57 = vpop.eup %4947  ;;  %4487 = vmatpush3.bf16.xpose.msra.mxu1 %v1828_v55 }
 0x65a   : > { %4606 = vmatprep.subr.msk.bf16.mxu1 %vm1044_vm0, %v1809_v58  ;;  %v1494_v6 = vsel %vm1134_vm1, %v4948_v57, 0.0  ;;  %v1508_v30 = vpack.c.bf16 %v4948_v57, %v4944_v47  ;;  %v2196_v41 = vpop.permute.xlu0 %2195 }
 0x65b   : > { %1495 = vadd.xlane.f32.xlu1 %v1494_v6  ;;  %v2216_v2 = vsel %vm1044_vm0, %v2196_v41, 0 }
 0x661   : > { %4489 = vmatpush3.bf16.xpose.msra.mxu1 %v1831_v31 }
 0x672   : > { %v1442_v54 = vpop.xlane.xlu1 %1441 }
 0x673   : > { %v1454_v45 = vsub.f32 %v6279_v5, %v1442_v54  ;;  %v2200_v5 = vpop.permute.xlu0 %2199 }
 0x674   : > { %v2222_v14 = vsel %vm1044_vm0, %v2200_v5, 0 }
 0x675   : > { %v1467_v3 = vmul.f32 1.442695, %v1454_v45 }
 0x676   : > { %v1811_v7 = vpop.permute.xlu1 %1810 }
 0x677   : > { %4949 = vpow2.f32 %v1467_v3  ;;  %v1834_v48 = vsel %vm1044_vm0, %v1811_v7, 0  ;;  %4607 = vmatprep.subr.msk.bf16.mxu1 %vm1044_vm0, %v1811_v7  ;;  %v2188_v46 = vpop.permute.xlu0 %2187 }
 0x678   : > { %4491 = vmatpush3.bf16.xpose.msra.mxu1 %v1834_v48 }
 0x679   : > { %4608 = vmatprep.subr.msk.bf16.mxu1 %vm1044_vm0, %v2196_v41 }
 0x67a   : > { %v1799_v59 = vpop.permute.xlu1 %1798 }
 0x67b   : > { %v2192_v12 = vpop.permute.xlu0 %2191 }
 0x67e   : > { %v1803_v63 = vpop.permute.xlu1 %1802 }
 0x681   : > { %v4950_v49 = vpop.eup %4949 }
 0x682   : > { %v1488_v60 = vsel %vm1134_vm1, %v4950_v49, 0.0  ;;  %v1507_v61 = vpack.c.bf16 %v4950_v49, %v4946_v52  ;;  %v2198_v8 = vpop.permute.xlu1 %2197 }
 0x683   : > { %1489 = vadd.xlane.f32.xlu1 %v1488_v60  ;;  %v2219_v9 = vsel %vm1044_vm0, %v2198_v8, 0 }
 0x684   : > { %4456 = vmatprep.mubr.msk.bf16.mxu1 %vm1134_vm1, %v1507_v61 }
 0x685   : > { %4457 = vmatmul.mubr.msk.bf16.gmra.mrb[28].mxu1 %vm1134_vm1, %v1508_v30  ;;  %v4817_v30 = vld [vmem:[#allocation10] sm:$0xff]  }
 0x686   : > { %4492 = vmatprep.mubr.msk.bf16.mxu1 %vm1044_vm0, %v1797_v43  ;;  %v2202_v15 = vpop.permute.xlu1 %2201  ;;  %4472 = vmatprep.subr.bf16.mxu0 %v4817_v30 }
 0x687   : > { %v2225_v22 = vsel %vm1044_vm0, %v2202_v15, 0 }
 0x68a   : > { %v2190_v36 = vpop.permute.xlu1 %2189 }
 0x68d   : > { %4493 = vmatmul.mubr.msk.bf16.vlgmr.msra.gmra.mrb[32].mxu1 %vm1044_vm0, %v1799_v59 }
 0x68e   : > { %4529 = vmatpush3.bf16.xpose.msra.mxu1 %v2216_v2  ;;  %4496 = vmatprep.mubr.msk.bf16.mxu1 %vm1044_vm0, %v1801_v53  ;;  %v2194_v42 = vpop.permute.xlu1 %2193  ;;  %v4818_v2 = vld [vmem:[#allocation10 + $0x8] sm:$0xff]  }
 0x68f   : > { %4609 = vmatprep.subr.msk.bf16.mxu1 %vm1044_vm0, %v2198_v8 }
 0x695   : > { %4497 = vmatmul.mubr.msk.bf16.gmra.mrb[36].mxu1 %vm1044_vm0, %v1803_v63 }
 0x696   : > { %4531 = vmatpush3.bf16.xpose.msra.mxu1 %v2219_v9  ;;  %4536 = vmatprep.mubr.msk.bf16.mxu1 %vm1044_vm0, %v2188_v46 }
 0x697   : > { %4610 = vmatprep.subr.msk.bf16.mxu1 %vm1044_vm0, %v2200_v5  ;;  %v1185_v10 = vpop.xlane.xlu0 %1184 }
 0x698   : > { %4951 = vrcp.f32 %v1185_v10 }
 0x69b   : > { %v1188_v13 = vpop.xlane.xlu0 %1187 }
 0x69c   : > { %4953 = vrcp.f32 %v1188_v13 }
 0x69e   : > { %4533 = vmatpush3.bf16.xpose.msra.mxu1 %v2222_v14 }
 0x69f   : > { %4611 = vmatprep.subr.msk.bf16.mxu1 %vm1044_vm0, %v2202_v15  ;;  %v1191_v11 = vpop.xlane.xlu0 %1190 }
 0x6a0   : > { %4955 = vrcp.f32 %v1191_v11 }
 0x6a2   : > { %v4952_v17 = vpop.eup %4951 }
 0x6a3   : > { %v1197_v18 = vpop.xlane.xlu0 %1196  ;;  %v6376_v21 = vmul.f32 %v4952_v17, %v6249_v0 }
 0x6a4   : > { %4957 = vrcp.f32 %v1197_v18 }
 0x6a6   : > { %v4954_v24 = vpop.eup %4953  ;;  %4535 = vmatpush3.bf16.xpose.msra.mxu1 %v2225_v22 }
 0x6a7   : > { %v1203_v25 = vpop.xlane.xlu0 %1202  ;;  %v6380_v26 = vmul.f32 %v4954_v24, %v6253_v29 }
 0x6a8   : > { %4959 = vrcp.f32 %v1203_v25 }
 0x6a9   : > { %v1304_v27 = vpack.c.bf16 %v6380_v26, %v6376_v21 }
 0x6aa   : > { %v4956_v35 = vpop.eup %4955 }
 0x6ab   : > { %v6385_v0 = vmul.f32 %v4956_v35, %v6247_v20 }
 0x6ad   : > { %4537 = vmatmul.mubr.msk.bf16.vlgmr.msra.gmra.mrb[40].mxu1 %vm1044_vm0, %v2190_v36 }
 0x6ae   : > { %v4958_v37 = vpop.eup %4957  ;;  %4540 = vmatprep.mubr.msk.bf16.mxu1 %vm1044_vm0, %v2192_v12 }
 0x6af   : > { %v6390_v38 = vmul.f32 %v4958_v37, %v6257_v32 }
 0x6b2   : > { %v4960_v29 = vpop.eup %4959 }
 0x6b3   : > { %v6393_v40 = vmul.f32 %v4960_v29, %v6255_v23 }
 0x6b5   : > { %4541 = vmatmul.mubr.msk.bf16.gmra.mrb[44].mxu1 %vm1044_vm0, %v2194_v42 }
 0x6b6   : > { %2985 = vmatprep.mubr.bf16.mxu1 %v5585_v39 }
 0x6bf   : > { %v1194_v20 = vpop.xlane.xlu1 %1193 }
 0x6c0   : > { %4961 = vrcp.f32 %v1194_v20 }
 0x6c3   : > { %v1200_v47 = vpop.xlane.xlu1 %1199 }
 0x6c4   : > { %4963 = vrcp.f32 %v1200_v47 }
 0x6c7   : > { %v1206_v50 = vpop.xlane.xlu1 %1205 }
 0x6c8   : > { %4965 = vrcp.f32 %v1206_v50 }
 0x6ca   : > { %v4962_v51 = vpop.eup %4961 }
 0x6cb   : > { %v6398_v52 = vmul.f32 %v4962_v51, %v6251_v28 }
 0x6cd   : > { %v1305_v32 = vpack.c.bf16 %v6398_v52, %v6385_v0 }
 0x6ce   : > { %v4964_v23 = vpop.eup %4963 }
 0x6cf   : > { %v6403_v56 = vmul.f32 %v4964_v23, %v6261_v34 }
 0x6d1   : > { %v1306_v55 = vpack.c.bf16 %v6403_v56, %v6390_v38 }
 0x6d2   : > { %v4966_v57 = vpop.eup %4965 }
 0x6d3   : > { %v6408_v58 = vmul.f32 %v4966_v57, %v6259_v33 }
 0x6d4   : > { %v1481_v28 = vpop.xlane.xlu0 %1480 }
 0x6d5   : > { %v1307_v6 = vpack.c.bf16 %v6408_v58, %v6393_v40  ;;  %4967 = vrcp.f32 %v1481_v28 }
 0x6d7   : > { %v1478_v43 = vpop.xlane.xlu1 %1477 }
 0x6d8   : > { %v1475_v31 = vpop.xlane.xlu0 %1474  ;;  %4969 = vrcp.f32 %v1478_v43 }
 0x6dc   : > { %v1484_v53 = vpop.xlane.xlu0 %1483 }
 0x6dd   : > { %4971 = vrcp.f32 %v1484_v53 }
 0x6de   : > { %4973 = vrcp.f32 %v1475_v31 }
 0x6df   : > { %v4968_v34 = vpop.eup %4967 }
 0x6e0   : > { %v1493_v12 = vpop.xlane.xlu0 %1492 }
 0x6e1   : > { %4975 = vrcp.f32 %v1493_v12 }
 0x6e2   : > { %v4970_v45 = vpop.eup %4969 }
 0x6e4   : > { %v1487_v46 = vpop.xlane.xlu1 %1486 }
 0x6e5   : > { %4977 = vrcp.f32 %v1487_v46 }
 0x6e7   : > { %v4972_v7 = vpop.eup %4971 }
 0x6e8   : > { %v4974_v48 = vpop.eup %4973  ;;  %v1496_v8 = vpop.xlane.xlu1 %1495 }
 0x6e9   : > { %4979 = vrcp.f32 %v1496_v8 }
 0x6eb   : > { %v4976_v10 = vpop.eup %4975 }
 0x6ef   : > { %v4978_v14 = vpop.eup %4977 }
 0x6f3   : > { %v4980_v11 = vpop.eup %4979 }
 0x710   : > { %v1490_v9 = vpop.xlane.xlu1 %1489 }
 0x711   : > { %4981 = vrcp.f32 %v1490_v9 }
 0x71b   : > { %v4982_v18 = vpop.eup %4981 }
 0x723   : > { %v4454_v54 = vpop.f32.mrb[24].mxu1 }
 0x724   : > { %v1571_v3 = vpop.f32.mrb[25].mxu1  ;;  %v1604_v41 = vmul.f32 %v4968_v34, %v4454_v54 }
 0x725   : > { %v4455_v33 = vpop.f32.mrb[26].mxu1  ;;  %v1602_v60 = vmul.f32 %v4974_v48, %v1571_v3 }
 0x726   : > { %v1605_v49 = vmul.f32 %v4972_v7, %v4455_v33  ;;  %v1574_v59 = vpop.f32.mrb[27].mxu1 }
 0x727   : > { %v1603_v61 = vmul.f32 %v4970_v45, %v1574_v59 }
 0x728   : > { %v1611_v5 = vpack.c.bf16 %v1605_v49, %v1604_v41 }
 0x729   : > { %v1610_v63 = vpack.c.bf16 %v1603_v61, %v1602_v60 }
 0x72b   : > { %4464 = vmatprep.mubr.msk.bf16.mxu0 %vm1044_vm0, %v1610_v63 }
 0x72c   : > { %4465 = vmatmul.mubr.msk.bf16.vlgmr.msra.gmra.mrb[24].mxu0 %vm1044_vm0, %v1611_v5 }
 0x72d   : > { %4473 = vmatpush3.bf16.msra.mxu0 %v4817_v30 }
 0x72e   : > { %4474 = vmatprep.subr.bf16.mxu0 %v4818_v2 }
 0x731   : > { %4475 = vmatpush3.bf16.msra.mxu0 %v4818_v2 }
 0x758   : > { %v4458_v13 = vpop.f32.mrb[28].mxu1 }
 0x759   : > { %v1587_v15 = vpop.f32.mrb[29].mxu1  ;;  %v1608_v19 = vmul.f32 %v4976_v10, %v4458_v13 }
 0x75a   : > { %v4459_v17 = vpop.f32.mrb[30].mxu1  ;;  %v1606_v25 = vmul.f32 %v4978_v14, %v1587_v15 }
 0x75b   : > { %v1609_v22 = vmul.f32 %v4980_v11, %v4459_v17  ;;  %v1590_v24 = vpop.f32.mrb[31].mxu1 }
 0x75c   : > { %v1607_v16 = vmul.f32 %v4982_v18, %v1590_v24 }
 0x75d   : > { %v1613_v35 = vpack.c.bf16 %v1609_v22, %v1608_v19 }
 0x75e   : > { %v1612_v36 = vpack.c.bf16 %v1607_v16, %v1606_v25 }
 0x760   : > { %4468 = vmatprep.mubr.msk.bf16.mxu0 %vm1044_vm0, %v1612_v36  ;;  %v4494_v37 = vpop.f32.mrb[32].mxu1 }
 0x761   : > { %4469 = vmatmul.mubr.msk.bf16.gmra.mrb[28].mxu0 %vm1044_vm0, %v1613_v35  ;;  %v6416_v29 = vpop.f32.mrb[33].mxu1  ;;  %v1907_v42 = vsel %vm1134_vm1, %v4494_v37, -inf }
 0x762   : > { %1908 = vmax.xlane.f32.xlu0 %v1907_v42  ;;  %4476 = vmatprep.mubr.msk.bf16.mxu0 %vm1044_vm0, %v1304_v27  ;;  %v4495_v20 = vpop.f32.mrb[34].mxu1  ;;  %v1901_v51 = vsel %vm1134_vm1, %v6416_v29, -inf }
 0x763   : > { %v6423_v47 = vpop.f32.mrb[35].mxu1  ;;  %v1910_v50 = vsel %vm1134_vm1, %v4495_v20, -inf }
 0x764   : > { %1911 = vmax.xlane.f32.xlu1 %v1910_v50  ;;  %v1904_v23 = vsel %vm1134_vm1, %v6423_v47, -inf }
 0x766   : > { %1902 = vmax.xlane.f32.xlu0 %v1901_v51 }
 0x768   : > { %1905 = vmax.xlane.f32.xlu1 %v1904_v23  ;;  %v6430_v57 = vpop.f32.mrb[36].mxu1 }
 0x769   : > { %4477 = vmatmul.mubr.msk.bf16.vlgmr.msra.gmra.mrb[24].mxu0 %vm1044_vm0, %v1305_v32  ;;  %v6436_v21 = vpop.f32.mrb[37].mxu1  ;;  %v1919_v26 = vsel %vm1134_vm1, %v6430_v57, -inf }
 0x76a   : > { %1920 = vmax.xlane.f32.xlu0 %v1919_v26  ;;  %4480 = vmatprep.mubr.msk.bf16.mxu0 %vm1044_vm0, %v1306_v55  ;;  %v6444_v27 = vpop.f32.mrb[38].mxu1  ;;  %v1913_v0 = vsel %vm1134_vm1, %v6436_v21, -inf }
 0x76b   : > { %v6446_v30 = vpop.f32.mrb[39].mxu1  ;;  %v1922_v28 = vsel %vm1134_vm1, %v6444_v27, -inf }
 0x76c   : > { %v1916_v31 = vsel %vm1134_vm1, %v6446_v30, -inf }
 0x76e   : > { %1914 = vmax.xlane.f32.xlu0 %v1913_v0 }
 0x771   : > { %4481 = vmatmul.mubr.msk.bf16.gmra.mrb[28].mxu0 %vm1044_vm0, %v1307_v6 }
 0x779   : > { %1987 = vrot.lane.b32.xlu1 %v6125_v1, %s5587_s15 }
 0x77d   : > { %1989 = vrot.lane.b32.xlu1 %v6153_v4, %s5587_s15 }
 0x780   : > { %v6458_v38 = vpop.f32.mrb[40].mxu1 }
 0x781   : > { %v6460_v52 = vpop.f32.mrb[41].mxu1  ;;  %v2298_v43 = vsel %vm1134_vm1, %v6458_v38, -inf }
 0x782   : > { %v6462_v32 = vpop.f32.mrb[42].mxu1 }
 0x783   : > { %v6464_v56 = vpop.f32.mrb[43].mxu1  ;;  %v2301_v34 = vsel %vm1134_vm1, %v6462_v32, -inf }
 0x784   : > { %1985 = vrot.lane.b32.xlu0 %v6129_v44, %s5587_s15  ;;  %v2295_v54 = vsel %vm1134_vm1, %v6464_v56, -inf }
 0x788   : > { %v6468_v40 = vpop.f32.mrb[44].mxu1  ;;  %2376 = vrot.lane.b32.xlu0 %v6129_v44, %s5588_s3  ;;  %v2292_v44 = vsel %vm1134_vm1, %v6460_v52, -inf }
 0x789   : > { %v6472_v55 = vpop.f32.mrb[45].mxu1  ;;  %v2310_v45 = vsel %vm1134_vm1, %v6468_v40, -inf }
 0x78a   : > { %v6474_v58 = vpop.f32.mrb[46].mxu1  ;;  %v2304_v53 = vsel %vm1134_vm1, %v6472_v55, -inf }
 0x78b   : > { %v6476_v6 = vpop.f32.mrb[47].mxu1  ;;  %v2313_v3 = vsel %vm1134_vm1, %v6474_v58, -inf }
 0x78c   : > { %v2307_v7 = vsel %vm1134_vm1, %v6476_v6, -inf }
 0x7a1   : > { %1923 = vmax.xlane.f32.xlu1 %v1922_v28 }
 0x7a5   : > { %1917 = vmax.xlane.f32.xlu1 %v1916_v31 }
 0x7a7   : > { %2299 = vmax.xlane.f32.xlu0 %v2298_v43  ;;  %v4819_v43 = vld [vmem:[#allocation10 + $0x20] sm:$0xff]  }
 0x7ab   : > { %2293 = vmax.xlane.f32.xlu0 %v2292_v44 }
 0x7af   : > { %2305 = vmax.xlane.f32.xlu0 %v2304_v53 }
 0x7b6   : > { %1991 = vrot.lane.b32.xlu1 %v6149_v62, %s5587_s15 }
 0x7ba   : > { %2378 = vrot.lane.b32.xlu1 %v6125_v1, %s5588_s3 }
 0x7de   : > { %2302 = vmax.xlane.f32.xlu1 %v2301_v34 }
 0x7e2   : > { %2296 = vmax.xlane.f32.xlu1 %v2295_v54 }
 0x7e6   : > { %2311 = vmax.xlane.f32.xlu1 %v2310_v45 }
 0x7ea   : > { %2314 = vmax.xlane.f32.xlu1 %v2313_v3 }
 0x7ee   : > { %2308 = vmax.xlane.f32.xlu1 %v2307_v7 }
 0x7ef   : > { %v1909_v1 = vpop.xlane.xlu0 %1908 }
 0x7f0   : > { %v1927_v33 = vsub.f32 %v4494_v37, %v1909_v1 }
 0x7f1   : > { %v1912_v48 = vpop.xlane.xlu1 %1911 }
 0x7f2   : > { %v1937_v41 = vmul.f32 1.442695, %v1927_v33  ;;  %v1928_v49 = vsub.f32 %v4495_v20, %v1912_v48 }
 0x7f3   : > { %v1903_v59 = vpop.xlane.xlu0 %1902 }
 0x7f4   : > { %4983 = vpow2.f32 %v1937_v41  ;;  %v1939_v60 = vmul.f32 1.442695, %v1928_v49  ;;  %v1925_v61 = vsub.f32 %v6416_v29, %v1903_v59 }
 0x7f5   : > { %v1906_v5 = vpop.xlane.xlu1 %1905 }
 0x7f6   : > { %4985 = vpow2.f32 %v1939_v60  ;;  %v1933_v63 = vmul.f32 1.442695, %v1925_v61  ;;  %v1926_v2 = vsub.f32 %v6423_v47, %v1906_v5 }
 0x7f7   : > { %v1921_v46 = vpop.xlane.xlu0 %1920 }
 0x7f8   : > { %4987 = vpow2.f32 %v1933_v63  ;;  %v1935_v8 = vmul.f32 1.442695, %v1926_v2  ;;  %v1931_v12 = vsub.f32 %v6430_v57, %v1921_v46 }
 0x7f9   : > { %v1988_v11 = vpop.permute.xlu1 %1987 }
 0x7fa   : > { %4989 = vpow2.f32 %v1935_v8  ;;  %v1945_v9 = vmul.f32 1.442695, %v1931_v12 }
 0x7fb   : > { %v1915_v10 = vpop.xlane.xlu0 %1914 }
 0x7fc   : > { %v1929_v13 = vsub.f32 %v6436_v21, %v1915_v10  ;;  %4991 = vpow2.f32 %v1945_v9 }
 0x7fd   : > { %v1990_v35 = vpop.permute.xlu1 %1989 }
 0x7fe   : > { %v4984_v14 = vpop.eup %4983  ;;  %v1941_v15 = vmul.f32 1.442695, %v1929_v13 }
 0x7ff   : > { %v1986_v17 = vpop.permute.xlu0 %1985  ;;  %v1955_v18 = vsel %vm1134_vm1, %v4984_v14, 0.0 }
 0x800   : > { %v4986_v19 = vpop.eup %4985  ;;  %1956 = vadd.xlane.f32.xlu0 %v1955_v18  ;;  %4500 = vmatprep.subr.bf16.mxu0 %v1986_v17  ;;  %4993 = vpow2.f32 %v1941_v15 }
 0x801   : > { %v1982_v22 = vpack.c.bf16 %v4986_v19, %v4984_v14  ;;  %4501 = vmatpush3.bf16.msra.mxu0 %v1986_v17  ;;  %v1958_v29 = vsel %vm1134_vm1, %v4986_v19, 0.0 }
 0x802   : > { %v4988_v24 = vpop.eup %4987  ;;  %4502 = vmatprep.subr.bf16.mxu0 %v1988_v11 }
 0x803   : > { %v1949_v25 = vsel %vm1134_vm1, %v4988_v24, 0.0  ;;  %v6516_v57 = vpop.permute.xlu0 %2376 }
 0x804   : > { %v4990_v16 = vpop.eup %4989  ;;  %1950 = vadd.xlane.f32.xlu0 %v1949_v25 }
 0x805   : > { %4503 = vmatpush3.bf16.msra.mxu0 %v1988_v11  ;;  %v1952_v36 = vsel %vm1134_vm1, %v4990_v16, 0.0  ;;  %v1981_v37 = vpack.c.bf16 %v4990_v16, %v4988_v24 }
 0x806   : > { %1953 = vadd.xlane.f32.xlu1 %v1952_v36  ;;  %4504 = vmatprep.subr.bf16.mxu0 %v1990_v35  ;;  %v4992_v42 = vpop.eup %4991 }
 0x807   : > { %4508 = vmatprep.mubr.msk.bf16.mxu0 %vm1134_vm1, %v1981_v37  ;;  %v1967_v20 = vsel %vm1134_vm1, %v4992_v42, 0.0 }
 0x808   : > { %1959 = vadd.xlane.f32.xlu0 %v1958_v29 }
 0x809   : > { %4505 = vmatpush3.bf16.msra.mxu0 %v1990_v35 }
 0x80a   : > { %v4994_v47 = vpop.eup %4993 }
 0x80b   : > { %v1961_v50 = vsel %vm1134_vm1, %v4994_v47, 0.0 }
 0x80c   : > { %1968 = vadd.xlane.f32.xlu0 %v1967_v20 }
 0x810   : > { %1962 = vadd.xlane.f32.xlu0 %v1961_v50 }
 0x826   : > { %2380 = vrot.lane.b32.xlu0 %v6153_v4, %s5588_s3 }
 0x82e   : > { %v1924_v51 = vpop.xlane.xlu1 %1923 }
 0x82f   : > { %v1932_v23 = vsub.f32 %v6444_v27, %v1924_v51  ;;  %v4820_v27 = vld [vmem:[#allocation10 + $0x28] sm:$0xff]  }
 0x831   : > { %v1947_v21 = vmul.f32 1.442695, %v1932_v23 }
 0x832   : > { %v1918_v26 = vpop.xlane.xlu1 %1917 }
 0x833   : > { %4995 = vpow2.f32 %v1947_v21  ;;  %v1930_v0 = vsub.f32 %v6446_v30, %v1918_v26 }
 0x834   : > { %v2300_v28 = vpop.xlane.xlu0 %2299 }
 0x835   : > { %v1943_v31 = vmul.f32 1.442695, %v1930_v0  ;;  %v2318_v53 = vsub.f32 %v6458_v38, %v2300_v28 }
 0x836   : > { %v1992_v44 = vpop.permute.xlu1 %1991 }
 0x837   : > { %4997 = vpow2.f32 %v1943_v31  ;;  %4506 = vmatprep.subr.bf16.mxu0 %v1992_v44  ;;  %v2328_v54 = vmul.f32 1.442695, %v2318_v53 }
 0x838   : > { %v2294_v34 = vpop.xlane.xlu0 %2293  ;;  %4507 = vmatpush3.bf16.msra.mxu0 %v1992_v44 }
 0x839   : > { %v2316_v4 = vsub.f32 %v6460_v52, %v2294_v34  ;;  %4516 = vmatprep.subr.bf16.mxu0 %v4819_v43 }
 0x83a   : > { %v6537_v59 = vpop.permute.xlu1 %2378 }
 0x83b   : > { %v2324_v45 = vmul.f32 1.442695, %v2316_v4  ;;  %4509 = vmatmul.mubr.msk.bf16.vlgmr.msra.gmra.mrb[32].mxu0 %vm1134_vm1, %v1982_v22 }
 0x83c   : > { %4517 = vmatpush3.bf16.msra.mxu0 %v4819_v43  ;;  %v2306_v60 = vpop.xlane.xlu0 %2305 }
 0x83d   : > { %v4996_v30 = vpop.eup %4995  ;;  %4999 = vpow2.f32 %v2324_v45  ;;  %4518 = vmatprep.subr.bf16.mxu0 %v4820_v27  ;;  %v2320_v61 = vsub.f32 %v6472_v55, %v2306_v60 }
 0x83e   : > { %v1970_v3 = vsel %vm1134_vm1, %v4996_v30, 0.0  ;;  %v1984_v7 = vpack.c.bf16 %v4996_v30, %v4992_v42  ;;  %5001 = vpow2.f32 %v2328_v54 }
 0x83f   : > { %1971 = vadd.xlane.f32.xlu1 %v1970_v3  ;;  %v2332_v2 = vmul.f32 1.442695, %v2320_v61 }
 0x840   : > { %4519 = vmatpush3.bf16.msra.mxu0 %v4820_v27 }
 0x841   : > { %v4998_v38 = vpop.eup %4997  ;;  %4544 = vmatprep.subr.bf16.mxu0 %v6516_v57 }
 0x842   : > { %v1964_v52 = vsel %vm1134_vm1, %v4998_v38, 0.0  ;;  %v1983_v1 = vpack.c.bf16 %v4998_v38, %v4994_v47 }
 0x843   : > { %1965 = vadd.xlane.f32.xlu1 %v1964_v52 }
 0x844   : > { %4512 = vmatprep.mubr.msk.bf16.mxu0 %vm1134_vm1, %v1983_v1 }
 0x845   : > { %4513 = vmatmul.mubr.msk.bf16.gmra.mrb[36].mxu0 %vm1134_vm1, %v1984_v7 }
 0x847   : > { %v6527_v33 = vpop.eup %4999 }
 0x848   : > { %v2340_v48 = vsel %vm1134_vm1, %v6527_v33, 0.0  ;;  %v6531_v41 = vpop.eup %5001 }
 0x849   : > { %2341 = vadd.xlane.f32.xlu0 %v2340_v48  ;;  %v2346_v49 = vsel %vm1134_vm1, %v6531_v41, 0.0 }
 0x84d   : > { %2347 = vadd.xlane.f32.xlu0 %v2346_v49 }
 0x854   : > { %2382 = vrot.lane.b32.xlu1 %v6149_v62, %s5588_s3 }
 0x86b   : > { %v2303_v5 = vpop.xlane.xlu1 %2302 }
 0x86c   : > { %v2319_v63 = vsub.f32 %v6462_v32, %v2303_v5 }
 0x86e   : > { %v2330_v46 = vmul.f32 1.442695, %v2319_v63 }
 0x86f   : > { %v2297_v8 = vpop.xlane.xlu1 %2296 }
 0x870   : > { %5003 = vpow2.f32 %v2330_v46  ;;  %v2317_v12 = vsub.f32 %v6464_v56, %v2297_v8 }
 0x871   : > { %5005 = vpow2.f32 %v2332_v2 }
 0x872   : > { %v2326_v9 = vmul.f32 1.442695, %v2317_v12 }
 0x873   : > { %v2312_v10 = vpop.xlane.xlu1 %2311 }
 0x874   : > { %5007 = vpow2.f32 %v2326_v9  ;;  %v2322_v62 = vsub.f32 %v6468_v40, %v2312_v10 }
 0x876   : > { %v2336_v13 = vmul.f32 1.442695, %v2322_v62 }
 0x877   : > { %v2315_v14 = vpop.xlane.xlu1 %2314 }
 0x878   : > { %5009 = vpow2.f32 %v2336_v13  ;;  %v2323_v55 = vsub.f32 %v6474_v58, %v2315_v14  ;;  %v4821_v14 = vld [vmem:[#allocation10 + $0x30] sm:$0xff]  }
 0x87a   : > { %v6544_v15 = vpop.eup %5003  ;;  %v2338_v32 = vmul.f32 1.442695, %v2323_v55 }
 0x87b   : > { %v2373_v11 = vpack.c.bf16 %v6544_v15, %v6531_v41  ;;  %v2309_v17 = vpop.xlane.xlu1 %2308  ;;  %v2349_v56 = vsel %vm1134_vm1, %v6544_v15, 0.0  ;;  %v6550_v18 = vpop.eup %5005 }
 0x87c   : > { %5011 = vpow2.f32 %v2338_v32  ;;  %v2321_v40 = vsub.f32 %v6476_v6, %v2309_v17  ;;  %2350 = vadd.xlane.f32.xlu0 %v2349_v56  ;;  %v2352_v58 = vsel %vm1134_vm1, %v6550_v18, 0.0 }
 0x87e   : > { %v6553_v19 = vpop.eup %5007  ;;  %v2334_v22 = vmul.f32 1.442695, %v2321_v40 }
 0x87f   : > { %v2343_v24 = vsel %vm1134_vm1, %v6553_v19, 0.0  ;;  %v2372_v25 = vpack.c.bf16 %v6553_v19, %v6527_v33  ;;  %v4822_v33 = vld [vmem:[#allocation10 + $0x38] sm:$0xff]  }
 0x880   : > { %5013 = vpow2.f32 %v2334_v22  ;;  %2353 = vadd.xlane.f32.xlu0 %v2352_v58  ;;  %2344 = vadd.xlane.f32.xlu1 %v2343_v24 }
 0x882   : > { %v6561_v16 = vpop.eup %5009 }
 0x883   : > { %v2358_v6 = vsel %vm1134_vm1, %v6561_v16, 0.0 }
 0x884   : > { %2359 = vadd.xlane.f32.xlu0 %v2358_v6 }
 0x886   : > { %v6565_v35 = vpop.eup %5011 }
 0x887   : > { %v2375_v36 = vpack.c.bf16 %v6565_v35, %v6561_v16  ;;  %v2361_v20 = vsel %vm1134_vm1, %v6565_v35, 0.0 }
 0x88a   : > { %v6569_v37 = vpop.eup %5013 }
 0x88b   : > { %v2355_v29 = vsel %vm1134_vm1, %v6569_v37, 0.0  ;;  %v2374_v42 = vpack.c.bf16 %v6569_v37, %v6550_v18 }
 0x88c   : > { %2356 = vadd.xlane.f32.xlu1 %v2355_v29 }
 0x88d   : > { %v1957_v47 = vpop.xlane.xlu0 %1956 }
 0x88e   : > { %5015 = vrcp.f32 %v1957_v47 }
 0x890   : > { %2362 = vadd.xlane.f32.xlu1 %v2361_v20 }
 0x891   : > { %v1951_v50 = vpop.xlane.xlu0 %1950 }
 0x892   : > { %5017 = vrcp.f32 %v1951_v50 }
 0x893   : > { %v1954_v23 = vpop.xlane.xlu1 %1953 }
 0x895   : > { %v1960_v51 = vpop.xlane.xlu0 %1959 }
 0x896   : > { %5019 = vrcp.f32 %v1960_v51 }
 0x897   : > { %5021 = vrcp.f32 %v1954_v23 }
 0x898   : > { %v5016_v28 = vpop.eup %5015 }
 0x899   : > { %v1969_v21 = vpop.xlane.xlu0 %1968 }
 0x89a   : > { %5023 = vrcp.f32 %v1969_v21 }
 0x89c   : > { %v5018_v44 = vpop.eup %5017 }
 0x89d   : > { %v1963_v0 = vpop.xlane.xlu0 %1962 }
 0x89e   : > { %5025 = vrcp.f32 %v1963_v0 }
 0x8a0   : > { %v5020_v34 = vpop.eup %5019 }
 0x8a1   : > { %v5022_v27 = vpop.eup %5021  ;;  %v2381_v12 = vpop.permute.xlu0 %2380 }
 0x8a4   : > { %v5024_v1 = vpop.eup %5023 }
 0x8a8   : > { %v5026_v49 = vpop.eup %5025 }
 0x8cc   : > { %v1972_v26 = vpop.xlane.xlu1 %1971 }
 0x8cd   : > { %5027 = vrcp.f32 %v1972_v26 }
 0x8d0   : > { %v1966_v31 = vpop.xlane.xlu1 %1965 }
 0x8d1   : > { %5029 = vrcp.f32 %v1966_v31 }
 0x8d7   : > { %v5028_v61 = vpop.eup %5027 }
 0x8db   : > { %v5030_v63 = vpop.eup %5029 }
 0x90e   : > { %v4510_v43 = vpop.f32.mrb[32].mxu0 }
 0x90f   : > { %v2043_v53 = vpop.f32.mrb[33].mxu0  ;;  %v2076_v54 = vmul.f32 %v5016_v28, %v4510_v43 }
 0x910   : > { %v4511_v4 = vpop.f32.mrb[34].mxu0  ;;  %v2074_v3 = vmul.f32 %v5018_v44, %v2043_v53 }
 0x911   : > { %v2077_v45 = vmul.f32 %v5020_v34, %v4511_v4  ;;  %v2046_v30 = vpop.f32.mrb[35].mxu0  ;;  %v4823_v4 = vld [vmem:[#allocation16] ss:$16 sps:$4 sm:$0xff]  }
 0x912   : > { %v2075_v7 = vmul.f32 %v5022_v27, %v2046_v30  ;;  %v4825_v27 = vld [vmem:[#allocation16 + $0x4] ss:$16 sps:$4 sm:$0xff]  }
 0x913   : > { %v2083_v38 = vpack.c.bf16 %v2077_v45, %v2076_v54  ;;  %v4826_v54 = vld [vmem:[#allocation16 + $0x8] ss:$16 sps:$4 sm:$0xff]   ;;  %v4828_v45 = vld [vmem:[#allocation16 + $0xc] ss:$16 sps:$4 sm:$0xff]   ;;  %2953 = vmatprep.subr.bf16.mxu1 %v4825_v27 }
 0x914   : > { %v2082_v52 = vpack.c.bf16 %v2075_v7, %v2074_v3  ;;  %2954 = vmatpush1.bf16.msra.mxu1 %v4823_v4  ;;  %v6605_v3 = vld [vmem:[#allocation11] ss:$0 sm:$0xff]  ;;  %v4853_v4 = vld [vmem:[#allocation16 + $0xa0] ss:$16 sps:$4 sm:$0xff]  }
 0x915   : > { %v4856_v27 = vld [vmem:[#allocation16 + $0xa8] ss:$16 sps:$4 sm:$0xff]  }
 0x916   : > { %4520 = vmatprep.mubr.msk.bf16.mxu0 %vm1044_vm0, %v2082_v52 }
 0x917   : > { %4521 = vmatmul.mubr.msk.bf16.vlgmr.msra.gmra.mrb[24].mxu0 %vm1044_vm0, %v2083_v38  ;;  %v5127_v38 = vld [vmem:[%s6010_s1] sm:$0xff] }
 0x918   : > { %4545 = vmatpush3.bf16.msra.mxu0 %v6516_v57  ;;  %v4514_v48 = vpop.f32.mrb[36].mxu0  ;;  %v2383_v57 = vpop.permute.xlu1 %2382 }
 0x919   : > { %4546 = vmatprep.subr.bf16.mxu0 %v6537_v59  ;;  %v2059_v60 = vpop.f32.mrb[37].mxu0  ;;  %v2080_v2 = vmul.f32 %v5024_v1, %v4514_v48 }
 0x91a   : > { %v4515_v5 = vpop.f32.mrb[38].mxu0  ;;  %v2078_v9 = vmul.f32 %v5026_v49, %v2059_v60  ;;  %v5128_v60 = vld [vmem:[%s6010_s1 + $0x8] sm:$0xff] }
 0x91b   : > { %v2081_v46 = vmul.f32 %v5028_v61, %v4515_v5  ;;  %v2062_v8 = vpop.f32.mrb[39].mxu0 }
 0x91c   : > { %v2079_v10 = vmul.f32 %v5030_v63, %v2062_v8  ;;  %4547 = vmatpush3.bf16.msra.mxu0 %v6537_v59  ;;  %v2342_v59 = vpop.xlane.xlu0 %2341  ;;  %v2345_v41 = vpop.xlane.xlu1 %2344  ;;  %v5129_v63 = vld [vmem:[%s6010_s1 + $0x10] sm:$0xff] }
 0x91d   : > { %v2085_v62 = vpack.c.bf16 %v2081_v46, %v2080_v2  ;;  %4548 = vmatprep.subr.bf16.mxu0 %v2381_v12  ;;  %5031 = vrcp.f32 %v2342_v59  ;;  %v5131_v59 = vld [vmem:[%s6010_s1 + $0x20] sm:$0xff] }
 0x91e   : > { %v2084_v13 = vpack.c.bf16 %v2079_v10, %v2078_v9  ;;  %v5130_v9 = vld [vmem:[%s6010_s1 + $0x18] sm:$0xff] }
 0x920   : > { %4549 = vmatpush3.bf16.msra.mxu0 %v2381_v12  ;;  %4524 = vmatprep.mubr.msk.bf16.mxu0 %vm1044_vm0, %v2084_v13  ;;  %v2348_v55 = vpop.xlane.xlu0 %2347 }
 0x921   : > { %4550 = vmatprep.subr.bf16.mxu0 %v2383_v57  ;;  %4525 = vmatmul.mubr.msk.bf16.gmra.mrb[28].mxu0 %vm1044_vm0, %v2085_v62  ;;  %5033 = vrcp.f32 %v2348_v55 }
 0x922   : > { %4552 = vmatprep.mubr.msk.bf16.mxu0 %vm1134_vm1, %v2372_v25 }
 0x924   : > { %4551 = vmatpush3.bf16.msra.mxu0 %v2383_v57  ;;  %v2351_v32 = vpop.xlane.xlu0 %2350 }
 0x925   : > { %4560 = vmatprep.subr.bf16.mxu0 %v4821_v14  ;;  %5035 = vrcp.f32 %v2351_v32 }
 0x926   : > { %5037 = vrcp.f32 %v2345_v41  ;;  %v5132_v41 = vld [vmem:[%s6010_s1 + $0x28] sm:$0xff] }
 0x927   : > { %v5032_v18 = vpop.eup %5031 }
 0x928   : > { %v2354_v15 = vpop.xlane.xlu0 %2353 }
 0x929   : > { %4553 = vmatmul.mubr.msk.bf16.vlgmr.msra.gmra.mrb[40].mxu0 %vm1134_vm1, %v2373_v11  ;;  %v2357_v11 = vpop.xlane.xlu1 %2356  ;;  %5039 = vrcp.f32 %v2354_v15 }
 0x92a   : > { %4556 = vmatprep.mubr.msk.bf16.mxu0 %vm1134_vm1, %v2374_v42  ;;  %4561 = vmatpush3.bf16.msra.mxu0 %v4821_v14 }
 0x92b   : > { %4562 = vmatprep.subr.bf16.mxu0 %v4822_v33  ;;  %v5034_v19 = vpop.eup %5033 }
 0x92c   : > { %v2360_v17 = vpop.xlane.xlu0 %2359 }
 0x92d   : > { %v2363_v56 = vpop.xlane.xlu1 %2362  ;;  %5041 = vrcp.f32 %v2360_v17 }
 0x92e   : > { %4563 = vmatpush3.bf16.msra.mxu0 %v4822_v33  ;;  %5043 = vrcp.f32 %v2363_v56 }
 0x92f   : > { %5045 = vrcp.f32 %v2357_v11  ;;  %v5036_v58 = vpop.eup %5035  ;;  %3026 = vmatprep.subr.bf16.mxu0 %v4828_v45  ;;  %v4864_v45 = vld [vmem:[#allocation16 + $0xcc] ss:$16 sps:$4 sm:$0xff]  }
 0x930   : > { %v5038_v25 = vpop.eup %5037 }
 0x931   : > { %4557 = vmatmul.mubr.msk.bf16.gmra.mrb[44].mxu0 %vm1134_vm1, %v2375_v36 }
 0x933   : > { %v5040_v20 = vpop.eup %5039 }
 0x937   : > { %v5042_v50 = vpop.eup %5041 }
 0x938   : > { %v5044_v23 = vpop.eup %5043 }
 0x939   : > { %v5046_v26 = vpop.eup %5045 }
 0x9fc   : > { %v4554_v40 = vpop.f32.mrb[40].mxu0 }
 0x9fd   : > { %v2434_v22 = vpop.f32.mrb[41].mxu0  ;;  %v2467_v16 = vmul.f32 %v5034_v19, %v4554_v40  ;;  %v4834_v40 = vld [vmem:[#allocation16 + $0x2c] ss:$16 sps:$4 sm:$0xff]   ;;  %v4829_v19 = vld [vmem:[#allocation16 + $0x20] ss:$16 sps:$4 sm:$0xff]  }
 0x9fe   : > { %v4555_v24 = vpop.f32.mrb[42].mxu0  ;;  %v2465_v36 = vmul.f32 %v5032_v18, %v2434_v22  ;;  %v4831_v18 = vld [vmem:[#allocation16 + $0x24] ss:$16 sps:$4 sm:$0xff]   ;;  %v4832_v22 = vld [vmem:[#allocation16 + $0x28] ss:$16 sps:$4 sm:$0xff]  }
 0x9ff   : > { %v2468_v6 = vmul.f32 %v5036_v58, %v4555_v24  ;;  %v2437_v35 = vpop.f32.mrb[43].mxu0  ;;  %v5133_v58 = vld [vmem:[%s6010_s1 + $0x30] sm:$0xff]  ;;  %2955 = vmatprep.subr.bf16.mxu1 %v4831_v18 }
 0xa00   : > { %v2466_v37 = vmul.f32 %v5038_v25, %v2437_v35  ;;  %2956 = vmatpush1.bf16.msra.mxu1 %v4829_v19 }
 0xa01   : > { %v2474_v29 = vpack.c.bf16 %v2468_v6, %v2467_v16  ;;  %v5134_v16 = vld [vmem:[%s6010_s1 + $0x38] sm:$0xff]  ;;  %s5477_s1 = sshll.u32 %s5589_s18, 4  ;;  %s5478_s1 = int_to_ptr.vmem [resolvable:$false] %s5477_s1 }
 0xa02   : > { %v2473_v42 = vpack.c.bf16 %v2466_v37, %v2465_v36  ;;  %v4837_v36 = vld [vmem:[#allocation16 + $0x44] ss:$16 sps:$4 sm:$0xff]   ;;  %v4840_v37 = vld [vmem:[#allocation16 + $0x4c] ss:$16 sps:$4 sm:$0xff]   ;;  %s5479_s28 = scalar_lea.vmem %s5478_s1, 2048  ;;  %p5480_p12 = scmp.lt.s32.totalorder %s7100_s19, %s5478_s1 }
 0xa03   : > { %2957 = vmatprep.subr.bf16.mxu1 %v4837_v36  ;;  %p5481_p0 = scmp.lt.s32.totalorder %s5479_s28, %s5473_s27 }
 0xa04   : > { %v4558_v47 = vpop.f32.mrb[44].mxu0  ;;  %4564 = vmatprep.mubr.msk.bf16.mxu0 %vm1044_vm0, %v2473_v42  ;;  %v4838_v42 = vld [vmem:[#allocation16 + $0x48] ss:$16 sps:$4 sm:$0xff]  }
 0xa05   : > { %v2450_v51 = vpop.f32.mrb[45].mxu0  ;;  %4565 = vmatmul.mubr.msk.bf16.vlgmr.msra.gmra.mrb[24].mxu0 %vm1044_vm0, %v2474_v29  ;;  %v2471_v0 = vmul.f32 %v5042_v50, %v4558_v47  ;;  %v4835_v29 = vld [vmem:[#allocation16 + $0x40] ss:$16 sps:$4 sm:$0xff]   ;;  %v4843_v50 = vld [vmem:[#allocation16 + $0x64] ss:$16 sps:$4 sm:$0xff]   ;;  %p5482_p5 = por %p5481_p0, %p5480_p12 }
 0xa06   : > { %v4559_v21 = vpop.f32.mrb[46].mxu0  ;;  %v2469_v43 = vmul.f32 %v5040_v20, %v2450_v51  ;;  %3027 = vmatpush1.bf16.msra.mxu0 %v4826_v54  ;;  %2958 = vmatpush1.bf16.msra.mxu1 %v4835_v29  ;;  %v4846_v51 = vld [vmem:[#allocation16 + $0x6c] ss:$16 sps:$4 sm:$0xff]   ;;  %v4861_v54 = vld [vmem:[#allocation16 + $0xc4] ss:$16 sps:$4 sm:$0xff]  }
 0xa07   : > { %v2472_v28 = vmul.f32 %v5044_v23, %v4559_v21  ;;  %v2453_v31 = vpop.f32.mrb[47].mxu0  ;;  %3028 = vmatprep.subr.bf16.mxu0 %v4834_v40  ;;  %v4841_v23 = vld [vmem:[#allocation16 + $0x60] ss:$16 sps:$4 sm:$0xff]   ;;  %v4844_v21 = vld [vmem:[#allocation16 + $0x68] ss:$16 sps:$4 sm:$0xff]   ;;  %2959 = vmatprep.subr.bf16.mxu1 %v4843_v50  ;;  %p5483_p9 = pnand %p5482_p5, %p5476_p11 }
 0xa08   : > { %v2470_v44 = vmul.f32 %v5046_v26, %v2453_v31  ;;  %v4852_v31 = vld [vmem:[#allocation16 + $0x8c] ss:$16 sps:$4 sm:$0xff]  }
 0xa09   : > { %v2476_v53 = vpack.c.bf16 %v2472_v28, %v2471_v0  ;;  %v4849_v28 = vld [vmem:[#allocation16 + $0x84] ss:$16 sps:$4 sm:$0xff]  }
 0xa0a   : > { %v2475_v34 = vpack.c.bf16 %v2470_v44, %v2469_v43  ;;  %3029 = vmatpush1.bf16.msra.mxu0 %v4832_v22  ;;  %2960 = vmatpush1.bf16.msra.mxu1 %v4841_v23  ;;  %v4847_v43 = vld [vmem:[#allocation16 + $0x80] ss:$16 sps:$4 sm:$0xff]   ;;  %v4850_v44 = vld [vmem:[#allocation16 + $0x88] ss:$16 sps:$4 sm:$0xff]  }
 0xa0b   : > { %3030 = vmatprep.subr.bf16.mxu0 %v4840_v37  ;;  %2961 = vmatprep.subr.bf16.mxu1 %v4849_v28 }
 0xa0c   : > { %4568 = vmatprep.mubr.msk.bf16.mxu0 %vm1044_vm0, %v2475_v34  ;;  %v4858_v34 = vld [vmem:[#allocation16 + $0xac] ss:$16 sps:$4 sm:$0xff]  }
 0xa0d   : > { %4569 = vmatmul.mubr.msk.bf16.gmra.mrb[28].mxu0 %vm1044_vm0, %v2476_v53  ;;  %v4855_v53 = vld [vmem:[#allocation16 + $0xa4] ss:$16 sps:$4 sm:$0xff]  }
 0xa0e   : > { %3058 = vmatprep.mubr.bf16.mxu0 %v5585_v39  ;;  %3031 = vmatpush1.bf16.msra.mxu0 %v4838_v42 }
 0xa0f   : > { %3032 = vmatprep.subr.bf16.mxu0 %v4846_v51  ;;  %2962 = vmatpush1.bf16.msra.mxu1 %v4847_v43 }
 0xa10   : > { %2963 = vmatprep.subr.bf16.mxu1 %v4855_v53 }
 0xa12   : > { %3033 = vmatpush1.bf16.msra.mxu0 %v4844_v21 }
 0xa13   : > { %3034 = vmatprep.subr.bf16.mxu0 %v4852_v31  ;;  %2964 = vmatpush1.bf16.msra.mxu1 %v4853_v4 }
 0xa14   : > { %2965 = vmatprep.subr.bf16.mxu1 %v4861_v54 }
 0xa16   : > { %3035 = vmatpush1.bf16.msra.mxu0 %v4850_v44 }
 0xa17   : > { %3036 = vmatprep.subr.bf16.mxu0 %v4858_v34 }
 0xa1a   : > { %3037 = vmatpush1.bf16.msra.mxu0 %v4856_v27 }
 0xa1b   : > { %3038 = vmatprep.subr.bf16.mxu0 %v4864_v45 }
 0xad8   : > { %v4566_v30 = vpop.f32.mrb[24].mxu0 }
 0xad9   : > { %v2539_v7 = vpop.f32.mrb[25].mxu0  ;;  %v2580_v2 = vadd.f32 %v5129_v63, %v4566_v30  ;;  %v4859_v30 = vld [vmem:[#allocation16 + $0xc0] ss:$16 sps:$4 sm:$0xff]  }
 0xada   : > { %v2578_v52 = vadd.f32 %v5127_v38, %v2539_v7  ;;  %v4567_v1 = vpop.f32.mrb[26].mxu0  ;;  %2966 = vmatpush1.bf16.msra.mxu1 %v4859_v30  ;;  %v4867_v7 = vld [vmem:[#allocation16 + $0xe4] ss:$16 sps:$4 sm:$0xff]   ;;  %v4870_v38 = vld [vmem:[#allocation16 + $0xec] ss:$16 sps:$4 sm:$0xff]  }
 0xadb   : > { %v2542_v48 = vpop.f32.mrb[27].mxu0  ;;  %v2581_v10 = vadd.f32 %v5130_v9, %v4567_v1  ;;  %v6624_v14 = vadd.f32 %v6605_v3, %v2580_v2  ;;  %v4868_v1 = vld [vmem:[#allocation16 + $0xe8] ss:$16 sps:$4 sm:$0xff]   ;;  %2967 = vmatprep.subr.bf16.mxu1 %v4867_v7  ;;  %v6676_v7 = vld [vmem:[#allocation14] ss:$0 sm:$0xff] }
 0xadc   : > { %v6609_v49 = vadd.f32 %v6605_v3, %v2578_v52  ;;  %v2579_v61 = vadd.f32 %v5128_v60, %v2542_v48  ;;  %v4865_v52 = vld [vmem:[#allocation16 + $0xe0] ss:$16 sps:$4 sm:$0xff]  }
 0xadd   : > { %7219 = vst [vmem:[#allocation34_spill] sm:$0xff] %v6624_v14  ;;  %v6627_v33 = vadd.f32 %v6605_v3, %v2581_v10  ;;  %v2629_v32 = vmul.f32 %v6624_v14, %v6624_v14 }
 0xade   : > { %7217 = vst [vmem:[#allocation32_spill] sm:$0xff] %v6609_v49  ;;  %v6613_v5 = vadd.f32 %v6605_v3, %v2579_v61  ;;  %2603 = vadd.xlane.f32.xlu0 %v6609_v49  ;;  %v2627_v8 = vmul.f32 %v6609_v49, %v6609_v49  ;;  %2968 = vmatpush1.bf16.msra.mxu1 %v4865_v52 }
 0xadf   : > { %7220 = vst [vmem:[#allocation35_spill] sm:$0xff] %v6627_v33  ;;  %v2630_v11 = vmul.f32 %v6627_v33, %v6627_v33 }
 0xae0   : > { %7218 = vst [vmem:[#allocation33_spill] sm:$0xff] %v6613_v5  ;;  %2605 = vadd.xlane.f32.xlu1 %v6613_v5  ;;  %v4570_v46 = vpop.f32.mrb[28].mxu0  ;;  %v2628_v13 = vmul.f32 %v6613_v5, %v6613_v5 }
 0xae1   : > { %v2555_v12 = vpop.f32.mrb[29].mxu0  ;;  %v2584_v24 = vadd.f32 %v5133_v58, %v4570_v46 }
 0xae2   : > { %2635 = vadd.xlane.f32.xlu0 %v2627_v8  ;;  %v4571_v62 = vpop.f32.mrb[30].mxu0  ;;  %v2582_v55 = vadd.f32 %v5131_v59, %v2555_v12 }
 0xae3   : > { %v2558_v57 = vpop.f32.mrb[31].mxu0  ;;  %v2585_v6 = vadd.f32 %v5134_v16, %v4571_v62  ;;  %v6652_v20 = vadd.f32 %v6605_v3, %v2584_v24 }
 0xae4   : > { %2637 = vadd.xlane.f32.xlu1 %v2628_v13  ;;  %v2583_v15 = vadd.f32 %v5132_v41, %v2558_v57  ;;  %v6638_v17 = vadd.f32 %v6605_v3, %v2582_v55 }
 0xae5   : > { %7223 = vst [vmem:[#allocation38_spill] sm:$0xff] %v6652_v20  ;;  %v6655_v47 = vadd.f32 %v6605_v3, %v2585_v6  ;;  %v2633_v26 = vmul.f32 %v6652_v20, %v6652_v20 }
 0xae6   : > { %2607 = vadd.xlane.f32.xlu0 %v6624_v14  ;;  %7221 = vst [vmem:[#allocation36_spill] sm:$0xff] %v6638_v17  ;;  %v6641_v56 = vadd.f32 %v6605_v3, %v2583_v15  ;;  %v2631_v25 = vmul.f32 %v6638_v17, %v6638_v17  ;;  %v4862_v3 = vld [vmem:[#allocation16 + $0xc8] ss:$16 sps:$4 sm:$0xff]  }
 0xae7   : > { %7224 = vst [vmem:[#allocation39_spill] sm:$0xff] %v6655_v47  ;;  %v2634_v0 = vmul.f32 %v6655_v47, %v6655_v47  ;;  %3039 = vmatpush1.bf16.msra.mxu0 %v4862_v3 }
 0xae8   : > { %2609 = vadd.xlane.f32.xlu1 %v6627_v33  ;;  %7222 = vst [vmem:[#allocation37_spill] sm:$0xff] %v6641_v56  ;;  %v2632_v35 = vmul.f32 %v6641_v56, %v6641_v56  ;;  %3040 = vmatprep.subr.bf16.mxu0 %v4870_v38 }
 0xaea   : > { %2639 = vadd.xlane.f32.xlu0 %v2629_v32 }
 0xaeb   : > { %3041 = vmatpush1.bf16.msra.mxu0 %v4868_v1 }
 0xaec   : > { %2641 = vadd.xlane.f32.xlu1 %v2630_v11 }
 0xaee   : > { %2611 = vadd.xlane.f32.xlu0 %v6638_v17 }
 0xaf0   : > { %2613 = vadd.xlane.f32.xlu1 %v6641_v56 }
 0xaf2   : > { %2643 = vadd.xlane.f32.xlu0 %v2631_v25 }
 0xaf4   : > { %2645 = vadd.xlane.f32.xlu1 %v2632_v35 }
 0xaf6   : > { %2615 = vadd.xlane.f32.xlu0 %v6652_v20 }
 0xaf8   : > { %2617 = vadd.xlane.f32.xlu1 %v6655_v47 }
 0xafa   : > { %2647 = vadd.xlane.f32.xlu0 %v2633_v26  ;;  %v6670_v26 = vld [vmem:[#allocation13] ss:$0 sm:$0xff] }
 0xafc   : > { %2649 = vadd.xlane.f32.xlu1 %v2634_v0 }
 0xb6b   : > { %v2604_v48 = vpop.xlane.xlu0 %2603 }
 0xb6c   : > { %v2619_v60 = vmul.f32 0.0078125, %v2604_v48 }
 0xb6d   : > { %v2606_v61 = vpop.xlane.xlu1 %2605 }
 0xb6e   : > { %v2620_v63 = vmul.f32 0.0078125, %v2606_v61  ;;  %v2659_v46 = vmul.f32 %v2619_v60, %v2619_v60  ;;  %v2691_v29 = vsub.f32 %v6609_v49, %v2619_v60 }
 0xb6f   : > { %v2636_v2 = vpop.xlane.xlu0 %2635 }
 0xb70   : > { %v2651_v8 = vmul.f32 0.0078125, %v2636_v2  ;;  %v2660_v9 = vmul.f32 %v2620_v63, %v2620_v63  ;;  %v2692_v0 = vsub.f32 %v6613_v5, %v2620_v63 }
 0xb71   : > { %v2638_v12 = vpop.xlane.xlu1 %2637 }
 0xb72   : > { %v2667_v10 = vsub.f32 %v2651_v8, %v2659_v46  ;;  %v2652_v62 = vmul.f32 0.0078125, %v2638_v12 }
 0xb73   : > { %v2608_v13 = vpop.xlane.xlu0 %2607 }
 0xb74   : > { %v2675_v57 = vadd.f32 1e-05, %v2667_v10  ;;  %v2668_v59 = vsub.f32 %v2652_v62, %v2660_v9  ;;  %v2621_v55 = vmul.f32 0.0078125, %v2608_v13 }
 0xb75   : > { %v2610_v32 = vpop.xlane.xlu1 %2609 }
 0xb76   : > { %5047 = vrsqrt.f32 %v2675_v57  ;;  %v2676_v41 = vadd.f32 1e-05, %v2668_v59  ;;  %v2622_v15 = vmul.f32 0.0078125, %v2610_v32  ;;  %v2661_v18 = vmul.f32 %v2621_v55, %v2621_v55 }
 0xb77   : > { %v2640_v11 = vpop.xlane.xlu0 %2639  ;;  %v2693_v48 = vsub.f32 %v6624_v14, %v2621_v55 }
 0xb78   : > { %5049 = vrsqrt.f32 %v2676_v41  ;;  %v2653_v40 = vmul.f32 0.0078125, %v2640_v11  ;;  %v2662_v22 = vmul.f32 %v2622_v15, %v2622_v15  ;;  %v2694_v9 = vsub.f32 %v6627_v33, %v2622_v15 }
 0xb79   : > { %v2642_v19 = vpop.xlane.xlu1 %2641 }
 0xb7a   : > { %v2669_v58 = vsub.f32 %v2653_v40, %v2661_v18  ;;  %v2654_v24 = vmul.f32 0.0078125, %v2642_v19 }
 0xb7b   : > { %v2612_v25 = vpop.xlane.xlu0 %2611 }
 0xb7c   : > { %v2677_v16 = vadd.f32 1e-05, %v2669_v58  ;;  %v2670_v6 = vsub.f32 %v2654_v24, %v2662_v22  ;;  %v6663_v35 = vmul.f32 0.0078125, %v2612_v25 }
 0xb7d   : > { %v2614_v36 = vpop.xlane.xlu1 %2613 }
 0xb7e   : > { %5051 = vrsqrt.f32 %v2677_v16  ;;  %v2678_v37 = vadd.f32 1e-05, %v2670_v6  ;;  %v6666_v42 = vmul.f32 0.0078125, %v2614_v36  ;;  %v2663_v23 = vmul.f32 %v6663_v35, %v6663_v35 }
 0xb7f   : > { %v2644_v50 = vpop.xlane.xlu0 %2643  ;;  %v2695_v22 = vsub.f32 %v6638_v17, %v6663_v35 }
 0xb80   : > { %v5048_v51 = vpop.eup %5047  ;;  %5053 = vrsqrt.f32 %v2678_v37  ;;  %v2655_v21 = vmul.f32 0.0078125, %v2644_v50  ;;  %v2664_v44 = vmul.f32 %v6666_v42, %v6666_v42  ;;  %v2696_v16 = vsub.f32 %v6641_v56, %v6666_v42 }
 0xb81   : > { %v2699_v28 = vmul.f32 %v5048_v51, %v2691_v29  ;;  %v2646_v31 = vpop.xlane.xlu1 %2645 }
 0xb82   : > { %v5050_v43 = vpop.eup %5049  ;;  %v2671_v53 = vsub.f32 %v2655_v21, %v2663_v23  ;;  %v2656_v34 = vmul.f32 0.0078125, %v2646_v31 }
 0xb83   : > { %v2700_v4 = vmul.f32 %v5050_v43, %v2692_v0  ;;  %v2616_v27 = vpop.xlane.xlu0 %2615  ;;  %v2713_v54 = vmul.f32 %v6670_v26, %v2699_v28 }
 0xb84   : > { %v2679_v45 = vadd.f32 1e-05, %v2671_v53  ;;  %v2672_v30 = vsub.f32 %v2656_v34, %v2664_v44  ;;  %v2625_v3 = vmul.f32 0.0078125, %v2616_v27 }
 0xb85   : > { %v2618_v38 = vpop.xlane.xlu1 %2617  ;;  %v2714_v52 = vmul.f32 %v6670_v26, %v2700_v4  ;;  %v2727_v63 = vadd.f32 %v6676_v7, %v2713_v54 }
 0xb86   : > { %5055 = vrsqrt.f32 %v2679_v45  ;;  %v2680_v1 = vadd.f32 1e-05, %v2672_v30  ;;  %v2626_v60 = vmul.f32 0.0078125, %v2618_v38  ;;  %v2665_v8 = vmul.f32 %v2625_v3, %v2625_v3  ;;  %v4871_v45 = vld [vmem:[#allocation19 + $0x40] sm:$0xff]  }
 0xb87   : > { %v2648_v61 = vpop.xlane.xlu0 %2647  ;;  %v2728_v2 = vadd.f32 %v6676_v7, %v2714_v52  ;;  %v2697_v51 = vsub.f32 %v6652_v20, %v2625_v3  ;;  %v4872_v30 = vld [vmem:[#allocation19 + $0xc0] sm:$0xff]   ;;  %4292 = vmatprep.subr.bf16.mxu1 %v4871_v45  ;;  %v4875_v52 = vld [vmem:[#allocation19 + $0x48] sm:$0xff]  }
 0xb88   : > { %v5052_v46 = vpop.eup %5051  ;;  %5057 = vrsqrt.f32 %v2680_v1  ;;  %v2657_v12 = vmul.f32 0.0078125, %v2648_v61  ;;  %v2666_v59 = vmul.f32 %v2626_v60, %v2626_v60  ;;  %v2698_v0 = vsub.f32 %v6655_v47, %v2626_v60  ;;  %4332 = vmatprep.subr.bf16.mxu0 %v4872_v30  ;;  %v4873_v3 = vld [vmem:[#allocation19] sm:$0xff]   ;;  %v4876_v1 = vld [vmem:[#allocation19 + $0xc8] sm:$0xff]   ;;  %v4881_v60 = vld [vmem:[#allocation19 + $0x10] sm:$0xff]  }
 0xb89   : > { %v2650_v10 = vpop.xlane.xlu1 %2649  ;;  %v2735_v62 = vpack.c.bf16 %v2728_v2, %v2727_v63  ;;  %v2701_v13 = vmul.f32 %v5052_v46, %v2693_v48  ;;  %v4874_v38 = vld [vmem:[#allocation19 + $0x80] sm:$0xff]   ;;  %v4878_v48 = vld [vmem:[#allocation19 + $0x88] sm:$0xff]   ;;  %v4882_v61 = vld [vmem:[#allocation19 + $0x90] sm:$0xff]  }
 0xb8a   : > { %v5054_v57 = vpop.eup %5053  ;;  %v2673_v32 = vsub.f32 %v2657_v12, %v2665_v8  ;;  %v2658_v41 = vmul.f32 0.0078125, %v2650_v10  ;;  %v4883_v63 = vld [vmem:[#allocation19 + $0x58] sm:$0xff]   ;;  %v4887_v12 = vld [vmem:[#allocation19 + $0x60] sm:$0xff]  }
 0xb8b   : > { %2986 = vmatmul.mubr.bf16.vlgmr.msra.gmra.mrb[48].mxu1 %v2735_v62  ;;  %3059 = vmatmul.mubr.bf16.vlgmr.msra.gmra.mrb[48].mxu0 %v2735_v62  ;;  %v2702_v55 = vmul.f32 %v5054_v57, %v2694_v9  ;;  %v2715_v11 = vmul.f32 %v6670_v26, %v2701_v13  ;;  %v4884_v2 = vld [vmem:[#allocation19 + $0xd8] sm:$0xff]   ;;  %v4888_v9 = vld [vmem:[#allocation19 + $0xe0] sm:$0xff]   ;;  %v4891_v13 = vld [vmem:[#allocation19 + $0x68] sm:$0xff]  }
 0xb8c   : > { %v2681_v18 = vadd.f32 1e-05, %v2673_v32  ;;  %v2674_v40 = vsub.f32 %v2658_v41, %v2666_v59  ;;  %2995 = vmatprep.mubr.bf16.mxu1 %v5585_v39  ;;  %3068 = vmatprep.mubr.bf16.mxu0 %v5585_v39  ;;  %v4885_v46 = vld [vmem:[#allocation19 + $0x18] sm:$0xff]   ;;  %v4889_v10 = vld [vmem:[#allocation19 + $0x20] sm:$0xff]   ;;  %v4892_v57 = vld [vmem:[#allocation19 + $0xe8] sm:$0xff]  }
 0xb8d   : > { %v2716_v15 = vmul.f32 %v6670_v26, %v2702_v55  ;;  %v2729_v58 = vadd.f32 %v6676_v7, %v2715_v11  ;;  %4293 = vmatpush3.bf16.msra.mxu1 %v4873_v3  ;;  %4333 = vmatpush3.bf16.msra.mxu0 %v4874_v38  ;;  %v4886_v8 = vld [vmem:[#allocation19 + $0x98] sm:$0xff]   ;;  %v4890_v62 = vld [vmem:[#allocation19 + $0xa0] sm:$0xff]   ;;  %v4893_v59 = vld [vmem:[#allocation19 + $0x28] sm:$0xff]  }
 0xb8e   : > { %5059 = vrsqrt.f32 %v2681_v18  ;;  %v2682_v19 = vadd.f32 1e-05, %v2674_v40  ;;  %4294 = vmatprep.subr.bf16.mxu1 %v4875_v52  ;;  %4334 = vmatprep.subr.bf16.mxu0 %v4876_v1  ;;  %v4894_v32 = vld [vmem:[#allocation19 + $0xa8] sm:$0xff]   ;;  %v4895_v41 = vld [vmem:[#allocation19 + $0x70] sm:$0xff]   ;;  %v4899_v40 = vld [vmem:[#allocation19 + $0x78] sm:$0xff]  }
 0xb8f   : > { %v2730_v24 = vadd.f32 %v6676_v7, %v2716_v15  ;;  %v4896_v55 = vld [vmem:[#allocation19 + $0xf0] sm:$0xff]   ;;  %v4900_v15 = vld [vmem:[#allocation19 + $0xf8] sm:$0xff]  }
 0xb90   : > { %v5056_v25 = vpop.eup %5055  ;;  %5061 = vrsqrt.f32 %v2682_v19  ;;  %v4897_v11 = vld [vmem:[#allocation19 + $0x30] sm:$0xff]   ;;  %v4901_v19 = vld [vmem:[#allocation19 + $0x38] sm:$0xff]  }
 0xb91   : > { %v2736_v6 = vpack.c.bf16 %v2730_v24, %v2729_v58  ;;  %v2703_v36 = vmul.f32 %v5056_v25, %v2695_v22  ;;  %4335 = vmatpush3.bf16.msra.mxu0 %v4878_v48  ;;  %v4898_v18 = vld [vmem:[#allocation19 + $0xb0] sm:$0xff]   ;;  %v4902_v22 = vld [vmem:[#allocation19 + $0xb8] sm:$0xff]   ;;  %v2773_v58 = vlaneseq }
 0xb92   : > { %v5058_v37 = vpop.eup %5057 }
 0xb93   : > { %2996 = vmatmul.mubr.bf16.gmra.mrb[52].mxu1 %v2736_v6  ;;  %3069 = vmatmul.mubr.bf16.gmra.mrb[52].mxu0 %v2736_v6  ;;  %v2704_v29 = vmul.f32 %v5058_v37, %v2696_v16  ;;  %v2717_v50 = vmul.f32 %v6670_v26, %v2703_v36  ;;  %v2774_v24 = vshrl.u32 %v2773_v58, 7  ;;  %v2771_v6 = vld [vmem:[#allocation17] sm:$0xf] }
 0xb94   : > { %3005 = vmatprep.mubr.bf16.mxu1 %v5585_v39  ;;  %3078 = vmatprep.mubr.bf16.mxu0 %v5585_v39 }
 0xb95   : > { %v2718_v35 = vmul.f32 %v6670_v26, %v2704_v29  ;;  %v2731_v23 = vadd.f32 %v6676_v7, %v2717_v50  ;;  %v2775_v25 = vsub.s32 0, %v2774_v24  ;;  %v2783_v16 = vsub.s32 2, %v2774_v24 }
 0xb96   : > { %v2779_v36 = vsub.s32 1, %v2774_v24  ;;  %v2787_v37 = vsub.s32 3, %v2774_v24 }
 0xb97   : > { %v2732_v42 = vadd.f32 %v6676_v7, %v2718_v35  ;;  %v6707_v29 = vrot.slane %v2771_v6, %v2775_v25  ;;  %v6709_v50 = vrot.slane %v2771_v6, %v2783_v16 }
 0xb98   : > { %v5060_v21 = vpop.eup %5059  ;;  %v6711_v35 = vrot.slane %v2771_v6, %v2779_v36 }
 0xb99   : > { %v2737_v28 = vpack.c.bf16 %v2732_v42, %v2731_v23  ;;  %v2705_v31 = vmul.f32 %v5060_v21, %v2697_v51  ;;  %v6713_v51 = vrot.slane %v2771_v6, %v2787_v37 }
 0xb9a   : > { %v5062_v43 = vpop.eup %5061 }
 0xb9b   : > { %3006 = vmatmul.mubr.bf16.gmra.mrb[56].mxu1 %v2737_v28  ;;  %3079 = vmatmul.mubr.bf16.gmra.mrb[56].mxu0 %v2737_v28  ;;  %v2706_v44 = vmul.f32 %v5062_v43, %v2698_v0  ;;  %v2719_v53 = vmul.f32 %v6670_v26, %v2705_v31 }
 0xb9c   : > { %3015 = vmatprep.mubr.bf16.mxu1 %v5585_v39  ;;  %3088 = vmatprep.mubr.bf16.mxu0 %v5585_v39  ;;  %v4877_v39 = vld [vmem:[#allocation19 + $0x8] sm:$0xff]  }
 0xb9d   : > { %v2720_v34 = vmul.f32 %v6670_v26, %v2706_v44  ;;  %v2733_v4 = vadd.f32 %v6676_v7, %v2719_v53  ;;  %4295 = vmatpush3.bf16.msra.mxu1 %v4877_v39  ;;  %v4879_v26 = vld [vmem:[#allocation19 + $0x50] sm:$0xff]  }
 0xb9e   : > { %4296 = vmatprep.subr.bf16.mxu1 %v4879_v26 }
 0xb9f   : > { %v2734_v27 = vadd.f32 %v6676_v7, %v2720_v34  ;;  %v4880_v7 = vld [vmem:[#allocation19 + $0xd0] sm:$0xff]  }
 0xba0   : > { %4336 = vmatprep.subr.bf16.mxu0 %v4880_v7 }
 0xba1   : > { %v2738_v54 = vpack.c.bf16 %v2734_v27, %v2733_v4  ;;  %4297 = vmatpush3.bf16.msra.mxu1 %v4881_v60  ;;  %4337 = vmatpush3.bf16.msra.mxu0 %v4882_v61 }
 0xba2   : > { %4298 = vmatprep.subr.bf16.mxu1 %v4883_v63  ;;  %4338 = vmatprep.subr.bf16.mxu0 %v4884_v2 }
 0xba3   : > { %3016 = vmatmul.mubr.bf16.gmra.mrb[60].mxu1 %v2738_v54  ;;  %3089 = vmatmul.mubr.bf16.gmra.mrb[60].mxu0 %v2738_v54 }
 0xba5   : > { %4299 = vmatpush3.bf16.msra.mxu1 %v4885_v46  ;;  %4339 = vmatpush3.bf16.msra.mxu0 %v4886_v8 }
 0xba6   : > { %4300 = vmatprep.subr.bf16.mxu1 %v4887_v12  ;;  %4340 = vmatprep.subr.bf16.mxu0 %v4888_v9 }
 0xba9   : > { %4301 = vmatpush3.bf16.msra.mxu1 %v4889_v10  ;;  %4341 = vmatpush3.bf16.msra.mxu0 %v4890_v62 }
 0xbaa   : > { %4302 = vmatprep.subr.bf16.mxu1 %v4891_v13  ;;  %4342 = vmatprep.subr.bf16.mxu0 %v4892_v57 }
 0xbad   : > { %4303 = vmatpush3.bf16.msra.mxu1 %v4893_v59  ;;  %4343 = vmatpush3.bf16.msra.mxu0 %v4894_v32 }
 0xbae   : > { %4304 = vmatprep.subr.bf16.mxu1 %v4895_v41  ;;  %4344 = vmatprep.subr.bf16.mxu0 %v4896_v55 }
 0xbb1   : > { %4305 = vmatpush3.bf16.msra.mxu1 %v4897_v11  ;;  %4345 = vmatpush3.bf16.msra.mxu0 %v4898_v18 }
 0xbb2   : > { %4306 = vmatprep.subr.bf16.mxu1 %v4899_v40  ;;  %4346 = vmatprep.subr.bf16.mxu0 %v4900_v15 }
 0xbb5   : > { %4307 = vmatpush3.bf16.msra.mxu1 %v4901_v19  ;;  %4347 = vmatpush3.bf16.msra.mxu0 %v4902_v22 }
 0xc5e   : > { %v2987_v23 = vpop.f32.mrb[48].mxu1  ;;  %v3060_v42 = vpop.f32.mrb[48].mxu0 }
 0xc5f   : > { %v2988_v21 = vadd.f32 %v2987_v23, %v6707_v29  ;;  %v3061_v0 = vadd.f32 %v3060_v42, %v6709_v50  ;;  %v2989_v28 = vpop.f32.mrb[49].mxu1  ;;  %v3062_v31 = vpop.f32.mrb[49].mxu0 }
 0xc60   : > { %v6718_v43 = vadd.f32 %v2989_v28, %v6711_v35  ;;  %v6721_v44 = vadd.f32 %v3062_v31, %v6713_v51  ;;  %v2991_v53 = vpop.f32.mrb[50].mxu1  ;;  %v3064_v34 = vpop.f32.mrb[50].mxu0 }
 0xc61   : > { %v3131_v4 = vmul.f32 0.044715, %v2988_v21  ;;  %v3133_v27 = vmul.f32 0.044715, %v3061_v0  ;;  %v2992_v45 = vadd.f32 %v2991_v53, %v6707_v29  ;;  %v3065_v30 = vadd.f32 %v3064_v34, %v6709_v50  ;;  %v2993_v3 = vpop.f32.mrb[51].mxu1  ;;  %v3066_v38 = vpop.f32.mrb[51].mxu0 }
 0xc62   : > { %v3132_v54 = vmul.f32 0.044715, %v6718_v43  ;;  %v3134_v39 = vmul.f32 0.044715, %v6721_v44  ;;  %v6728_v48 = vadd.f32 %v2993_v3, %v6711_v35  ;;  %v6731_v63 = vadd.f32 %v3066_v38, %v6713_v51 }
 0xc63   : > { %v3163_v52 = vmul.f32 %v3131_v4, %v2988_v21  ;;  %v3165_v1 = vmul.f32 %v3133_v27, %v3061_v0  ;;  %v3135_v26 = vmul.f32 0.044715, %v2992_v45  ;;  %v3137_v61 = vmul.f32 0.044715, %v3065_v30 }
 0xc64   : > { %v3164_v2 = vmul.f32 %v3132_v54, %v6718_v43  ;;  %v3166_v10 = vmul.f32 %v3134_v39, %v6721_v44  ;;  %v3136_v13 = vmul.f32 0.044715, %v6728_v48  ;;  %v6742_v15 = vmul.f32 0.5, %v2988_v21 }
 0xc65   : > { %v3195_v7 = vmul.f32 %v3163_v52, %v2988_v21  ;;  %v3197_v60 = vmul.f32 %v3165_v1, %v3061_v0  ;;  %v3167_v46 = vmul.f32 %v3135_v26, %v2992_v45  ;;  %v3169_v62 = vmul.f32 %v3137_v61, %v3065_v30 }
 0xc66   : > { %v2997_v8 = vpop.f32.mrb[52].mxu1  ;;  %v3070_v12 = vpop.f32.mrb[52].mxu0  ;;  %v6744_v19 = vmul.f32 0.5, %v3061_v0  ;;  %v3138_v58 = vmul.f32 0.044715, %v6731_v63  ;;  %v6747_v6 = vmul.f32 0.5, %v2992_v45  ;;  %v6757_v31 = vmul.f32 %v3164_v2, %v6718_v43 }
 0xc67   : > { %v3227_v9 = vadd.f32 %v3195_v7, %v2988_v21  ;;  %v2999_v57 = vpop.f32.mrb[53].mxu1  ;;  %v3072_v59 = vpop.f32.mrb[53].mxu0  ;;  %v3229_v32 = vadd.f32 %v3197_v60, %v3061_v0  ;;  %v3199_v41 = vmul.f32 %v3167_v46, %v2992_v45  ;;  %v6737_v55 = vadd.f32 %v2997_v8, %v6707_v29 }
 0xc68   : > { %v6740_v11 = vadd.f32 %v3070_v12, %v6709_v50  ;;  %v3001_v18 = vpop.f32.mrb[54].mxu1  ;;  %v3074_v40 = vpop.f32.mrb[54].mxu0  ;;  %v3201_v22 = vmul.f32 %v3169_v62, %v3065_v30  ;;  %v6749_v37 = vmul.f32 0.5, %v3065_v30  ;;  %v6754_v21 = vadd.f32 %v2999_v57, %v6711_v35 }
 0xc69   : > { %v3003_v24 = vpop.f32.mrb[55].mxu1  ;;  %v3076_v25 = vpop.f32.mrb[55].mxu0  ;;  %v3259_v16 = vmul.f32 0.7978846, %v3227_v9  ;;  %v3231_v36 = vadd.f32 %v3199_v41, %v2992_v45  ;;  %v3139_v42 = vmul.f32 0.044715, %v6737_v55  ;;  %v6760_v53 = vmul.f32 %v3166_v10, %v6721_v44 }
 0xc6a   : > { %7225 = vst [vmem:[#allocation40_spill] sm:$0xff] %v6740_v11  ;;  %v3233_v23 = vadd.f32 %v3201_v22, %v3065_v30  ;;  %v3141_v28 = vmul.f32 0.044715, %v6740_v11  ;;  %v3261_v0 = vmul.f32 0.7978846, %v3229_v32  ;;  %v3168_v34 = vmul.f32 %v3136_v13, %v6728_v48 }
 0xc6b   : > { %v3170_v4 = vmul.f32 %v3138_v58, %v6731_v63  ;;  %v3140_v27 = vmul.f32 0.044715, %v6754_v21  ;;  %v6766_v54 = vadd.f32 %v3072_v59, %v6713_v51  ;;  %v6769_v45 = vadd.f32 %v3001_v18, %v6707_v29 }
 0xc6c   : > { %5063 = vtanh.f32 %v3259_v16  ;;  %v3263_v30 = vmul.f32 0.7978846, %v3231_v36  ;;  %v3265_v3 = vmul.f32 0.7978846, %v3233_v23  ;;  %v6772_v38 = vadd.f32 %v3074_v40, %v6709_v50 }
 0xc6d   : > { %7226 = vst [vmem:[#allocation41_spill] sm:$0xff] %v6769_v45  ;;  %v3171_v39 = vmul.f32 %v3139_v42, %v6737_v55  ;;  %v3173_v26 = vmul.f32 %v3141_v28, %v6740_v11  ;;  %v3142_v7 = vmul.f32 0.044715, %v6766_v54  ;;  %v3143_v60 = vmul.f32 0.044715, %v6769_v45 }
 0xc6e   : > { %7227 = vst [vmem:[#allocation42_spill] sm:$0xff] %v6772_v38  ;;  %v3007_v52 = vpop.f32.mrb[56].mxu1  ;;  %v3080_v1 = vpop.f32.mrb[56].mxu0  ;;  %v3172_v46 = vmul.f32 %v3140_v27, %v6754_v21  ;;  %v3145_v8 = vmul.f32 0.044715, %v6772_v38  ;;  %v6781_v12 = vadd.f32 %v3003_v24, %v6711_v35  ;;  %v6784_v9 = vadd.f32 %v3076_v25, %v6713_v51 }
 0xc6f   : > { %v3009_v61 = vpop.f32.mrb[57].mxu1  ;;  %v3082_v2 = vpop.f32.mrb[57].mxu0  ;;  %5065 = vtanh.f32 %v3261_v0  ;;  %v6787_v13 = vmul.f32 %v3168_v34, %v6728_v48  ;;  %v6790_v57 = vadd.f32 %v3007_v52, %v6707_v29  ;;  %v6793_v59 = vadd.f32 %v3080_v1, %v6709_v50 }
 0xc70   : > { %v3011_v10 = vpop.f32.mrb[58].mxu1  ;;  %v3084_v62 = vpop.f32.mrb[58].mxu0  ;;  %5067 = vtanh.f32 %v3263_v30  ;;  %v6796_v18 = vmul.f32 %v3170_v4, %v6731_v63  ;;  %v3174_v40 = vmul.f32 %v3142_v7, %v6766_v54  ;;  %v3144_v22 = vmul.f32 0.044715, %v6781_v12 }
 0xc71   : > { %v3013_v32 = vpop.f32.mrb[59].mxu1  ;;  %v3086_v41 = vpop.f32.mrb[59].mxu0  ;;  %v6801_v58 = vmul.f32 %v3171_v39, %v6737_v55  ;;  %v3175_v24 = vmul.f32 %v3143_v60, %v6769_v45  ;;  %v3146_v25 = vmul.f32 0.044715, %v6784_v9  ;;  %v6806_v16 = vadd.f32 %v3009_v61, %v6711_v35 }
 0xc72   : > { %5069 = vtanh.f32 %v3265_v3  ;;  %v6809_v36 = vmul.f32 %v3173_v26, %v6740_v11  ;;  %v6812_v23 = vmul.f32 %v3172_v46, %v6754_v21  ;;  %v3177_v42 = vmul.f32 %v3145_v8, %v6772_v38 }
 0xc73   : > { %7228 = vst [vmem:[#allocation43_spill] sm:$0xff] %v6801_v58  ;;  %v3147_v28 = vmul.f32 0.044715, %v6790_v57  ;;  %v3149_v0 = vmul.f32 0.044715, %v6793_v59  ;;  %v6818_v34 = vadd.f32 %v3082_v2, %v6713_v51  ;;  %v6821_v4 = vadd.f32 %v3011_v10, %v6707_v29 }
 0xc74   : > { %7229 = vst [vmem:[#allocation44_spill] sm:$0xff] %v6809_v36  ;;  %v6824_v27 = vmul.f32 %v3174_v40, %v6766_v54  ;;  %v3176_v30 = vmul.f32 %v3144_v22, %v6781_v12  ;;  %v3148_v3 = vmul.f32 0.044715, %v6806_v16  ;;  %v6829_v52 = vadd.f32 %v3084_v62, %v6709_v50 }
 0xc75   : > { %v6832_v26 = vmul.f32 %v3175_v24, %v6769_v45  ;;  %v3178_v7 = vmul.f32 %v3146_v25, %v6784_v9  ;;  %v3150_v60 = vmul.f32 0.044715, %v6818_v34  ;;  %v3151_v61 = vmul.f32 0.044715, %v6821_v4 }
 0xc76   : > { %v3017_v1 = vpop.f32.mrb[60].mxu1  ;;  %v3090_v39 = vpop.f32.mrb[60].mxu0  ;;  %v3153_v10 = vmul.f32 0.044715, %v6829_v52  ;;  %v6841_v62 = vadd.f32 %v3013_v32, %v6711_v35  ;;  %v6844_v40 = vadd.f32 %v3086_v41, %v6713_v51  ;;  %v6850_v47 = vmul.f32 %v3177_v42, %v6772_v38 }
 0xc77   : > { %7230 = vst [vmem:[#allocation45_spill] sm:$0xff] %v6832_v26  ;;  %v3019_v2 = vpop.f32.mrb[61].mxu1  ;;  %v3092_v46 = vpop.f32.mrb[61].mxu0  ;;  %v6847_v22 = vadd.f32 %v3017_v1, %v6707_v29  ;;  %v3179_v20 = vmul.f32 %v3147_v28, %v6790_v57  ;;  %v3181_v56 = vmul.f32 %v3149_v0, %v6793_v59  ;;  %v6855_v17 = vadd.f32 %v3090_v39, %v6709_v50 }
 0xc78   : > { %v6837_v8 = vpop.eup %5063  ;;  %v3021_v24 = vpop.f32.mrb[62].mxu1  ;;  %7231 = vst [vmem:[#allocation46_spill] sm:$0xff] %v6850_v47  ;;  %v6858_v41 = vmul.f32 %v3176_v30, %v6781_v12  ;;  %v3152_v1 = vmul.f32 0.044715, %v6841_v62  ;;  %v3154_v14 = vmul.f32 0.044715, %v6844_v40  ;;  %v6864_v49 = vmul.f32 %v3178_v7, %v6784_v9 }
 0xc79   : > { %v3094_v25 = vpop.f32.mrb[62].mxu0  ;;  %7232 = vst [vmem:[#allocation47_spill] sm:$0xff] %v6855_v17  ;;  %v3023_v32 = vpop.f32.mrb[63].mxu1  ;;  %v3155_v5 = vmul.f32 0.044715, %v6847_v22  ;;  %v3180_v28 = vmul.f32 %v3148_v3, %v6806_v16  ;;  %v6869_v39 = vadd.f32 %v3019_v2, %v6711_v35  ;;  %v3182_v30 = vmul.f32 %v3150_v60, %v6818_v34 }
 0xc7a   : > { %v3096_v33 = vpop.f32.mrb[63].mxu0  ;;  %v5066_v42 = vpop.eup %5065  ;;  %v3157_v0 = vmul.f32 0.044715, %v6855_v17  ;;  %v3183_v38 = vmul.f32 %v3151_v61, %v6821_v4  ;;  %v3185_v36 = vmul.f32 %v3153_v10, %v6829_v52  ;;  %v3184_v11 = vmul.f32 %v3152_v1, %v6841_v62 }
 0xc7b   : > { %v5068_v47 = vpop.eup %5067  ;;  %v3186_v26 = vmul.f32 %v3154_v14, %v6844_v40  ;;  %v3156_v7 = vmul.f32 0.044715, %v6869_v39  ;;  %v6878_v3 = vadd.f32 %v3092_v46, %v6713_v51  ;;  %v6881_v45 = vadd.f32 %v3021_v24, %v6707_v29 }
 0xc7c   : > { %v5070_v2 = vpop.eup %5069  ;;  %v6884_v58 = vmul.f32 %v3179_v20, %v6790_v57  ;;  %v6887_v60 = vmul.f32 %v3181_v56, %v6793_v59  ;;  %v3187_v61 = vmul.f32 %v3155_v5, %v6847_v22  ;;  %v6891_v10 = vadd.f32 %v3094_v25, %v6709_v50 }
 0xc7d   : > { %v6894_v14 = vmul.f32 %v3180_v28, %v6806_v16  ;;  %v3189_v46 = vmul.f32 %v3157_v0, %v6855_v17  ;;  %v3188_v29 = vmul.f32 %v3156_v7, %v6869_v39  ;;  %v3158_v24 = vmul.f32 0.044715, %v6878_v3 }
 0xc7e   : > { %v6900_v20 = vmul.f32 %v3182_v30, %v6818_v34  ;;  %v6903_v56 = vmul.f32 %v3183_v38, %v6821_v4  ;;  %v3159_v5 = vmul.f32 0.044715, %v6881_v45  ;;  %v3161_v50 = vmul.f32 0.044715, %v6891_v10 }
 0xc7f   : > { %v6908_v25 = vmul.f32 %v3185_v36, %v6829_v52  ;;  %v6911_v1 = vmul.f32 %v3184_v11, %v6841_v62  ;;  %v6914_v28 = vmul.f32 %v3186_v26, %v6844_v40  ;;  %v6917_v0 = vadd.f32 %v3023_v32, %v6711_v35 }
 0xc80   : > { %v6920_v30 = vmul.f32 %v3187_v61, %v6847_v22  ;;  %v3190_v38 = vmul.f32 %v3158_v24, %v6878_v3  ;;  %v6924_v7 = vadd.f32 %v3096_v33, %v6713_v51  ;;  %v3228_v36 = vadd.f32 %v6757_v31, %v6718_v43 }
 0xc81   : > { %v6929_v11 = vmul.f32 %v3189_v46, %v6855_v17  ;;  %v6932_v26 = vmul.f32 %v3188_v29, %v6869_v39  ;;  %v6935_v35 = vmul.f32 0.5, %v6718_v43  ;;  %v3232_v32 = vadd.f32 %v6787_v13, %v6728_v48 }
 0xc82   : > { %v3191_v61 = vmul.f32 %v3159_v5, %v6881_v45  ;;  %v3193_v33 = vmul.f32 %v3161_v50, %v6891_v10  ;;  %v6942_v51 = vmul.f32 0.5, %v6728_v48  ;;  %v3260_v31 = vmul.f32 0.7978846, %v3228_v36 }
 0xc83   : > { %7233 = vst [vmem:[#allocation48_spill] sm:$0xff] %v6929_v11  ;;  %v3160_v46 = vmul.f32 0.044715, %v6917_v0  ;;  %v3264_v24 = vmul.f32 0.7978846, %v3232_v32  ;;  %v3230_v29 = vadd.f32 %v6760_v53, %v6721_v44  ;;  %v3234_v43 = vadd.f32 %v6796_v18, %v6731_v63 }
 0xc84   : > { %v6950_v11 = vmul.f32 %v3190_v38, %v6878_v3  ;;  %v3162_v13 = vmul.f32 0.044715, %v6924_v7  ;;  %5071 = vtanh.f32 %v3260_v31  ;;  %v3323_v5 = vadd.f32 1.0, %v6837_v8 }
 0xc85   : > { %5073 = vtanh.f32 %v3264_v24  ;;  %v3262_v48 = vmul.f32 0.7978846, %v3230_v29  ;;  %v3266_v50 = vmul.f32 0.7978846, %v3234_v43  ;;  %v3327_v36 = vadd.f32 1.0, %v5068_v47 }
 0xc86   : > { %v6955_v32 = vmul.f32 %v3191_v61, %v6881_v45  ;;  %v6958_v53 = vmul.f32 0.5, %v6721_v44  ;;  %v3325_v17 = vadd.f32 1.0, %v5066_v42  ;;  %v3329_v18 = vadd.f32 1.0, %v5070_v2 }
 0xc87   : > { %5075 = vtanh.f32 %v3262_v48  ;;  %v6961_v38 = vmul.f32 %v3323_v5, %v6742_v15  ;;  %v6964_v31 = vmul.f32 %v3327_v36, %v6747_v6  ;;  %v3236_v8 = vadd.f32 %v6812_v23, %v6754_v21  ;;  %v7235_v5 = vld [vmem:[#allocation41_spill] sm:$0xff]  ;;  %v7237_v36 = vld [vmem:[#allocation40_spill] sm:$0xff] }
 0xc88   : > { %5077 = vtanh.f32 %v3266_v50  ;;  %v6969_v47 = vmul.f32 %v3325_v17, %v6744_v19  ;;  %v6972_v61 = vmul.f32 %v3329_v18, %v6749_v37  ;;  %v3240_v44 = vadd.f32 %v6858_v41, %v6781_v12  ;;  %v7236_v48 = vld [vmem:[#allocation45_spill] sm:$0xff]  ;;  %v7238_v18 = vld [vmem:[#allocation44_spill] sm:$0xff] }
 0xc89   : > { %v3192_v42 = vmul.f32 %v3160_v46, %v6917_v0  ;;  %v3194_v15 = vmul.f32 %v3162_v13, %v6924_v7  ;;  %v3387_v6 = vpack.c.bf16 %v6964_v31, %v6961_v38  ;;  %v3268_v2 = vmul.f32 0.7978846, %v3236_v8  ;;  %v7234_v46 = vld [vmem:[#allocation43_spill] sm:$0xff] }
 0xc8a   : > { %v3389_v23 = vpack.c.bf16 %v6972_v61, %v6969_v47  ;;  %v3272_v24 = vmul.f32 0.7978846, %v3240_v44  ;;  %v3238_v17 = vadd.f32 %v6824_v27, %v6766_v54  ;;  %v3242_v19 = vadd.f32 %v6864_v49, %v6784_v9  ;;  %v7239_v44 = vld [vmem:[#allocation42_spill] sm:$0xff] }
 0xc8b   : > { %v6987_v37 = vmul.f32 %v3193_v33, %v6891_v10  ;;  %v3106_v41 = vmul.f32 0.5, %v6731_v63  ;;  %5079 = vtanh.f32 %v3268_v2  ;;  %v3235_v29 = vadd.f32 %v7234_v46, %v6737_v55  ;;  %v7240_v2 = vld [vmem:[#allocation46_spill] sm:$0xff] }
 0xc8c   : > { %5081 = vtanh.f32 %v3272_v24  ;;  %v3270_v43 = vmul.f32 0.7978846, %v3238_v17  ;;  %v3274_v13 = vmul.f32 0.7978846, %v3242_v19  ;;  %v3239_v50 = vadd.f32 %v7236_v48, %v7235_v5 }
 0xc8d   : > { %v6995_v27 = vmul.f32 %v3192_v42, %v6917_v0  ;;  %v6998_v49 = vmul.f32 %v3194_v15, %v6924_v7  ;;  %v3267_v33 = vmul.f32 0.7978846, %v3235_v29  ;;  %v3237_v63 = vadd.f32 %v7238_v18, %v7237_v36 }
 0xc8e   : > { %v5072_v38 = vpop.eup %5071  ;;  %v3108_v31 = vmul.f32 0.5, %v6754_v21  ;;  %5083 = vtanh.f32 %v3270_v43  ;;  %v3271_v8 = vmul.f32 0.7978846, %v3239_v50  ;;  %v3241_v24 = vadd.f32 %v7240_v2, %v7239_v44 }
 0xc8f   : > { %v5074_v17 = vpop.eup %5073  ;;  %v3324_v19 = vadd.f32 1.0, %v5072_v38  ;;  %v3112_v42 = vmul.f32 0.5, %v6781_v12  ;;  %5085 = vtanh.f32 %v3274_v13  ;;  %v3269_v46 = vmul.f32 0.7978846, %v3237_v63 }
 0xc90   : > { %v3328_v15 = vadd.f32 1.0, %v5074_v17  ;;  %5087 = vtanh.f32 %v3267_v33  ;;  %v3273_v29 = vmul.f32 0.7978846, %v3241_v24  ;;  %v3244_v48 = vadd.f32 %v6894_v14, %v6806_v16 }
 0xc91   : > { %v5076_v18 = vpop.eup %5075  ;;  %v3356_v21 = vmul.f32 %v3324_v19, %v6935_v35  ;;  %v3110_v43 = vmul.f32 0.5, %v6766_v54  ;;  %5089 = vtanh.f32 %v3271_v8  ;;  %v3248_v50 = vadd.f32 %v6911_v1, %v6841_v62 }
 0xc92   : > { %v5078_v38 = vpop.eup %5077  ;;  %v3360_v12 = vmul.f32 %v3328_v15, %v6942_v51  ;;  %v3326_v13 = vadd.f32 1.0, %v5076_v18  ;;  %5091 = vtanh.f32 %v3269_v46  ;;  %v3276_v63 = vmul.f32 0.7978846, %v3244_v48 }
 0xc93   : > { %v3330_v33 = vadd.f32 1.0, %v5078_v38  ;;  %v3114_v2 = vmul.f32 0.5, %v6784_v9  ;;  %5093 = vtanh.f32 %v3273_v29  ;;  %v3280_v14 = vmul.f32 0.7978846, %v3248_v50 }
 0xc94   : > { %v3388_v24 = vpack.c.bf16 %v3360_v12, %v3356_v21  ;;  %v3107_v35 = vmul.f32 0.5, %v6737_v55  ;;  %5095 = vtanh.f32 %v3276_v63  ;;  %v3246_v54 = vadd.f32 %v6900_v20, %v6818_v34 }
 0xc95   : > { %v5080_v8 = vpop.eup %5079  ;;  %v3358_v1 = vmul.f32 %v3326_v13, %v6958_v53  ;;  %v3362_v17 = vmul.f32 %v3330_v33, %v3106_v41  ;;  %5097 = vtanh.f32 %v3280_v14  ;;  %v3250_v51 = vadd.f32 %v6914_v28, %v6844_v40 }
 0xc96   : > { %v5082_v19 = vpop.eup %5081  ;;  %3698 = vmatprep.mubr.bf16.mxu1 %v3388_v24  ;;  %v3332_v9 = vadd.f32 1.0, %v5080_v8  ;;  %v3111_v46 = vmul.f32 0.5, %v7235_v5  ;;  %v3278_v15 = vmul.f32 0.7978846, %v3246_v54  ;;  %v3243_v55 = vadd.f32 %v6884_v58, %v6790_v57 }
 0xc97   : > { %v3390_v29 = vpack.c.bf16 %v3362_v17, %v3358_v1  ;;  %3699 = vmatmul.mubr.bf16.vlgmr.msra.gmra.mrb[64].mxu1 %v3387_v6  ;;  %v3336_v20 = vadd.f32 1.0, %v5082_v19  ;;  %v3282_v48 = vmul.f32 0.7978846, %v3250_v51  ;;  %v3247_v53 = vadd.f32 %v6903_v56, %v6821_v4 }
 0xc98   : > { %v5084_v41 = vpop.eup %5083  ;;  %v3364_v18 = vmul.f32 %v3332_v9, %v3108_v31  ;;  %v3109_v28 = vmul.f32 0.5, %v7237_v36  ;;  %5099 = vtanh.f32 %v3278_v15  ;;  %v3275_v21 = vmul.f32 0.7978846, %v3243_v55 }
 0xc99   : > { %v5086_v50 = vpop.eup %5085  ;;  %3763 = vmatprep.mubr.bf16.mxu0 %v3390_v29  ;;  %v3368_v5 = vmul.f32 %v3336_v20, %v3112_v42  ;;  %v3334_v38 = vadd.f32 1.0, %v5084_v41  ;;  %5101 = vtanh.f32 %v3282_v48  ;;  %v3279_v12 = vmul.f32 0.7978846, %v3247_v53 }
 0xc9a   : > { %v5088_v58 = vpop.eup %5087  ;;  %3764 = vmatmul.mubr.bf16.vlgmr.msra.gmra.mrb[64].mxu0 %v3389_v23  ;;  %v3338_v6 = vadd.f32 1.0, %v5086_v50  ;;  %v3113_v56 = vmul.f32 0.5, %v7239_v44  ;;  %5103 = vtanh.f32 %v3275_v21  ;;  %v3245_v36 = vadd.f32 %v6887_v60, %v6793_v59 }
 0xc9b   : > { %v5090_v31 = vpop.eup %5089  ;;  %v3392_v13 = vpack.c.bf16 %v3368_v5, %v3364_v18  ;;  %v3366_v63 = vmul.f32 %v3334_v38, %v3110_v43  ;;  %v3331_v33 = vadd.f32 1.0, %v5088_v58  ;;  %5105 = vtanh.f32 %v3279_v12 }
 0xc9c   : > { %v5092_v42 = vpop.eup %5091  ;;  %v3370_v14 = vmul.f32 %v3338_v6, %v3114_v2  ;;  %v3335_v24 = vadd.f32 1.0, %v5090_v31  ;;  %v3249_v54 = vadd.f32 %v6908_v25, %v6829_v52  ;;  %v3277_v47 = vmul.f32 0.7978846, %v3245_v36 }
 0xc9d   : > { %v5094_v61 = vpop.eup %5093  ;;  %3706 = vmatprep.mubr.bf16.mxu1 %v3392_v13  ;;  %v3363_v23 = vmul.f32 %v3331_v33, %v3107_v35  ;;  %v3333_v44 = vadd.f32 1.0, %v5092_v42  ;;  %v3116_v8 = vmul.f32 0.5, %v6806_v16  ;;  %v3120_v60 = vmul.f32 0.5, %v6841_v62 }
 0xc9e   : > { %v5096_v1 = vpop.eup %5095  ;;  %v3394_v17 = vpack.c.bf16 %v3370_v14, %v3366_v63  ;;  %v3367_v43 = vmul.f32 %v3335_v24, %v3111_v46  ;;  %v3337_v51 = vadd.f32 1.0, %v5094_v61  ;;  %v3281_v19 = vmul.f32 0.7978846, %v3249_v54  ;;  %v7241_v54 = vld [vmem:[#allocation47_spill] sm:$0xff] }
 0xc9f   : > { %v5098_v9 = vpop.eup %5097  ;;  %v3365_v2 = vmul.f32 %v3333_v44, %v3109_v28  ;;  %v3340_v15 = vadd.f32 1.0, %v5096_v1  ;;  %5107 = vtanh.f32 %v3277_v47  ;;  %v3252_v25 = vadd.f32 %v6932_v26, %v6869_v39  ;;  %v7242_v47 = vld [vmem:[#allocation48_spill] sm:$0xff] }
 0xca0   : > { %3771 = vmatprep.mubr.bf16.mxu0 %v3394_v17  ;;  %v3391_v55 = vpack.c.bf16 %v3367_v43, %v3363_v23  ;;  %v3369_v35 = vmul.f32 %v3337_v51, %v3113_v56  ;;  %v3344_v29 = vadd.f32 1.0, %v5098_v9  ;;  %5109 = vtanh.f32 %v3281_v19 }
 0xca1   : > { %v3118_v16 = vmul.f32 0.5, %v6818_v34  ;;  %v3122_v62 = vmul.f32 0.5, %v6844_v40  ;;  %v3256_v46 = vadd.f32 %v6995_v27, %v6917_v0  ;;  %v3284_v20 = vmul.f32 0.7978846, %v3252_v25 }
 0xca2   : > { %v5100_v48 = vpop.eup %5099  ;;  %3707 = vmatmul.mubr.bf16.gmra.mrb[68].mxu1 %v3391_v55  ;;  %v3393_v53 = vpack.c.bf16 %v3369_v35, %v3365_v2  ;;  %v3372_v41 = vmul.f32 %v3340_v15, %v3116_v8  ;;  %v3376_v18 = vmul.f32 %v3344_v29, %v3120_v60  ;;  %v3254_v26 = vadd.f32 %v6950_v11, %v6878_v3 }
 0xca3   : > { %v5102_v28 = vpop.eup %5101  ;;  %v3342_v21 = vadd.f32 1.0, %v5100_v48  ;;  %v3288_v50 = vmul.f32 0.7978846, %v3256_v46  ;;  %5111 = vtanh.f32 %v3284_v20  ;;  %v3258_v34 = vadd.f32 %v6998_v49, %v6924_v7 }
 0xca4   : > { %v5104_v40 = vpop.eup %5103  ;;  %3772 = vmatmul.mubr.bf16.gmra.mrb[68].mxu0 %v3393_v53  ;;  %v3396_v5 = vpack.c.bf16 %v3376_v18, %v3372_v41  ;;  %v3346_v27 = vadd.f32 1.0, %v5102_v28  ;;  %v3115_v38 = vmul.f32 0.5, %v6790_v57  ;;  %v3286_v12 = vmul.f32 0.7978846, %v3254_v26 }
 0xca5   : > { %v5106_v58 = vpop.eup %5105  ;;  %v3119_v6 = vmul.f32 0.5, %v6821_v4  ;;  %v3339_v56 = vadd.f32 1.0, %v5104_v40  ;;  %5113 = vtanh.f32 %v3288_v50  ;;  %v3290_v11 = vmul.f32 0.7978846, %v3258_v34 }
 0xca6   : > { %3714 = vmatprep.mubr.bf16.mxu1 %v3396_v5  ;;  %v3374_v36 = vmul.f32 %v3342_v21, %v3118_v16  ;;  %v3378_v31 = vmul.f32 %v3346_v27, %v3122_v62  ;;  %v3343_v13 = vadd.f32 1.0, %v5106_v58  ;;  %5115 = vtanh.f32 %v3286_v12 }
 0xca7   : > { %5117 = vtanh.f32 %v3290_v11  ;;  %v3251_v49 = vadd.f32 %v6920_v30, %v6847_v22  ;;  %v3255_v63 = vadd.f32 %v6955_v32, %v6881_v45  ;;  %v3371_v33 = vmul.f32 %v3339_v56, %v3115_v38 }
 0xca8   : > { %v3398_v57 = vpack.c.bf16 %v3378_v31, %v3374_v36  ;;  %v3375_v42 = vmul.f32 %v3343_v13, %v3119_v6  ;;  %v3253_v61 = vadd.f32 %v7242_v47, %v7241_v54  ;;  %v3257_v23 = vadd.f32 %v6987_v37, %v6891_v10  ;;  %v7066_v31 = vld [vmem:[#allocation20] ss:$0 sm:$0xff] }
 0xca9   : > { %v5108_v14 = vpop.eup %5107  ;;  %v3283_v4 = vmul.f32 0.7978846, %v3251_v49  ;;  %v3287_v24 = vmul.f32 0.7978846, %v3255_v63  ;;  %v3117_v30 = vmul.f32 0.5, %v6793_v59  ;;  %v3121_v60 = vmul.f32 0.5, %v6829_v52 }
 0xcaa   : > { %v5110_v44 = vpop.eup %5109  ;;  %3779 = vmatprep.mubr.bf16.mxu0 %v3398_v57  ;;  %v3395_v8 = vpack.c.bf16 %v3375_v42, %v3371_v33  ;;  %v3341_v32 = vadd.f32 1.0, %v5108_v14  ;;  %v3285_v17 = vmul.f32 0.7978846, %v3253_v61  ;;  %v3289_v43 = vmul.f32 0.7978846, %v3257_v23  ;;  %v7243_v23 = vld [vmem:[#allocation32_spill] sm:$0xff] }
 0xcab   : > { %v3345_v1 = vadd.f32 1.0, %v5110_v44  ;;  %5119 = vtanh.f32 %v3283_v4  ;;  %v3124_v59 = vmul.f32 0.5, %v6869_v39  ;;  %v3128_v52 = vmul.f32 0.5, %v6917_v0 }
 0xcac   : > { %3715 = vmatmul.mubr.bf16.gmra.mrb[72].mxu1 %v3395_v8  ;;  %5121 = vtanh.f32 %v3287_v24  ;;  %v3373_v19 = vmul.f32 %v3341_v32, %v3117_v30  ;;  %v3126_v29 = vmul.f32 0.5, %v6878_v3  ;;  %v3130_v20 = vmul.f32 0.5, %v6924_v7  ;;  %v7244_v30 = vld [vmem:[#allocation33_spill] sm:$0xff] }
 0xcad   : > { %v5112_v51 = vpop.eup %5111  ;;  %v3377_v9 = vmul.f32 %v3345_v1, %v3121_v60  ;;  %5123 = vtanh.f32 %v3285_v17  ;;  %v3123_v50 = vmul.f32 0.5, %v6847_v22  ;;  %v3127_v34 = vmul.f32 0.5, %v6881_v45 }
 0xcae   : > { %v3348_v2 = vadd.f32 1.0, %v5112_v51  ;;  %5125 = vtanh.f32 %v3289_v43  ;;  %v3125_v5 = vmul.f32 0.5, %v7241_v54  ;;  %v3129_v12 = vmul.f32 0.5, %v6891_v10 }
 0xcaf   : > { %v5114_v37 = vpop.eup %5113  ;;  %v3397_v15 = vpack.c.bf16 %v3377_v9, %v3373_v19 }
 0xcb0   : > { %v5116_v25 = vpop.eup %5115  ;;  %v3352_v55 = vadd.f32 1.0, %v5114_v37  ;;  %v3380_v62 = vmul.f32 %v3348_v2, %v3124_v59 }
 0xcb1   : > { %v5118_v35 = vpop.eup %5117  ;;  %3780 = vmatmul.mubr.bf16.gmra.mrb[72].mxu0 %v3397_v15  ;;  %v3350_v16 = vadd.f32 1.0, %v5116_v25 }
 0xcb2   : > { %v3384_v46 = vmul.f32 %v3352_v55, %v3128_v52  ;;  %v3354_v48 = vadd.f32 1.0, %v5118_v35 }
 0xcb3   : > { %v3382_v41 = vmul.f32 %v3350_v16, %v3126_v29  ;;  %v7245_v29 = vld [vmem:[#allocation34_spill] sm:$0xff] }
 0xcb4   : > { %v3400_v53 = vpack.c.bf16 %v3384_v46, %v3380_v62  ;;  %v3386_v18 = vmul.f32 %v3354_v48, %v3130_v20  ;;  %v7246_v46 = vld [vmem:[#allocation35_spill] sm:$0xff] }
 0xcb5   : > { %v5120_v26 = vpop.eup %5119 }
 0xcb6   : > { %v5122_v28 = vpop.eup %5121  ;;  %3722 = vmatprep.mubr.bf16.mxu1 %v3400_v53  ;;  %v3402_v39 = vpack.c.bf16 %v3386_v18, %v3382_v41  ;;  %v3347_v21 = vadd.f32 1.0, %v5120_v26 }
 0xcb7   : > { %v5124_v0 = vpop.eup %5123  ;;  %v3351_v3 = vadd.f32 1.0, %v5122_v28 }
 0xcb8   : > { %v5126_v40 = vpop.eup %5125  ;;  %3787 = vmatprep.mubr.bf16.mxu0 %v3402_v39  ;;  %v3349_v7 = vadd.f32 1.0, %v5124_v0  ;;  %v3379_v27 = vmul.f32 %v3347_v21, %v3123_v50 }
 0xcb9   : > { %v3383_v38 = vmul.f32 %v3351_v3, %v3127_v34  ;;  %v3353_v58 = vadd.f32 1.0, %v5126_v40 }
 0xcba   : > { %v3381_v56 = vmul.f32 %v3349_v7, %v3125_v5 }
 0xcbb   : > { %v3399_v6 = vpack.c.bf16 %v3383_v38, %v3379_v27  ;;  %v3385_v11 = vmul.f32 %v3353_v58, %v3129_v12  ;;  %v7247_v27 = vld [vmem:[#allocation36_spill] sm:$0xff]  ;;  %v7248_v58 = vld [vmem:[#allocation37_spill] sm:$0xff] }
 0xcbd   : > { %3723 = vmatmul.mubr.bf16.gmra.mrb[76].mxu1 %v3399_v6  ;;  %v3401_v36 = vpack.c.bf16 %v3385_v11, %v3381_v56 }
 0xcbf   : > { %3788 = vmatmul.mubr.bf16.gmra.mrb[76].mxu0 %v3401_v36 }
 0xd6a   : > { %v4308_v22 = vpop.f32.mrb[64].mxu1 }
 0xd6b   : > { %v4309_v45 = vpop.f32.mrb[65].mxu1 }
 0xd6c   : > { %v4310_v13 = vadd.f32 %v4309_v45, %v4308_v22  ;;  %v4311_v49 = vpop.f32.mrb[66].mxu1 }
 0xd6d   : > { %v4348_v63 = vpop.f32.mrb[64].mxu0  ;;  %v4312_v57 = vpop.f32.mrb[67].mxu1 }
 0xd6e   : > { %v3701_v33 = vadd.f32 %v4310_v13, %v7066_v31  ;;  %v4349_v42 = vpop.f32.mrb[65].mxu0  ;;  %v4313_v10 = vadd.f32 %v4312_v57, %v4311_v49 }
 0xd6f   : > { %v4350_v14 = vadd.f32 %v4349_v42, %v4348_v63  ;;  %v4351_v4 = vpop.f32.mrb[66].mxu0 }
 0xd70   : > { %v3704_v24 = vadd.f32 %v4313_v10, %v7066_v31  ;;  %v4352_v54 = vpop.f32.mrb[67].mxu0 }
 0xd71   : > { %v3766_v47 = vadd.f32 %v4350_v14, %v3701_v33  ;;  %v4353_v61 = vadd.f32 %v4352_v54, %v4351_v4  ;;  %v7249_v54 = vld [vmem:[#allocation38_spill] sm:$0xff] }
 0xd73   : > { %v3796_v44 = vadd.f32 %v3766_v47, %v7243_v23  ;;  %v3769_v8 = vadd.f32 %v4353_v61, %v3704_v24  ;;  %v7251_v23 = vld [vmem:[#allocation39_spill] sm:$0xff] }
 0xd75   : > { %3804 = vst [vmem:[%s7073_s29] sm:$0xff] %v3796_v44  ;;  %v3797_v60 = vadd.f32 %v3769_v8, %v7244_v30  ;;  %v4314_v32 = vpop.f32.mrb[68].mxu1 }
 0xd76   : > { %v4315_v1 = vpop.f32.mrb[69].mxu1 }
 0xd77   : > { %3805 = vst [vmem:[%s7073_s29 + $0x8] sm:$0xff] %v3797_v60  ;;  %v4354_v17 = vpop.f32.mrb[68].mxu0  ;;  %v4316_v43 = vadd.f32 %v4315_v1, %v4314_v32  ;;  %v4317_v51 = vpop.f32.mrb[70].mxu1 }
 0xd78   : > { %v4355_v19 = vpop.f32.mrb[69].mxu0  ;;  %v4318_v9 = vpop.f32.mrb[71].mxu1 }
 0xd79   : > { %v3709_v2 = vadd.f32 %v4316_v43, %v7066_v31  ;;  %v4356_v37 = vadd.f32 %v4355_v19, %v4354_v17  ;;  %v4357_v15 = vpop.f32.mrb[70].mxu0  ;;  %v4319_v25 = vadd.f32 %v4318_v9, %v4317_v51 }
 0xd7a   : > { %v4358_v59 = vpop.f32.mrb[71].mxu0 }
 0xd7b   : > { %v3774_v52 = vadd.f32 %v4356_v37, %v3709_v2  ;;  %v3712_v55 = vadd.f32 %v4319_v25, %v7066_v31  ;;  %v4359_v35 = vadd.f32 %v4358_v59, %v4357_v15 }
 0xd7d   : > { %v3798_v16 = vadd.f32 %v3774_v52, %v7245_v29  ;;  %v3777_v62 = vadd.f32 %v4359_v35, %v3712_v55 }
 0xd7f   : > { %3806 = vst [vmem:[%s7073_s29 + $0x10] sm:$0xff] %v3798_v16  ;;  %v3799_v20 = vadd.f32 %v3777_v62, %v7246_v46  ;;  %v4320_v48 = vpop.f32.mrb[72].mxu1 }
 0xd80   : > { %v4321_v53 = vpop.f32.mrb[73].mxu1 }
 0xd81   : > { %3807 = vst [vmem:[%s7073_s29 + $0x18] sm:$0xff] %v3799_v20  ;;  %v4322_v41 = vadd.f32 %v4321_v53, %v4320_v48  ;;  %v4323_v18 = vpop.f32.mrb[74].mxu1 }
 0xd82   : > { %v4324_v26 = vpop.f32.mrb[75].mxu1 }
 0xd83   : > { %v4325_v28 = vadd.f32 %v4324_v26, %v4323_v18  ;;  %v3717_v21 = vadd.f32 %v4322_v41, %v7066_v31 }
 0xd84   : > { %v4360_v39 = vpop.f32.mrb[72].mxu0 }
 0xd85   : > { %v4361_v0 = vpop.f32.mrb[73].mxu0  ;;  %v3720_v3 = vadd.f32 %v4325_v28, %v7066_v31 }
 0xd86   : > { %v4362_v50 = vadd.f32 %v4361_v0, %v4360_v39  ;;  %v4363_v34 = vpop.f32.mrb[74].mxu0 }
 0xd87   : > { %v4364_v40 = vpop.f32.mrb[75].mxu0 }
 0xd88   : > { %v3782_v5 = vadd.f32 %v4362_v50, %v3717_v21  ;;  %v4365_v7 = vadd.f32 %v4364_v40, %v4363_v34 }
 0xd8a   : > { %v3800_v38 = vadd.f32 %v3782_v5, %v7247_v27  ;;  %v3785_v12 = vadd.f32 %v4365_v7, %v3720_v3 }
 0xd8c   : > { %3808 = vst [vmem:[%s7073_s29 + $0x20] sm:$0xff] %v3800_v38  ;;  %v3801_v6 = vadd.f32 %v3785_v12, %v7248_v58 }
 0xd8e   : > { %3809 = vst [vmem:[%s7073_s29 + $0x28] sm:$0xff] %v3801_v6 }
 0xd90   : > { %v4326_v56 = vpop.f32.mrb[76].mxu1 }
 0xd91   : > { %v4327_v11 = vpop.f32.mrb[77].mxu1 }
 0xd92   : > { %v4366_v36 = vpop.f32.mrb[76].mxu0  ;;  %v4328_v22 = vadd.f32 %v4327_v11, %v4326_v56  ;;  %v4329_v45 = vpop.f32.mrb[78].mxu1 }
 0xd93   : > { %v4367_v13 = vpop.f32.mrb[77].mxu0  ;;  %v4330_v49 = vpop.f32.mrb[79].mxu1 }
 0xd94   : > { %v3725_v63 = vadd.f32 %v4328_v22, %v7066_v31  ;;  %v4368_v57 = vadd.f32 %v4367_v13, %v4366_v36  ;;  %v4369_v33 = vpop.f32.mrb[78].mxu0  ;;  %v4331_v42 = vadd.f32 %v4330_v49, %v4329_v45 }
 0xd95   : > { %v4370_v10 = vpop.f32.mrb[79].mxu0 }
 0xd96   : > { %v3790_v14 = vadd.f32 %v4368_v57, %v3725_v63  ;;  %v3728_v4 = vadd.f32 %v4331_v42, %v7066_v31  ;;  %v4371_v24 = vadd.f32 %v4370_v10, %v4369_v33 }
 0xd98   : > { %v3802_v47 = vadd.f32 %v3790_v14, %v7249_v54  ;;  %v3793_v61 = vadd.f32 %v4371_v24, %v3728_v4 }
 0xd9a   : > { %3810 = vst [vmem:[%s7073_s29 + $0x30] sm:$0xff] %v3802_v47  ;;  %v3803_v44 = vadd.f32 %v3793_v61, %v7251_v23 }
 0xd9c   : > { %3811 = vst [vmem:[%s7073_s29 + $0x38] sm:$0xff] %v3803_v44 }
 0xd9d   : > { %5486 = shalt.err (!%p5483_p9)
}
 0xd9e   : > { %s5487_s15 = scalar_lea.hbm %s7098_s14, 1024  ;;  %s5491_s12 = scalar_lea.hbm %s7250_s16, 2048 }
 0xd9f   : > { %p5488_p7 = scmp.ne.s32.totalorder %s7098_s14, %s5487_s15  ;;  %p5492_p13 = scmp.lt.u32.totalorder %s7098_s14, %s7250_s16 }
 0xda0   : > { %p5493_p1 = scmp.lt.u32.totalorder %s5491_s12, %s5487_s15  ;;  %p5495_p2 = scmp.lt.u32.totalorder %s5487_s15, %s7098_s14 }
 0xda1   : > { %p5489_p10 = pnand %p5488_p7, %p7252_p8 }
 0xda2   : > { %p5494_p3 = por %p5493_p1, %p5492_p13 }
 0xda3   : > { %p5490_p4 = pneg %p5489_p10 }
 0xda4   : > { %p5496_p6 = por %p5495_p2, %p5494_p3 }
 0xda6   : > { %p5497_p11 = pnand %p5496_p6, %p5490_p4 }
 0xda8   : > { %5500 = shalt.err (!%p5497_p11)
}
 0xda9   : > { %s5590_s27 = smov 128   ;;  %s5591_s18 = smov 8  }
 0xdaa   : > { %4658 = dma.vmem_to_hbm [thread:$0]  (%p7252_p8), %s7100_s19, 1024, %s7098_s14, %s3813_s30, %s5590_s27, %s5590_s27, %s5591_s18  }
 0xdab PF: > { %s3841_s1 = sand.u32 1, %s5551_s21   ;;  %p7253_p12 = scmp.ne.s32.totalorder %s7201_s2, 0 }
 0xdac   : > { %p7254_p0 = scmp.ge.s32.totalorder %s5563_s24, 2  ;;  %s3842_s28 = scalar_lea.sflag [#allocation4], %s3841_s1 }
 0xdae   : > { %p4699_p5 = pnand %p7254_p0, %p7253_p12 }
 0xdb0   : > { %5546 = dma.done.wait (!%p4699_p5), %s3842_s28, 1024  }
 0xdb1   : > { %5548 = vsyncadd (!%p4699_p5), %s3842_s28, 4294966272  ;;  %p31_p9 = scmp.ge.s32.totalorder %s5931_s13, 4   ;;  %s7255_s21 = smov %s5555_s22 }
 0xdb2   : > { %s7256_s22 = smov %s5559_s23  ;;  %s7257_s23 = smov %s5943_s20 }
 0xdb3   : > { %s7258_s24 = smov %s5931_s13  ;;  %33 = sbr.rel (!%p31_p9) target bundleno = 17 (0x11), region = 157 }
 0xdba   :  { %3847 = vsyncpa [#allocation3], 1 }
 0xdbb   :  { %3849 = vsyncpa [#allocation3 + $0x1], 1 }
 0xdbc   :  { %3850 = vsyncpa [#allocation6], 1 }
 0xdbd   :  { %3851 = vsyncpa [#allocation9], 1 }
 0xdbe   :  { %3852 = vsyncpa [#allocation12], 1 }
 0xdbf   :  { %3853 = vsyncpa [#allocation15], 1 }
 0xdc0   :  { %3854 = vsyncpa [#allocation18], 1 }
 0xdc1   :  { %3855 = vsyncpa [#allocation21], 1 }
 0xdc2   :  { %3856 = vsyncpa [#allocation4], 1 }
 0xdc3   :  { %3858 = vsyncpa [#allocation4 + $0x1], 1 }

</bundles_post_ra>
